<compile_context>
chip_gen: v7x
topology: tpu7x:2x2x1
jax: 0.10.0
libtpu: 0.0.40
codegen_flags: <defaults>
</compile_context>

<pallas_src>
import functools

import jax
import jax.numpy as jnp
from jax import lax
from jax.experimental import pallas as pl
from jax.experimental.pallas import tpu as pltpu

# problem sizes (small, deterministic)
R = 64        # rays in batch
S = 16        # samples per ray
F_PAD = 8     # xyz (+ delta in lane 3) padded to 8 input features
HID = 128     # hidden width (lane aligned)
OUT = 4       # sigma + rgb
N = R * S     # flattened sample rows (sample-major: row = s * R + r)


def _render_loss_kernel(pts_ref, gt_ref,
                        w1_ref, b1_ref, w2_ref, b2_ref, w3_ref, b3_ref,
                        rmap_ref, stats_ref, *, rays, samples):
    # ---- NeRF MLP over flattened (sample*ray, feature) rows: bf16 MXU, f32 acc
    xb = pts_ref[...].astype(jnp.bfloat16)                            # (N, F_PAD)
    h = jnp.dot(xb, w1_ref[...], preferred_element_type=jnp.float32) + b1_ref[...]
    h = jnp.maximum(h, 0.0)
    h = jnp.dot(h.astype(jnp.bfloat16), w2_ref[...],
                preferred_element_type=jnp.float32) + b2_ref[...]
    h = jnp.maximum(h, 0.0)
    out = jnp.dot(h.astype(jnp.bfloat16), w3_ref[...],
                  preferred_element_type=jnp.float32) + b3_ref[...]   # (N, 4)

    # ---- volume rendering: exact sequential transmittance over S samples ----
    # rows are sample-major, so sample s of all rays is the contiguous,
    # sublane-aligned block [s*rays, (s+1)*rays).  Loop is fully unrolled.
    rgb_map = jnp.zeros((rays, 3), jnp.float32)
    acc_map = jnp.zeros((rays, 1), jnp.float32)
    trans = jnp.ones((rays, 1), jnp.float32)
    for s in range(samples):
        blk = out[s * rays:(s + 1) * rays, :]                         # (R, 4)
        delta = pts_ref[s * rays:(s + 1) * rays, 3:4]                 # (R, 1) f32
        sigma = jnp.maximum(blk[:, 0:1], 0.0)
        rgb = jax.nn.sigmoid(blk[:, 1:4])
        alpha = 1.0 - jnp.exp(-sigma * delta)
        w = alpha * trans
        rgb_map = rgb_map + w * rgb
        acc_map = acc_map + w
        trans = trans * (1.0 - alpha + 1e-10)

    # merged (R, 4) output block: [rgb_map | acc_map]
    rmap_ref[...] = jnp.concatenate([rgb_map, acc_map], axis=1)

    # ---- loss / scalar-stat sums (single grid step -> write once) -----------
    gt = gt_ref[...]                                                  # (R, 3)
    sse = jnp.sum((rgb_map - gt) ** 2, keepdims=True)                 # (1, 1)
    srm = jnp.sum(rgb_map, keepdims=True)
    sac = jnp.sum(acc_map, keepdims=True)
    sgt = jnp.sum(gt, keepdims=True)
    lane = lax.broadcasted_iota(jnp.int32, (1, 8), 1)
    stats_ref[...] = (jnp.where(lane == 0, sse, 0.0)
                      + jnp.where(lane == 1, srm, 0.0)
                      + jnp.where(lane == 2, sac, 0.0)
                      + jnp.where(lane == 3, sgt, 0.0))


def _pallas_render_and_stats(pts_delta, rgb_gt, params):
    w1, b1, w2, b2, w3, b3 = params
    kernel = functools.partial(_render_loss_kernel, rays=R, samples=S)
    return pl.pallas_call(
        kernel,
        grid=(1,),
        in_specs=[
            pl.BlockSpec((N, F_PAD), lambda i: (0, 0)),   # pts (xyz + delta lane)
            pl.BlockSpec((R, 3), lambda i: (0, 0)),       # rgb ground truth
            pl.BlockSpec((F_PAD, HID), lambda i: (0, 0)),  # w1 (bf16)
            pl.BlockSpec((1, HID), lambda i: (0, 0)),      # b1
            pl.BlockSpec((HID, HID), lambda i: (0, 0)),    # w2 (bf16)
            pl.BlockSpec((1, HID), lambda i: (0, 0)),      # b2
            pl.BlockSpec((HID, OUT), lambda i: (0, 0)),    # w3 (bf16)
            pl.BlockSpec((1, OUT), lambda i: (0, 0)),      # b3
        ],
        out_specs=[
            pl.BlockSpec((R, OUT), lambda i: (0, 0)),      # [rgb_map | acc_map]
            pl.BlockSpec((1, 8), lambda i: (0, 0)),        # stat sums
        ],
        out_shape=[
            jax.ShapeDtypeStruct((R, OUT), jnp.float32),
            jax.ShapeDtypeStruct((1, 8), jnp.float32),
        ],
        compiler_params=pltpu.CompilerParams(
            dimension_semantics=("arbitrary",)),
    )(pts_delta, rgb_gt, w1, b1, w2, b2, w3, b3)


def render_wrapper_forward(params, batch, loss_weights):
    """Equivalent of RenderWrapper.forward: returns (ret, loss, scalar_stats, image_stats)."""
    ray_o = batch['ray_o'].astype(jnp.float32)       # (R, 3)
    ray_d = batch['ray_d'].astype(jnp.float32)       # (R, 3)
    z_vals = batch['z_vals'].astype(jnp.float32)     # (R, S)
    rgb_gt = batch['rgb'].astype(jnp.float32)        # (R, 3)

    # glue: sample-major point / delta construction (layout plumbing, kept in JAX).
    z_t = z_vals.T                                                     # (S, R)
    pts = ray_o[None, :, :] + ray_d[None, :, :] * z_t[:, :, None]      # (S, R, 3)
    deltas = jnp.concatenate(
        [z_vals[:, 1:] - z_vals[:, :-1],
         jnp.full((R, 1), 1e10, dtype=jnp.float32)], axis=1)           # (R, S)
    pts_delta = jnp.concatenate(
        [pts.reshape(N, 3), deltas.T.reshape(N, 1),
         jnp.zeros((N, F_PAD - 4), jnp.float32)], axis=1)              # (N, 8)

    render_map, stats = _pallas_render_and_stats(pts_delta, rgb_gt, params)
    rgb_map = render_map[:, 0:3]
    acc_map = render_map[:, 3:4]

    sse = stats[0, 0]
    sum_rgb_map = stats[0, 1]
    sum_acc_map = stats[0, 2]
    sum_rgb_gt = stats[0, 3]

    mse_rgb = sse / (R * 3)
    loss = loss_weights['rgb'] * mse_rgb

    ret = {'rgb_map': rgb_map, 'acc_map': acc_map}
    scalar_stats = {
        'rgb': mse_rgb,                       # per-loss value (loss.items())
        'rgb_map': sum_rgb_map / (R * 3),     # ret['rgb_map'].mean()
        'acc_map': sum_acc_map / R,           # ret['acc_map'].mean()
        'mean_rgb': sum_rgb_gt / (R * 3),     # batch['rgb'].mean()
        'loss': loss,
    }
    image_stats = {}
    return ret, loss, scalar_stats, image_stats


# ----------------------------- pure-JAX reference ------------------------------
def _reference_forward(params, batch, loss_weights):
    w1, b1, w2, b2, w3, b3 = params           # w* are bf16, b* are f32
    ray_o, ray_d, z, rgb_gt = (batch['ray_o'], batch['ray_d'],
                               batch['z_vals'], batch['rgb'])
    pts = ray_o[:, None, :] + ray_d[:, None, :] * z[..., None]         # (R, S, 3)
    x = pts.reshape(R * S, 3).astype(jnp.bfloat16)
    h = jax.nn.relu(jnp.dot(x, w1[:3], preferred_element_type=jnp.float32) + b1)
    h = jax.nn.relu(jnp.dot(h.astype(jnp.bfloat16), w2,
                            preferred_element_type=jnp.float32) + b2)
    out = jnp.dot(h.astype(jnp.bfloat16), w3,
                  preferred_element_type=jnp.float32) + b3
    sigma = jax.nn.relu(out[:, 0]).reshape(R, S)
    rgb = jax.nn.sigmoid(out[:, 1:4]).reshape(R, S, 3)
    deltas = jnp.concatenate([z[:, 1:] - z[:, :-1],
                              jnp.full((R, 1), 1e10, jnp.float32)], axis=1)
    alpha = 1.0 - jnp.exp(-sigma * deltas)
    trans = jnp.cumprod(
        jnp.concatenate([jnp.ones((R, 1)), 1.0 - alpha + 1e-10], axis=1),
        axis=1)[:, :-1]
    w = alpha * trans
    rgb_map = jnp.sum(w[..., None] * rgb, axis=1)
    acc_map = jnp.sum(w, axis=1, keepdims=True)
    mse = jnp.mean((rgb_map - rgb_gt) ** 2)
    loss = loss_weights['rgb'] * mse
    return rgb_map, acc_map, loss


if __name__ == "__main__":
    key = jax.random.PRNGKey(0)
    k = jax.random.split(key, 10)

    # deterministic synthetic "net" parameters (3-layer MLP -> sigma + rgb)
    w1 = 0.3 * jax.random.normal(k[0], (F_PAD, HID), jnp.float32)
    w1 = w1.at[3:].set(0.0)      # rows 3..7 unused (lane 3 carries delta)
    b1 = 0.01 * jax.random.normal(k[1], (1, HID), jnp.float32)
    w2 = 0.1 * jax.random.normal(k[2], (HID, HID), jnp.float32)
    b2 = 0.01 * jax.random.normal(k[3], (1, HID), jnp.float32)
    w3 = 0.1 * jax.random.normal(k[4], (HID, OUT), jnp.float32)
    b3 = 0.01 * jax.random.normal(k[5], (1, OUT), jnp.float32)
    # MXU-native bf16 weights; f32 accumulation in both kernel and reference.
    params = (w1.astype(jnp.bfloat16), b1,
              w2.astype(jnp.bfloat16), b2,
              w3.astype(jnp.bfloat16), b3)

    # deterministic synthetic ray batch
    ray_o = jax.random.normal(k[6], (R, 3), jnp.float32) * 0.1
    ray_d = jax.random.normal(k[7], (R, 3), jnp.float32)
    ray_d = ray_d / jnp.linalg.norm(ray_d, axis=-1, keepdims=True)
    base_z = jnp.linspace(2.0, 6.0, S, dtype=jnp.float32)
    z_vals = base_z[None, :] + 0.05 * jax.random.uniform(k[8], (R, S), jnp.float32)
    rgb = jax.random.uniform(k[9], (R, 3), jnp.float32)
    batch = {'ray_o': ray_o, 'ray_d': ray_d, 'z_vals': z_vals, 'rgb': rgb}

    loss_weights = {'rgb': 1.0}   # self.weights from the loss config

    ret, loss, scalar_stats, image_stats = render_wrapper_forward(params, batch, loss_weights)
    jax.block_until_ready((ret, loss, scalar_stats))

    # sanity check vs pure-JAX reference (same bf16 MLP quantization, f32 rendering)
    ref_rgb_map, ref_acc_map, ref_loss = _reference_forward(params, batch, loss_weights)
    assert jnp.allclose(ret['rgb_map'], ref_rgb_map, rtol=1e-2, atol=1e-2)
    assert jnp.allclose(ret['acc_map'], ref_acc_map, rtol=1e-2, atol=1e-2)
    assert jnp.allclose(loss, ref_loss, rtol=1e-2, atol=1e-2)
    assert image_stats == {}

    print("KERNEL_OK")
</pallas_src>

<mosaic_0001>
module attributes {stable_mosaic.version = 11 : i64} {
  func.func @_render_loss_kernel(%arg0: i32, %arg1: memref<1024x8xf32, #tpu.memory_space<vmem>>, %arg2: memref<64x3xf32, #tpu.memory_space<vmem>>, %arg3: memref<8x128xbf16, #tpu.memory_space<vmem>>, %arg4: memref<1x128xf32, #tpu.memory_space<vmem>>, %arg5: memref<128x128xbf16, #tpu.memory_space<vmem>>, %arg6: memref<1x128xf32, #tpu.memory_space<vmem>>, %arg7: memref<128x4xbf16, #tpu.memory_space<vmem>>, %arg8: memref<1x4xf32, #tpu.memory_space<vmem>>, %arg9: memref<64x4xf32, #tpu.memory_space<vmem>>, %arg10: memref<1x8xf32, #tpu.memory_space<vmem>>) attributes {dimension_semantics = [#tpu.dimension_semantics<arbitrary>], iteration_bounds = array<i64: 1>, scalar_prefetch = 0 : i64, scratch_operands = 0 : i64, tpu.core_type = #tpu.core_type<tc>, window_params = [{pipeline_mode = #tpu.pipeline_mode<synchronous>, transform_indices = @transform_0, window_bounds = array<i64: 1024, 8>}, {pipeline_mode = #tpu.pipeline_mode<synchronous>, transform_indices = @transform_1, window_bounds = array<i64: 64, 3>}, {pipeline_mode = #tpu.pipeline_mode<synchronous>, transform_indices = @transform_2, window_bounds = array<i64: 8, 128>}, {pipeline_mode = #tpu.pipeline_mode<synchronous>, transform_indices = @transform_3, window_bounds = array<i64: 1, 128>}, {pipeline_mode = #tpu.pipeline_mode<synchronous>, transform_indices = @transform_4, window_bounds = array<i64: 128, 128>}, {pipeline_mode = #tpu.pipeline_mode<synchronous>, transform_indices = @transform_5, window_bounds = array<i64: 1, 128>}, {pipeline_mode = #tpu.pipeline_mode<synchronous>, transform_indices = @transform_6, window_bounds = array<i64: 128, 4>}, {pipeline_mode = #tpu.pipeline_mode<synchronous>, transform_indices = @transform_7, window_bounds = array<i64: 1, 4>}, {pipeline_mode = #tpu.pipeline_mode<synchronous>, transform_indices = @transform_8, window_bounds = array<i64: 64, 4>}, {pipeline_mode = #tpu.pipeline_mode<synchronous>, transform_indices = @transform_9, window_bounds = array<i64: 1, 8>}]} {
    %c0 = arith.constant 0 : index
    %c0_0 = arith.constant 0 : index
    %0 = vector.load %arg1[%c0, %c0_0] : memref<1024x8xf32, #tpu.memory_space<vmem>>, vector<1024x8xf32>
    %1 = arith.truncf %0 : vector<1024x8xf32> to vector<1024x8xbf16>
    %c0_1 = arith.constant 0 : index
    %c0_2 = arith.constant 0 : index
    %2 = vector.load %arg3[%c0_1, %c0_2] : memref<8x128xbf16, #tpu.memory_space<vmem>>, vector<8x128xbf16>
    %cst = arith.constant dense<0.000000e+00> : vector<1024x128xf32>
    %3 = tpu.matmul %1, %2, %cst {dimension_numbers = #tpu.dot_dimension_numbers<[1], [0], [0], [1], [0, 0, 1, 1], [], []>} : vector<1024x8xbf16>, vector<8x128xbf16>, vector<1024x128xf32> -> vector<1024x128xf32>
    %c0_3 = arith.constant 0 : index
    %c0_4 = arith.constant 0 : index
    %4 = vector.load %arg4[%c0_3, %c0_4] : memref<1x128xf32, #tpu.memory_space<vmem>>, vector<1x128xf32>
    %5 = vector.broadcast %4 : vector<1x128xf32> to vector<1024x128xf32>
    %6 = arith.addf %3, %5 : vector<1024x128xf32>
    %cst_5 = arith.constant 0.000000e+00 : f32
    %7 = vector.broadcast %cst_5 : f32 to vector<1024x128xf32>
    %8 = arith.maximumf %6, %7 : vector<1024x128xf32>
    %9 = arith.truncf %8 : vector<1024x128xf32> to vector<1024x128xbf16>
    %c0_6 = arith.constant 0 : index
    %c0_7 = arith.constant 0 : index
    %10 = vector.load %arg5[%c0_6, %c0_7] : memref<128x128xbf16, #tpu.memory_space<vmem>>, vector<128x128xbf16>
    %cst_8 = arith.constant dense<0.000000e+00> : vector<1024x128xf32>
    %11 = tpu.matmul %9, %10, %cst_8 {dimension_numbers = #tpu.dot_dimension_numbers<[1], [0], [0], [1], [0, 0, 1, 1], [], []>} : vector<1024x128xbf16>, vector<128x128xbf16>, vector<1024x128xf32> -> vector<1024x128xf32>
    %c0_9 = arith.constant 0 : index
    %c0_10 = arith.constant 0 : index
    %12 = vector.load %arg6[%c0_9, %c0_10] : memref<1x128xf32, #tpu.memory_space<vmem>>, vector<1x128xf32>
    %13 = vector.broadcast %12 : vector<1x128xf32> to vector<1024x128xf32>
    %14 = arith.addf %11, %13 : vector<1024x128xf32>
    %cst_11 = arith.constant 0.000000e+00 : f32
    %15 = vector.broadcast %cst_11 : f32 to vector<1024x128xf32>
    %16 = arith.maximumf %14, %15 : vector<1024x128xf32>
    %17 = arith.truncf %16 : vector<1024x128xf32> to vector<1024x128xbf16>
    %c0_12 = arith.constant 0 : index
    %c0_13 = arith.constant 0 : index
    %18 = vector.load %arg7[%c0_12, %c0_13] : memref<128x4xbf16, #tpu.memory_space<vmem>>, vector<128x4xbf16>
    %cst_14 = arith.constant dense<0.000000e+00> : vector<1024x4xf32>
    %19 = tpu.matmul %17, %18, %cst_14 {dimension_numbers = #tpu.dot_dimension_numbers<[1], [0], [0], [1], [0, 0, 1, 1], [], []>} : vector<1024x128xbf16>, vector<128x4xbf16>, vector<1024x4xf32> -> vector<1024x4xf32>
    %c0_15 = arith.constant 0 : index
    %c0_16 = arith.constant 0 : index
    %20 = vector.load %arg8[%c0_15, %c0_16] : memref<1x4xf32, #tpu.memory_space<vmem>>, vector<1x4xf32>
    %21 = vector.broadcast %20 : vector<1x4xf32> to vector<1024x4xf32>
    %22 = arith.addf %19, %21 : vector<1024x4xf32>
    %cst_17 = arith.constant 0.000000e+00 : f32
    %23 = vector.broadcast %cst_17 : f32 to vector<64x3xf32>
    %cst_18 = arith.constant 0.000000e+00 : f32
    %24 = vector.broadcast %cst_18 : f32 to vector<64x1xf32>
    %cst_19 = arith.constant 1.000000e+00 : f32
    %25 = vector.broadcast %cst_19 : f32 to vector<64x1xf32>
    %26 = vector.extract_strided_slice %22 {offsets = [0, 0], sizes = [64, 4], strides = [1, 1]} : vector<1024x4xf32> to vector<64x4xf32>
    %c0_20 = arith.constant 0 : index
    %c3 = arith.constant 3 : index
    %27 = vector.load %arg1[%c0_20, %c3] : memref<1024x8xf32, #tpu.memory_space<vmem>>, vector<64x1xf32>
    %28 = vector.extract_strided_slice %26 {offsets = [0, 0], sizes = [64, 1], strides = [1, 1]} : vector<64x4xf32> to vector<64x1xf32>
    %cst_21 = arith.constant 0.000000e+00 : f32
    %29 = vector.broadcast %cst_21 : f32 to vector<64x1xf32>
    %30 = arith.maximumf %28, %29 : vector<64x1xf32>
    %31 = vector.extract_strided_slice %26 {offsets = [0, 1], sizes = [64, 3], strides = [1, 1]} : vector<64x4xf32> to vector<64x3xf32>
    %32 = arith.negf %31 : vector<64x3xf32>
    %33 = math.exp %32 : vector<64x3xf32>
    %cst_22 = arith.constant 1.000000e+00 : f32
    %34 = vector.broadcast %cst_22 : f32 to vector<64x3xf32>
    %35 = arith.addf %34, %33 : vector<64x3xf32>
    %36 = arith.divf %34, %35 : vector<64x3xf32>
    %cst_23 = arith.constant 0.000000e+00 : f32
    %37 = vector.broadcast %cst_23 : f32 to vector<64x1xf32>
    %38 = arith.subf %37, %30 : vector<64x1xf32>
    %39 = arith.mulf %38, %27 : vector<64x1xf32>
    %40 = math.exp %39 : vector<64x1xf32>
    %cst_24 = arith.constant 1.000000e+00 : f32
    %41 = vector.broadcast %cst_24 : f32 to vector<64x1xf32>
    %42 = arith.subf %41, %40 : vector<64x1xf32>
    %43 = arith.mulf %42, %25 : vector<64x1xf32>
    %44 = vector.broadcast %43 : vector<64x1xf32> to vector<64x3xf32>
    %45 = arith.mulf %44, %36 : vector<64x3xf32>
    %46 = arith.addf %23, %45 : vector<64x3xf32>
    %47 = arith.addf %24, %43 : vector<64x1xf32>
    %cst_25 = arith.constant 1.000000e+00 : f32
    %48 = vector.broadcast %cst_25 : f32 to vector<64x1xf32>
    %49 = arith.subf %48, %42 : vector<64x1xf32>
    %cst_26 = arith.constant 1.000000e-10 : f32
    %50 = vector.broadcast %cst_26 : f32 to vector<64x1xf32>
    %51 = arith.addf %49, %50 : vector<64x1xf32>
    %52 = arith.mulf %25, %51 : vector<64x1xf32>
    %53 = vector.extract_strided_slice %22 {offsets = [64, 0], sizes = [64, 4], strides = [1, 1]} : vector<1024x4xf32> to vector<64x4xf32>
    %c64 = arith.constant 64 : index
    %c3_27 = arith.constant 3 : index
    %54 = vector.load %arg1[%c64, %c3_27] : memref<1024x8xf32, #tpu.memory_space<vmem>>, vector<64x1xf32>
    %55 = vector.extract_strided_slice %53 {offsets = [0, 0], sizes = [64, 1], strides = [1, 1]} : vector<64x4xf32> to vector<64x1xf32>
    %cst_28 = arith.constant 0.000000e+00 : f32
    %56 = vector.broadcast %cst_28 : f32 to vector<64x1xf32>
    %57 = arith.maximumf %55, %56 : vector<64x1xf32>
    %58 = vector.extract_strided_slice %53 {offsets = [0, 1], sizes = [64, 3], strides = [1, 1]} : vector<64x4xf32> to vector<64x3xf32>
    %59 = arith.negf %58 : vector<64x3xf32>
    %60 = math.exp %59 : vector<64x3xf32>
    %cst_29 = arith.constant 1.000000e+00 : f32
    %61 = vector.broadcast %cst_29 : f32 to vector<64x3xf32>
    %62 = arith.addf %61, %60 : vector<64x3xf32>
    %63 = arith.divf %61, %62 : vector<64x3xf32>
    %cst_30 = arith.constant 0.000000e+00 : f32
    %64 = vector.broadcast %cst_30 : f32 to vector<64x1xf32>
    %65 = arith.subf %64, %57 : vector<64x1xf32>
    %66 = arith.mulf %65, %54 : vector<64x1xf32>
    %67 = math.exp %66 : vector<64x1xf32>
    %cst_31 = arith.constant 1.000000e+00 : f32
    %68 = vector.broadcast %cst_31 : f32 to vector<64x1xf32>
    %69 = arith.subf %68, %67 : vector<64x1xf32>
    %70 = arith.mulf %69, %52 : vector<64x1xf32>
    %71 = vector.broadcast %70 : vector<64x1xf32> to vector<64x3xf32>
    %72 = arith.mulf %71, %63 : vector<64x3xf32>
    %73 = arith.addf %46, %72 : vector<64x3xf32>
    %74 = arith.addf %47, %70 : vector<64x1xf32>
    %cst_32 = arith.constant 1.000000e+00 : f32
    %75 = vector.broadcast %cst_32 : f32 to vector<64x1xf32>
    %76 = arith.subf %75, %69 : vector<64x1xf32>
    %cst_33 = arith.constant 1.000000e-10 : f32
    %77 = vector.broadcast %cst_33 : f32 to vector<64x1xf32>
    %78 = arith.addf %76, %77 : vector<64x1xf32>
    %79 = arith.mulf %52, %78 : vector<64x1xf32>
    %80 = vector.extract_strided_slice %22 {offsets = [128, 0], sizes = [64, 4], strides = [1, 1]} : vector<1024x4xf32> to vector<64x4xf32>
    %c128 = arith.constant 128 : index
    %c3_34 = arith.constant 3 : index
    %81 = vector.load %arg1[%c128, %c3_34] : memref<1024x8xf32, #tpu.memory_space<vmem>>, vector<64x1xf32>
    %82 = vector.extract_strided_slice %80 {offsets = [0, 0], sizes = [64, 1], strides = [1, 1]} : vector<64x4xf32> to vector<64x1xf32>
    %cst_35 = arith.constant 0.000000e+00 : f32
    %83 = vector.broadcast %cst_35 : f32 to vector<64x1xf32>
    %84 = arith.maximumf %82, %83 : vector<64x1xf32>
    %85 = vector.extract_strided_slice %80 {offsets = [0, 1], sizes = [64, 3], strides = [1, 1]} : vector<64x4xf32> to vector<64x3xf32>
    %86 = arith.negf %85 : vector<64x3xf32>
    %87 = math.exp %86 : vector<64x3xf32>
    %cst_36 = arith.constant 1.000000e+00 : f32
    %88 = vector.broadcast %cst_36 : f32 to vector<64x3xf32>
    %89 = arith.addf %88, %87 : vector<64x3xf32>
    %90 = arith.divf %88, %89 : vector<64x3xf32>
    %cst_37 = arith.constant 0.000000e+00 : f32
    %91 = vector.broadcast %cst_37 : f32 to vector<64x1xf32>
    %92 = arith.subf %91, %84 : vector<64x1xf32>
    %93 = arith.mulf %92, %81 : vector<64x1xf32>
    %94 = math.exp %93 : vector<64x1xf32>
    %cst_38 = arith.constant 1.000000e+00 : f32
    %95 = vector.broadcast %cst_38 : f32 to vector<64x1xf32>
    %96 = arith.subf %95, %94 : vector<64x1xf32>
    %97 = arith.mulf %96, %79 : vector<64x1xf32>
    %98 = vector.broadcast %97 : vector<64x1xf32> to vector<64x3xf32>
    %99 = arith.mulf %98, %90 : vector<64x3xf32>
    %100 = arith.addf %73, %99 : vector<64x3xf32>
    %101 = arith.addf %74, %97 : vector<64x1xf32>
    %cst_39 = arith.constant 1.000000e+00 : f32
    %102 = vector.broadcast %cst_39 : f32 to vector<64x1xf32>
    %103 = arith.subf %102, %96 : vector<64x1xf32>
    %cst_40 = arith.constant 1.000000e-10 : f32
    %104 = vector.broadcast %cst_40 : f32 to vector<64x1xf32>
    %105 = arith.addf %103, %104 : vector<64x1xf32>
    %106 = arith.mulf %79, %105 : vector<64x1xf32>
    %107 = vector.extract_strided_slice %22 {offsets = [192, 0], sizes = [64, 4], strides = [1, 1]} : vector<1024x4xf32> to vector<64x4xf32>
    %c192 = arith.constant 192 : index
    %c3_41 = arith.constant 3 : index
    %108 = vector.load %arg1[%c192, %c3_41] : memref<1024x8xf32, #tpu.memory_space<vmem>>, vector<64x1xf32>
    %109 = vector.extract_strided_slice %107 {offsets = [0, 0], sizes = [64, 1], strides = [1, 1]} : vector<64x4xf32> to vector<64x1xf32>
    %cst_42 = arith.constant 0.000000e+00 : f32
    %110 = vector.broadcast %cst_42 : f32 to vector<64x1xf32>
    %111 = arith.maximumf %109, %110 : vector<64x1xf32>
    %112 = vector.extract_strided_slice %107 {offsets = [0, 1], sizes = [64, 3], strides = [1, 1]} : vector<64x4xf32> to vector<64x3xf32>
    %113 = arith.negf %112 : vector<64x3xf32>
    %114 = math.exp %113 : vector<64x3xf32>
    %cst_43 = arith.constant 1.000000e+00 : f32
    %115 = vector.broadcast %cst_43 : f32 to vector<64x3xf32>
    %116 = arith.addf %115, %114 : vector<64x3xf32>
    %117 = arith.divf %115, %116 : vector<64x3xf32>
    %cst_44 = arith.constant 0.000000e+00 : f32
    %118 = vector.broadcast %cst_44 : f32 to vector<64x1xf32>
    %119 = arith.subf %118, %111 : vector<64x1xf32>
    %120 = arith.mulf %119, %108 : vector<64x1xf32>
    %121 = math.exp %120 : vector<64x1xf32>
    %cst_45 = arith.constant 1.000000e+00 : f32
    %122 = vector.broadcast %cst_45 : f32 to vector<64x1xf32>
    %123 = arith.subf %122, %121 : vector<64x1xf32>
    %124 = arith.mulf %123, %106 : vector<64x1xf32>
    %125 = vector.broadcast %124 : vector<64x1xf32> to vector<64x3xf32>
    %126 = arith.mulf %125, %117 : vector<64x3xf32>
    %127 = arith.addf %100, %126 : vector<64x3xf32>
    %128 = arith.addf %101, %124 : vector<64x1xf32>
    %cst_46 = arith.constant 1.000000e+00 : f32
    %129 = vector.broadcast %cst_46 : f32 to vector<64x1xf32>
    %130 = arith.subf %129, %123 : vector<64x1xf32>
    %cst_47 = arith.constant 1.000000e-10 : f32
    %131 = vector.broadcast %cst_47 : f32 to vector<64x1xf32>
    %132 = arith.addf %130, %131 : vector<64x1xf32>
    %133 = arith.mulf %106, %132 : vector<64x1xf32>
    %134 = vector.extract_strided_slice %22 {offsets = [256, 0], sizes = [64, 4], strides = [1, 1]} : vector<1024x4xf32> to vector<64x4xf32>
    %c256 = arith.constant 256 : index
    %c3_48 = arith.constant 3 : index
    %135 = vector.load %arg1[%c256, %c3_48] : memref<1024x8xf32, #tpu.memory_space<vmem>>, vector<64x1xf32>
    %136 = vector.extract_strided_slice %134 {offsets = [0, 0], sizes = [64, 1], strides = [1, 1]} : vector<64x4xf32> to vector<64x1xf32>
    %cst_49 = arith.constant 0.000000e+00 : f32
    %137 = vector.broadcast %cst_49 : f32 to vector<64x1xf32>
    %138 = arith.maximumf %136, %137 : vector<64x1xf32>
    %139 = vector.extract_strided_slice %134 {offsets = [0, 1], sizes = [64, 3], strides = [1, 1]} : vector<64x4xf32> to vector<64x3xf32>
    %140 = arith.negf %139 : vector<64x3xf32>
    %141 = math.exp %140 : vector<64x3xf32>
    %cst_50 = arith.constant 1.000000e+00 : f32
    %142 = vector.broadcast %cst_50 : f32 to vector<64x3xf32>
    %143 = arith.addf %142, %141 : vector<64x3xf32>
    %144 = arith.divf %142, %143 : vector<64x3xf32>
    %cst_51 = arith.constant 0.000000e+00 : f32
    %145 = vector.broadcast %cst_51 : f32 to vector<64x1xf32>
    %146 = arith.subf %145, %138 : vector<64x1xf32>
    %147 = arith.mulf %146, %135 : vector<64x1xf32>
    %148 = math.exp %147 : vector<64x1xf32>
    %cst_52 = arith.constant 1.000000e+00 : f32
    %149 = vector.broadcast %cst_52 : f32 to vector<64x1xf32>
    %150 = arith.subf %149, %148 : vector<64x1xf32>
    %151 = arith.mulf %150, %133 : vector<64x1xf32>
    %152 = vector.broadcast %151 : vector<64x1xf32> to vector<64x3xf32>
    %153 = arith.mulf %152, %144 : vector<64x3xf32>
    %154 = arith.addf %127, %153 : vector<64x3xf32>
    %155 = arith.addf %128, %151 : vector<64x1xf32>
    %cst_53 = arith.constant 1.000000e+00 : f32
    %156 = vector.broadcast %cst_53 : f32 to vector<64x1xf32>
    %157 = arith.subf %156, %150 : vector<64x1xf32>
    %cst_54 = arith.constant 1.000000e-10 : f32
    %158 = vector.broadcast %cst_54 : f32 to vector<64x1xf32>
    %159 = arith.addf %157, %158 : vector<64x1xf32>
    %160 = arith.mulf %133, %159 : vector<64x1xf32>
    %161 = vector.extract_strided_slice %22 {offsets = [320, 0], sizes = [64, 4], strides = [1, 1]} : vector<1024x4xf32> to vector<64x4xf32>
    %c320 = arith.constant 320 : index
    %c3_55 = arith.constant 3 : index
    %162 = vector.load %arg1[%c320, %c3_55] : memref<1024x8xf32, #tpu.memory_space<vmem>>, vector<64x1xf32>
    %163 = vector.extract_strided_slice %161 {offsets = [0, 0], sizes = [64, 1], strides = [1, 1]} : vector<64x4xf32> to vector<64x1xf32>
    %cst_56 = arith.constant 0.000000e+00 : f32
    %164 = vector.broadcast %cst_56 : f32 to vector<64x1xf32>
    %165 = arith.maximumf %163, %164 : vector<64x1xf32>
    %166 = vector.extract_strided_slice %161 {offsets = [0, 1], sizes = [64, 3], strides = [1, 1]} : vector<64x4xf32> to vector<64x3xf32>
    %167 = arith.negf %166 : vector<64x3xf32>
    %168 = math.exp %167 : vector<64x3xf32>
    %cst_57 = arith.constant 1.000000e+00 : f32
    %169 = vector.broadcast %cst_57 : f32 to vector<64x3xf32>
    %170 = arith.addf %169, %168 : vector<64x3xf32>
    %171 = arith.divf %169, %170 : vector<64x3xf32>
    %cst_58 = arith.constant 0.000000e+00 : f32
    %172 = vector.broadcast %cst_58 : f32 to vector<64x1xf32>
    %173 = arith.subf %172, %165 : vector<64x1xf32>
    %174 = arith.mulf %173, %162 : vector<64x1xf32>
    %175 = math.exp %174 : vector<64x1xf32>
    %cst_59 = arith.constant 1.000000e+00 : f32
    %176 = vector.broadcast %cst_59 : f32 to vector<64x1xf32>
    %177 = arith.subf %176, %175 : vector<64x1xf32>
    %178 = arith.mulf %177, %160 : vector<64x1xf32>
    %179 = vector.broadcast %178 : vector<64x1xf32> to vector<64x3xf32>
    %180 = arith.mulf %179, %171 : vector<64x3xf32>
    %181 = arith.addf %154, %180 : vector<64x3xf32>
    %182 = arith.addf %155, %178 : vector<64x1xf32>
    %cst_60 = arith.constant 1.000000e+00 : f32
    %183 = vector.broadcast %cst_60 : f32 to vector<64x1xf32>
    %184 = arith.subf %183, %177 : vector<64x1xf32>
    %cst_61 = arith.constant 1.000000e-10 : f32
    %185 = vector.broadcast %cst_61 : f32 to vector<64x1xf32>
    %186 = arith.addf %184, %185 : vector<64x1xf32>
    %187 = arith.mulf %160, %186 : vector<64x1xf32>
    %188 = vector.extract_strided_slice %22 {offsets = [384, 0], sizes = [64, 4], strides = [1, 1]} : vector<1024x4xf32> to vector<64x4xf32>
    %c384 = arith.constant 384 : index
    %c3_62 = arith.constant 3 : index
    %189 = vector.load %arg1[%c384, %c3_62] : memref<1024x8xf32, #tpu.memory_space<vmem>>, vector<64x1xf32>
    %190 = vector.extract_strided_slice %188 {offsets = [0, 0], sizes = [64, 1], strides = [1, 1]} : vector<64x4xf32> to vector<64x1xf32>
    %cst_63 = arith.constant 0.000000e+00 : f32
    %191 = vector.broadcast %cst_63 : f32 to vector<64x1xf32>
    %192 = arith.maximumf %190, %191 : vector<64x1xf32>
    %193 = vector.extract_strided_slice %188 {offsets = [0, 1], sizes = [64, 3], strides = [1, 1]} : vector<64x4xf32> to vector<64x3xf32>
    %194 = arith.negf %193 : vector<64x3xf32>
    %195 = math.exp %194 : vector<64x3xf32>
    %cst_64 = arith.constant 1.000000e+00 : f32
    %196 = vector.broadcast %cst_64 : f32 to vector<64x3xf32>
    %197 = arith.addf %196, %195 : vector<64x3xf32>
    %198 = arith.divf %196, %197 : vector<64x3xf32>
    %cst_65 = arith.constant 0.000000e+00 : f32
    %199 = vector.broadcast %cst_65 : f32 to vector<64x1xf32>
    %200 = arith.subf %199, %192 : vector<64x1xf32>
    %201 = arith.mulf %200, %189 : vector<64x1xf32>
    %202 = math.exp %201 : vector<64x1xf32>
    %cst_66 = arith.constant 1.000000e+00 : f32
    %203 = vector.broadcast %cst_66 : f32 to vector<64x1xf32>
    %204 = arith.subf %203, %202 : vector<64x1xf32>
    %205 = arith.mulf %204, %187 : vector<64x1xf32>
    %206 = vector.broadcast %205 : vector<64x1xf32> to vector<64x3xf32>
    %207 = arith.mulf %206, %198 : vector<64x3xf32>
    %208 = arith.addf %181, %207 : vector<64x3xf32>
    %209 = arith.addf %182, %205 : vector<64x1xf32>
    %cst_67 = arith.constant 1.000000e+00 : f32
    %210 = vector.broadcast %cst_67 : f32 to vector<64x1xf32>
    %211 = arith.subf %210, %204 : vector<64x1xf32>
    %cst_68 = arith.constant 1.000000e-10 : f32
    %212 = vector.broadcast %cst_68 : f32 to vector<64x1xf32>
    %213 = arith.addf %211, %212 : vector<64x1xf32>
    %214 = arith.mulf %187, %213 : vector<64x1xf32>
    %215 = vector.extract_strided_slice %22 {offsets = [448, 0], sizes = [64, 4], strides = [1, 1]} : vector<1024x4xf32> to vector<64x4xf32>
    %c448 = arith.constant 448 : index
    %c3_69 = arith.constant 3 : index
    %216 = vector.load %arg1[%c448, %c3_69] : memref<1024x8xf32, #tpu.memory_space<vmem>>, vector<64x1xf32>
    %217 = vector.extract_strided_slice %215 {offsets = [0, 0], sizes = [64, 1], strides = [1, 1]} : vector<64x4xf32> to vector<64x1xf32>
    %cst_70 = arith.constant 0.000000e+00 : f32
    %218 = vector.broadcast %cst_70 : f32 to vector<64x1xf32>
    %219 = arith.maximumf %217, %218 : vector<64x1xf32>
    %220 = vector.extract_strided_slice %215 {offsets = [0, 1], sizes = [64, 3], strides = [1, 1]} : vector<64x4xf32> to vector<64x3xf32>
    %221 = arith.negf %220 : vector<64x3xf32>
    %222 = math.exp %221 : vector<64x3xf32>
    %cst_71 = arith.constant 1.000000e+00 : f32
    %223 = vector.broadcast %cst_71 : f32 to vector<64x3xf32>
    %224 = arith.addf %223, %222 : vector<64x3xf32>
    %225 = arith.divf %223, %224 : vector<64x3xf32>
    %cst_72 = arith.constant 0.000000e+00 : f32
    %226 = vector.broadcast %cst_72 : f32 to vector<64x1xf32>
    %227 = arith.subf %226, %219 : vector<64x1xf32>
    %228 = arith.mulf %227, %216 : vector<64x1xf32>
    %229 = math.exp %228 : vector<64x1xf32>
    %cst_73 = arith.constant 1.000000e+00 : f32
    %230 = vector.broadcast %cst_73 : f32 to vector<64x1xf32>
    %231 = arith.subf %230, %229 : vector<64x1xf32>
    %232 = arith.mulf %231, %214 : vector<64x1xf32>
    %233 = vector.broadcast %232 : vector<64x1xf32> to vector<64x3xf32>
    %234 = arith.mulf %233, %225 : vector<64x3xf32>
    %235 = arith.addf %208, %234 : vector<64x3xf32>
    %236 = arith.addf %209, %232 : vector<64x1xf32>
    %cst_74 = arith.constant 1.000000e+00 : f32
    %237 = vector.broadcast %cst_74 : f32 to vector<64x1xf32>
    %238 = arith.subf %237, %231 : vector<64x1xf32>
    %cst_75 = arith.constant 1.000000e-10 : f32
    %239 = vector.broadcast %cst_75 : f32 to vector<64x1xf32>
    %240 = arith.addf %238, %239 : vector<64x1xf32>
    %241 = arith.mulf %214, %240 : vector<64x1xf32>
    %242 = vector.extract_strided_slice %22 {offsets = [512, 0], sizes = [64, 4], strides = [1, 1]} : vector<1024x4xf32> to vector<64x4xf32>
    %c512 = arith.constant 512 : index
    %c3_76 = arith.constant 3 : index
    %243 = vector.load %arg1[%c512, %c3_76] : memref<1024x8xf32, #tpu.memory_space<vmem>>, vector<64x1xf32>
    %244 = vector.extract_strided_slice %242 {offsets = [0, 0], sizes = [64, 1], strides = [1, 1]} : vector<64x4xf32> to vector<64x1xf32>
    %cst_77 = arith.constant 0.000000e+00 : f32
    %245 = vector.broadcast %cst_77 : f32 to vector<64x1xf32>
    %246 = arith.maximumf %244, %245 : vector<64x1xf32>
    %247 = vector.extract_strided_slice %242 {offsets = [0, 1], sizes = [64, 3], strides = [1, 1]} : vector<64x4xf32> to vector<64x3xf32>
    %248 = arith.negf %247 : vector<64x3xf32>
    %249 = math.exp %248 : vector<64x3xf32>
    %cst_78 = arith.constant 1.000000e+00 : f32
    %250 = vector.broadcast %cst_78 : f32 to vector<64x3xf32>
    %251 = arith.addf %250, %249 : vector<64x3xf32>
    %252 = arith.divf %250, %251 : vector<64x3xf32>
    %cst_79 = arith.constant 0.000000e+00 : f32
    %253 = vector.broadcast %cst_79 : f32 to vector<64x1xf32>
    %254 = arith.subf %253, %246 : vector<64x1xf32>
    %255 = arith.mulf %254, %243 : vector<64x1xf32>
    %256 = math.exp %255 : vector<64x1xf32>
    %cst_80 = arith.constant 1.000000e+00 : f32
    %257 = vector.broadcast %cst_80 : f32 to vector<64x1xf32>
    %258 = arith.subf %257, %256 : vector<64x1xf32>
    %259 = arith.mulf %258, %241 : vector<64x1xf32>
    %260 = vector.broadcast %259 : vector<64x1xf32> to vector<64x3xf32>
    %261 = arith.mulf %260, %252 : vector<64x3xf32>
    %262 = arith.addf %235, %261 : vector<64x3xf32>
    %263 = arith.addf %236, %259 : vector<64x1xf32>
    %cst_81 = arith.constant 1.000000e+00 : f32
    %264 = vector.broadcast %cst_81 : f32 to vector<64x1xf32>
    %265 = arith.subf %264, %258 : vector<64x1xf32>
    %cst_82 = arith.constant 1.000000e-10 : f32
    %266 = vector.broadcast %cst_82 : f32 to vector<64x1xf32>
    %267 = arith.addf %265, %266 : vector<64x1xf32>
    %268 = arith.mulf %241, %267 : vector<64x1xf32>
    %269 = vector.extract_strided_slice %22 {offsets = [576, 0], sizes = [64, 4], strides = [1, 1]} : vector<1024x4xf32> to vector<64x4xf32>
    %c576 = arith.constant 576 : index
    %c3_83 = arith.constant 3 : index
    %270 = vector.load %arg1[%c576, %c3_83] : memref<1024x8xf32, #tpu.memory_space<vmem>>, vector<64x1xf32>
    %271 = vector.extract_strided_slice %269 {offsets = [0, 0], sizes = [64, 1], strides = [1, 1]} : vector<64x4xf32> to vector<64x1xf32>
    %cst_84 = arith.constant 0.000000e+00 : f32
    %272 = vector.broadcast %cst_84 : f32 to vector<64x1xf32>
    %273 = arith.maximumf %271, %272 : vector<64x1xf32>
    %274 = vector.extract_strided_slice %269 {offsets = [0, 1], sizes = [64, 3], strides = [1, 1]} : vector<64x4xf32> to vector<64x3xf32>
    %275 = arith.negf %274 : vector<64x3xf32>
    %276 = math.exp %275 : vector<64x3xf32>
    %cst_85 = arith.constant 1.000000e+00 : f32
    %277 = vector.broadcast %cst_85 : f32 to vector<64x3xf32>
    %278 = arith.addf %277, %276 : vector<64x3xf32>
    %279 = arith.divf %277, %278 : vector<64x3xf32>
    %cst_86 = arith.constant 0.000000e+00 : f32
    %280 = vector.broadcast %cst_86 : f32 to vector<64x1xf32>
    %281 = arith.subf %280, %273 : vector<64x1xf32>
    %282 = arith.mulf %281, %270 : vector<64x1xf32>
    %283 = math.exp %282 : vector<64x1xf32>
    %cst_87 = arith.constant 1.000000e+00 : f32
    %284 = vector.broadcast %cst_87 : f32 to vector<64x1xf32>
    %285 = arith.subf %284, %283 : vector<64x1xf32>
    %286 = arith.mulf %285, %268 : vector<64x1xf32>
    %287 = vector.broadcast %286 : vector<64x1xf32> to vector<64x3xf32>
    %288 = arith.mulf %287, %279 : vector<64x3xf32>
    %289 = arith.addf %262, %288 : vector<64x3xf32>
    %290 = arith.addf %263, %286 : vector<64x1xf32>
    %cst_88 = arith.constant 1.000000e+00 : f32
    %291 = vector.broadcast %cst_88 : f32 to vector<64x1xf32>
    %292 = arith.subf %291, %285 : vector<64x1xf32>
    %cst_89 = arith.constant 1.000000e-10 : f32
    %293 = vector.broadcast %cst_89 : f32 to vector<64x1xf32>
    %294 = arith.addf %292, %293 : vector<64x1xf32>
    %295 = arith.mulf %268, %294 : vector<64x1xf32>
    %296 = vector.extract_strided_slice %22 {offsets = [640, 0], sizes = [64, 4], strides = [1, 1]} : vector<1024x4xf32> to vector<64x4xf32>
    %c640 = arith.constant 640 : index
    %c3_90 = arith.constant 3 : index
    %297 = vector.load %arg1[%c640, %c3_90] : memref<1024x8xf32, #tpu.memory_space<vmem>>, vector<64x1xf32>
    %298 = vector.extract_strided_slice %296 {offsets = [0, 0], sizes = [64, 1], strides = [1, 1]} : vector<64x4xf32> to vector<64x1xf32>
    %cst_91 = arith.constant 0.000000e+00 : f32
    %299 = vector.broadcast %cst_91 : f32 to vector<64x1xf32>
    %300 = arith.maximumf %298, %299 : vector<64x1xf32>
    %301 = vector.extract_strided_slice %296 {offsets = [0, 1], sizes = [64, 3], strides = [1, 1]} : vector<64x4xf32> to vector<64x3xf32>
    %302 = arith.negf %301 : vector<64x3xf32>
    %303 = math.exp %302 : vector<64x3xf32>
    %cst_92 = arith.constant 1.000000e+00 : f32
    %304 = vector.broadcast %cst_92 : f32 to vector<64x3xf32>
    %305 = arith.addf %304, %303 : vector<64x3xf32>
    %306 = arith.divf %304, %305 : vector<64x3xf32>
    %cst_93 = arith.constant 0.000000e+00 : f32
    %307 = vector.broadcast %cst_93 : f32 to vector<64x1xf32>
    %308 = arith.subf %307, %300 : vector<64x1xf32>
    %309 = arith.mulf %308, %297 : vector<64x1xf32>
    %310 = math.exp %309 : vector<64x1xf32>
    %cst_94 = arith.constant 1.000000e+00 : f32
    %311 = vector.broadcast %cst_94 : f32 to vector<64x1xf32>
    %312 = arith.subf %311, %310 : vector<64x1xf32>
    %313 = arith.mulf %312, %295 : vector<64x1xf32>
    %314 = vector.broadcast %313 : vector<64x1xf32> to vector<64x3xf32>
    %315 = arith.mulf %314, %306 : vector<64x3xf32>
    %316 = arith.addf %289, %315 : vector<64x3xf32>
    %317 = arith.addf %290, %313 : vector<64x1xf32>
    %cst_95 = arith.constant 1.000000e+00 : f32
    %318 = vector.broadcast %cst_95 : f32 to vector<64x1xf32>
    %319 = arith.subf %318, %312 : vector<64x1xf32>
    %cst_96 = arith.constant 1.000000e-10 : f32
    %320 = vector.broadcast %cst_96 : f32 to vector<64x1xf32>
    %321 = arith.addf %319, %320 : vector<64x1xf32>
    %322 = arith.mulf %295, %321 : vector<64x1xf32>
    %323 = vector.extract_strided_slice %22 {offsets = [704, 0], sizes = [64, 4], strides = [1, 1]} : vector<1024x4xf32> to vector<64x4xf32>
    %c704 = arith.constant 704 : index
    %c3_97 = arith.constant 3 : index
    %324 = vector.load %arg1[%c704, %c3_97] : memref<1024x8xf32, #tpu.memory_space<vmem>>, vector<64x1xf32>
    %325 = vector.extract_strided_slice %323 {offsets = [0, 0], sizes = [64, 1], strides = [1, 1]} : vector<64x4xf32> to vector<64x1xf32>
    %cst_98 = arith.constant 0.000000e+00 : f32
    %326 = vector.broadcast %cst_98 : f32 to vector<64x1xf32>
    %327 = arith.maximumf %325, %326 : vector<64x1xf32>
    %328 = vector.extract_strided_slice %323 {offsets = [0, 1], sizes = [64, 3], strides = [1, 1]} : vector<64x4xf32> to vector<64x3xf32>
    %329 = arith.negf %328 : vector<64x3xf32>
    %330 = math.exp %329 : vector<64x3xf32>
    %cst_99 = arith.constant 1.000000e+00 : f32
    %331 = vector.broadcast %cst_99 : f32 to vector<64x3xf32>
    %332 = arith.addf %331, %330 : vector<64x3xf32>
    %333 = arith.divf %331, %332 : vector<64x3xf32>
    %cst_100 = arith.constant 0.000000e+00 : f32
    %334 = vector.broadcast %cst_100 : f32 to vector<64x1xf32>
    %335 = arith.subf %334, %327 : vector<64x1xf32>
    %336 = arith.mulf %335, %324 : vector<64x1xf32>
    %337 = math.exp %336 : vector<64x1xf32>
    %cst_101 = arith.constant 1.000000e+00 : f32
    %338 = vector.broadcast %cst_101 : f32 to vector<64x1xf32>
    %339 = arith.subf %338, %337 : vector<64x1xf32>
    %340 = arith.mulf %339, %322 : vector<64x1xf32>
    %341 = vector.broadcast %340 : vector<64x1xf32> to vector<64x3xf32>
    %342 = arith.mulf %341, %333 : vector<64x3xf32>
    %343 = arith.addf %316, %342 : vector<64x3xf32>
    %344 = arith.addf %317, %340 : vector<64x1xf32>
    %cst_102 = arith.constant 1.000000e+00 : f32
    %345 = vector.broadcast %cst_102 : f32 to vector<64x1xf32>
    %346 = arith.subf %345, %339 : vector<64x1xf32>
    %cst_103 = arith.constant 1.000000e-10 : f32
    %347 = vector.broadcast %cst_103 : f32 to vector<64x1xf32>
    %348 = arith.addf %346, %347 : vector<64x1xf32>
    %349 = arith.mulf %322, %348 : vector<64x1xf32>
    %350 = vector.extract_strided_slice %22 {offsets = [768, 0], sizes = [64, 4], strides = [1, 1]} : vector<1024x4xf32> to vector<64x4xf32>
    %c768 = arith.constant 768 : index
    %c3_104 = arith.constant 3 : index
    %351 = vector.load %arg1[%c768, %c3_104] : memref<1024x8xf32, #tpu.memory_space<vmem>>, vector<64x1xf32>
    %352 = vector.extract_strided_slice %350 {offsets = [0, 0], sizes = [64, 1], strides = [1, 1]} : vector<64x4xf32> to vector<64x1xf32>
    %cst_105 = arith.constant 0.000000e+00 : f32
    %353 = vector.broadcast %cst_105 : f32 to vector<64x1xf32>
    %354 = arith.maximumf %352, %353 : vector<64x1xf32>
    %355 = vector.extract_strided_slice %350 {offsets = [0, 1], sizes = [64, 3], strides = [1, 1]} : vector<64x4xf32> to vector<64x3xf32>
    %356 = arith.negf %355 : vector<64x3xf32>
    %357 = math.exp %356 : vector<64x3xf32>
    %cst_106 = arith.constant 1.000000e+00 : f32
    %358 = vector.broadcast %cst_106 : f32 to vector<64x3xf32>
    %359 = arith.addf %358, %357 : vector<64x3xf32>
    %360 = arith.divf %358, %359 : vector<64x3xf32>
    %cst_107 = arith.constant 0.000000e+00 : f32
    %361 = vector.broadcast %cst_107 : f32 to vector<64x1xf32>
    %362 = arith.subf %361, %354 : vector<64x1xf32>
    %363 = arith.mulf %362, %351 : vector<64x1xf32>
    %364 = math.exp %363 : vector<64x1xf32>
    %cst_108 = arith.constant 1.000000e+00 : f32
    %365 = vector.broadcast %cst_108 : f32 to vector<64x1xf32>
    %366 = arith.subf %365, %364 : vector<64x1xf32>
    %367 = arith.mulf %366, %349 : vector<64x1xf32>
    %368 = vector.broadcast %367 : vector<64x1xf32> to vector<64x3xf32>
    %369 = arith.mulf %368, %360 : vector<64x3xf32>
    %370 = arith.addf %343, %369 : vector<64x3xf32>
    %371 = arith.addf %344, %367 : vector<64x1xf32>
    %cst_109 = arith.constant 1.000000e+00 : f32
    %372 = vector.broadcast %cst_109 : f32 to vector<64x1xf32>
    %373 = arith.subf %372, %366 : vector<64x1xf32>
    %cst_110 = arith.constant 1.000000e-10 : f32
    %374 = vector.broadcast %cst_110 : f32 to vector<64x1xf32>
    %375 = arith.addf %373, %374 : vector<64x1xf32>
    %376 = arith.mulf %349, %375 : vector<64x1xf32>
    %377 = vector.extract_strided_slice %22 {offsets = [832, 0], sizes = [64, 4], strides = [1, 1]} : vector<1024x4xf32> to vector<64x4xf32>
    %c832 = arith.constant 832 : index
    %c3_111 = arith.constant 3 : index
    %378 = vector.load %arg1[%c832, %c3_111] : memref<1024x8xf32, #tpu.memory_space<vmem>>, vector<64x1xf32>
    %379 = vector.extract_strided_slice %377 {offsets = [0, 0], sizes = [64, 1], strides = [1, 1]} : vector<64x4xf32> to vector<64x1xf32>
    %cst_112 = arith.constant 0.000000e+00 : f32
    %380 = vector.broadcast %cst_112 : f32 to vector<64x1xf32>
    %381 = arith.maximumf %379, %380 : vector<64x1xf32>
    %382 = vector.extract_strided_slice %377 {offsets = [0, 1], sizes = [64, 3], strides = [1, 1]} : vector<64x4xf32> to vector<64x3xf32>
    %383 = arith.negf %382 : vector<64x3xf32>
    %384 = math.exp %383 : vector<64x3xf32>
    %cst_113 = arith.constant 1.000000e+00 : f32
    %385 = vector.broadcast %cst_113 : f32 to vector<64x3xf32>
    %386 = arith.addf %385, %384 : vector<64x3xf32>
    %387 = arith.divf %385, %386 : vector<64x3xf32>
    %cst_114 = arith.constant 0.000000e+00 : f32
    %388 = vector.broadcast %cst_114 : f32 to vector<64x1xf32>
    %389 = arith.subf %388, %381 : vector<64x1xf32>
    %390 = arith.mulf %389, %378 : vector<64x1xf32>
    %391 = math.exp %390 : vector<64x1xf32>
    %cst_115 = arith.constant 1.000000e+00 : f32
    %392 = vector.broadcast %cst_115 : f32 to vector<64x1xf32>
    %393 = arith.subf %392, %391 : vector<64x1xf32>
    %394 = arith.mulf %393, %376 : vector<64x1xf32>
    %395 = vector.broadcast %394 : vector<64x1xf32> to vector<64x3xf32>
    %396 = arith.mulf %395, %387 : vector<64x3xf32>
    %397 = arith.addf %370, %396 : vector<64x3xf32>
    %398 = arith.addf %371, %394 : vector<64x1xf32>
    %cst_116 = arith.constant 1.000000e+00 : f32
    %399 = vector.broadcast %cst_116 : f32 to vector<64x1xf32>
    %400 = arith.subf %399, %393 : vector<64x1xf32>
    %cst_117 = arith.constant 1.000000e-10 : f32
    %401 = vector.broadcast %cst_117 : f32 to vector<64x1xf32>
    %402 = arith.addf %400, %401 : vector<64x1xf32>
    %403 = arith.mulf %376, %402 : vector<64x1xf32>
    %404 = vector.extract_strided_slice %22 {offsets = [896, 0], sizes = [64, 4], strides = [1, 1]} : vector<1024x4xf32> to vector<64x4xf32>
    %c896 = arith.constant 896 : index
    %c3_118 = arith.constant 3 : index
    %405 = vector.load %arg1[%c896, %c3_118] : memref<1024x8xf32, #tpu.memory_space<vmem>>, vector<64x1xf32>
    %406 = vector.extract_strided_slice %404 {offsets = [0, 0], sizes = [64, 1], strides = [1, 1]} : vector<64x4xf32> to vector<64x1xf32>
    %cst_119 = arith.constant 0.000000e+00 : f32
    %407 = vector.broadcast %cst_119 : f32 to vector<64x1xf32>
    %408 = arith.maximumf %406, %407 : vector<64x1xf32>
    %409 = vector.extract_strided_slice %404 {offsets = [0, 1], sizes = [64, 3], strides = [1, 1]} : vector<64x4xf32> to vector<64x3xf32>
    %410 = arith.negf %409 : vector<64x3xf32>
    %411 = math.exp %410 : vector<64x3xf32>
    %cst_120 = arith.constant 1.000000e+00 : f32
    %412 = vector.broadcast %cst_120 : f32 to vector<64x3xf32>
    %413 = arith.addf %412, %411 : vector<64x3xf32>
    %414 = arith.divf %412, %413 : vector<64x3xf32>
    %cst_121 = arith.constant 0.000000e+00 : f32
    %415 = vector.broadcast %cst_121 : f32 to vector<64x1xf32>
    %416 = arith.subf %415, %408 : vector<64x1xf32>
    %417 = arith.mulf %416, %405 : vector<64x1xf32>
    %418 = math.exp %417 : vector<64x1xf32>
    %cst_122 = arith.constant 1.000000e+00 : f32
    %419 = vector.broadcast %cst_122 : f32 to vector<64x1xf32>
    %420 = arith.subf %419, %418 : vector<64x1xf32>
    %421 = arith.mulf %420, %403 : vector<64x1xf32>
    %422 = vector.broadcast %421 : vector<64x1xf32> to vector<64x3xf32>
    %423 = arith.mulf %422, %414 : vector<64x3xf32>
    %424 = arith.addf %397, %423 : vector<64x3xf32>
    %425 = arith.addf %398, %421 : vector<64x1xf32>
    %cst_123 = arith.constant 1.000000e+00 : f32
    %426 = vector.broadcast %cst_123 : f32 to vector<64x1xf32>
    %427 = arith.subf %426, %420 : vector<64x1xf32>
    %cst_124 = arith.constant 1.000000e-10 : f32
    %428 = vector.broadcast %cst_124 : f32 to vector<64x1xf32>
    %429 = arith.addf %427, %428 : vector<64x1xf32>
    %430 = arith.mulf %403, %429 : vector<64x1xf32>
    %431 = vector.extract_strided_slice %22 {offsets = [960, 0], sizes = [64, 4], strides = [1, 1]} : vector<1024x4xf32> to vector<64x4xf32>
    %c960 = arith.constant 960 : index
    %c3_125 = arith.constant 3 : index
    %432 = vector.load %arg1[%c960, %c3_125] : memref<1024x8xf32, #tpu.memory_space<vmem>>, vector<64x1xf32>
    %433 = vector.extract_strided_slice %431 {offsets = [0, 0], sizes = [64, 1], strides = [1, 1]} : vector<64x4xf32> to vector<64x1xf32>
    %cst_126 = arith.constant 0.000000e+00 : f32
    %434 = vector.broadcast %cst_126 : f32 to vector<64x1xf32>
    %435 = arith.maximumf %433, %434 : vector<64x1xf32>
    %436 = vector.extract_strided_slice %431 {offsets = [0, 1], sizes = [64, 3], strides = [1, 1]} : vector<64x4xf32> to vector<64x3xf32>
    %437 = arith.negf %436 : vector<64x3xf32>
    %438 = math.exp %437 : vector<64x3xf32>
    %cst_127 = arith.constant 1.000000e+00 : f32
    %439 = vector.broadcast %cst_127 : f32 to vector<64x3xf32>
    %440 = arith.addf %439, %438 : vector<64x3xf32>
    %441 = arith.divf %439, %440 : vector<64x3xf32>
    %cst_128 = arith.constant 0.000000e+00 : f32
    %442 = vector.broadcast %cst_128 : f32 to vector<64x1xf32>
    %443 = arith.subf %442, %435 : vector<64x1xf32>
    %444 = arith.mulf %443, %432 : vector<64x1xf32>
    %445 = math.exp %444 : vector<64x1xf32>
    %cst_129 = arith.constant 1.000000e+00 : f32
    %446 = vector.broadcast %cst_129 : f32 to vector<64x1xf32>
    %447 = arith.subf %446, %445 : vector<64x1xf32>
    %448 = arith.mulf %447, %430 : vector<64x1xf32>
    %449 = vector.broadcast %448 : vector<64x1xf32> to vector<64x3xf32>
    %450 = arith.mulf %449, %441 : vector<64x3xf32>
    %451 = arith.addf %424, %450 : vector<64x3xf32>
    %452 = arith.addf %425, %448 : vector<64x1xf32>
    %453 = tpu.concatenate %451, %452 in 1 : vector<64x3xf32>, vector<64x1xf32> -> vector<64x4xf32>
    %c0_130 = arith.constant 0 : index
    %c0_131 = arith.constant 0 : index
    %454 = vector.load %arg9[%c0_130, %c0_131] : memref<64x4xf32, #tpu.memory_space<vmem>>, vector<64x4xf32>
    tpu.vector_store %arg9[%c0_130, %c0_131], %453 {strides = array<i32>} : memref<64x4xf32, #tpu.memory_space<vmem>>, vector<64x4xf32>,
    %c0_132 = arith.constant 0 : index
    %c0_133 = arith.constant 0 : index
    %455 = vector.load %arg2[%c0_132, %c0_133] : memref<64x3xf32, #tpu.memory_space<vmem>>, vector<64x3xf32>
    %456 = arith.subf %451, %455 : vector<64x3xf32>
    %457 = arith.mulf %456, %456 : vector<64x3xf32>
    %458 = vector.shape_cast %457 : vector<64x3xf32> to vector<1x64x3xf32>
    %cst_134 = arith.constant dense<0.000000e+00> : vector<1xf32>
    %459 = vector.multi_reduction <add>, %458, %cst_134 [1, 2] : vector<1x64x3xf32> to vector<1xf32>
    %460 = vector.shape_cast %459 : vector<1xf32> to vector<1x1x1xf32>
    %461 = vector.extract %460[0, 0, 0] : f32 from vector<1x1x1xf32>
    %462 = vector.broadcast %461 : f32 to vector<1x1xf32>
    %463 = vector.shape_cast %451 : vector<64x3xf32> to vector<1x64x3xf32>
    %cst_135 = arith.constant dense<0.000000e+00> : vector<1xf32>
    %464 = vector.multi_reduction <add>, %463, %cst_135 [1, 2] : vector<1x64x3xf32> to vector<1xf32>
    %465 = vector.shape_cast %464 : vector<1xf32> to vector<1x1x1xf32>
    %466 = vector.extract %465[0, 0, 0] : f32 from vector<1x1x1xf32>
    %467 = vector.broadcast %466 : f32 to vector<1x1xf32>
    %468 = vector.shape_cast %452 : vector<64x1xf32> to vector<1x64x1xf32>
    %cst_136 = arith.constant dense<0.000000e+00> : vector<1xf32>
    %469 = vector.multi_reduction <add>, %468, %cst_136 [1, 2] : vector<1x64x1xf32> to vector<1xf32>
    %470 = vector.shape_cast %469 : vector<1xf32> to vector<1x1x1xf32>
    %471 = vector.extract %470[0, 0, 0] : f32 from vector<1x1x1xf32>
    %472 = vector.broadcast %471 : f32 to vector<1x1xf32>
    %473 = vector.shape_cast %455 : vector<64x3xf32> to vector<1x64x3xf32>
    %cst_137 = arith.constant dense<0.000000e+00> : vector<1xf32>
    %474 = vector.multi_reduction <add>, %473, %cst_137 [1, 2] : vector<1x64x3xf32> to vector<1xf32>
    %475 = vector.shape_cast %474 : vector<1xf32> to vector<1x1x1xf32>
    %476 = vector.extract %475[0, 0, 0] : f32 from vector<1x1x1xf32>
    %477 = vector.broadcast %476 : f32 to vector<1x1xf32>
    %478 = tpu.iota {dimensions = array<i32: 1>} : vector<1x8xi32>
    %c0_i32 = arith.constant 0 : i32
    %479 = vector.broadcast %c0_i32 : i32 to vector<1x8xi32>
    %480 = arith.cmpi eq, %478, %479 : vector<1x8xi32>
    %cst_138 = arith.constant 0.000000e+00 : f32
    %481 = vector.shape_cast %462 : vector<1x1xf32> to vector<1x1xf32>
    %482 = vector.broadcast %481 : vector<1x1xf32> to vector<1x8xf32>
    %483 = vector.broadcast %cst_138 : f32 to vector<1x8xf32>
    %484 = arith.select %480, %482, %483 : vector<1x8xi1>, vector<1x8xf32>
    %c1_i32 = arith.constant 1 : i32
    %485 = vector.broadcast %c1_i32 : i32 to vector<1x8xi32>
    %486 = arith.cmpi eq, %478, %485 : vector<1x8xi32>
    %cst_139 = arith.constant 0.000000e+00 : f32
    %487 = vector.shape_cast %467 : vector<1x1xf32> to vector<1x1xf32>
    %488 = vector.broadcast %487 : vector<1x1xf32> to vector<1x8xf32>
    %489 = vector.broadcast %cst_139 : f32 to vector<1x8xf32>
    %490 = arith.select %486, %488, %489 : vector<1x8xi1>, vector<1x8xf32>
    %491 = arith.addf %484, %490 : vector<1x8xf32>
    %c2_i32 = arith.constant 2 : i32
    %492 = vector.broadcast %c2_i32 : i32 to vector<1x8xi32>
    %493 = arith.cmpi eq, %478, %492 : vector<1x8xi32>
    %cst_140 = arith.constant 0.000000e+00 : f32
    %494 = vector.shape_cast %472 : vector<1x1xf32> to vector<1x1xf32>
    %495 = vector.broadcast %494 : vector<1x1xf32> to vector<1x8xf32>
    %496 = vector.broadcast %cst_140 : f32 to vector<1x8xf32>
    %497 = arith.select %493, %495, %496 : vector<1x8xi1>, vector<1x8xf32>
    %498 = arith.addf %491, %497 : vector<1x8xf32>
    %c3_i32 = arith.constant 3 : i32
    %499 = vector.broadcast %c3_i32 : i32 to vector<1x8xi32>
    %500 = arith.cmpi eq, %478, %499 : vector<1x8xi32>
    %cst_141 = arith.constant 0.000000e+00 : f32
    %501 = vector.shape_cast %477 : vector<1x1xf32> to vector<1x1xf32>
    %502 = vector.broadcast %501 : vector<1x1xf32> to vector<1x8xf32>
    %503 = vector.broadcast %cst_141 : f32 to vector<1x8xf32>
    %504 = arith.select %500, %502, %503 : vector<1x8xi1>, vector<1x8xf32>
    %505 = arith.addf %498, %504 : vector<1x8xf32>
    %c0_142 = arith.constant 0 : index
    %c0_143 = arith.constant 0 : index
    %506 = vector.load %arg10[%c0_142, %c0_143] : memref<1x8xf32, #tpu.memory_space<vmem>>, vector<1x8xf32>
    tpu.vector_store %arg10[%c0_142, %c0_143], %505 {strides = array<i32>} : memref<1x8xf32, #tpu.memory_space<vmem>>, vector<1x8xf32>,
    return
  }
  func.func @transform_0(%arg0: i32) -> (i32, i32) {
    %c0_i32 = arith.constant 0 : i32
    %c0_i32_0 = arith.constant 0 : i32
    %c0_i32_1 = arith.constant 0 : i32
    return %c0_i32, %c0_i32_0 : i32, i32
  }
  func.func @transform_1(%arg0: i32) -> (i32, i32) {
    %c0_i32 = arith.constant 0 : i32
    %c0_i32_0 = arith.constant 0 : i32
    %c0_i32_1 = arith.constant 0 : i32
    return %c0_i32, %c0_i32_0 : i32, i32
  }
  func.func @transform_2(%arg0: i32) -> (i32, i32) {
    %c0_i32 = arith.constant 0 : i32
    %c0_i32_0 = arith.constant 0 : i32
    %c0_i32_1 = arith.constant 0 : i32
    return %c0_i32, %c0_i32_0 : i32, i32
  }
  func.func @transform_3(%arg0: i32) -> (i32, i32) {
    %c0_i32 = arith.constant 0 : i32
    %c0_i32_0 = arith.constant 0 : i32
    %c0_i32_1 = arith.constant 0 : i32
    return %c0_i32, %c0_i32_0 : i32, i32
  }
  func.func @transform_4(%arg0: i32) -> (i32, i32) {
    %c0_i32 = arith.constant 0 : i32
    %c0_i32_0 = arith.constant 0 : i32
    %c0_i32_1 = arith.constant 0 : i32
    return %c0_i32, %c0_i32_0 : i32, i32
  }
  func.func @transform_5(%arg0: i32) -> (i32, i32) {
    %c0_i32 = arith.constant 0 : i32
    %c0_i32_0 = arith.constant 0 : i32
    %c0_i32_1 = arith.constant 0 : i32
    return %c0_i32, %c0_i32_0 : i32, i32
  }
  func.func @transform_6(%arg0: i32) -> (i32, i32) {
    %c0_i32 = arith.constant 0 : i32
    %c0_i32_0 = arith.constant 0 : i32
    %c0_i32_1 = arith.constant 0 : i32
    return %c0_i32, %c0_i32_0 : i32, i32
  }
  func.func @transform_7(%arg0: i32) -> (i32, i32) {
    %c0_i32 = arith.constant 0 : i32
    %c0_i32_0 = arith.constant 0 : i32
    %c0_i32_1 = arith.constant 0 : i32
    return %c0_i32, %c0_i32_0 : i32, i32
  }
  func.func @transform_8(%arg0: i32) -> (i32, i32) {
    %c0_i32 = arith.constant 0 : i32
    %c0_i32_0 = arith.constant 0 : i32
    %c0_i32_1 = arith.constant 0 : i32
    return %c0_i32, %c0_i32_0 : i32, i32
  }
  func.func @transform_9(%arg0: i32) -> (i32, i32) {
    %c0_i32 = arith.constant 0 : i32
    %c0_i32_0 = arith.constant 0 : i32
    %c0_i32_1 = arith.constant 0 : i32
    return %c0_i32, %c0_i32_0 : i32, i32
  }
}

</mosaic_0001>

<bundles_post_ra>
// kernel: tpu_custom_call.1
= control target key start
LH: loop header
LB: loop body
LE: loop exit
PB: predicated region body
PF: predicated region fallthrough
CT: control target
= control target key end

     0   :  { %vm426_vm0 = vcmask 1043456   ;;  %vm233_vm1 = vcmask 64512   ;;  %s13810_s0 = inlined_call_operand.vmem [shape: f32[1024,8], index: 0, kind: input, shape index: {}]   ;;  %s13811_s1 = inlined_call_operand.vmem [shape: f32[64,3], index: 1, kind: input, shape index: {}]   ;;  %s13812_s2 = inlined_call_operand.vmem [shape: bf16[8,128], index: 2, kind: input, shape index: {}]   ;;  %s13813_s3 = inlined_call_operand.vmem [shape: f32[1,128], index: 3, kind: input, shape index: {}]   ;;  %s13814_s4 = inlined_call_operand.vmem [shape: bf16[128,128], index: 4, kind: input, shape index: {}]   ;;  %s13815_s5 = inlined_call_operand.vmem [shape: f32[1,128], index: 5, kind: input, shape index: {}]   ;;  %s13816_s6 = inlined_call_operand.vmem [shape: bf16[128,4], index: 6, kind: input, shape index: {}]   ;;  %s13817_s7 = inlined_call_operand.vmem [shape: f32[1,4], index: 7, kind: input, shape index: {}]   ;;  %s13818_s8 = inlined_call_operand.vmem [shape: f32[64,4], index: 8, kind: output, shape index: {0}]   ;;  %s13819_s9 = inlined_call_operand.hbm [shape: f32[1,8], index: 9, kind: output, shape index: {1}]  }
   0x1   :  { %v225_v0 = vld [vmem:[%s13812_s2] sm:$0xf]  ;;  %v34_v2 = vld [vmem:[%s13810_s0 + $0x8] sm:$0xff]  ;;  %v35_v5 = vld [vmem:[%s13810_s0 + $0x10] sm:$0xff] }
   0x2   :  { %v33_v1 = vld [vmem:[%s13810_s0] sm:$0xff]  ;;  %7399 = vmatprep.subr.msk.bf16.mxu0 %vm426_vm0, %v225_v0  ;;  %v428_v3 = vsel %vm426_vm0, %v225_v0, 0  ;;  %v36_v6 = vld [vmem:[%s13810_s0 + $0x18] sm:$0xff]  ;;  %7400 = vmatprep.subr.msk.bf16.mxu1 %vm426_vm0, %v225_v0  ;;  %v38_v9 = vld [vmem:[%s13810_s0 + $0x28] sm:$0xff] }
   0x3   :  { %v161_v4 = vpack.c.bf16 %v34_v2, %v33_v1  ;;  %v37_v7 = vld [vmem:[%s13810_s0 + $0x20] sm:$0xff]  ;;  %6980 = vmatpush3.bf16.msra.mxu0 %v428_v3  ;;  %v162_v8 = vpack.c.bf16 %v36_v6, %v35_v5  ;;  %7398 = vmatpush3.bf16.msra.mxu1 %v428_v3  ;;  %v39_v11 = vld [vmem:[%s13810_s0 + $0x30] sm:$0xff]  ;;  %v40_v12 = vld [vmem:[%s13810_s0 + $0x38] sm:$0xff] }
   0x4   :  { %v163_v10 = vpack.c.bf16 %v38_v9, %v37_v7  ;;  %v41_v13 = vld [vmem:[%s13810_s0 + $0x40] sm:$0xff]  ;;  %v42_v14 = vld [vmem:[%s13810_s0 + $0x48] sm:$0xff]  ;;  %v164_v15 = vpack.c.bf16 %v40_v12, %v39_v11  ;;  %v43_v17 = vld [vmem:[%s13810_s0 + $0x50] sm:$0xff] }
   0x5   :  { %6981 = vmatprep.mubr.msk.bf16.mxu0 %vm233_vm1, %v161_v4  ;;  %v165_v16 = vpack.c.bf16 %v42_v14, %v41_v13  ;;  %v44_v18 = vld [vmem:[%s13810_s0 + $0x58] sm:$0xff]  ;;  %v45_v19 = vld [vmem:[%s13810_s0 + $0x60] sm:$0xff]  ;;  %v46_v20 = vld [vmem:[%s13810_s0 + $0x68] sm:$0xff] }
   0x6   :  { %6982 = vmatmul.mubr.msk.bf16.vlgmr.msra.gmra.mrb[0].mxu0 %vm233_vm1, %v162_v8  ;;  %v97_v21 = vld [vmem:[%s13810_s0 + $0x200] sm:$0xff]  ;;  %v98_v22 = vld [vmem:[%s13810_s0 + $0x208] sm:$0xff]  ;;  %v166_v23 = vpack.c.bf16 %v44_v18, %v43_v17  ;;  %v99_v25 = vld [vmem:[%s13810_s0 + $0x210] sm:$0xff]  ;;  %v167_v27 = vpack.c.bf16 %v46_v20, %v45_v19 }
   0x7   :  { %6985 = vmatprep.mubr.msk.bf16.mxu0 %vm233_vm1, %v163_v10  ;;  %v193_v24 = vpack.c.bf16 %v98_v22, %v97_v21  ;;  %v100_v26 = vld [vmem:[%s13810_s0 + $0x218] sm:$0xff]  ;;  %v7417_v29 = vld [vmem:[%s13814_s4] sm:$0xff]   ;;  %v102_v31 = vld [vmem:[%s13810_s0 + $0x228] sm:$0xff] }
   0x8   :  { %v194_v28 = vpack.c.bf16 %v100_v26, %v99_v25  ;;  %7109 = vmatprep.subr.bf16.mxu1 %v7417_v29  ;;  %v101_v30 = vld [vmem:[%s13810_s0 + $0x220] sm:$0xff]  ;;  %v103_v33 = vld [vmem:[%s13810_s0 + $0x230] sm:$0xff]  ;;  %v104_v34 = vld [vmem:[%s13810_s0 + $0x238] sm:$0xff] }
   0x9   :  { %7045 = vmatprep.mubr.msk.bf16.mxu1 %vm233_vm1, %v193_v24  ;;  %v195_v32 = vpack.c.bf16 %v102_v31, %v101_v30  ;;  %v47_v35 = vld [vmem:[%s13810_s0 + $0x70] sm:$0xff]  ;;  %v48_v36 = vld [vmem:[%s13810_s0 + $0x78] sm:$0xff]  ;;  %v105_v37 = vld [vmem:[%s13810_s0 + $0x240] sm:$0xff]  ;;  %v196_v41 = vpack.c.bf16 %v104_v34, %v103_v33 }
   0xa   :  { %7046 = vmatmul.mubr.msk.bf16.vlgmr.msra.gmra.mrb[0].mxu1 %vm233_vm1, %v194_v28  ;;  %v49_v38 = vld [vmem:[%s13810_s0 + $0x80] sm:$0xff]  ;;  %v50_v39 = vld [vmem:[%s13810_s0 + $0x88] sm:$0xff]  ;;  %v168_v43 = vpack.c.bf16 %v48_v36, %v47_v35  ;;  %v51_v46 = vld [vmem:[%s13810_s0 + $0x90] sm:$0xff] }
   0xb   :  { %7110 = vmatpush3.bf16.msra.mxu1 %v7417_v29  ;;  %7049 = vmatprep.mubr.msk.bf16.mxu1 %vm233_vm1, %v195_v32  ;;  %v106_v40 = vld [vmem:[%s13810_s0 + $0x248] sm:$0xff]  ;;  %v169_v45 = vpack.c.bf16 %v50_v39, %v49_v38  ;;  %v52_v47 = vld [vmem:[%s13810_s0 + $0x98] sm:$0xff]  ;;  %v107_v48 = vld [vmem:[%s13810_s0 + $0x250] sm:$0xff] }
   0xc   :  { %v7418_v42 = vld [vmem:[%s13814_s4 + $0x8] sm:$0xff]   ;;  %v197_v44 = vpack.c.bf16 %v106_v40, %v105_v37  ;;  %v108_v49 = vld [vmem:[%s13810_s0 + $0x258] sm:$0xff]  ;;  %v109_v50 = vld [vmem:[%s13810_s0 + $0x260] sm:$0xff]  ;;  %v170_v56 = vpack.c.bf16 %v52_v47, %v51_v46 }
   0xd   :  { %7111 = vmatprep.subr.bf16.mxu1 %v7418_v42  ;;  %v110_v51 = vld [vmem:[%s13810_s0 + $0x268] sm:$0xff]  ;;  %v53_v52 = vld [vmem:[%s13810_s0 + $0xa0] sm:$0xff]  ;;  %v7419_v54 = vld [vmem:[%s13814_s4 + $0x10] sm:$0xff]   ;;  %v198_v55 = vpack.c.bf16 %v108_v49, %v107_v48 }
   0xe   :  { %6986 = vmatmul.mubr.msk.bf16.gmra.mrb[4].mxu0 %vm233_vm1, %v164_v15  ;;  %v54_v53 = vld [vmem:[%s13810_s0 + $0xa8] sm:$0xff]  ;;  %v199_v57 = vpack.c.bf16 %v110_v51, %v109_v50  ;;  %v7420_v59 = vld [vmem:[%s13814_s4 + $0x18] sm:$0xff]   ;;  %v55_v60 = vld [vmem:[%s13810_s0 + $0xb0] sm:$0xff] }
   0xf   :  { %6989 = vmatprep.mubr.msk.bf16.mxu0 %vm233_vm1, %v165_v16  ;;  %7112 = vmatpush3.bf16.msra.mxu1 %v7418_v42  ;;  %v171_v58 = vpack.c.bf16 %v54_v53, %v53_v52  ;;  %v56_v61 = vld [vmem:[%s13810_s0 + $0xb8] sm:$0xff]  ;;  %v111_v62 = vld [vmem:[%s13810_s0 + $0x270] sm:$0xff]  ;;  %v113_v0 = vld [vmem:[%s13810_s0 + $0x280] sm:$0xff] }
  0x10   :  { %7113 = vmatprep.subr.bf16.mxu1 %v7419_v54  ;;  %v112_v63 = vld [vmem:[%s13810_s0 + $0x278] sm:$0xff]  ;;  %v114_v1 = vld [vmem:[%s13810_s0 + $0x288] sm:$0xff]  ;;  %v7421_v2 = vld [vmem:[%s13814_s4 + $0x20] sm:$0xff]   ;;  %v172_v6 = vpack.c.bf16 %v56_v61, %v55_v60 }
  0x11   :  { %v57_v3 = vld [vmem:[%s13810_s0 + $0xc0] sm:$0xff]  ;;  %v58_v4 = vld [vmem:[%s13810_s0 + $0xc8] sm:$0xff]  ;;  %v200_v5 = vpack.c.bf16 %v112_v63, %v111_v62  ;;  %v201_v7 = vpack.c.bf16 %v114_v1, %v113_v0  ;;  %v59_v10 = vld [vmem:[%s13810_s0 + $0xd0] sm:$0xff] }
  0x12   :  { %7050 = vmatmul.mubr.msk.bf16.gmra.mrb[4].mxu1 %vm233_vm1, %v196_v41  ;;  %v173_v8 = vpack.c.bf16 %v58_v4, %v57_v3  ;;  %v7422_v9 = vld [vmem:[%s13814_s4 + $0x28] sm:$0xff]   ;;  %v115_v11 = vld [vmem:[%s13810_s0 + $0x290] sm:$0xff]  ;;  %v116_v12 = vld [vmem:[%s13810_s0 + $0x298] sm:$0xff] }
  0x13   :  { %7053 = vmatprep.mubr.msk.bf16.mxu1 %vm233_vm1, %v197_v44  ;;  %7114 = vmatpush3.bf16.msra.mxu1 %v7419_v54  ;;  %v7423_v13 = vld [vmem:[%s13814_s4 + $0x30] sm:$0xff]   ;;  %v60_v14 = vld [vmem:[%s13810_s0 + $0xd8] sm:$0xff]  ;;  %v117_v15 = vld [vmem:[%s13810_s0 + $0x2a0] sm:$0xff]  ;;  %v202_v19 = vpack.c.bf16 %v116_v12, %v115_v11 }
  0x14   :  { %7115 = vmatprep.subr.bf16.mxu1 %v7420_v59  ;;  %v118_v16 = vld [vmem:[%s13810_s0 + $0x2a8] sm:$0xff]  ;;  %v61_v17 = vld [vmem:[%s13810_s0 + $0xe0] sm:$0xff]  ;;  %v174_v20 = vpack.c.bf16 %v60_v14, %v59_v10  ;;  %v7424_v22 = vld [vmem:[%s13814_s4 + $0x38] sm:$0xff]  }
  0x15   :  { %v62_v18 = vld [vmem:[%s13810_s0 + $0xe8] sm:$0xff]  ;;  %v203_v21 = vpack.c.bf16 %v118_v16, %v117_v15  ;;  %v119_v24 = vld [vmem:[%s13810_s0 + $0x2b0] sm:$0xff]  ;;  %v120_v25 = vld [vmem:[%s13810_s0 + $0x2b8] sm:$0xff] }
  0x16   :  { %6990 = vmatmul.mubr.msk.bf16.gmra.mrb[8].mxu0 %vm233_vm1, %v166_v23  ;;  %v175_v23 = vpack.c.bf16 %v62_v18, %v61_v17  ;;  %v63_v26 = vld [vmem:[%s13810_s0 + $0xf0] sm:$0xff]  ;;  %v121_v28 = vld [vmem:[%s13810_s0 + $0x2c0] sm:$0xff]  ;;  %v122_v29 = vld [vmem:[%s13810_s0 + $0x2c8] sm:$0xff] }
  0x17   :  { %6993 = vmatprep.mubr.msk.bf16.mxu0 %vm233_vm1, %v167_v27  ;;  %7116 = vmatpush3.bf16.msra.mxu1 %v7420_v59  ;;  %v64_v27 = vld [vmem:[%s13810_s0 + $0xf8] sm:$0xff]  ;;  %v65_v30 = vld [vmem:[%s13810_s0 + $0x100] sm:$0xff]  ;;  %v66_v31 = vld [vmem:[%s13810_s0 + $0x108] sm:$0xff] }
  0x18   :  { %7117 = vmatprep.subr.bf16.mxu1 %v7421_v2 }
  0x1a   :  { %7054 = vmatmul.mubr.msk.bf16.gmra.mrb[8].mxu1 %vm233_vm1, %v198_v55 }
  0x1b   :  { %7057 = vmatprep.mubr.msk.bf16.mxu1 %vm233_vm1, %v199_v57  ;;  %7118 = vmatpush3.bf16.msra.mxu1 %v7421_v2 }
  0x1c   :  { %7119 = vmatprep.subr.bf16.mxu1 %v7422_v9 }
  0x1e   :  { %6994 = vmatmul.mubr.msk.bf16.gmra.mrb[12].mxu0 %vm233_vm1, %v168_v43 }
  0x1f   :  { %6997 = vmatprep.mubr.msk.bf16.mxu0 %vm233_vm1, %v169_v45  ;;  %7120 = vmatpush3.bf16.msra.mxu1 %v7422_v9 }
  0x20   :  { %7121 = vmatprep.subr.bf16.mxu1 %v7423_v13 }
  0x22   :  { %7058 = vmatmul.mubr.msk.bf16.gmra.mrb[12].mxu1 %vm233_vm1, %v200_v5 }
  0x23   :  { %7061 = vmatprep.mubr.msk.bf16.mxu1 %vm233_vm1, %v201_v7  ;;  %7122 = vmatpush3.bf16.msra.mxu1 %v7423_v13 }
  0x24   :  { %7123 = vmatprep.subr.bf16.mxu1 %v7424_v22 }
  0x26   :  { %6998 = vmatmul.mubr.msk.bf16.gmra.mrb[16].mxu0 %vm233_vm1, %v170_v56 }
  0x27   :  { %7001 = vmatprep.mubr.msk.bf16.mxu0 %vm233_vm1, %v171_v58  ;;  %7124 = vmatpush3.bf16.msra.mxu1 %v7424_v22 }
  0x2a   :  { %7062 = vmatmul.mubr.msk.bf16.gmra.mrb[16].mxu1 %vm233_vm1, %v202_v19 }
  0x2b   :  { %7065 = vmatprep.mubr.msk.bf16.mxu1 %vm233_vm1, %v203_v21 }
  0x2e   :  { %7002 = vmatmul.mubr.msk.bf16.gmra.mrb[20].mxu0 %vm233_vm1, %v172_v6 }
  0x2f   :  { %7005 = vmatprep.mubr.msk.bf16.mxu0 %vm233_vm1, %v173_v8 }
  0x36   :  { %7006 = vmatmul.mubr.msk.bf16.gmra.mrb[24].mxu0 %vm233_vm1, %v174_v20 }
  0x37   :  { %7009 = vmatprep.mubr.msk.bf16.mxu0 %vm233_vm1, %v175_v23 }
  0x38   :  { %15 = vsyncpa [#allocation3], 0  ;;  %v204_v32 = vpack.c.bf16 %v120_v25, %v119_v24  ;;  %v176_v33 = vpack.c.bf16 %v64_v27, %v63_v26  ;;  %v205_v34 = vpack.c.bf16 %v122_v29, %v121_v28  ;;  %v177_v35 = vpack.c.bf16 %v66_v31, %v65_v30  ;;  %v67_v36 = vld [vmem:[%s13810_s0 + $0x110] sm:$0xff]  ;;  %v124_v38 = vld [vmem:[%s13810_s0 + $0x2d8] sm:$0xff]  ;;  %s8241_s28 = smov 125   ;;  %s8242_s29 = smov 1  }
  0x39   :  { %v123_v37 = vld [vmem:[%s13810_s0 + $0x2d0] sm:$0xff]  ;;  %v68_v39 = vld [vmem:[%s13810_s0 + $0x118] sm:$0xff]  ;;  %v125_v40 = vld [vmem:[%s13810_s0 + $0x2e0] sm:$0xff]  ;;  %vm6319_vm2 = vcmask 23552   ;;  %vm6473_vm3 = vcmask 7168   ;;  %vm6328_vm4 = vcmask 31744  }
  0x3a   :  { %7066 = vmatmul.mubr.msk.bf16.gmra.mrb[20].mxu1 %vm233_vm1, %v204_v32  ;;  %v126_v41 = vld [vmem:[%s13810_s0 + $0x2e8] sm:$0xff]  ;;  %v69_v42 = vld [vmem:[%s13810_s0 + $0x120] sm:$0xff]  ;;  %v206_v44 = vpack.c.bf16 %v124_v38, %v123_v37  ;;  %v178_v45 = vpack.c.bf16 %v68_v39, %v67_v36  ;;  %v71_v48 = vld [vmem:[%s13810_s0 + $0x130] sm:$0xff]  ;;  %s8246_s25 = smov [#allocation2]   ;;  %vm6539_vm9 = vcmask 57344  }
  0x3b   :  { %7069 = vmatprep.mubr.msk.bf16.mxu1 %vm233_vm1, %v205_v34  ;;  %v70_v43 = vld [vmem:[%s13810_s0 + $0x128] sm:$0xff]  ;;  %v207_v46 = vpack.c.bf16 %v126_v41, %v125_v40  ;;  %v127_v49 = vld [vmem:[%s13810_s0 + $0x2f0] sm:$0xff]  ;;  %v128_v50 = vld [vmem:[%s13810_s0 + $0x2f8] sm:$0xff] }
  0x3c   :  { %v179_v47 = vpack.c.bf16 %v70_v43, %v69_v42  ;;  %v72_v51 = vld [vmem:[%s13810_s0 + $0x138] sm:$0xff]  ;;  %v129_v52 = vld [vmem:[%s13810_s0 + $0x300] sm:$0xff]  ;;  %v130_v53 = vld [vmem:[%s13810_s0 + $0x308] sm:$0xff]  ;;  %v208_v56 = vpack.c.bf16 %v128_v50, %v127_v49 }
  0x3d   :  { %v73_v54 = vld [vmem:[%s13810_s0 + $0x140] sm:$0xff]  ;;  %v74_v55 = vld [vmem:[%s13810_s0 + $0x148] sm:$0xff]  ;;  %v180_v57 = vpack.c.bf16 %v72_v51, %v71_v48  ;;  %v209_v58 = vpack.c.bf16 %v130_v53, %v129_v52  ;;  %v75_v60 = vld [vmem:[%s13810_s0 + $0x150] sm:$0xff] }
  0x3e   :  { %7010 = vmatmul.mubr.msk.bf16.gmra.mrb[28].mxu0 %vm233_vm1, %v176_v33  ;;  %v181_v59 = vpack.c.bf16 %v74_v55, %v73_v54  ;;  %v131_v61 = vld [vmem:[%s13810_s0 + $0x310] sm:$0xff]  ;;  %v132_v62 = vld [vmem:[%s13810_s0 + $0x318] sm:$0xff]  ;;  %v133_v0 = vld [vmem:[%s13810_s0 + $0x320] sm:$0xff] }
  0x3f   :  { %7013 = vmatprep.mubr.msk.bf16.mxu0 %vm233_vm1, %v177_v35  ;;  %v76_v63 = vld [vmem:[%s13810_s0 + $0x158] sm:$0xff]  ;;  %v134_v1 = vld [vmem:[%s13810_s0 + $0x328] sm:$0xff]  ;;  %v77_v2 = vld [vmem:[%s13810_s0 + $0x160] sm:$0xff]  ;;  %v210_v4 = vpack.c.bf16 %v132_v62, %v131_v61 }
  0x40   :  { %v78_v3 = vld [vmem:[%s13810_s0 + $0x168] sm:$0xff]  ;;  %v182_v5 = vpack.c.bf16 %v76_v63, %v75_v60  ;;  %v211_v6 = vpack.c.bf16 %v134_v1, %v133_v0  ;;  %v79_v8 = vld [vmem:[%s13810_s0 + $0x170] sm:$0xff]  ;;  %v136_v10 = vld [vmem:[%s13810_s0 + $0x338] sm:$0xff] }
  0x41   :  { %v183_v7 = vpack.c.bf16 %v78_v3, %v77_v2  ;;  %v135_v9 = vld [vmem:[%s13810_s0 + $0x330] sm:$0xff]  ;;  %v80_v11 = vld [vmem:[%s13810_s0 + $0x178] sm:$0xff]  ;;  %v137_v12 = vld [vmem:[%s13810_s0 + $0x340] sm:$0xff] }
  0x42   :  { %7070 = vmatmul.mubr.msk.bf16.gmra.mrb[24].mxu1 %vm233_vm1, %v206_v44  ;;  %v138_v13 = vld [vmem:[%s13810_s0 + $0x348] sm:$0xff]  ;;  %v81_v14 = vld [vmem:[%s13810_s0 + $0x180] sm:$0xff]  ;;  %v212_v16 = vpack.c.bf16 %v136_v10, %v135_v9  ;;  %v184_v17 = vpack.c.bf16 %v80_v11, %v79_v8  ;;  %v83_v20 = vld [vmem:[%s13810_s0 + $0x190] sm:$0xff] }
  0x43   :  { %7073 = vmatprep.mubr.msk.bf16.mxu1 %vm233_vm1, %v207_v46  ;;  %v82_v15 = vld [vmem:[%s13810_s0 + $0x188] sm:$0xff]  ;;  %v213_v18 = vpack.c.bf16 %v138_v13, %v137_v12  ;;  %v139_v21 = vld [vmem:[%s13810_s0 + $0x350] sm:$0xff]  ;;  %v140_v22 = vld [vmem:[%s13810_s0 + $0x358] sm:$0xff] }
  0x44   :  { %v185_v19 = vpack.c.bf16 %v82_v15, %v81_v14  ;;  %v84_v23 = vld [vmem:[%s13810_s0 + $0x198] sm:$0xff]  ;;  %v141_v24 = vld [vmem:[%s13810_s0 + $0x360] sm:$0xff]  ;;  %v142_v25 = vld [vmem:[%s13810_s0 + $0x368] sm:$0xff]  ;;  %v214_v28 = vpack.c.bf16 %v140_v22, %v139_v21 }
  0x45   :  { %v85_v26 = vld [vmem:[%s13810_s0 + $0x1a0] sm:$0xff]  ;;  %v86_v27 = vld [vmem:[%s13810_s0 + $0x1a8] sm:$0xff]  ;;  %v186_v29 = vpack.c.bf16 %v84_v23, %v83_v20  ;;  %v215_v30 = vpack.c.bf16 %v142_v25, %v141_v24  ;;  %v87_v32 = vld [vmem:[%s13810_s0 + $0x1b0] sm:$0xff] }
  0x46   :  { %7014 = vmatmul.mubr.msk.bf16.gmra.mrb[32].mxu0 %vm233_vm1, %v178_v45  ;;  %v187_v31 = vpack.c.bf16 %v86_v27, %v85_v26  ;;  %v143_v33 = vld [vmem:[%s13810_s0 + $0x370] sm:$0xff]  ;;  %v144_v34 = vld [vmem:[%s13810_s0 + $0x378] sm:$0xff]  ;;  %v145_v36 = vld [vmem:[%s13810_s0 + $0x380] sm:$0xff] }
  0x47   :  { %7017 = vmatprep.mubr.msk.bf16.mxu0 %vm233_vm1, %v179_v47  ;;  %v88_v35 = vld [vmem:[%s13810_s0 + $0x1b8] sm:$0xff]  ;;  %v146_v37 = vld [vmem:[%s13810_s0 + $0x388] sm:$0xff]  ;;  %v89_v38 = vld [vmem:[%s13810_s0 + $0x1c0] sm:$0xff]  ;;  %v216_v40 = vpack.c.bf16 %v144_v34, %v143_v33 }
  0x48   :  { %v90_v39 = vld [vmem:[%s13810_s0 + $0x1c8] sm:$0xff]  ;;  %v188_v41 = vpack.c.bf16 %v88_v35, %v87_v32  ;;  %v217_v42 = vpack.c.bf16 %v146_v37, %v145_v36  ;;  %v91_v44 = vld [vmem:[%s13810_s0 + $0x1d0] sm:$0xff]  ;;  %v148_v46 = vld [vmem:[%s13810_s0 + $0x398] sm:$0xff] }
  0x49   :  { %v189_v43 = vpack.c.bf16 %v90_v39, %v89_v38  ;;  %v147_v45 = vld [vmem:[%s13810_s0 + $0x390] sm:$0xff]  ;;  %v92_v47 = vld [vmem:[%s13810_s0 + $0x1d8] sm:$0xff]  ;;  %v149_v48 = vld [vmem:[%s13810_s0 + $0x3a0] sm:$0xff] }
  0x4a   :  { %7074 = vmatmul.mubr.msk.bf16.gmra.mrb[28].mxu1 %vm233_vm1, %v208_v56  ;;  %v150_v49 = vld [vmem:[%s13810_s0 + $0x3a8] sm:$0xff]  ;;  %v93_v50 = vld [vmem:[%s13810_s0 + $0x1e0] sm:$0xff]  ;;  %v218_v52 = vpack.c.bf16 %v148_v46, %v147_v45  ;;  %v190_v53 = vpack.c.bf16 %v92_v47, %v91_v44  ;;  %v95_v56 = vld [vmem:[%s13810_s0 + $0x1f0] sm:$0xff] }
  0x4b   :  { %7077 = vmatprep.mubr.msk.bf16.mxu1 %vm233_vm1, %v209_v58  ;;  %v94_v51 = vld [vmem:[%s13810_s0 + $0x1e8] sm:$0xff]  ;;  %v219_v54 = vpack.c.bf16 %v150_v49, %v149_v48  ;;  %v152_v58 = vld [vmem:[%s13810_s0 + $0x3b8] sm:$0xff]  ;;  %v153_v60 = vld [vmem:[%s13810_s0 + $0x3c0] sm:$0xff] }
  0x4c   :  { %v191_v55 = vpack.c.bf16 %v94_v51, %v93_v50  ;;  %v154_v61 = vld [vmem:[%s13810_s0 + $0x3c8] sm:$0xff]  ;;  %v155_v1 = vld [vmem:[%s13810_s0 + $0x3d0] sm:$0xff]  ;;  %v156_v2 = vld [vmem:[%s13810_s0 + $0x3d8] sm:$0xff] }
  0x4d   :  { %v221_v0 = vpack.c.bf16 %v154_v61, %v153_v60  ;;  %v157_v3 = vld [vmem:[%s13810_s0 + $0x3e0] sm:$0xff]  ;;  %v160_v8 = vld [vmem:[%s13810_s0 + $0x3f8] sm:$0xff]  ;;  %v7426_v11 = vld [vmem:[%s13816_s6 + $0x8] sm:$0xff]  }
  0x4e   :  { %7018 = vmatmul.mubr.msk.bf16.gmra.mrb[36].mxu0 %vm233_vm1, %v180_v57  ;;  %v151_v57 = vld [vmem:[%s13810_s0 + $0x3b0] sm:$0xff]  ;;  %v7425_v10 = vld [vmem:[%s13816_s6] sm:$0xff]   ;;  %v7428_v61 = vld [vmem:[%s13816_s6 + $0x18] sm:$0xff]  }
  0x4f   :  { %7021 = vmatprep.mubr.msk.bf16.mxu0 %vm233_vm1, %v181_v59  ;;  %v96_v59 = vld [vmem:[%s13810_s0 + $0x1f8] sm:$0xff]  ;;  %v220_v62 = vpack.c.bf16 %v152_v58, %v151_v57  ;;  %7253 = vmatprep.subr.bf16.mxu0 %v7425_v10  ;;  %v8781_v12 = vld [vmem:[%s13813_s3] ss:$0 sm:$0xff]  ;;  %v7427_v21 = vld [vmem:[%s13816_s6 + $0x10] sm:$0xff]  }
  0x50   :  { %v192_v63 = vpack.c.bf16 %v96_v59, %v95_v56  ;;  %7254 = vmatpush3.bf16.msra.mxu0 %v7425_v10 }
  0x51   :  { %7255 = vmatprep.subr.bf16.mxu0 %v7426_v11 }
  0x52   :  { %7078 = vmatmul.mubr.msk.bf16.gmra.mrb[32].mxu1 %vm233_vm1, %v210_v4  ;;  %v158_v4 = vld [vmem:[%s13810_s0 + $0x3e8] sm:$0xff] }
  0x53   :  { %7081 = vmatprep.mubr.msk.bf16.mxu1 %vm233_vm1, %v211_v6  ;;  %v223_v6 = vpack.c.bf16 %v158_v4, %v157_v3 }
  0x54   :  { %7256 = vmatpush3.bf16.msra.mxu0 %v7426_v11 }
  0x55   :  { %7257 = vmatprep.subr.bf16.mxu0 %v7427_v21 }
  0x56   :  { %7022 = vmatmul.mubr.msk.bf16.gmra.mrb[40].mxu0 %vm233_vm1, %v182_v5  ;;  %v222_v5 = vpack.c.bf16 %v156_v2, %v155_v1 }
  0x57   :  { %7025 = vmatprep.mubr.msk.bf16.mxu0 %vm233_vm1, %v183_v7  ;;  %v159_v7 = vld [vmem:[%s13810_s0 + $0x3f0] sm:$0xff] }
  0x58   :  { %v224_v9 = vpack.c.bf16 %v160_v8, %v159_v7  ;;  %7258 = vmatpush3.bf16.msra.mxu0 %v7427_v21 }
  0x59   :  { %7259 = vmatprep.subr.bf16.mxu0 %v7428_v61 }
  0x5a   :  { %7082 = vmatmul.mubr.msk.bf16.gmra.mrb[36].mxu1 %vm233_vm1, %v212_v16 }
  0x5b   :  { %7085 = vmatprep.mubr.msk.bf16.mxu1 %vm233_vm1, %v213_v18 }
  0x5c   :  { %7260 = vmatpush3.bf16.msra.mxu0 %v7428_v61 }
  0x5e   :  { %7026 = vmatmul.mubr.msk.bf16.gmra.mrb[44].mxu0 %vm233_vm1, %v184_v17 }
  0x5f   :  { %7029 = vmatprep.mubr.msk.bf16.mxu0 %vm233_vm1, %v185_v19 }
  0x62   :  { %7086 = vmatmul.mubr.msk.bf16.gmra.mrb[40].mxu1 %vm233_vm1, %v214_v28 }
  0x63   :  { %7089 = vmatprep.mubr.msk.bf16.mxu1 %vm233_vm1, %v215_v30 }
  0x66   :  { %7030 = vmatmul.mubr.msk.bf16.gmra.mrb[48].mxu0 %vm233_vm1, %v186_v29 }
  0x67   :  { %7033 = vmatprep.mubr.msk.bf16.mxu0 %vm233_vm1, %v187_v31 }
  0x6a   :  { %7090 = vmatmul.mubr.msk.bf16.gmra.mrb[44].mxu1 %vm233_vm1, %v216_v40 }
  0x6b   :  { %7093 = vmatprep.mubr.msk.bf16.mxu1 %vm233_vm1, %v217_v42 }
  0x6e   :  { %7034 = vmatmul.mubr.msk.bf16.gmra.mrb[52].mxu0 %vm233_vm1, %v188_v41 }
  0x6f   :  { %7037 = vmatprep.mubr.msk.bf16.mxu0 %vm233_vm1, %v189_v43 }
  0x72   :  { %7094 = vmatmul.mubr.msk.bf16.gmra.mrb[48].mxu1 %vm233_vm1, %v218_v52 }
  0x73   :  { %7097 = vmatprep.mubr.msk.bf16.mxu1 %vm233_vm1, %v219_v54 }
  0x76   :  { %7038 = vmatmul.mubr.msk.bf16.gmra.mrb[56].mxu0 %vm233_vm1, %v190_v53 }
  0x77   :  { %7041 = vmatprep.mubr.msk.bf16.mxu0 %vm233_vm1, %v191_v55 }
  0x7a   :  { %7098 = vmatmul.mubr.msk.bf16.gmra.mrb[52].mxu1 %vm233_vm1, %v220_v62 }
  0x7b   :  { %7101 = vmatprep.mubr.msk.bf16.mxu1 %vm233_vm1, %v221_v0 }
  0x7e   :  { %7042 = vmatmul.mubr.msk.bf16.gmra.mrb[60].mxu0 %vm233_vm1, %v192_v63 }
  0x82   :  { %7102 = vmatmul.mubr.msk.bf16.gmra.mrb[56].mxu1 %vm233_vm1, %v222_v5 }
  0x83   :  { %7105 = vmatprep.mubr.msk.bf16.mxu1 %vm233_vm1, %v223_v6 }
  0x8a   :  { %7106 = vmatmul.mubr.msk.bf16.gmra.mrb[60].mxu1 %vm233_vm1, %v224_v9 }
  0xd9   :  { %v6983_v13 = vpop.f32.mrb[0].mxu0 }
  0xda   :  { %v473_v14 = vadd.f32 %v6983_v13, %v8781_v12  ;;  %v464_v15 = vpop.f32.mrb[1].mxu0 }
  0xdb   :  { %v465_v16 = vadd.f32 %v8781_v12, %v464_v15  ;;  %v6984_v17 = vpop.f32.mrb[2].mxu0 }
  0xdc   :  { %v476_v18 = vadd.f32 %v6984_v17, %v8781_v12  ;;  %v467_v19 = vpop.f32.mrb[3].mxu0  ;;  %v977_v22 = vmax.f32 %v473_v14, 0.0 }
  0xdd   :  { %v468_v20 = vadd.f32 %v8781_v12, %v467_v19  ;;  %v975_v24 = vmax.f32 %v465_v16, 0.0  ;;  %v7047_v41 = vpop.f32.mrb[0].mxu1 }
  0xde   :  { %v978_v23 = vmax.f32 %v476_v18, 0.0  ;;  %v729_v44 = vadd.f32 %v7047_v41, %v8781_v12  ;;  %v720_v45 = vpop.f32.mrb[1].mxu1 }
  0xdf   :  { %v976_v25 = vmax.f32 %v468_v20, 0.0  ;;  %v721_v48 = vadd.f32 %v8781_v12, %v720_v45  ;;  %v7048_v49 = vpop.f32.mrb[2].mxu1 }
  0xe0   :  { %v1104_v26 = vpack.c.bf16 %v978_v23, %v977_v22  ;;  %v1041_v52 = vmax.f32 %v729_v44, 0.0  ;;  %v732_v53 = vadd.f32 %v7048_v49, %v8781_v12  ;;  %v723_v54 = vpop.f32.mrb[3].mxu1 }
  0xe1   :  { %v1103_v27 = vpack.c.bf16 %v976_v25, %v975_v24  ;;  %v6987_v28 = vpop.f32.mrb[4].mxu0  ;;  %v1039_v57 = vmax.f32 %v721_v48, 0.0  ;;  %v724_v58 = vadd.f32 %v8781_v12, %v723_v54 }
  0xe2   :  { %v489_v29 = vadd.f32 %v6987_v28, %v8781_v12  ;;  %v480_v30 = vpop.f32.mrb[5].mxu0  ;;  %v1042_v60 = vmax.f32 %v732_v53, 0.0 }
  0xe3   :  { %v481_v31 = vadd.f32 %v8781_v12, %v480_v30  ;;  %v6988_v32 = vpop.f32.mrb[6].mxu0  ;;  %7125 = vmatprep.mubr.bf16.mxu1 %v1103_v27  ;;  %v1040_v0 = vmax.f32 %v724_v58, 0.0 }
  0xe4   :  { %v492_v33 = vadd.f32 %v6988_v32, %v8781_v12  ;;  %v483_v34 = vpop.f32.mrb[7].mxu0  ;;  %7126 = vmatmul.mubr.bf16.vlgmr.msra.gmra.mrb[64].mxu1 %v1104_v26  ;;  %v981_v36 = vmax.f32 %v489_v29, 0.0  ;;  %v8805_v3 = vpack.c.bf16 %v1042_v60, %v1041_v52 }
  0xe5   :  { %v484_v35 = vadd.f32 %v8781_v12, %v483_v34  ;;  %v979_v38 = vmax.f32 %v481_v31, 0.0  ;;  %v8807_v5 = vpack.c.bf16 %v1040_v0, %v1039_v57  ;;  %v7051_v6 = vpop.f32.mrb[4].mxu1 }
  0xe6   :  { %v982_v37 = vmax.f32 %v492_v33, 0.0  ;;  %v745_v9 = vadd.f32 %v7051_v6, %v8781_v12  ;;  %v736_v10 = vpop.f32.mrb[5].mxu1 }
  0xe7   :  { %v980_v39 = vmax.f32 %v484_v35, 0.0  ;;  %v737_v14 = vadd.f32 %v8781_v12, %v736_v10  ;;  %v7052_v15 = vpop.f32.mrb[6].mxu1 }
  0xe8   :  { %v1106_v40 = vpack.c.bf16 %v982_v37, %v981_v36  ;;  %v1045_v18 = vmax.f32 %v745_v9, 0.0  ;;  %v748_v19 = vadd.f32 %v7052_v15, %v8781_v12  ;;  %v739_v20 = vpop.f32.mrb[7].mxu1 }
  0xe9   :  { %v1105_v42 = vpack.c.bf16 %v980_v39, %v979_v38  ;;  %v6991_v43 = vpop.f32.mrb[8].mxu0  ;;  %v1043_v23 = vmax.f32 %v737_v14, 0.0  ;;  %v740_v24 = vadd.f32 %v8781_v12, %v739_v20 }
  0xea   :  { %v505_v46 = vadd.f32 %v6991_v43, %v8781_v12  ;;  %v496_v47 = vpop.f32.mrb[9].mxu0  ;;  %v1046_v26 = vmax.f32 %v748_v19, 0.0 }
  0xeb   :  { %v497_v50 = vadd.f32 %v8781_v12, %v496_v47  ;;  %v6992_v51 = vpop.f32.mrb[10].mxu0  ;;  %7129 = vmatprep.mubr.bf16.mxu1 %v1105_v42  ;;  %v1044_v29 = vmax.f32 %v740_v24, 0.0 }
  0xec   :  { %v508_v55 = vadd.f32 %v6992_v51, %v8781_v12  ;;  %v499_v56 = vpop.f32.mrb[11].mxu0  ;;  %7130 = vmatmul.mubr.bf16.gmra.mrb[68].mxu1 %v1106_v40  ;;  %v985_v62 = vmax.f32 %v505_v46, 0.0  ;;  %v8817_v32 = vpack.c.bf16 %v1046_v26, %v1045_v18 }
  0xed   :  { %v500_v59 = vadd.f32 %v8781_v12, %v499_v56  ;;  %v983_v1 = vmax.f32 %v497_v50, 0.0  ;;  %v8819_v34 = vpack.c.bf16 %v1044_v29, %v1043_v23  ;;  %v7055_v35 = vpop.f32.mrb[8].mxu1 }
  0xee   :  { %v986_v63 = vmax.f32 %v508_v55, 0.0  ;;  %v761_v38 = vadd.f32 %v7055_v35, %v8781_v12  ;;  %v752_v39 = vpop.f32.mrb[9].mxu1  ;;  %v7429_v55 = vld [vmem:[%s13816_s6 + $0x20] sm:$0xff]  }
  0xef   :  { %v984_v2 = vmax.f32 %v500_v59, 0.0  ;;  %v753_v42 = vadd.f32 %v8781_v12, %v752_v39  ;;  %v7056_v43 = vpop.f32.mrb[10].mxu1  ;;  %7261 = vmatprep.subr.bf16.mxu0 %v7429_v55 }
  0xf0   :  { %v1108_v4 = vpack.c.bf16 %v986_v63, %v985_v62  ;;  %v1049_v46 = vmax.f32 %v761_v38, 0.0  ;;  %v764_v47 = vadd.f32 %v7056_v43, %v8781_v12  ;;  %v755_v48 = vpop.f32.mrb[11].mxu1  ;;  %7262 = vmatpush3.bf16.msra.mxu0 %v7429_v55 }
  0xf1   :  { %v1107_v7 = vpack.c.bf16 %v984_v2, %v983_v1  ;;  %v6995_v8 = vpop.f32.mrb[12].mxu0  ;;  %v1047_v51 = vmax.f32 %v753_v42, 0.0  ;;  %v756_v52 = vadd.f32 %v8781_v12, %v755_v48 }
  0xf2   :  { %v521_v11 = vadd.f32 %v6995_v8, %v8781_v12  ;;  %v512_v13 = vpop.f32.mrb[13].mxu0  ;;  %v1050_v54 = vmax.f32 %v764_v47, 0.0 }
  0xf3   :  { %v513_v16 = vadd.f32 %v8781_v12, %v512_v13  ;;  %v6996_v17 = vpop.f32.mrb[14].mxu0  ;;  %7133 = vmatprep.mubr.bf16.mxu1 %v1107_v7  ;;  %v1048_v58 = vmax.f32 %v756_v52, 0.0 }
  0xf4   :  { %v524_v21 = vadd.f32 %v6996_v17, %v8781_v12  ;;  %v515_v22 = vpop.f32.mrb[15].mxu0  ;;  %7134 = vmatmul.mubr.bf16.gmra.mrb[72].mxu1 %v1108_v4  ;;  %v989_v27 = vmax.f32 %v521_v11, 0.0  ;;  %v8832_v61 = vpack.c.bf16 %v1050_v54, %v1049_v46 }
  0xf5   :  { %v516_v25 = vadd.f32 %v8781_v12, %v515_v22  ;;  %v987_v30 = vmax.f32 %v513_v16, 0.0  ;;  %v8834_v63 = vpack.c.bf16 %v1048_v58, %v1047_v51  ;;  %v7059_v0 = vpop.f32.mrb[12].mxu1 }
  0xf6   :  { %v990_v28 = vmax.f32 %v524_v21, 0.0  ;;  %v777_v4 = vadd.f32 %v7059_v0, %v8781_v12  ;;  %v768_v6 = vpop.f32.mrb[13].mxu1 }
  0xf7   :  { %v988_v31 = vmax.f32 %v516_v25, 0.0  ;;  %v769_v9 = vadd.f32 %v8781_v12, %v768_v6  ;;  %v7060_v10 = vpop.f32.mrb[14].mxu1 }
  0xf8   :  { %v1110_v33 = vpack.c.bf16 %v990_v28, %v989_v27  ;;  %v1053_v14 = vmax.f32 %v777_v4, 0.0  ;;  %v780_v15 = vadd.f32 %v7060_v10, %v8781_v12  ;;  %v771_v16 = vpop.f32.mrb[15].mxu1 }
  0xf9   :  { %v1109_v36 = vpack.c.bf16 %v988_v31, %v987_v30  ;;  %v6999_v37 = vpop.f32.mrb[16].mxu0  ;;  %v1051_v19 = vmax.f32 %v769_v9, 0.0  ;;  %v772_v20 = vadd.f32 %v8781_v12, %v771_v16 }
  0xfa   :  { %v537_v40 = vadd.f32 %v6999_v37, %v8781_v12  ;;  %v528_v41 = vpop.f32.mrb[17].mxu0  ;;  %v1054_v22 = vmax.f32 %v780_v15, 0.0 }
  0xfb   :  { %v529_v44 = vadd.f32 %v8781_v12, %v528_v41  ;;  %v7000_v45 = vpop.f32.mrb[18].mxu0  ;;  %7137 = vmatprep.mubr.bf16.mxu1 %v1109_v36  ;;  %v1052_v25 = vmax.f32 %v772_v20, 0.0 }
  0xfc   :  { %v540_v49 = vadd.f32 %v7000_v45, %v8781_v12  ;;  %v531_v50 = vpop.f32.mrb[19].mxu0  ;;  %7138 = vmatmul.mubr.bf16.gmra.mrb[76].mxu1 %v1110_v33  ;;  %v993_v56 = vmax.f32 %v537_v40, 0.0  ;;  %v8844_v28 = vpack.c.bf16 %v1054_v22, %v1053_v14 }
  0xfd   :  { %v532_v53 = vadd.f32 %v8781_v12, %v531_v50  ;;  %v991_v59 = vmax.f32 %v529_v44, 0.0  ;;  %v8846_v30 = vpack.c.bf16 %v1052_v25, %v1051_v19  ;;  %v7063_v31 = vpop.f32.mrb[16].mxu1 }
  0xfe   :  { %v994_v57 = vmax.f32 %v540_v49, 0.0  ;;  %v793_v36 = vadd.f32 %v7063_v31, %v8781_v12  ;;  %v784_v37 = vpop.f32.mrb[17].mxu1 }
  0xff   :  { %v992_v60 = vmax.f32 %v532_v53, 0.0  ;;  %v785_v40 = vadd.f32 %v8781_v12, %v784_v37  ;;  %v7064_v41 = vpop.f32.mrb[18].mxu1  ;;  %v7430_v53 = vld [vmem:[%s13816_s6 + $0x28] sm:$0xff]  }
 0x100   :  { %v1112_v62 = vpack.c.bf16 %v994_v57, %v993_v56  ;;  %v1057_v44 = vmax.f32 %v793_v36, 0.0  ;;  %v796_v45 = vadd.f32 %v7064_v41, %v8781_v12  ;;  %v787_v46 = vpop.f32.mrb[19].mxu1  ;;  %7263 = vmatprep.subr.bf16.mxu0 %v7430_v53 }
 0x101   :  { %v1111_v1 = vpack.c.bf16 %v992_v60, %v991_v59  ;;  %v7003_v2 = vpop.f32.mrb[20].mxu0  ;;  %v1055_v49 = vmax.f32 %v785_v40, 0.0  ;;  %v788_v50 = vadd.f32 %v8781_v12, %v787_v46  ;;  %7264 = vmatpush3.bf16.msra.mxu0 %v7430_v53 }
 0x102   :  { %v553_v7 = vadd.f32 %v7003_v2, %v8781_v12  ;;  %v544_v8 = vpop.f32.mrb[21].mxu0  ;;  %v1058_v52 = vmax.f32 %v796_v45, 0.0 }
 0x103   :  { %v545_v11 = vadd.f32 %v8781_v12, %v544_v8  ;;  %v7004_v13 = vpop.f32.mrb[22].mxu0  ;;  %7141 = vmatprep.mubr.bf16.mxu1 %v1111_v1  ;;  %v1056_v56 = vmax.f32 %v788_v50, 0.0 }
 0x104   :  { %v556_v17 = vadd.f32 %v7004_v13, %v8781_v12  ;;  %v547_v18 = vpop.f32.mrb[23].mxu0  ;;  %7142 = vmatmul.mubr.bf16.gmra.mrb[80].mxu1 %v1112_v62  ;;  %v997_v23 = vmax.f32 %v553_v7, 0.0  ;;  %v8859_v59 = vpack.c.bf16 %v1058_v52, %v1057_v44 }
 0x105   :  { %v548_v21 = vadd.f32 %v8781_v12, %v547_v18  ;;  %v995_v26 = vmax.f32 %v545_v11, 0.0  ;;  %v8861_v62 = vpack.c.bf16 %v1056_v56, %v1055_v49 }
 0x106   :  { %v998_v24 = vmax.f32 %v556_v17, 0.0 }
 0x107   :  { %v996_v27 = vmax.f32 %v548_v21, 0.0 }
 0x108   :  { %v1114_v29 = vpack.c.bf16 %v998_v24, %v997_v23 }
 0x109   :  { %v1113_v33 = vpack.c.bf16 %v996_v27, %v995_v26  ;;  %v7007_v35 = vpop.f32.mrb[24].mxu0 }
 0x10a   :  { %v569_v38 = vadd.f32 %v7007_v35, %v8781_v12  ;;  %v560_v39 = vpop.f32.mrb[25].mxu0 }
 0x10b   :  { %v561_v42 = vadd.f32 %v8781_v12, %v560_v39  ;;  %v7008_v43 = vpop.f32.mrb[26].mxu0  ;;  %7145 = vmatprep.mubr.bf16.mxu1 %v1113_v33 }
 0x10c   :  { %v572_v47 = vadd.f32 %v7008_v43, %v8781_v12  ;;  %v563_v48 = vpop.f32.mrb[27].mxu0  ;;  %7146 = vmatmul.mubr.bf16.gmra.mrb[84].mxu1 %v1114_v29  ;;  %v1001_v54 = vmax.f32 %v569_v38, 0.0 }
 0x10d   :  { %v564_v51 = vadd.f32 %v8781_v12, %v563_v48  ;;  %v999_v57 = vmax.f32 %v561_v42, 0.0  ;;  %v7067_v0 = vpop.f32.mrb[20].mxu1 }
 0x10e   :  { %v1002_v55 = vmax.f32 %v572_v47, 0.0  ;;  %v809_v4 = vadd.f32 %v7067_v0, %v8781_v12  ;;  %v800_v6 = vpop.f32.mrb[21].mxu1 }
 0x10f   :  { %v1000_v58 = vmax.f32 %v564_v51, 0.0  ;;  %v801_v9 = vadd.f32 %v8781_v12, %v800_v6  ;;  %v7068_v10 = vpop.f32.mrb[22].mxu1 }
 0x110   :  { %v1116_v60 = vpack.c.bf16 %v1002_v55, %v1001_v54  ;;  %v1061_v14 = vmax.f32 %v809_v4, 0.0  ;;  %v812_v15 = vadd.f32 %v7068_v10, %v8781_v12  ;;  %v803_v16 = vpop.f32.mrb[23].mxu1  ;;  %v7431_v55 = vld [vmem:[%s13816_s6 + $0x30] sm:$0xff]  }
 0x111   :  { %v1115_v1 = vpack.c.bf16 %v1000_v58, %v999_v57  ;;  %v7011_v2 = vpop.f32.mrb[28].mxu0  ;;  %v1059_v19 = vmax.f32 %v801_v9, 0.0  ;;  %v804_v20 = vadd.f32 %v8781_v12, %v803_v16  ;;  %7265 = vmatprep.subr.bf16.mxu0 %v7431_v55 }
 0x112   :  { %v585_v7 = vadd.f32 %v7011_v2, %v8781_v12  ;;  %v576_v8 = vpop.f32.mrb[29].mxu0  ;;  %v1062_v22 = vmax.f32 %v812_v15, 0.0  ;;  %7266 = vmatpush3.bf16.msra.mxu0 %v7431_v55 }
 0x113   :  { %v577_v11 = vadd.f32 %v8781_v12, %v576_v8  ;;  %v7012_v13 = vpop.f32.mrb[30].mxu0  ;;  %7149 = vmatprep.mubr.bf16.mxu1 %v1115_v1  ;;  %v1060_v25 = vmax.f32 %v804_v20, 0.0 }
 0x114   :  { %v588_v17 = vadd.f32 %v7012_v13, %v8781_v12  ;;  %v579_v18 = vpop.f32.mrb[31].mxu0  ;;  %7150 = vmatmul.mubr.bf16.gmra.mrb[88].mxu1 %v1116_v60  ;;  %v1005_v23 = vmax.f32 %v585_v7, 0.0  ;;  %v8871_v29 = vpack.c.bf16 %v1062_v22, %v1061_v14 }
 0x115   :  { %v580_v21 = vadd.f32 %v8781_v12, %v579_v18  ;;  %v1003_v26 = vmax.f32 %v577_v11, 0.0  ;;  %v8873_v33 = vpack.c.bf16 %v1060_v25, %v1059_v19  ;;  %v7071_v35 = vpop.f32.mrb[24].mxu1 }
 0x116   :  { %v1006_v24 = vmax.f32 %v588_v17, 0.0  ;;  %v825_v38 = vadd.f32 %v7071_v35, %v8781_v12  ;;  %v816_v39 = vpop.f32.mrb[25].mxu1 }
 0x117   :  { %v1004_v27 = vmax.f32 %v580_v21, 0.0  ;;  %v817_v42 = vadd.f32 %v8781_v12, %v816_v39  ;;  %v7072_v43 = vpop.f32.mrb[26].mxu1 }
 0x118   :  { %v1118_v31 = vpack.c.bf16 %v1006_v24, %v1005_v23  ;;  %v1065_v46 = vmax.f32 %v825_v38, 0.0  ;;  %v828_v47 = vadd.f32 %v7072_v43, %v8781_v12  ;;  %v819_v48 = vpop.f32.mrb[27].mxu1 }
 0x119   :  { %v1117_v36 = vpack.c.bf16 %v1004_v27, %v1003_v26  ;;  %v7015_v37 = vpop.f32.mrb[32].mxu0  ;;  %v1063_v51 = vmax.f32 %v817_v42, 0.0  ;;  %v820_v52 = vadd.f32 %v8781_v12, %v819_v48  ;;  %v2591_v27 = vld [vmem:[%s13810_s0] sm:$0xff] }
 0x11a   :  { %v601_v40 = vadd.f32 %v7015_v37, %v8781_v12  ;;  %v592_v41 = vpop.f32.mrb[33].mxu0  ;;  %v1066_v54 = vmax.f32 %v828_v47, 0.0  ;;  %2671 = vrot.lane.b32.xlu0 %v2591_v27, %s8241_s28 }
 0x11b   :  { %v593_v44 = vadd.f32 %v8781_v12, %v592_v41  ;;  %v7016_v45 = vpop.f32.mrb[34].mxu0  ;;  %7153 = vmatprep.mubr.bf16.mxu1 %v1117_v36  ;;  %v1064_v58 = vmax.f32 %v820_v52, 0.0 }
 0x11c   :  { %v604_v49 = vadd.f32 %v7016_v45, %v8781_v12  ;;  %v595_v50 = vpop.f32.mrb[35].mxu0  ;;  %7154 = vmatmul.mubr.bf16.gmra.mrb[92].mxu1 %v1118_v31  ;;  %v1009_v56 = vmax.f32 %v601_v40, 0.0  ;;  %v8886_v1 = vpack.c.bf16 %v1066_v54, %v1065_v46 }
 0x11d   :  { %v596_v53 = vadd.f32 %v8781_v12, %v595_v50  ;;  %v1007_v60 = vmax.f32 %v593_v44, 0.0  ;;  %v8888_v4 = vpack.c.bf16 %v1064_v58, %v1063_v51  ;;  %v7075_v6 = vpop.f32.mrb[28].mxu1 }
 0x11e   :  { %v1010_v57 = vmax.f32 %v604_v49, 0.0  ;;  %v841_v9 = vadd.f32 %v7075_v6, %v8781_v12  ;;  %v832_v10 = vpop.f32.mrb[29].mxu1 }
 0x11f   :  { %v1008_v0 = vmax.f32 %v596_v53, 0.0  ;;  %v833_v14 = vadd.f32 %v8781_v12, %v832_v10  ;;  %v7076_v15 = vpop.f32.mrb[30].mxu1 }
 0x120   :  { %v1120_v2 = vpack.c.bf16 %v1010_v57, %v1009_v56  ;;  %v1069_v18 = vmax.f32 %v841_v9, 0.0  ;;  %v844_v19 = vadd.f32 %v7076_v15, %v8781_v12  ;;  %v835_v20 = vpop.f32.mrb[31].mxu1 }
 0x121   :  { %v1119_v7 = vpack.c.bf16 %v1008_v0, %v1007_v60  ;;  %v7019_v8 = vpop.f32.mrb[36].mxu0  ;;  %v1067_v23 = vmax.f32 %v833_v14, 0.0  ;;  %v836_v24 = vadd.f32 %v8781_v12, %v835_v20  ;;  %v2593_v0 = vld [vmem:[%s13810_s0 + $0x10] sm:$0xff] }
 0x122   :  { %v617_v11 = vadd.f32 %v7019_v8, %v8781_v12  ;;  %v608_v13 = vpop.f32.mrb[37].mxu0  ;;  %v1070_v26 = vmax.f32 %v844_v19, 0.0  ;;  %2675 = vrot.lane.b32.xlu1 %v2593_v0, %s8241_s28  ;;  %v7432_v8 = vld [vmem:[%s13816_s6 + $0x38] sm:$0xff]  }
 0x123   :  { %v609_v16 = vadd.f32 %v8781_v12, %v608_v13  ;;  %v7020_v17 = vpop.f32.mrb[38].mxu0  ;;  %7157 = vmatprep.mubr.bf16.mxu1 %v1119_v7  ;;  %v1068_v36 = vmax.f32 %v836_v24, 0.0  ;;  %v2592_v7 = vld [vmem:[%s13810_s0 + $0x8] sm:$0xff]  ;;  %v2594_v13 = vld [vmem:[%s13810_s0 + $0x18] sm:$0xff]  ;;  %7267 = vmatprep.subr.bf16.mxu0 %v7432_v8 }
 0x124   :  { %v620_v21 = vadd.f32 %v7020_v17, %v8781_v12  ;;  %v611_v22 = vpop.f32.mrb[39].mxu0  ;;  %7158 = vmatmul.mubr.bf16.gmra.mrb[96].mxu1 %v1120_v2  ;;  %v1013_v31 = vmax.f32 %v617_v11, 0.0  ;;  %v8902_v39 = vpack.c.bf16 %v1070_v26, %v1069_v18  ;;  %2673 = vrot.lane.b32.xlu0 %v2592_v7, %s8241_s28  ;;  %v2595_v17 = vld [vmem:[%s13810_s0 + $0x20] sm:$0xff] }
 0x125   :  { %v612_v25 = vadd.f32 %v8781_v12, %v611_v22  ;;  %v1011_v37 = vmax.f32 %v609_v16, 0.0  ;;  %v8904_v41 = vpack.c.bf16 %v1068_v36, %v1067_v23  ;;  %v7079_v42 = vpop.f32.mrb[32].mxu1  ;;  %7268 = vmatpush3.bf16.msra.mxu0 %v7432_v8  ;;  %v2808_v8 = vld [vmem:[%s13810_s0 + $0x48] sm:$0xff] }
 0x126   :  { %v1014_v35 = vmax.f32 %v620_v21, 0.0  ;;  %v857_v45 = vadd.f32 %v7079_v42, %v8781_v12  ;;  %v848_v46 = vpop.f32.mrb[33].mxu1  ;;  %2677 = vrot.lane.b32.xlu1 %v2594_v13, %s8241_s28 }
 0x127   :  { %v1012_v38 = vmax.f32 %v612_v25, 0.0  ;;  %v849_v49 = vadd.f32 %v8781_v12, %v848_v46  ;;  %v7080_v50 = vpop.f32.mrb[34].mxu1  ;;  %v2596_v46 = vld [vmem:[%s13810_s0 + $0x28] sm:$0xff] }
 0x128   :  { %v1122_v40 = vpack.c.bf16 %v1014_v35, %v1013_v31  ;;  %v1073_v53 = vmax.f32 %v857_v45, 0.0  ;;  %v860_v54 = vadd.f32 %v7080_v50, %v8781_v12  ;;  %v851_v55 = vpop.f32.mrb[35].mxu1  ;;  %2679 = vrot.lane.b32.xlu0 %v2595_v17, %s8241_s28 }
 0x129   :  { %v1121_v43 = vpack.c.bf16 %v1012_v38, %v1011_v37  ;;  %v7023_v44 = vpop.f32.mrb[40].mxu0  ;;  %v1071_v58 = vmax.f32 %v849_v49, 0.0  ;;  %v852_v60 = vadd.f32 %v8781_v12, %v851_v55  ;;  %v2597_v49 = vld [vmem:[%s13810_s0 + $0x30] sm:$0xff] }
 0x12a   :  { %v633_v47 = vadd.f32 %v7023_v44, %v8781_v12  ;;  %v624_v48 = vpop.f32.mrb[41].mxu0  ;;  %v1074_v6 = vmax.f32 %v860_v54, 0.0  ;;  %2681 = vrot.lane.b32.xlu1 %v2596_v46, %s8241_s28  ;;  %v2809_v46 = vld [vmem:[%s13810_s0 + $0x50] sm:$0xff] }
 0x12b   :  { %v625_v51 = vadd.f32 %v8781_v12, %v624_v48  ;;  %v7024_v52 = vpop.f32.mrb[42].mxu0  ;;  %7161 = vmatprep.mubr.bf16.mxu1 %v1121_v43  ;;  %v1072_v11 = vmax.f32 %v852_v60, 0.0  ;;  %v2598_v60 = vld [vmem:[%s13810_s0 + $0x38] sm:$0xff] }
 0x12c   :  { %v636_v56 = vadd.f32 %v7024_v52, %v8781_v12  ;;  %v627_v57 = vpop.f32.mrb[43].mxu0  ;;  %7162 = vmatmul.mubr.bf16.gmra.mrb[100].mxu1 %v1122_v40  ;;  %v1017_v9 = vmax.f32 %v633_v47, 0.0  ;;  %v8928_v16 = vpack.c.bf16 %v1074_v6, %v1073_v53  ;;  %2683 = vrot.lane.b32.xlu0 %v2597_v49, %s8241_s28 }
 0x12d   :  { %v628_v2 = vadd.f32 %v8781_v12, %v627_v57  ;;  %v1015_v14 = vmax.f32 %v625_v51, 0.0  ;;  %v8933_v19 = vpack.c.bf16 %v1072_v11, %v1071_v58  ;;  %v7083_v20 = vpop.f32.mrb[36].mxu1 }
 0x12e   :  { %v1018_v10 = vmax.f32 %v636_v56, 0.0  ;;  %v873_v23 = vadd.f32 %v7083_v20, %v8781_v12  ;;  %v864_v24 = vpop.f32.mrb[37].mxu1  ;;  %2685 = vrot.lane.b32.xlu1 %v2598_v60, %s8241_s28 }
 0x12f   :  { %v1016_v15 = vmax.f32 %v628_v2, 0.0  ;;  %v865_v27 = vadd.f32 %v8781_v12, %v864_v24  ;;  %v7084_v31 = vpop.f32.mrb[38].mxu1 }
 0x130   :  { %v1124_v18 = vpack.c.bf16 %v1018_v10, %v1017_v9  ;;  %v1077_v37 = vmax.f32 %v873_v23, 0.0  ;;  %v876_v38 = vadd.f32 %v7084_v31, %v8781_v12  ;;  %v867_v40 = vpop.f32.mrb[39].mxu1  ;;  %2889 = vrot.lane.b32.xlu0 %v2808_v8, %s8241_s28  ;;  %v2810_v31 = vld [vmem:[%s13810_s0 + $0x58] sm:$0xff] }
 0x131   :  { %v1123_v21 = vpack.c.bf16 %v1016_v15, %v1015_v14  ;;  %v7027_v22 = vpop.f32.mrb[44].mxu0  ;;  %v1075_v44 = vmax.f32 %v865_v27, 0.0  ;;  %v868_v45 = vadd.f32 %v8781_v12, %v867_v40 }
 0x132   :  { %v649_v25 = vadd.f32 %v7027_v22, %v8781_v12  ;;  %v640_v26 = vpop.f32.mrb[45].mxu0  ;;  %v1078_v48 = vmax.f32 %v876_v38, 0.0 }
 0x133   :  { %v641_v35 = vadd.f32 %v8781_v12, %v640_v26  ;;  %v7028_v36 = vpop.f32.mrb[46].mxu0  ;;  %7165 = vmatprep.mubr.bf16.mxu1 %v1123_v21  ;;  %v1076_v52 = vmax.f32 %v868_v45, 0.0 }
 0x134   :  { %v652_v42 = vadd.f32 %v7028_v36, %v8781_v12  ;;  %v643_v43 = vpop.f32.mrb[47].mxu0  ;;  %7166 = vmatmul.mubr.bf16.gmra.mrb[104].mxu1 %v1124_v18  ;;  %v1021_v50 = vmax.f32 %v649_v25, 0.0  ;;  %v8953_v55 = vpack.c.bf16 %v1078_v48, %v1077_v37  ;;  %v2807_v25 = vld [vmem:[%s13810_s0 + $0x40] sm:$0xff]  ;;  %2893 = vrot.lane.b32.xlu0 %v2810_v31, %s8241_s28 }
 0x135   :  { %v644_v47 = vadd.f32 %v8781_v12, %v643_v43  ;;  %v1019_v53 = vmax.f32 %v641_v35, 0.0  ;;  %v8955_v57 = vpack.c.bf16 %v1076_v52, %v1075_v44  ;;  %v7087_v58 = vpop.f32.mrb[40].mxu1  ;;  %2887 = vrot.lane.b32.xlu1 %v2807_v25, %s8241_s28 }
 0x136   :  { %v1022_v51 = vmax.f32 %v652_v42, 0.0  ;;  %v889_v6 = vadd.f32 %v7087_v58, %v8781_v12  ;;  %v880_v7 = vpop.f32.mrb[41].mxu1 }
 0x137   :  { %v1020_v54 = vmax.f32 %v644_v47, 0.0  ;;  %v881_v11 = vadd.f32 %v8781_v12, %v880_v7  ;;  %v7088_v13 = vpop.f32.mrb[42].mxu1 }
 0x138   :  { %v1126_v56 = vpack.c.bf16 %v1022_v51, %v1021_v50  ;;  %v1081_v17 = vmax.f32 %v889_v6, 0.0  ;;  %v892_v18 = vadd.f32 %v7088_v13, %v8781_v12  ;;  %v883_v20 = vpop.f32.mrb[43].mxu1  ;;  %v2812_v51 = vld [vmem:[%s13810_s0 + $0x68] sm:$0xff] }
 0x139   :  { %v1125_v0 = vpack.c.bf16 %v1020_v54, %v1019_v53  ;;  %v7031_v2 = vpop.f32.mrb[48].mxu0  ;;  %v1079_v23 = vmax.f32 %v881_v11, 0.0  ;;  %v884_v24 = vadd.f32 %v8781_v12, %v883_v20  ;;  %2891 = vrot.lane.b32.xlu1 %v2809_v46, %s8241_s28  ;;  %2897 = vrot.lane.b32.xlu0 %v2812_v51, %s8241_s28  ;;  %v2811_v11 = vld [vmem:[%s13810_s0 + $0x60] sm:$0xff] }
 0x13a   :  { %v665_v9 = vadd.f32 %v7031_v2, %v8781_v12  ;;  %v656_v10 = vpop.f32.mrb[49].mxu0  ;;  %v1082_v27 = vmax.f32 %v892_v18, 0.0 }
 0x13b   :  { %v657_v14 = vadd.f32 %v8781_v12, %v656_v10  ;;  %v7032_v15 = vpop.f32.mrb[50].mxu0  ;;  %7169 = vmatprep.mubr.bf16.mxu1 %v1125_v0  ;;  %v1080_v37 = vmax.f32 %v884_v24, 0.0 }
 0x13c   :  { %v668_v21 = vadd.f32 %v7032_v15, %v8781_v12  ;;  %v659_v22 = vpop.f32.mrb[51].mxu0  ;;  %7170 = vmatmul.mubr.bf16.gmra.mrb[108].mxu1 %v1126_v56  ;;  %v1025_v35 = vmax.f32 %v665_v9, 0.0  ;;  %v8981_v42 = vpack.c.bf16 %v1082_v27, %v1081_v17  ;;  %v2814_v15 = vld [vmem:[%s13810_s0 + $0x78] sm:$0xff]  ;;  %v2813_v27 = vld [vmem:[%s13810_s0 + $0x70] sm:$0xff] }
 0x13d   :  { %v660_v26 = vadd.f32 %v8781_v12, %v659_v22  ;;  %v1023_v38 = vmax.f32 %v657_v14, 0.0  ;;  %v8983_v44 = vpack.c.bf16 %v1080_v37, %v1079_v23  ;;  %v7091_v45 = vpop.f32.mrb[44].mxu1  ;;  %2895 = vrot.lane.b32.xlu1 %v2811_v11, %s8241_s28  ;;  %2901 = vrot.lane.b32.xlu0 %v2814_v15, %s8241_s28 }
 0x13e   :  { %v1026_v36 = vmax.f32 %v668_v21, 0.0  ;;  %v905_v49 = vadd.f32 %v7091_v45, %v8781_v12  ;;  %v896_v50 = vpop.f32.mrb[45].mxu1 }
 0x13f   :  { %v1024_v40 = vmax.f32 %v660_v26, 0.0  ;;  %v897_v54 = vadd.f32 %v8781_v12, %v896_v50  ;;  %v7092_v56 = vpop.f32.mrb[46].mxu1 }
 0x140   :  { %v1128_v43 = vpack.c.bf16 %v1026_v36, %v1025_v35  ;;  %v1085_v0 = vmax.f32 %v905_v49, 0.0  ;;  %v908_v2 = vadd.f32 %v7092_v56, %v8781_v12  ;;  %v899_v6 = vpop.f32.mrb[47].mxu1 }
 0x141   :  { %v1127_v47 = vpack.c.bf16 %v1024_v40, %v1023_v38  ;;  %v7035_v48 = vpop.f32.mrb[52].mxu0  ;;  %v1083_v9 = vmax.f32 %v897_v54, 0.0  ;;  %v900_v10 = vadd.f32 %v8781_v12, %v899_v6  ;;  %2899 = vrot.lane.b32.xlu1 %v2813_v27, %s8241_s28  ;;  %v3040_v38 = vld [vmem:[%s13810_s0 + $0x88] sm:$0xff] }
 0x142   :  { %v681_v52 = vadd.f32 %v7035_v48, %v8781_v12  ;;  %v672_v53 = vpop.f32.mrb[53].mxu0  ;;  %v1086_v14 = vmax.f32 %v908_v2, 0.0  ;;  %3121 = vrot.lane.b32.xlu0 %v3040_v38, %s8241_s28  ;;  %v3042_v2 = vld [vmem:[%s13810_s0 + $0x98] sm:$0xff] }
 0x143   :  { %v673_v58 = vadd.f32 %v8781_v12, %v672_v53  ;;  %v7036_v60 = vpop.f32.mrb[54].mxu0  ;;  %7173 = vmatprep.mubr.bf16.mxu1 %v1127_v47  ;;  %v1084_v20 = vmax.f32 %v900_v10, 0.0 }
 0x144   :  { %v684_v7 = vadd.f32 %v7036_v60, %v8781_v12  ;;  %v675_v8 = vpop.f32.mrb[55].mxu0  ;;  %7174 = vmatmul.mubr.bf16.gmra.mrb[112].mxu1 %v1128_v43  ;;  %v1029_v17 = vmax.f32 %v681_v52, 0.0  ;;  %v9009_v23 = vpack.c.bf16 %v1086_v14, %v1085_v0 }
 0x145   :  { %v676_v13 = vadd.f32 %v8781_v12, %v675_v8  ;;  %v1027_v21 = vmax.f32 %v673_v58, 0.0  ;;  %v9011_v25 = vpack.c.bf16 %v1084_v20, %v1083_v9  ;;  %v7095_v26 = vpop.f32.mrb[48].mxu1  ;;  %v3039_v58 = vld [vmem:[%s13810_s0 + $0x80] sm:$0xff] }
 0x146   :  { %v1030_v18 = vmax.f32 %v684_v7, 0.0  ;;  %v921_v36 = vadd.f32 %v7095_v26, %v8781_v12  ;;  %v912_v37 = vpop.f32.mrb[49].mxu1  ;;  %3119 = vrot.lane.b32.xlu1 %v3039_v58, %s8241_s28  ;;  %3125 = vrot.lane.b32.xlu0 %v3042_v2, %s8241_s28 }
 0x147   :  { %v1028_v22 = vmax.f32 %v676_v13, 0.0  ;;  %v913_v45 = vadd.f32 %v8781_v12, %v912_v37  ;;  %v7096_v46 = vpop.f32.mrb[50].mxu1 }
 0x148   :  { %v1130_v24 = vpack.c.bf16 %v1030_v18, %v1029_v17  ;;  %v1089_v49 = vmax.f32 %v921_v36, 0.0  ;;  %v924_v50 = vadd.f32 %v7096_v46, %v8781_v12  ;;  %v915_v51 = vpop.f32.mrb[51].mxu1  ;;  %v3041_v17 = vld [vmem:[%s13810_s0 + $0x90] sm:$0xff] }
 0x149   :  { %v1129_v31 = vpack.c.bf16 %v1028_v22, %v1027_v21  ;;  %v7039_v35 = vpop.f32.mrb[56].mxu0  ;;  %v1087_v54 = vmax.f32 %v913_v45, 0.0  ;;  %v916_v56 = vadd.f32 %v8781_v12, %v915_v51 }
 0x14a   :  { %v697_v40 = vadd.f32 %v7039_v35, %v8781_v12  ;;  %v688_v43 = vpop.f32.mrb[57].mxu0  ;;  %v1090_v0 = vmax.f32 %v924_v50, 0.0  ;;  %3123 = vrot.lane.b32.xlu1 %v3041_v17, %s8241_s28 }
 0x14b   :  { %v689_v47 = vadd.f32 %v8781_v12, %v688_v43  ;;  %v7040_v48 = vpop.f32.mrb[58].mxu0  ;;  %7177 = vmatprep.mubr.bf16.mxu1 %v1129_v31  ;;  %v1088_v8 = vmax.f32 %v916_v56, 0.0 }
 0x14c   :  { %v700_v52 = vadd.f32 %v7040_v48, %v8781_v12  ;;  %v691_v53 = vpop.f32.mrb[59].mxu0  ;;  %7178 = vmatmul.mubr.bf16.gmra.mrb[116].mxu1 %v1130_v24  ;;  %v1033_v6 = vmax.f32 %v697_v40, 0.0  ;;  %v9037_v11 = vpack.c.bf16 %v1090_v0, %v1089_v49  ;;  %v3044_v24 = vld [vmem:[%s13810_s0 + $0xa8] sm:$0xff]  ;;  %v3043_v49 = vld [vmem:[%s13810_s0 + $0xa0] sm:$0xff] }
 0x14d   :  { %v692_v60 = vadd.f32 %v8781_v12, %v691_v53  ;;  %v1031_v9 = vmax.f32 %v689_v47, 0.0  ;;  %v9039_v14 = vpack.c.bf16 %v1088_v8, %v1087_v54  ;;  %v7099_v15 = vpop.f32.mrb[52].mxu1  ;;  %3129 = vrot.lane.b32.xlu0 %v3044_v24, %s8241_s28 }
 0x14e   :  { %v1034_v7 = vmax.f32 %v700_v52, 0.0  ;;  %v937_v21 = vadd.f32 %v7099_v15, %v8781_v12  ;;  %v928_v22 = vpop.f32.mrb[53].mxu1  ;;  %3127 = vrot.lane.b32.xlu1 %v3043_v49, %s8241_s28  ;;  %v3046_v52 = vld [vmem:[%s13810_s0 + $0xb8] sm:$0xff]  ;;  %v3272_v15 = vld [vmem:[%s13810_s0 + $0xc8] sm:$0xff] }
 0x14f   :  { %v1032_v10 = vmax.f32 %v692_v60, 0.0  ;;  %v929_v31 = vadd.f32 %v8781_v12, %v928_v22  ;;  %v7100_v35 = vpop.f32.mrb[54].mxu1 }
 0x150   :  { %v1132_v13 = vpack.c.bf16 %v1034_v7, %v1033_v6  ;;  %v1093_v38 = vmax.f32 %v937_v21, 0.0  ;;  %v940_v40 = vadd.f32 %v7100_v35, %v8781_v12  ;;  %v931_v43 = vpop.f32.mrb[55].mxu1  ;;  %v3045_v7 = vld [vmem:[%s13810_s0 + $0xb0] sm:$0xff]  ;;  %v3274_v35 = vld [vmem:[%s13810_s0 + $0xd8] sm:$0xff] }
 0x151   :  { %v1131_v18 = vpack.c.bf16 %v1032_v10, %v1031_v9  ;;  %v7043_v20 = vpop.f32.mrb[60].mxu0  ;;  %v1091_v47 = vmax.f32 %v929_v31, 0.0  ;;  %v932_v48 = vadd.f32 %v8781_v12, %v931_v43  ;;  %3133 = vrot.lane.b32.xlu0 %v3046_v52, %s8241_s28  ;;  %v8201_v9 = vld [vmem:[%s13813_s3] ss:$0 sm:$0xff]  ;;  %v3273_v43 = vld [vmem:[%s13810_s0 + $0xd0] sm:$0xff] }
 0x152   :  { %v713_v26 = vadd.f32 %v7043_v20, %v8781_v12  ;;  %v704_v27 = vpop.f32.mrb[61].mxu0  ;;  %v1094_v51 = vmax.f32 %v940_v40, 0.0  ;;  %3131 = vrot.lane.b32.xlu1 %v3045_v7, %s8241_s28  ;;  %v3503_v7 = vld [vmem:[%s13810_s0 + $0x100] sm:$0xff] }
 0x153   :  { %v705_v36 = vadd.f32 %v8781_v12, %v704_v27  ;;  %v7044_v37 = vpop.f32.mrb[62].mxu0  ;;  %7181 = vmatprep.mubr.bf16.mxu1 %v1131_v18  ;;  %v1092_v56 = vmax.f32 %v932_v48, 0.0  ;;  %v3271_v27 = vld [vmem:[%s13810_s0 + $0xc0] sm:$0xff] }
 0x154   :  { %v716_v45 = vadd.f32 %v7044_v37, %v8781_v12  ;;  %v707_v46 = vpop.f32.mrb[63].mxu0  ;;  %7182 = vmatmul.mubr.bf16.gmra.mrb[120].mxu1 %v1132_v13  ;;  %v1037_v53 = vmax.f32 %v713_v26, 0.0  ;;  %v9065_v0 = vpack.c.bf16 %v1094_v51, %v1093_v38 }
 0x155   :  { %v708_v50 = vadd.f32 %v8781_v12, %v707_v46  ;;  %v1035_v58 = vmax.f32 %v705_v36, 0.0  ;;  %v9067_v6 = vpack.c.bf16 %v1092_v56, %v1091_v47  ;;  %v7103_v12 = vpop.f32.mrb[56].mxu1  ;;  %3353 = vrot.lane.b32.xlu0 %v3272_v15, %s8241_s28  ;;  %v3276_v46 = vld [vmem:[%s13810_s0 + $0xe8] sm:$0xff]  ;;  %v3738_v15 = vld [vmem:[%s13810_s0 + $0x158] sm:$0xff] }
 0x156   :  { %v1038_v54 = vmax.f32 %v716_v45, 0.0  ;;  %v953_v10 = vadd.f32 %v8201_v9, %v7103_v12  ;;  %v944_v13 = vpop.f32.mrb[57].mxu1  ;;  %3351 = vrot.lane.b32.xlu1 %v3271_v27, %s8241_s28  ;;  %v3277_v12 = vld [vmem:[%s13810_s0 + $0xf0] sm:$0xff]  ;;  %v4202_v27 = vld [vmem:[%s13810_s0 + $0x1d8] sm:$0xff] }
 0x157   :  { %v1036_v60 = vmax.f32 %v708_v50, 0.0  ;;  %v945_v17 = vadd.f32 %v8201_v9, %v944_v13  ;;  %v7104_v18 = vpop.f32.mrb[58].mxu1  ;;  %v3509_v13 = vld [vmem:[%s13810_s0 + $0x130] sm:$0xff] }
 0x158   :  { %v1134_v2 = vpack.c.bf16 %v1038_v54, %v1037_v53  ;;  %v1097_v20 = vmax.f32 %v953_v10, 0.0  ;;  %v956_v21 = vadd.f32 %v8201_v9, %v7104_v18  ;;  %v947_v22 = vpop.f32.mrb[59].mxu1  ;;  %v3275_v54 = vld [vmem:[%s13810_s0 + $0xe0] sm:$0xff]  ;;  %v3510_v10 = vld [vmem:[%s13810_s0 + $0x138] sm:$0xff] }
 0x159   :  { %v1133_v8 = vpack.c.bf16 %v1036_v60, %v1035_v58  ;;  %v1095_v24 = vmax.f32 %v945_v17, 0.0  ;;  %v948_v26 = vadd.f32 %v8201_v9, %v947_v22  ;;  %3357 = vrot.lane.b32.xlu0 %v3274_v35, %s8241_s28  ;;  %v3278_v58 = vld [vmem:[%s13810_s0 + $0xf8] sm:$0xff]  ;;  %v3737_v17 = vld [vmem:[%s13810_s0 + $0x150] sm:$0xff] }
 0x15a   :  { %v1098_v31 = vmax.f32 %v956_v21, 0.0  ;;  %3355 = vrot.lane.b32.xlu1 %v3273_v43, %s8241_s28  ;;  %v3742_v18 = vld [vmem:[%s13810_s0 + $0x178] sm:$0xff]  ;;  %v3969_v22 = vld [vmem:[%s13810_s0 + $0x190] sm:$0xff] }
 0x15b   :  { %7185 = vmatprep.mubr.bf16.mxu1 %v1133_v8  ;;  %v1096_v36 = vmax.f32 %v948_v26, 0.0  ;;  %v3506_v8 = vld [vmem:[%s13810_s0 + $0x118] sm:$0xff]  ;;  %v3973_v26 = vld [vmem:[%s13810_s0 + $0x1b0] sm:$0xff] }
 0x15c   :  { %7186 = vmatmul.mubr.bf16.gmra.mrb[124].mxu1 %v1134_v2  ;;  %v9089_v37 = vpack.c.bf16 %v1098_v31, %v1097_v20  ;;  %v3741_v20 = vld [vmem:[%s13810_s0 + $0x170] sm:$0xff]  ;;  %v3970_v21 = vld [vmem:[%s13810_s0 + $0x198] sm:$0xff] }
 0x15d   :  { %7189 = vmatprep.mubr.bf16.mxu1 %v8807_v5  ;;  %v9091_v38 = vpack.c.bf16 %v1096_v36, %v1095_v24  ;;  %v7107_v40 = vpop.f32.mrb[60].mxu1  ;;  %3361 = vrot.lane.b32.xlu0 %v3276_v46, %s8241_s28  ;;  %v3974_v24 = vld [vmem:[%s13810_s0 + $0x1b8] sm:$0xff]  ;;  %v4201_v31 = vld [vmem:[%s13810_s0 + $0x1d0] sm:$0xff] }
 0x15e   :  { %v969_v5 = vadd.f32 %v8201_v9, %v7107_v40  ;;  %v960_v45 = vpop.f32.mrb[61].mxu1  ;;  %3359 = vrot.lane.b32.xlu1 %v3275_v54, %s8241_s28  ;;  %v4206_v35 = vld [vmem:[%s13810_s0 + $0x1f8] sm:$0xff]  ;;  %v4205_v36 = vld [vmem:[%s13810_s0 + $0x1f0] sm:$0xff] }
 0x15f   :  { %v961_v47 = vadd.f32 %v8201_v9, %v960_v45  ;;  %v7108_v48 = vpop.f32.mrb[62].mxu1  ;;  %v4434_v40 = vld [vmem:[%s13810_s0 + $0x218] sm:$0xff]  ;;  %v4433_v43 = vld [vmem:[%s13810_s0 + $0x210] sm:$0xff] }
 0x160   :  { %v1101_v49 = vmax.f32 %v969_v5, 0.0  ;;  %v972_v50 = vadd.f32 %v8201_v9, %v7108_v48  ;;  %v963_v51 = vpop.f32.mrb[63].mxu1  ;;  %v9293_v5 = vld [vmem:[%s13815_s5] ss:$0 sm:$0xff]  ;;  %v4438_v45 = vld [vmem:[%s13810_s0 + $0x238] sm:$0xff] }
 0x161   :  { %v1099_v52 = vmax.f32 %v961_v47, 0.0  ;;  %v964_v53 = vadd.f32 %v8201_v9, %v963_v51  ;;  %3365 = vrot.lane.b32.xlu0 %v3278_v58, %s8241_s28  ;;  %v3505_v9 = vld [vmem:[%s13810_s0 + $0x110] sm:$0xff]  ;;  %v4663_v58 = vld [vmem:[%s13810_s0 + $0x240] sm:$0xff] }
 0x162   :  { %v1102_v56 = vmax.f32 %v972_v50, 0.0  ;;  %3363 = vrot.lane.b32.xlu1 %v3277_v12, %s8241_s28  ;;  %v4664_v50 = vld [vmem:[%s13810_s0 + $0x248] sm:$0xff] }
 0x163   :  { %v1100_v60 = vmax.f32 %v964_v53, 0.0 }
 0x164   :  { %7190 = vmatmul.mubr.bf16.gmra.mrb[128].mxu1 %v8805_v3  ;;  %v9111_v2 = vpack.c.bf16 %v1102_v56, %v1101_v49 }
 0x165   :  { %7193 = vmatprep.mubr.bf16.mxu1 %v8819_v34  ;;  %v9113_v3 = vpack.c.bf16 %v1100_v60, %v1099_v52  ;;  %v3504_v34 = vld [vmem:[%s13810_s0 + $0x108] sm:$0xff] }
 0x166   :  { %3585 = vrot.lane.b32.xlu0 %v3504_v34, %s8241_s28  ;;  %3583 = vrot.lane.b32.xlu1 %v3503_v7, %s8241_s28  ;;  %v4666_v34 = vld [vmem:[%s13810_s0 + $0x258] sm:$0xff] }
 0x16a   :  { %3589 = vrot.lane.b32.xlu0 %v3506_v8, %s8241_s28  ;;  %3587 = vrot.lane.b32.xlu1 %v3505_v9, %s8241_s28 }
 0x16c   :  { %7194 = vmatmul.mubr.bf16.gmra.mrb[132].mxu1 %v8817_v32  ;;  %v3508_v32 = vld [vmem:[%s13810_s0 + $0x128] sm:$0xff] }
 0x16d   :  { %7197 = vmatprep.mubr.bf16.mxu1 %v8834_v63  ;;  %v3507_v63 = vld [vmem:[%s13810_s0 + $0x120] sm:$0xff] }
 0x16e   :  { %3593 = vrot.lane.b32.xlu0 %v3508_v32, %s8241_s28  ;;  %3591 = vrot.lane.b32.xlu1 %v3507_v63, %s8241_s28  ;;  %v4665_v63 = vld [vmem:[%s13810_s0 + $0x250] sm:$0xff] }
 0x172   :  { %3597 = vrot.lane.b32.xlu0 %v3510_v10, %s8241_s28  ;;  %3595 = vrot.lane.b32.xlu1 %v3509_v13, %s8241_s28  ;;  %v4668_v13 = vld [vmem:[%s13810_s0 + $0x268] sm:$0xff] }
 0x174   :  { %7198 = vmatmul.mubr.bf16.gmra.mrb[136].mxu1 %v8832_v61  ;;  %v3736_v61 = vld [vmem:[%s13810_s0 + $0x148] sm:$0xff] }
 0x175   :  { %7201 = vmatprep.mubr.bf16.mxu1 %v8846_v30  ;;  %v3735_v30 = vld [vmem:[%s13810_s0 + $0x140] sm:$0xff] }
 0x176   :  { %3817 = vrot.lane.b32.xlu0 %v3736_v61, %s8241_s28  ;;  %3815 = vrot.lane.b32.xlu1 %v3735_v30, %s8241_s28 }
 0x17a   :  { %3821 = vrot.lane.b32.xlu0 %v3738_v15, %s8241_s28  ;;  %3819 = vrot.lane.b32.xlu1 %v3737_v17, %s8241_s28 }
 0x17c   :  { %7202 = vmatmul.mubr.bf16.gmra.mrb[140].mxu1 %v8844_v28  ;;  %v3740_v28 = vld [vmem:[%s13810_s0 + $0x168] sm:$0xff] }
 0x17d   :  { %7205 = vmatprep.mubr.bf16.mxu1 %v8861_v62  ;;  %v3739_v62 = vld [vmem:[%s13810_s0 + $0x160] sm:$0xff] }
 0x17e   :  { %3825 = vrot.lane.b32.xlu0 %v3740_v28, %s8241_s28  ;;  %3823 = vrot.lane.b32.xlu1 %v3739_v62, %s8241_s28  ;;  %v4667_v62 = vld [vmem:[%s13810_s0 + $0x260] sm:$0xff] }
 0x182   :  { %3829 = vrot.lane.b32.xlu0 %v3742_v18, %s8241_s28  ;;  %3827 = vrot.lane.b32.xlu1 %v3741_v20, %s8241_s28 }
 0x184   :  { %7206 = vmatmul.mubr.bf16.gmra.mrb[144].mxu1 %v8859_v59  ;;  %v3968_v59 = vld [vmem:[%s13810_s0 + $0x188] sm:$0xff] }
 0x185   :  { %7209 = vmatprep.mubr.bf16.mxu1 %v8873_v33  ;;  %v3967_v33 = vld [vmem:[%s13810_s0 + $0x180] sm:$0xff] }
 0x186   :  { %4049 = vrot.lane.b32.xlu0 %v3968_v59, %s8241_s28  ;;  %4047 = vrot.lane.b32.xlu1 %v3967_v33, %s8241_s28  ;;  %v4670_v59 = vld [vmem:[%s13810_s0 + $0x278] sm:$0xff] }
 0x18a   :  { %4053 = vrot.lane.b32.xlu0 %v3970_v21, %s8241_s28  ;;  %4051 = vrot.lane.b32.xlu1 %v3969_v22, %s8241_s28 }
 0x18c   :  { %7210 = vmatmul.mubr.bf16.gmra.mrb[148].mxu1 %v8871_v29  ;;  %v3972_v29 = vld [vmem:[%s13810_s0 + $0x1a8] sm:$0xff] }
 0x18d   :  { %7213 = vmatprep.mubr.bf16.mxu1 %v8888_v4  ;;  %v3971_v4 = vld [vmem:[%s13810_s0 + $0x1a0] sm:$0xff] }
 0x18e   :  { %4057 = vrot.lane.b32.xlu0 %v3972_v29, %s8241_s28  ;;  %4055 = vrot.lane.b32.xlu1 %v3971_v4, %s8241_s28  ;;  %v4669_v4 = vld [vmem:[%s13810_s0 + $0x270] sm:$0xff] }
 0x192   :  { %4061 = vrot.lane.b32.xlu0 %v3974_v24, %s8241_s28  ;;  %4059 = vrot.lane.b32.xlu1 %v3973_v26, %s8241_s28  ;;  %v4895_v26 = vld [vmem:[%s13810_s0 + $0x280] sm:$0xff] }
 0x194   :  { %7214 = vmatmul.mubr.bf16.gmra.mrb[152].mxu1 %v8886_v1  ;;  %v4200_v1 = vld [vmem:[%s13810_s0 + $0x1c8] sm:$0xff] }
 0x195   :  { %7217 = vmatprep.mubr.bf16.mxu1 %v8904_v41  ;;  %v4199_v41 = vld [vmem:[%s13810_s0 + $0x1c0] sm:$0xff] }
 0x196   :  { %4281 = vrot.lane.b32.xlu0 %v4200_v1, %s8241_s28  ;;  %4279 = vrot.lane.b32.xlu1 %v4199_v41, %s8241_s28 }
 0x19a   :  { %4285 = vrot.lane.b32.xlu0 %v4202_v27, %s8241_s28  ;;  %4283 = vrot.lane.b32.xlu1 %v4201_v31, %s8241_s28 }
 0x19c   :  { %7218 = vmatmul.mubr.bf16.gmra.mrb[156].mxu1 %v8902_v39  ;;  %v4204_v39 = vld [vmem:[%s13810_s0 + $0x1e8] sm:$0xff] }
 0x19d   :  { %7221 = vmatprep.mubr.bf16.mxu1 %v8933_v19  ;;  %v4203_v19 = vld [vmem:[%s13810_s0 + $0x1e0] sm:$0xff] }
 0x19e   :  { %4289 = vrot.lane.b32.xlu0 %v4204_v39, %s8241_s28  ;;  %4287 = vrot.lane.b32.xlu1 %v4203_v19, %s8241_s28  ;;  %v4896_v19 = vld [vmem:[%s13810_s0 + $0x288] sm:$0xff] }
 0x1a2   :  { %4293 = vrot.lane.b32.xlu0 %v4206_v35, %s8241_s28  ;;  %4291 = vrot.lane.b32.xlu1 %v4205_v36, %s8241_s28 }
 0x1a4   :  { %7222 = vmatmul.mubr.bf16.gmra.mrb[160].mxu1 %v8928_v16  ;;  %v4432_v16 = vld [vmem:[%s13810_s0 + $0x208] sm:$0xff] }
 0x1a5   :  { %7225 = vmatprep.mubr.bf16.mxu1 %v8955_v57  ;;  %v4431_v57 = vld [vmem:[%s13810_s0 + $0x200] sm:$0xff] }
 0x1a6   :  { %4513 = vrot.lane.b32.xlu0 %v4432_v16, %s8241_s28  ;;  %4511 = vrot.lane.b32.xlu1 %v4431_v57, %s8241_s28  ;;  %v4897_v16 = vld [vmem:[%s13810_s0 + $0x290] sm:$0xff] }
 0x1aa   :  { %4517 = vrot.lane.b32.xlu0 %v4434_v40, %s8241_s28  ;;  %4515 = vrot.lane.b32.xlu1 %v4433_v43, %s8241_s28 }
 0x1ac   :  { %7226 = vmatmul.mubr.bf16.gmra.mrb[164].mxu1 %v8953_v55  ;;  %v4436_v55 = vld [vmem:[%s13810_s0 + $0x228] sm:$0xff] }
 0x1ad   :  { %7229 = vmatprep.mubr.bf16.mxu1 %v8983_v44  ;;  %v4435_v44 = vld [vmem:[%s13810_s0 + $0x220] sm:$0xff] }
 0x1ae   :  { %4521 = vrot.lane.b32.xlu0 %v4436_v55, %s8241_s28  ;;  %4519 = vrot.lane.b32.xlu1 %v4435_v44, %s8241_s28  ;;  %v5127_v44 = vld [vmem:[%s13810_s0 + $0x2c0] sm:$0xff] }
 0x1b2   :  { %4525 = vrot.lane.b32.xlu0 %v4438_v45, %s8241_s28 }
 0x1b4   :  { %7230 = vmatmul.mubr.bf16.gmra.mrb[168].mxu1 %v8981_v42 }
 0x1b5   :  { %7233 = vmatprep.mubr.bf16.mxu1 %v9011_v25  ;;  %v4437_v25 = vld [vmem:[%s13810_s0 + $0x230] sm:$0xff] }
 0x1b6   :  { %4523 = vrot.lane.b32.xlu1 %v4437_v25, %s8241_s28  ;;  %4745 = vrot.lane.b32.xlu0 %v4664_v50, %s8241_s28  ;;  %v4898_v50 = vld [vmem:[%s13810_s0 + $0x298] sm:$0xff] }
 0x1b7   :  { %v7127_v42 = vpop.f32.mrb[64].mxu1 }
 0x1b8   :  { %v1281_v46 = vadd.f32 %v7127_v42, %v9293_v5  ;;  %v1272_v47 = vpop.f32.mrb[65].mxu1  ;;  %v5128_v42 = vld [vmem:[%s13810_s0 + $0x2c8] sm:$0xff] }
 0x1b9   :  { %v1273_v48 = vadd.f32 %v9293_v5, %v1272_v47  ;;  %v7128_v49 = vpop.f32.mrb[66].mxu1 }
 0x1ba   :  { %v1284_v51 = vadd.f32 %v7128_v49, %v9293_v5  ;;  %v1275_v52 = vpop.f32.mrb[67].mxu1  ;;  %v1785_v54 = vmax.f32 %v1281_v46, 0.0  ;;  %4743 = vrot.lane.b32.xlu1 %v4663_v58, %s8241_s28  ;;  %4749 = vrot.lane.b32.xlu0 %v4666_v34, %s8241_s28 }
 0x1bb   :  { %v1276_v53 = vadd.f32 %v9293_v5, %v1275_v52  ;;  %v1783_v60 = vmax.f32 %v1273_v48, 0.0 }
 0x1bc   :  { %v1786_v56 = vmax.f32 %v1284_v51, 0.0  ;;  %7234 = vmatmul.mubr.bf16.gmra.mrb[172].mxu1 %v9009_v23 }
 0x1bd   :  { %v1784_v12 = vmax.f32 %v1276_v53, 0.0  ;;  %7237 = vmatprep.mubr.bf16.mxu1 %v9039_v14  ;;  %v9383_v53 = vpop.permute.xlu0 %2671 }
 0x1be   :  { %v1912_v7 = vpack.c.bf16 %v1786_v56, %v1785_v54  ;;  %4747 = vrot.lane.b32.xlu1 %v4665_v63, %s8241_s28  ;;  %4753 = vrot.lane.b32.xlu0 %v4668_v13, %s8241_s28  ;;  %v5129_v54 = vld [vmem:[%s13810_s0 + $0x2d0] sm:$0xff]  ;;  %v4899_v13 = vld [vmem:[%s13810_s0 + $0x2a0] sm:$0xff] }
 0x1bf   :  { %v1911_v8 = vpack.c.bf16 %v1784_v12, %v1783_v60  ;;  %v7131_v9 = vpop.f32.mrb[68].mxu1 }
 0x1c0   :  { %v1297_v23 = vadd.f32 %v7131_v9, %v9293_v5  ;;  %v1288_v32 = vpop.f32.mrb[69].mxu1 }
 0x1c1   :  { %v1289_v14 = vadd.f32 %v9293_v5, %v1288_v32  ;;  %v7132_v10 = vpop.f32.mrb[70].mxu1  ;;  %7269 = vmatprep.mubr.bf16.mxu0 %v1911_v8  ;;  %v5360_v8 = vld [vmem:[%s13810_s0 + $0x308] sm:$0xff]  ;;  %v9402_v63 = vpop.permute.xlu0 %2673 }
 0x1c2   :  { %v1300_v61 = vadd.f32 %v7132_v10, %v9293_v5  ;;  %v1291_v30 = vpop.f32.mrb[71].mxu1  ;;  %7270 = vmatmul.mubr.bf16.vlgmr.msra.gmra.mrb[64].mxu0 %v1912_v7  ;;  %v1789_v17 = vmax.f32 %v1297_v23, 0.0  ;;  %4751 = vrot.lane.b32.xlu1 %v4667_v62, %s8241_s28 }
 0x1c3   :  { %v1292_v15 = vadd.f32 %v9293_v5, %v1291_v30  ;;  %v1787_v18 = vmax.f32 %v1289_v14, 0.0  ;;  %4757 = vrot.lane.b32.xlu0 %v4670_v59, %s8241_s28  ;;  %v5361_v59 = vld [vmem:[%s13810_s0 + $0x310] sm:$0xff] }
 0x1c4   :  { %v1790_v28 = vmax.f32 %v1300_v61, 0.0  ;;  %7238 = vmatmul.mubr.bf16.gmra.mrb[176].mxu1 %v9037_v11 }
 0x1c5   :  { %v1788_v20 = vmax.f32 %v1292_v15, 0.0  ;;  %7241 = vmatprep.mubr.bf16.mxu1 %v9067_v6  ;;  %v9408_v15 = vpop.permute.xlu1 %2675 }
 0x1c6   :  { %v1914_v33 = vpack.c.bf16 %v1790_v28, %v1789_v17  ;;  %4755 = vrot.lane.b32.xlu1 %v4669_v4, %s8241_s28  ;;  %v5130_v17 = vld [vmem:[%s13810_s0 + $0x2d8] sm:$0xff] }
 0x1c7   :  { %v1913_v21 = vpack.c.bf16 %v1788_v20, %v1787_v18  ;;  %v7135_v22 = vpop.f32.mrb[72].mxu1  ;;  %4975 = vrot.lane.b32.xlu0 %v4895_v26, %s8241_s28 }
 0x1c8   :  { %v1313_v11 = vadd.f32 %v7135_v22, %v9293_v5  ;;  %v1304_v29 = vpop.f32.mrb[73].mxu1  ;;  %v9420_v22 = vpop.permute.xlu0 %2679 }
 0x1c9   :  { %v1305_v6 = vadd.f32 %v9293_v5, %v1304_v29  ;;  %v7136_v24 = vpop.f32.mrb[74].mxu1  ;;  %7273 = vmatprep.mubr.bf16.mxu0 %v1913_v21 }
 0x1ca   :  { %v1316_v1 = vadd.f32 %v7136_v24, %v9293_v5  ;;  %v1307_v41 = vpop.f32.mrb[75].mxu1  ;;  %7274 = vmatmul.mubr.bf16.gmra.mrb[68].mxu0 %v1914_v33  ;;  %v1793_v31 = vmax.f32 %v1313_v11, 0.0  ;;  %4977 = vrot.lane.b32.xlu1 %v4896_v19, %s8241_s28  ;;  %v5591_v11 = vld [vmem:[%s13810_s0 + $0x340] sm:$0xff]  ;;  %v9429_v24 = vpop.permute.xlu1 %2677 }
 0x1cb   :  { %v1308_v27 = vadd.f32 %v9293_v5, %v1307_v41  ;;  %v1791_v35 = vmax.f32 %v1305_v6, 0.0  ;;  %4979 = vrot.lane.b32.xlu0 %v4897_v16, %s8241_s28  ;;  %v5592_v41 = vld [vmem:[%s13810_s0 + $0x348] sm:$0xff] }
 0x1cc   :  { %v1794_v39 = vmax.f32 %v1316_v1, 0.0  ;;  %7242 = vmatmul.mubr.bf16.gmra.mrb[180].mxu1 %v9065_v0  ;;  %v9439_v16 = vpop.permute.xlu0 %2683 }
 0x1cd   :  { %v1792_v36 = vmax.f32 %v1308_v27, 0.0  ;;  %7245 = vmatprep.mubr.bf16.mxu1 %v9091_v38 }
 0x1ce   :  { %v1916_v57 = vpack.c.bf16 %v1794_v39, %v1793_v31  ;;  %5207 = vrot.lane.b32.xlu1 %v5127_v44, %s8241_s28  ;;  %v4900_v39 = vld [vmem:[%s13810_s0 + $0x2a8] sm:$0xff]  ;;  %v9446_v44 = vpop.permute.xlu1 %2681 }
 0x1cf   :  { %v1915_v40 = vpack.c.bf16 %v1792_v36, %v1791_v35  ;;  %v7139_v43 = vpop.f32.mrb[76].mxu1  ;;  %5209 = vrot.lane.b32.xlu0 %v5128_v42, %s8241_s28 }
 0x1d0   :  { %v1329_v0 = vadd.f32 %v7139_v43, %v9293_v5  ;;  %v1320_v55 = vpop.f32.mrb[77].mxu1  ;;  %v5131_v43 = vld [vmem:[%s13810_s0 + $0x2e0] sm:$0xff] }
 0x1d1   :  { %v1321_v38 = vadd.f32 %v9293_v5, %v1320_v55  ;;  %v7140_v45 = vpop.f32.mrb[78].mxu1  ;;  %7277 = vmatprep.mubr.bf16.mxu0 %v1915_v40 }
 0x1d2   :  { %v1332_v46 = vadd.f32 %v7140_v45, %v9293_v5  ;;  %v1323_v47 = vpop.f32.mrb[79].mxu1  ;;  %7278 = vmatmul.mubr.bf16.gmra.mrb[72].mxu0 %v1916_v57  ;;  %v1797_v48 = vmax.f32 %v1329_v0, 0.0  ;;  %4981 = vrot.lane.b32.xlu1 %v4898_v50, %s8241_s28 }
 0x1d3   :  { %v1324_v25 = vadd.f32 %v9293_v5, %v1323_v47  ;;  %v1795_v51 = vmax.f32 %v1321_v38, 0.0  ;;  %5211 = vrot.lane.b32.xlu0 %v5129_v54, %s8241_s28  ;;  %v5362_v38 = vld [vmem:[%s13810_s0 + $0x318] sm:$0xff] }
 0x1d4   :  { %v1798_v49 = vmax.f32 %v1332_v46, 0.0  ;;  %7246 = vmatmul.mubr.bf16.gmra.mrb[184].mxu1 %v9089_v37 }
 0x1d5   :  { %v1796_v52 = vmax.f32 %v1324_v25, 0.0  ;;  %7249 = vmatprep.mubr.bf16.mxu1 %v9113_v3  ;;  %v5359_v3 = vld [vmem:[%s13810_s0 + $0x300] sm:$0xff] }
 0x1d6   :  { %v1918_v56 = vpack.c.bf16 %v1798_v49, %v1797_v48  ;;  %5439 = vrot.lane.b32.xlu1 %v5359_v3, %s8241_s28  ;;  %v5593_v48 = vld [vmem:[%s13810_s0 + $0x350] sm:$0xff]  ;;  %v5824_v3 = vld [vmem:[%s13810_s0 + $0x388] sm:$0xff] }
 0x1d7   :  { %v1917_v37 = vpack.c.bf16 %v1796_v52, %v1795_v51  ;;  %v7143_v58 = vpop.f32.mrb[80].mxu1  ;;  %5441 = vrot.lane.b32.xlu0 %v5360_v8, %s8241_s28  ;;  %v9458_v51 = vpop.permute.xlu0 %2889  ;;  %v5823_v52 = vld [vmem:[%s13810_s0 + $0x380] sm:$0xff]  ;;  %v4901_v8 = vld [vmem:[%s13810_s0 + $0x2b0] sm:$0xff] }
 0x1d8   :  { %v1345_v60 = vadd.f32 %v7143_v58, %v9293_v5  ;;  %v1336_v12 = vpop.f32.mrb[81].mxu1  ;;  %v9465_v58 = vpop.permute.xlu1 %2685 }
 0x1d9   :  { %v1337_v34 = vadd.f32 %v9293_v5, %v1336_v12  ;;  %v7144_v7 = vpop.f32.mrb[82].mxu1  ;;  %7281 = vmatprep.mubr.bf16.mxu0 %v1917_v37 }
 0x1da   :  { %v1348_v9 = vadd.f32 %v7144_v7, %v9293_v5  ;;  %v1339_v23 = vpop.f32.mrb[83].mxu1  ;;  %7282 = vmatmul.mubr.bf16.gmra.mrb[76].mxu0 %v1918_v56  ;;  %v1801_v14 = vmax.f32 %v1345_v60, 0.0  ;;  %4983 = vrot.lane.b32.xlu1 %v4899_v13, %s8241_s28 }
 0x1db   :  { %v1340_v32 = vadd.f32 %v9293_v5, %v1339_v23  ;;  %v1799_v61 = vmax.f32 %v1337_v34, 0.0  ;;  %5213 = vrot.lane.b32.xlu0 %v5130_v17, %s8241_s28 }
 0x1dc   :  { %v1802_v10 = vmax.f32 %v1348_v9, 0.0  ;;  %7250 = vmatmul.mubr.bf16.gmra.mrb[188].mxu1 %v9111_v2 }
 0x1dd   :  { %v1800_v30 = vmax.f32 %v1340_v32, 0.0 }
 0x1de   :  { %v1920_v28 = vpack.c.bf16 %v1802_v10, %v1801_v14  ;;  %5443 = vrot.lane.b32.xlu1 %v5361_v59, %s8241_s28  ;;  %v9479_v14 = vpop.permute.xlu0 %2893 }
 0x1df   :  { %v1919_v62 = vpack.c.bf16 %v1800_v30, %v1799_v61  ;;  %v7147_v18 = vpop.f32.mrb[84].mxu1  ;;  %5671 = vrot.lane.b32.xlu0 %v5591_v11, %s8241_s28  ;;  %v5132_v61 = vld [vmem:[%s13810_s0 + $0x2e8] sm:$0xff] }
 0x1e0   :  { %v1361_v2 = vadd.f32 %v7147_v18, %v9293_v5  ;;  %v1352_v20 = vpop.f32.mrb[85].mxu1 }
 0x1e1   :  { %v1353_v33 = vadd.f32 %v9293_v5, %v1352_v20  ;;  %v7148_v21 = vpop.f32.mrb[86].mxu1  ;;  %7285 = vmatprep.mubr.bf16.mxu0 %v1919_v62  ;;  %v5363_v62 = vld [vmem:[%s13810_s0 + $0x320] sm:$0xff] }
 0x1e2   :  { %v1364_v29 = vadd.f32 %v7148_v21, %v9293_v5  ;;  %v1355_v4 = vpop.f32.mrb[87].mxu1  ;;  %7286 = vmatmul.mubr.bf16.gmra.mrb[80].mxu0 %v1920_v28  ;;  %v1805_v26 = vmax.f32 %v1361_v2, 0.0  ;;  %5673 = vrot.lane.b32.xlu1 %v5592_v41, %s8241_s28  ;;  %v9484_v28 = vpop.permute.xlu1 %2887  ;;  %v5594_v21 = vld [vmem:[%s13810_s0 + $0x358] sm:$0xff] }
 0x1e3   :  { %v1356_v6 = vadd.f32 %v9293_v5, %v1355_v4  ;;  %v1803_v27 = vmax.f32 %v1353_v33, 0.0  ;;  %4985 = vrot.lane.b32.xlu0 %v4900_v39, %s8241_s28  ;;  %v9496_v4 = vpop.permute.xlu0 %2897 }
 0x1e4   :  { %v1806_v1 = vmax.f32 %v1364_v29, 0.0 }
 0x1e5   :  { %v1804_v31 = vmax.f32 %v1356_v6, 0.0  ;;  %v5825_v6 = vld [vmem:[%s13810_s0 + $0x390] sm:$0xff] }
 0x1e6   :  { %v1922_v19 = vpack.c.bf16 %v1806_v1, %v1805_v26  ;;  %5215 = vrot.lane.b32.xlu1 %v5131_v43, %s8241_s28 }
 0x1e7   :  { %v1921_v35 = vpack.c.bf16 %v1804_v31, %v1803_v27  ;;  %v7151_v36 = vpop.f32.mrb[88].mxu1  ;;  %5445 = vrot.lane.b32.xlu0 %v5362_v38, %s8241_s28  ;;  %v9505_v27 = vpop.permute.xlu1 %2891 }
 0x1e8   :  { %v1377_v57 = vadd.f32 %v7151_v36, %v9293_v5  ;;  %v1368_v40 = vpop.f32.mrb[89].mxu1 }
 0x1e9   :  { %v1369_v0 = vadd.f32 %v9293_v5, %v1368_v40  ;;  %v7152_v55 = vpop.f32.mrb[90].mxu1  ;;  %7289 = vmatprep.mubr.bf16.mxu0 %v1921_v35 }
 0x1ea   :  { %v1380_v45 = vadd.f32 %v7152_v55, %v9293_v5  ;;  %v1371_v42 = vpop.f32.mrb[91].mxu1  ;;  %7290 = vmatmul.mubr.bf16.gmra.mrb[84].mxu0 %v1922_v19  ;;  %v1809_v47 = vmax.f32 %v1377_v57, 0.0  ;;  %5675 = vrot.lane.b32.xlu1 %v5593_v48, %s8241_s28  ;;  %v4902_v19 = vld [vmem:[%s13810_s0 + $0x2b8] sm:$0xff]  ;;  %v5133_v57 = vld [vmem:[%s13810_s0 + $0x2f0] sm:$0xff]  ;;  %v9515_v55 = vpop.permute.xlu0 %2901  ;;  %v5595_v48 = vld [vmem:[%s13810_s0 + $0x360] sm:$0xff] }
 0x1eb   :  { %v1372_v46 = vadd.f32 %v9293_v5, %v1371_v42  ;;  %v1807_v49 = vmax.f32 %v1369_v0, 0.0  ;;  %5903 = vrot.lane.b32.xlu0 %v5823_v52, %s8241_s28  ;;  %v5364_v42 = vld [vmem:[%s13810_s0 + $0x328] sm:$0xff] }
 0x1ec   :  { %v1810_v25 = vmax.f32 %v1380_v45, 0.0 }
 0x1ed   :  { %v1808_v50 = vmax.f32 %v1372_v46, 0.0 }
 0x1ee   :  { %v1924_v54 = vpack.c.bf16 %v1810_v25, %v1809_v47  ;;  %5905 = vrot.lane.b32.xlu1 %v5824_v3, %s8241_s28  ;;  %v9522_v25 = vpop.permute.xlu1 %2895  ;;  %v9534_v3 = vpop.permute.xlu0 %3121 }
 0x1ef   :  { %v1923_v56 = vpack.c.bf16 %v1808_v50, %v1807_v49  ;;  %v7155_v37 = vpop.f32.mrb[92].mxu1  ;;  %4987 = vrot.lane.b32.xlu0 %v4901_v8, %s8241_s28 }
 0x1f0   :  { %v1393_v60 = vadd.f32 %v7155_v37, %v9293_v5  ;;  %v1384_v12 = vpop.f32.mrb[93].mxu1  ;;  %v5826_v37 = vld [vmem:[%s13810_s0 + $0x398] sm:$0xff] }
 0x1f1   :  { %v1385_v34 = vadd.f32 %v9293_v5, %v1384_v12  ;;  %v7156_v7 = vpop.f32.mrb[94].mxu1  ;;  %7293 = vmatprep.mubr.bf16.mxu0 %v1923_v56 }
 0x1f2   :  { %v1396_v9 = vadd.f32 %v7156_v7, %v9293_v5  ;;  %v1387_v23 = vpop.f32.mrb[95].mxu1  ;;  %7294 = vmatmul.mubr.bf16.gmra.mrb[88].mxu0 %v1924_v54  ;;  %v1813_v10 = vmax.f32 %v1393_v60, 0.0  ;;  %5217 = vrot.lane.b32.xlu1 %v5132_v61, %s8241_s28 }
 0x1f3   :  { %v1388_v32 = vadd.f32 %v9293_v5, %v1387_v23  ;;  %v1811_v30 = vmax.f32 %v1385_v34, 0.0  ;;  %5447 = vrot.lane.b32.xlu0 %v5363_v62, %s8241_s28  ;;  %v5134_v34 = vld [vmem:[%s13810_s0 + $0x2f8] sm:$0xff]  ;;  %v9541_v23 = vpop.permute.xlu1 %2899 }
 0x1f4   :  { %v1814_v13 = vmax.f32 %v1396_v9, 0.0 }
 0x1f5   :  { %v1812_v17 = vmax.f32 %v1388_v32, 0.0 }
 0x1f6   :  { %v1926_v18 = vpack.c.bf16 %v1814_v13, %v1813_v10  ;;  %5677 = vrot.lane.b32.xlu1 %v5594_v21, %s8241_s28  ;;  %v5365_v13 = vld [vmem:[%s13810_s0 + $0x330] sm:$0xff]  ;;  %v5827_v21 = vld [vmem:[%s13810_s0 + $0x3a0] sm:$0xff] }
 0x1f7   :  { %v1925_v2 = vpack.c.bf16 %v1812_v17, %v1811_v30  ;;  %v7159_v20 = vpop.f32.mrb[96].mxu1  ;;  %5907 = vrot.lane.b32.xlu0 %v5825_v6, %s8241_s28  ;;  %v5596_v17 = vld [vmem:[%s13810_s0 + $0x368] sm:$0xff]  ;;  %v9560_v6 = vpop.permute.xlu1 %3119 }
 0x1f8   :  { %v1409_v59 = vadd.f32 %v7159_v20, %v9293_v5  ;;  %v1400_v33 = vpop.f32.mrb[97].mxu1  ;;  %v9555_v20 = vpop.permute.xlu0 %3125 }
 0x1f9   :  { %v1401_v11 = vadd.f32 %v9293_v5, %v1400_v33  ;;  %v7160_v29 = vpop.f32.mrb[98].mxu1  ;;  %7297 = vmatprep.mubr.bf16.mxu0 %v1925_v2 }
 0x1fa   :  { %v1412_v26 = vadd.f32 %v7160_v29, %v9293_v5  ;;  %v1403_v1 = vpop.f32.mrb[99].mxu1  ;;  %7298 = vmatmul.mubr.bf16.gmra.mrb[92].mxu0 %v1926_v18  ;;  %v1817_v31 = vmax.f32 %v1409_v59, 0.0  ;;  %4989 = vrot.lane.b32.xlu1 %v4902_v19, %s8241_s28 }
 0x1fb   :  { %v1404_v41 = vadd.f32 %v9293_v5, %v1403_v1  ;;  %v1815_v35 = vmax.f32 %v1401_v11, 0.0  ;;  %5219 = vrot.lane.b32.xlu0 %v5133_v57, %s8241_s28  ;;  %v8202_v1 = vld [vmem:[%s13810_s0 + $0x3c0] sm:$0xff] }
 0x1fc   :  { %v1818_v39 = vmax.f32 %v1412_v26, 0.0  ;;  %v9569_v57 = vpop.permute.xlu0 %3129 }
 0x1fd   :  { %v1816_v36 = vmax.f32 %v1404_v41, 0.0  ;;  %13864 = vst [vmem:[#allocation5_spill] sm:$0xff] %v9569_v57 }
 0x1fe   :  { %v1928_v40 = vpack.c.bf16 %v1818_v39, %v1817_v31  ;;  %5449 = vrot.lane.b32.xlu1 %v5364_v42, %s8241_s28  ;;  %v9581_v42 = vpop.permute.xlu1 %3123 }
 0x1ff   :  { %v1927_v43 = vpack.c.bf16 %v1816_v36, %v1815_v35  ;;  %v7163_v0 = vpop.f32.mrb[100].mxu1  ;;  %5679 = vrot.lane.b32.xlu0 %v5595_v48, %s8241_s28  ;;  %v5597_v48 = vld [vmem:[%s13810_s0 + $0x370] sm:$0xff] }
 0x200   :  { %v1425_v38 = vadd.f32 %v7163_v0, %v9293_v5  ;;  %v1416_v45 = vpop.f32.mrb[101].mxu1 }
 0x201   :  { %v1417_v46 = vadd.f32 %v9293_v5, %v1416_v45  ;;  %v7164_v47 = vpop.f32.mrb[102].mxu1  ;;  %7301 = vmatprep.mubr.bf16.mxu0 %v1927_v43  ;;  %v5366_v43 = vld [vmem:[%s13810_s0 + $0x338] sm:$0xff] }
 0x202   :  { %v1428_v49 = vadd.f32 %v7164_v47, %v9293_v5  ;;  %v1419_v50 = vpop.f32.mrb[103].mxu1  ;;  %7302 = vmatmul.mubr.bf16.gmra.mrb[96].mxu0 %v1928_v40  ;;  %v1821_v54 = vmax.f32 %v1425_v38, 0.0  ;;  %5909 = vrot.lane.b32.xlu1 %v5826_v37, %s8241_s28  ;;  %v8203_v40 = vld [vmem:[%s13810_s0 + $0x3c8] sm:$0xff] }
 0x203   :  { %v1420_v52 = vadd.f32 %v9293_v5, %v1419_v50  ;;  %v1819_v60 = vmax.f32 %v1417_v46, 0.0  ;;  %5221 = vrot.lane.b32.xlu0 %v5134_v34, %s8241_s28 }
 0x204   :  { %v1822_v56 = vmax.f32 %v1428_v49, 0.0 }
 0x205   :  { %v1820_v12 = vmax.f32 %v1420_v52, 0.0  ;;  %v5828_v52 = vld [vmem:[%s13810_s0 + $0x3a8] sm:$0xff] }
 0x206   :  { %v1930_v7 = vpack.c.bf16 %v1822_v56, %v1821_v54  ;;  %5451 = vrot.lane.b32.xlu1 %v5365_v13, %s8241_s28 }
 0x207   :  { %v1929_v8 = vpack.c.bf16 %v1820_v12, %v1819_v60  ;;  %v7167_v9 = vpop.f32.mrb[104].mxu1  ;;  %5681 = vrot.lane.b32.xlu0 %v5596_v17, %s8241_s28  ;;  %v9591_v60 = vpop.permute.xlu0 %3133 }
 0x208   :  { %v1441_v32 = vadd.f32 %v7167_v9, %v9293_v5  ;;  %v1432_v10 = vpop.f32.mrb[105].mxu1  ;;  %13865 = vst [vmem:[#allocation6_spill] sm:$0xff] %v9591_v60  ;;  %v9595_v9 = vpop.permute.xlu1 %3127 }
 0x209   :  { %v1433_v61 = vadd.f32 %v9293_v5, %v1432_v10  ;;  %v7168_v30 = vpop.f32.mrb[106].mxu1  ;;  %7305 = vmatprep.mubr.bf16.mxu0 %v1929_v8  ;;  %13866 = vst [vmem:[#allocation7_spill] sm:$0xff] %v9595_v9 }
 0x20a   :  { %v1444_v62 = vadd.f32 %v7168_v30, %v9293_v5  ;;  %v1435_v18 = vpop.f32.mrb[107].mxu1  ;;  %7306 = vmatmul.mubr.bf16.gmra.mrb[100].mxu0 %v1930_v7  ;;  %v1825_v59 = vmax.f32 %v1441_v32, 0.0  ;;  %5911 = vrot.lane.b32.xlu1 %v5827_v21, %s8241_s28  ;;  %v8204_v32 = vld [vmem:[%s13810_s0 + $0x3d0] sm:$0xff] }
 0x20b   :  { %v1436_v2 = vadd.f32 %v9293_v5, %v1435_v18  ;;  %v1823_v11 = vmax.f32 %v1433_v61, 0.0  ;;  %6127 = vrot.lane.b32.xlu0 %v8202_v1, %s8241_s28 }
 0x20c   :  { %v1826_v33 = vmax.f32 %v1444_v62, 0.0  ;;  %v5598_v62 = vld [vmem:[%s13810_s0 + $0x378] sm:$0xff] }
 0x20d   :  { %v1824_v29 = vmax.f32 %v1436_v2, 0.0 }
 0x20e   :  { %v1932_v26 = vpack.c.bf16 %v1826_v33, %v1825_v59  ;;  %6129 = vrot.lane.b32.xlu1 %v8203_v40, %s8241_s28  ;;  %v9606_v59 = vpop.permute.xlu0 %3353 }
 0x20f   :  { %v1931_v41 = vpack.c.bf16 %v1824_v29, %v1823_v11  ;;  %v7171_v31 = vpop.f32.mrb[108].mxu1  ;;  %5453 = vrot.lane.b32.xlu0 %v5366_v43, %s8241_s28  ;;  %13867 = vst [vmem:[#allocation8_spill] sm:$0xff] %v9606_v59  ;;  %v5829_v29 = vld [vmem:[%s13810_s0 + $0x3b0] sm:$0xff] }
 0x210   :  { %v1457_v39 = vadd.f32 %v7171_v31, %v9293_v5  ;;  %v1448_v19 = vpop.f32.mrb[109].mxu1 }
 0x211   :  { %v1449_v35 = vadd.f32 %v9293_v5, %v1448_v19  ;;  %v7172_v36 = vpop.f32.mrb[110].mxu1  ;;  %7309 = vmatprep.mubr.bf16.mxu0 %v1931_v41  ;;  %v9613_v41 = vpop.permute.xlu1 %3131  ;;  %v8205_v19 = vld [vmem:[%s13810_s0 + $0x3d8] sm:$0xff] }
 0x212   :  { %v1460_v0 = vadd.f32 %v7172_v36, %v9293_v5  ;;  %v1451_v38 = vpop.f32.mrb[111].mxu1  ;;  %7310 = vmatmul.mubr.bf16.gmra.mrb[104].mxu0 %v1932_v26  ;;  %v1829_v46 = vmax.f32 %v1457_v39, 0.0  ;;  %5683 = vrot.lane.b32.xlu1 %v5597_v48, %s8241_s28  ;;  %v9623_v43 = vpop.permute.xlu0 %3357 }
 0x213   :  { %v1452_v45 = vadd.f32 %v9293_v5, %v1451_v38  ;;  %v1827_v49 = vmax.f32 %v1449_v35, 0.0  ;;  %5913 = vrot.lane.b32.xlu0 %v5828_v52, %s8241_s28  ;;  %13868 = vst [vmem:[#allocation9_spill] sm:$0xff] %v9623_v43 }
 0x214   :  { %v1830_v47 = vmax.f32 %v1460_v0, 0.0 }
 0x215   :  { %v1828_v50 = vmax.f32 %v1452_v45, 0.0  ;;  %v9629_v52 = vpop.permute.xlu1 %3351 }
 0x216   :  { %v1934_v54 = vpack.c.bf16 %v1830_v47, %v1829_v46  ;;  %6131 = vrot.lane.b32.xlu1 %v8204_v32, %s8241_s28  ;;  %v8206_v47 = vld [vmem:[%s13810_s0 + $0x3e0] sm:$0xff]  ;;  %13869 = vst [vmem:[#allocation10_spill] sm:$0xff] %v9629_v52 }
 0x217   :  { %v1933_v56 = vpack.c.bf16 %v1828_v50, %v1827_v49  ;;  %v7175_v37 = vpop.f32.mrb[112].mxu1  ;;  %5685 = vrot.lane.b32.xlu0 %v5598_v62, %s8241_s28 }
 0x218   :  { %v1473_v12 = vadd.f32 %v7175_v37, %v9293_v5  ;;  %v1464_v34 = vpop.f32.mrb[113].mxu1 }
 0x219   :  { %v1465_v7 = vadd.f32 %v9293_v5, %v1464_v34  ;;  %v7176_v8 = vpop.f32.mrb[114].mxu1  ;;  %7313 = vmatprep.mubr.bf16.mxu0 %v1933_v56  ;;  %v9633_v34 = vpop.permute.xlu0 %3361 }
 0x21a   :  { %v1476_v10 = vadd.f32 %v7176_v8, %v9293_v5  ;;  %v1467_v13 = vpop.f32.mrb[115].mxu1  ;;  %7314 = vmatmul.mubr.bf16.gmra.mrb[108].mxu0 %v1934_v54  ;;  %v1833_v30 = vmax.f32 %v1473_v12, 0.0  ;;  %5915 = vrot.lane.b32.xlu1 %v5829_v29, %s8241_s28  ;;  %13870 = vst [vmem:[#allocation11_spill] sm:$0xff] %v9633_v34 }
 0x21b   :  { %v1468_v61 = vadd.f32 %v9293_v5, %v1467_v13  ;;  %v1831_v18 = vmax.f32 %v1465_v7, 0.0  ;;  %6133 = vrot.lane.b32.xlu0 %v8205_v19, %s8241_s28  ;;  %v8207_v7 = vld [vmem:[%s13810_s0 + $0x3f0] sm:$0xff] }
 0x21c   :  { %v1834_v17 = vmax.f32 %v1476_v10, 0.0  ;;  %v5830_v10 = vld [vmem:[%s13810_s0 + $0x3b8] sm:$0xff] }
 0x21d   :  { %v1832_v2 = vmax.f32 %v1468_v61, 0.0 }
 0x21e   :  { %v1936_v33 = vpack.c.bf16 %v1834_v17, %v1833_v30  ;;  %5917 = vrot.lane.b32.xlu1 %v5830_v10, %s8241_s28 }
 0x21f   :  { %v1935_v21 = vpack.c.bf16 %v1832_v2, %v1831_v18  ;;  %v7179_v11 = vpop.f32.mrb[116].mxu1  ;;  %6135 = vrot.lane.b32.xlu0 %v8206_v47, %s8241_s28  ;;  %v9645_v18 = vpop.permute.xlu1 %3355 }
 0x220   :  { %v1489_v26 = vadd.f32 %v7179_v11, %v9293_v5  ;;  %v1480_v1 = vpop.f32.mrb[117].mxu1  ;;  %13871 = vst [vmem:[#allocation12_spill] sm:$0xff] %v9645_v18  ;;  %v8208_v11 = vld [vmem:[%s13810_s0 + $0x3e8] sm:$0xff] }
 0x221   :  { %v1481_v31 = vadd.f32 %v9293_v5, %v1480_v1  ;;  %v7180_v39 = vpop.f32.mrb[118].mxu1  ;;  %7317 = vmatprep.mubr.bf16.mxu0 %v1935_v21 }
 0x222   :  { %v1492_v35 = vadd.f32 %v7180_v39, %v9293_v5  ;;  %v1483_v36 = vpop.f32.mrb[119].mxu1  ;;  %7318 = vmatmul.mubr.bf16.gmra.mrb[112].mxu0 %v1936_v33  ;;  %v1837_v0 = vmax.f32 %v1489_v26, 0.0  ;;  %6137 = vrot.lane.b32.xlu1 %v8208_v11, %s8241_s28 }
 0x223   :  { %v1484_v40 = vadd.f32 %v9293_v5, %v1483_v36  ;;  %v1835_v45 = vmax.f32 %v1481_v31, 0.0  ;;  %6139 = vrot.lane.b32.xlu0 %v8207_v7, %s8241_s28  ;;  %v9655_v36 = vpop.permute.xlu1 %3359 }
 0x224   :  { %v1838_v38 = vmax.f32 %v1492_v35, 0.0  ;;  %13872 = vst [vmem:[#allocation13_spill] sm:$0xff] %v9655_v36 }
 0x225   :  { %v1836_v46 = vmax.f32 %v1484_v40, 0.0  ;;  %v8209_v40 = vld [vmem:[%s13810_s0 + $0x3f8] sm:$0xff] }
 0x226   :  { %v1938_v48 = vpack.c.bf16 %v1838_v38, %v1837_v0  ;;  %6141 = vrot.lane.b32.xlu1 %v8209_v40, %s8241_s28 }
 0x227   :  { %v1937_v49 = vpack.c.bf16 %v1836_v46, %v1835_v45  ;;  %v7183_v50 = vpop.f32.mrb[120].mxu1  ;;  %v6337_v45 = vld [vmem:[%s13811_s1] sm:$0xff] }
 0x228   :  { %v1505_v54 = vadd.f32 %v7183_v50, %v9293_v5  ;;  %v1496_v56 = vpop.f32.mrb[121].mxu1 }
 0x229   :  { %v1497_v37 = vadd.f32 %v9293_v5, %v1496_v56  ;;  %v7184_v12 = vpop.f32.mrb[122].mxu1  ;;  %7321 = vmatprep.mubr.bf16.mxu0 %v1937_v49  ;;  %v8243_v56 = vmov 0  }
 0x22a   :  { %v1508_v8 = vadd.f32 %v7184_v12, %v9293_v5  ;;  %v1499_v32 = vpop.f32.mrb[123].mxu1  ;;  %7322 = vmatmul.mubr.bf16.gmra.mrb[116].mxu0 %v1938_v48  ;;  %v1841_v61 = vmax.f32 %v1505_v54, 0.0  ;;  %v9664_v48 = vpop.permute.xlu0 %3365  ;;  %6353 = vrot.lane.b32.xlu0 %v6337_v45, %s8242_s29 }
 0x22b   :  { %v1500_v13 = vadd.f32 %v9293_v5, %v1499_v32  ;;  %v1839_v17 = vmax.f32 %v1497_v37, 0.0  ;;  %13873 = vst [vmem:[#allocation14_spill] sm:$0xff] %v9664_v48  ;;  %7415 = vset.pattern.permute.xlu1 %v8243_v56  ;;  %7416 = vset.pattern.permute.xlu0 %v8243_v56 }
 0x22c   :  { %v1842_v30 = vmax.f32 %v1508_v8, 0.0 }
 0x22d   :  { %v1840_v62 = vmax.f32 %v1500_v13, 0.0 }
 0x22e   :  { %v1940_v2 = vpack.c.bf16 %v1842_v30, %v1841_v61 }
 0x22f   :  { %v1939_v33 = vpack.c.bf16 %v1840_v62, %v1839_v17  ;;  %v7187_v21 = vpop.f32.mrb[124].mxu1 }
 0x230   :  { %v1521_v29 = vadd.f32 %v7187_v21, %v9293_v5  ;;  %v1512_v26 = vpop.f32.mrb[125].mxu1 }
 0x231   :  { %v1513_v1 = vadd.f32 %v9293_v5, %v1512_v26  ;;  %v7188_v31 = vpop.f32.mrb[126].mxu1  ;;  %7325 = vmatprep.mubr.bf16.mxu0 %v1939_v33 }
 0x232   :  { %v1524_v39 = vadd.f32 %v7188_v31, %v9293_v5  ;;  %v1515_v19 = vpop.f32.mrb[127].mxu1  ;;  %7326 = vmatmul.mubr.bf16.gmra.mrb[120].mxu0 %v1940_v2  ;;  %v1845_v0 = vmax.f32 %v1521_v29, 0.0 }
 0x233   :  { %v1516_v35 = vadd.f32 %v9293_v5, %v1515_v19  ;;  %v1843_v46 = vmax.f32 %v1513_v1, 0.0 }
 0x234   :  { %v1846_v38 = vmax.f32 %v1524_v39, 0.0 }
 0x235   :  { %v1844_v47 = vmax.f32 %v1516_v35, 0.0 }
 0x236   :  { %v1942_v49 = vpack.c.bf16 %v1846_v38, %v1845_v0 }
 0x237   :  { %v1941_v50 = vpack.c.bf16 %v1844_v47, %v1843_v46  ;;  %v7191_v54 = vpop.f32.mrb[128].mxu1 }
 0x238   :  { %v1537_v37 = vadd.f32 %v7191_v54, %v9293_v5  ;;  %v1528_v12 = vpop.f32.mrb[129].mxu1 }
 0x239   :  { %v1529_v7 = vadd.f32 %v9293_v5, %v1528_v12  ;;  %v7192_v8 = vpop.f32.mrb[130].mxu1  ;;  %7329 = vmatprep.mubr.bf16.mxu0 %v1941_v50 }
 0x23a   :  { %v1540_v32 = vadd.f32 %v7192_v8, %v9293_v5  ;;  %v1531_v10 = vpop.f32.mrb[131].mxu1  ;;  %7330 = vmatmul.mubr.bf16.gmra.mrb[124].mxu0 %v1942_v49  ;;  %v1849_v61 = vmax.f32 %v1537_v37, 0.0 }
 0x23b   :  { %v1532_v13 = vadd.f32 %v9293_v5, %v1531_v10  ;;  %v1847_v17 = vmax.f32 %v1529_v7, 0.0 }
 0x23c   :  { %v1850_v30 = vmax.f32 %v1540_v32, 0.0 }
 0x23d   :  { %v1848_v62 = vmax.f32 %v1532_v13, 0.0 }
 0x23e   :  { %v1944_v2 = vpack.c.bf16 %v1850_v30, %v1849_v61 }
 0x23f   :  { %v1943_v33 = vpack.c.bf16 %v1848_v62, %v1847_v17  ;;  %v7195_v21 = vpop.f32.mrb[132].mxu1 }
 0x240   :  { %v1553_v11 = vadd.f32 %v7195_v21, %v9293_v5  ;;  %v1544_v29 = vpop.f32.mrb[133].mxu1 }
 0x241   :  { %v1545_v26 = vadd.f32 %v9293_v5, %v1544_v29  ;;  %v7196_v1 = vpop.f32.mrb[134].mxu1  ;;  %7333 = vmatprep.mubr.bf16.mxu0 %v1943_v33 }
 0x242   :  { %v1556_v31 = vadd.f32 %v7196_v1, %v9293_v5  ;;  %v1547_v39 = vpop.f32.mrb[135].mxu1  ;;  %7334 = vmatmul.mubr.bf16.gmra.mrb[128].mxu0 %v1944_v2  ;;  %v1853_v35 = vmax.f32 %v1553_v11, 0.0 }
 0x243   :  { %v1548_v19 = vadd.f32 %v9293_v5, %v1547_v39  ;;  %v1851_v0 = vmax.f32 %v1545_v26, 0.0 }
 0x244   :  { %v1854_v40 = vmax.f32 %v1556_v31, 0.0 }
 0x245   :  { %v1852_v38 = vmax.f32 %v1548_v19, 0.0 }
 0x246   :  { %v1946_v45 = vpack.c.bf16 %v1854_v40, %v1853_v35 }
 0x247   :  { %v1945_v46 = vpack.c.bf16 %v1852_v38, %v1851_v0  ;;  %v7199_v47 = vpop.f32.mrb[136].mxu1 }
 0x248   :  { %v1569_v49 = vadd.f32 %v7199_v47, %v9293_v5  ;;  %v1560_v50 = vpop.f32.mrb[137].mxu1 }
 0x249   :  { %v1561_v54 = vadd.f32 %v9293_v5, %v1560_v50  ;;  %v7200_v56 = vpop.f32.mrb[138].mxu1  ;;  %7337 = vmatprep.mubr.bf16.mxu0 %v1945_v46 }
 0x24a   :  { %v1572_v37 = vadd.f32 %v7200_v56, %v9293_v5  ;;  %v1563_v12 = vpop.f32.mrb[139].mxu1  ;;  %7338 = vmatmul.mubr.bf16.gmra.mrb[132].mxu0 %v1946_v45  ;;  %v1857_v8 = vmax.f32 %v1569_v49, 0.0 }
 0x24b   :  { %v1564_v7 = vadd.f32 %v9293_v5, %v1563_v12  ;;  %v1855_v10 = vmax.f32 %v1561_v54, 0.0 }
 0x24c   :  { %v1858_v32 = vmax.f32 %v1572_v37, 0.0 }
 0x24d   :  { %v1856_v13 = vmax.f32 %v1564_v7, 0.0 }
 0x24e   :  { %v1948_v61 = vpack.c.bf16 %v1858_v32, %v1857_v8 }
 0x24f   :  { %v1947_v30 = vpack.c.bf16 %v1856_v13, %v1855_v10  ;;  %v7203_v17 = vpop.f32.mrb[140].mxu1 }
 0x250   :  { %v1585_v62 = vadd.f32 %v7203_v17, %v9293_v5  ;;  %v1576_v2 = vpop.f32.mrb[141].mxu1 }
 0x251   :  { %v1577_v33 = vadd.f32 %v9293_v5, %v1576_v2  ;;  %v7204_v21 = vpop.f32.mrb[142].mxu1  ;;  %7341 = vmatprep.mubr.bf16.mxu0 %v1947_v30 }
 0x252   :  { %v1588_v11 = vadd.f32 %v7204_v21, %v9293_v5  ;;  %v1579_v29 = vpop.f32.mrb[143].mxu1  ;;  %7342 = vmatmul.mubr.bf16.gmra.mrb[136].mxu0 %v1948_v61  ;;  %v1861_v1 = vmax.f32 %v1585_v62, 0.0 }
 0x253   :  { %v1580_v26 = vadd.f32 %v9293_v5, %v1579_v29  ;;  %v1859_v39 = vmax.f32 %v1577_v33, 0.0 }
 0x254   :  { %v1862_v31 = vmax.f32 %v1588_v11, 0.0 }
 0x255   :  { %v1860_v19 = vmax.f32 %v1580_v26, 0.0 }
 0x256   :  { %v1950_v35 = vpack.c.bf16 %v1862_v31, %v1861_v1 }
 0x257   :  { %v1949_v40 = vpack.c.bf16 %v1860_v19, %v1859_v39  ;;  %v7207_v0 = vpop.f32.mrb[144].mxu1 }
 0x258   :  { %v1601_v38 = vadd.f32 %v7207_v0, %v9293_v5  ;;  %v1592_v45 = vpop.f32.mrb[145].mxu1 }
 0x259   :  { %v1593_v46 = vadd.f32 %v9293_v5, %v1592_v45  ;;  %v7208_v47 = vpop.f32.mrb[146].mxu1  ;;  %7345 = vmatprep.mubr.bf16.mxu0 %v1949_v40 }
 0x25a   :  { %v1604_v49 = vadd.f32 %v7208_v47, %v9293_v5  ;;  %v1595_v50 = vpop.f32.mrb[147].mxu1  ;;  %7346 = vmatmul.mubr.bf16.gmra.mrb[140].mxu0 %v1950_v35  ;;  %v1865_v56 = vmax.f32 %v1601_v38, 0.0  ;;  %v9696_v38 = vld [vmem:[%s13815_s5] ss:$0 sm:$0xff] }
 0x25b   :  { %v1596_v54 = vadd.f32 %v9293_v5, %v1595_v50  ;;  %v1863_v12 = vmax.f32 %v1593_v46, 0.0 }
 0x25c   :  { %v1866_v37 = vmax.f32 %v1604_v49, 0.0 }
 0x25d   :  { %v1864_v7 = vmax.f32 %v1596_v54, 0.0 }
 0x25e   :  { %v1952_v8 = vpack.c.bf16 %v1866_v37, %v1865_v56 }
 0x25f   :  { %v1951_v32 = vpack.c.bf16 %v1864_v7, %v1863_v12  ;;  %v7211_v10 = vpop.f32.mrb[148].mxu1 }
 0x260   :  { %v1617_v13 = vadd.f32 %v7211_v10, %v9293_v5  ;;  %v1608_v61 = vpop.f32.mrb[149].mxu1 }
 0x261   :  { %v1609_v30 = vadd.f32 %v9293_v5, %v1608_v61  ;;  %v7212_v17 = vpop.f32.mrb[150].mxu1  ;;  %7349 = vmatprep.mubr.bf16.mxu0 %v1951_v32 }
 0x262   :  { %v1620_v62 = vadd.f32 %v7212_v17, %v9293_v5  ;;  %v1611_v2 = vpop.f32.mrb[151].mxu1  ;;  %7350 = vmatmul.mubr.bf16.gmra.mrb[144].mxu0 %v1952_v8  ;;  %v1869_v21 = vmax.f32 %v1617_v13, 0.0 }
 0x263   :  { %v1612_v33 = vadd.f32 %v9293_v5, %v1611_v2  ;;  %v1867_v29 = vmax.f32 %v1609_v30, 0.0 }
 0x264   :  { %v1870_v11 = vmax.f32 %v1620_v62, 0.0 }
 0x265   :  { %v1868_v26 = vmax.f32 %v1612_v33, 0.0 }
 0x266   :  { %v1954_v1 = vpack.c.bf16 %v1870_v11, %v1869_v21 }
 0x267   :  { %v1953_v31 = vpack.c.bf16 %v1868_v26, %v1867_v29  ;;  %v7215_v39 = vpop.f32.mrb[152].mxu1 }
 0x268   :  { %v1633_v19 = vadd.f32 %v7215_v39, %v9293_v5  ;;  %v1624_v35 = vpop.f32.mrb[153].mxu1 }
 0x269   :  { %v1625_v40 = vadd.f32 %v9293_v5, %v1624_v35  ;;  %v7216_v0 = vpop.f32.mrb[154].mxu1  ;;  %7353 = vmatprep.mubr.bf16.mxu0 %v1953_v31 }
 0x26a   :  { %v1636_v45 = vadd.f32 %v9696_v38, %v7216_v0  ;;  %v1627_v46 = vpop.f32.mrb[155].mxu1  ;;  %7354 = vmatmul.mubr.bf16.gmra.mrb[148].mxu0 %v1954_v1  ;;  %v1873_v49 = vmax.f32 %v1633_v19, 0.0 }
 0x26b   :  { %v1628_v47 = vadd.f32 %v9696_v38, %v1627_v46  ;;  %v1871_v54 = vmax.f32 %v1625_v40, 0.0 }
 0x26c   :  { %v1874_v50 = vmax.f32 %v1636_v45, 0.0 }
 0x26d   :  { %v1872_v56 = vmax.f32 %v1628_v47, 0.0 }
 0x26e   :  { %v1956_v37 = vpack.c.bf16 %v1874_v50, %v1873_v49 }
 0x26f   :  { %v1955_v12 = vpack.c.bf16 %v1872_v56, %v1871_v54  ;;  %v7219_v5 = vpop.f32.mrb[156].mxu1 }
 0x270   :  { %v1649_v7 = vadd.f32 %v9696_v38, %v7219_v5  ;;  %v1640_v8 = vpop.f32.mrb[157].mxu1 }
 0x271   :  { %v1641_v32 = vadd.f32 %v9696_v38, %v1640_v8  ;;  %v7220_v10 = vpop.f32.mrb[158].mxu1  ;;  %7357 = vmatprep.mubr.bf16.mxu0 %v1955_v12 }
 0x272   :  { %v1652_v13 = vadd.f32 %v9696_v38, %v7220_v10  ;;  %v1643_v61 = vpop.f32.mrb[159].mxu1  ;;  %7358 = vmatmul.mubr.bf16.gmra.mrb[152].mxu0 %v1956_v37  ;;  %v1877_v17 = vmax.f32 %v1649_v7, 0.0 }
 0x273   :  { %v1644_v30 = vadd.f32 %v9696_v38, %v1643_v61  ;;  %v1875_v2 = vmax.f32 %v1641_v32, 0.0 }
 0x274   :  { %v1878_v62 = vmax.f32 %v1652_v13, 0.0 }
 0x275   :  { %v1876_v33 = vmax.f32 %v1644_v30, 0.0 }
 0x276   :  { %v1958_v21 = vpack.c.bf16 %v1878_v62, %v1877_v17 }
 0x277   :  { %v1957_v11 = vpack.c.bf16 %v1876_v33, %v1875_v2  ;;  %v7223_v29 = vpop.f32.mrb[160].mxu1 }
 0x278   :  { %v1665_v26 = vadd.f32 %v9696_v38, %v7223_v29  ;;  %v1656_v1 = vpop.f32.mrb[161].mxu1 }
 0x279   :  { %v1657_v31 = vadd.f32 %v9696_v38, %v1656_v1  ;;  %v7224_v39 = vpop.f32.mrb[162].mxu1  ;;  %7361 = vmatprep.mubr.bf16.mxu0 %v1957_v11  ;;  %v9713_v11 = vpop.permute.xlu0 %3585 }
 0x27a   :  { %v1668_v19 = vadd.f32 %v9696_v38, %v7224_v39  ;;  %v1659_v35 = vpop.f32.mrb[163].mxu1  ;;  %7362 = vmatmul.mubr.bf16.gmra.mrb[156].mxu0 %v1958_v21  ;;  %v1881_v0 = vmax.f32 %v1665_v26, 0.0  ;;  %13874 = vst [vmem:[#allocation15_spill] sm:$0xff] %v9713_v11 }
 0x27b   :  { %v1660_v40 = vadd.f32 %v9696_v38, %v1659_v35  ;;  %v1879_v46 = vmax.f32 %v1657_v31, 0.0 }
 0x27c   :  { %v1882_v45 = vmax.f32 %v1668_v19, 0.0 }
 0x27d   :  { %v1880_v47 = vmax.f32 %v1660_v40, 0.0 }
 0x27e   :  { %v1960_v49 = vpack.c.bf16 %v1882_v45, %v1881_v0 }
 0x27f   :  { %v1959_v50 = vpack.c.bf16 %v1880_v47, %v1879_v46  ;;  %v7227_v54 = vpop.f32.mrb[164].mxu1  ;;  %v9718_v46 = vpop.permute.xlu0 %3589 }
 0x280   :  { %v1681_v56 = vadd.f32 %v9696_v38, %v7227_v54  ;;  %v1672_v37 = vpop.f32.mrb[165].mxu1  ;;  %13875 = vst [vmem:[#allocation16_spill] sm:$0xff] %v9718_v46 }
 0x281   :  { %v1673_v12 = vadd.f32 %v9696_v38, %v1672_v37  ;;  %v7228_v5 = vpop.f32.mrb[166].mxu1  ;;  %7365 = vmatprep.mubr.bf16.mxu0 %v1959_v50  ;;  %v9720_v50 = vpop.permute.xlu1 %3363 }
 0x282   :  { %v1684_v7 = vadd.f32 %v9696_v38, %v7228_v5  ;;  %v1675_v8 = vpop.f32.mrb[167].mxu1  ;;  %7366 = vmatmul.mubr.bf16.gmra.mrb[160].mxu0 %v1960_v49  ;;  %v1885_v10 = vmax.f32 %v1681_v56, 0.0  ;;  %13876 = vst [vmem:[#allocation17_spill] sm:$0xff] %v9720_v50 }
 0x283   :  { %v1676_v32 = vadd.f32 %v9696_v38, %v1675_v8  ;;  %v1883_v61 = vmax.f32 %v1673_v12, 0.0 }
 0x284   :  { %v1886_v13 = vmax.f32 %v1684_v7, 0.0 }
 0x285   :  { %v1884_v30 = vmax.f32 %v1676_v32, 0.0  ;;  %v9729_v32 = vld [vmem:[%s13817_s7] ss:$0 sm:$0xff] }
 0x286   :  { %v1962_v17 = vpack.c.bf16 %v1886_v13, %v1885_v10 }
 0x287   :  { %v1961_v62 = vpack.c.bf16 %v1884_v30, %v1883_v61  ;;  %v7231_v2 = vpop.f32.mrb[168].mxu1  ;;  %v9731_v61 = vpop.permute.xlu0 %3593 }
 0x288   :  { %v1697_v33 = vadd.f32 %v9696_v38, %v7231_v2  ;;  %v1688_v21 = vpop.f32.mrb[169].mxu1  ;;  %13877 = vst [vmem:[#allocation18_spill] sm:$0xff] %v9731_v61  ;;  %v9733_v2 = vpop.permute.xlu1 %3583 }
 0x289   :  { %v1689_v29 = vadd.f32 %v9696_v38, %v1688_v21  ;;  %v7232_v26 = vpop.f32.mrb[170].mxu1  ;;  %7369 = vmatprep.mubr.bf16.mxu0 %v1961_v62  ;;  %13878 = vst [vmem:[#allocation19_spill] sm:$0xff] %v9733_v2 }
 0x28a   :  { %v1700_v1 = vadd.f32 %v9696_v38, %v7232_v26  ;;  %v1691_v31 = vpop.f32.mrb[171].mxu1  ;;  %7370 = vmatmul.mubr.bf16.gmra.mrb[164].mxu0 %v1962_v17  ;;  %v1889_v19 = vmax.f32 %v1697_v33, 0.0 }
 0x28b   :  { %v1692_v39 = vadd.f32 %v9696_v38, %v1691_v31  ;;  %v1887_v40 = vmax.f32 %v1689_v29, 0.0 }
 0x28c   :  { %v1890_v35 = vmax.f32 %v1700_v1, 0.0 }
 0x28d   :  { %v1888_v0 = vmax.f32 %v1692_v39, 0.0 }
 0x28e   :  { %v1964_v45 = vpack.c.bf16 %v1890_v35, %v1889_v19 }
 0x28f   :  { %v1963_v47 = vpack.c.bf16 %v1888_v0, %v1887_v40  ;;  %v7235_v49 = vpop.f32.mrb[172].mxu1 }
 0x290   :  { %v1713_v54 = vadd.f32 %v9696_v38, %v7235_v49  ;;  %v1704_v56 = vpop.f32.mrb[173].mxu1 }
 0x291   :  { %v1705_v37 = vadd.f32 %v9696_v38, %v1704_v56  ;;  %v7236_v12 = vpop.f32.mrb[174].mxu1  ;;  %7373 = vmatprep.mubr.bf16.mxu0 %v1963_v47  ;;  %v9742_v47 = vpop.permute.xlu0 %3597 }
 0x292   :  { %v1716_v5 = vadd.f32 %v9696_v38, %v7236_v12  ;;  %v1707_v7 = vpop.f32.mrb[175].mxu1  ;;  %7374 = vmatmul.mubr.bf16.gmra.mrb[168].mxu0 %v1964_v45  ;;  %v1893_v10 = vmax.f32 %v1713_v54, 0.0  ;;  %13879 = vst [vmem:[#allocation20_spill] sm:$0xff] %v9742_v47 }
 0x293   :  { %v1708_v8 = vadd.f32 %v9696_v38, %v1707_v7  ;;  %v1891_v30 = vmax.f32 %v1705_v37, 0.0  ;;  %v9748_v7 = vpop.permute.xlu1 %3587 }
 0x294   :  { %v1894_v13 = vmax.f32 %v1716_v5, 0.0  ;;  %13880 = vst [vmem:[#allocation21_spill] sm:$0xff] %v9748_v7 }
 0x295   :  { %v1892_v17 = vmax.f32 %v1708_v8, 0.0  ;;  %v7271_v62 = vpop.f32.mrb[64].mxu0 }
 0x296   :  { %v1966_v33 = vpack.c.bf16 %v1894_v13, %v1893_v10  ;;  %v9736_v21 = vadd.f32 %v7271_v62, %v9729_v32  ;;  %v2080_v29 = vpop.f32.mrb[65].mxu0 }
 0x297   :  { %v1965_v26 = vpack.c.bf16 %v1892_v17, %v1891_v30  ;;  %v7239_v1 = vpop.f32.mrb[176].mxu1  ;;  %v7272_v31 = vpop.f32.mrb[66].mxu0  ;;  %v9740_v0 = vadd.f32 %v9729_v32, %v2080_v29 }
 0x298   :  { %v1720_v39 = vpop.f32.mrb[177].mxu1  ;;  %v2083_v19 = vpop.f32.mrb[67].mxu0  ;;  %v2601_v35 = vmax.f32 %v9736_v21, 0.0  ;;  %v1729_v49 = vadd.f32 %v9696_v38, %v7239_v1 }
 0x299   :  { %v7240_v40 = vpop.f32.mrb[178].mxu1  ;;  %7377 = vmatprep.mubr.bf16.mxu0 %v1965_v26  ;;  %v1721_v54 = vadd.f32 %v9696_v38, %v1720_v39  ;;  %v2599_v8 = vmax.f32 %v9740_v0, 0.0  ;;  %v9755_v39 = vpop.permute.xlu0 %3817  ;;  %v9759_v2 = vadd.f32 %v9729_v32, %v2083_v19 }
 0x29a   :  { %v1723_v45 = vpop.f32.mrb[179].mxu1  ;;  %7378 = vmatmul.mubr.bf16.gmra.mrb[172].mxu0 %v1966_v33  ;;  %v2657_v56 = vsub.f32 0.0, %v2601_v35  ;;  %v1732_v37 = vadd.f32 %v9696_v38, %v7240_v40  ;;  %v1897_v13 = vmax.f32 %v1729_v49, 0.0  ;;  %13881 = vst [vmem:[#allocation22_spill] sm:$0xff] %v9755_v39 }
 0x29b   :  { %v1724_v12 = vadd.f32 %v9696_v38, %v1723_v45  ;;  %v1895_v30 = vmax.f32 %v1721_v54, 0.0  ;;  %v2655_v11 = vsub.f32 0.0, %v2599_v8  ;;  %v2600_v8 = vmax.f32 %v9759_v2, 0.0 }
 0x29c   :  { %v1898_v17 = vmax.f32 %v1732_v37, 0.0  ;;  %v2697_v35 = vmul.f32 %v9408_v15, %v2657_v56  ;;  %v9763_v37 = vpop.permute.xlu1 %3591 }
 0x29d   :  { %v7275_v5 = vpop.f32.mrb[68].mxu0  ;;  %v1896_v62 = vmax.f32 %v1724_v12, 0.0  ;;  %13882 = vst [vmem:[#allocation23_spill] sm:$0xff] %v9763_v37  ;;  %v9766_v12 = vadd.f32 %v7272_v31, %v9729_v32  ;;  %v9770_v15 = vpop.permute.xlu0 %3821  ;;  %v2695_v56 = vmul.f32 %v9383_v53, %v2655_v11  ;;  %v2656_v37 = vsub.f32 0.0, %v2600_v8 }
 0x29e   :  { %v9751_v10 = vpop.f32.mrb[69].mxu0  ;;  %v1968_v40 = vpack.c.bf16 %v1898_v17, %v1897_v13  ;;  %v2707_v49 = vmul.f32 1.442695, %v2697_v35  ;;  %13883 = vst [vmem:[#allocation24_spill] sm:$0xff] %v9770_v15 }
 0x29f   :  { %v7243_v33 = vpop.f32.mrb[180].mxu1  ;;  %v7276_v29 = vpop.f32.mrb[70].mxu0  ;;  %v1967_v45 = vpack.c.bf16 %v1896_v62, %v1895_v30 }
 0x2a0   :  { %v1736_v26 = vpop.f32.mrb[181].mxu1  ;;  %v9753_v1 = vpop.f32.mrb[71].mxu0  ;;  %v1745_v13 = vadd.f32 %v9696_v38, %v7243_v33  ;;  %7433 = vpow2.f32 %v2707_v49  ;;  %v2703_v33 = vmul.f32 1.442695, %v2695_v56  ;;  %v2696_v56 = vmul.f32 %v9402_v63, %v2656_v37 }
 0x2a1   :  { %v7244_v61 = vpop.f32.mrb[182].mxu1  ;;  %7381 = vmatprep.mubr.bf16.mxu0 %v1967_v45  ;;  %v1737_v30 = vadd.f32 %v9696_v38, %v1736_v26  ;;  %v9782_v45 = vadd.f32 %v7275_v5, %v9729_v32  ;;  %v9788_v48 = vpop.permute.xlu1 %3595  ;;  %v9799_v8 = vadd.f32 %v7276_v29, %v9729_v32 }
 0x2a2   :  { %v1739_v47 = vpop.f32.mrb[183].mxu1  ;;  %7382 = vmatmul.mubr.bf16.gmra.mrb[176].mxu0 %v1968_v40  ;;  %v2602_v40 = vmax.f32 %v9766_v12, 0.0  ;;  %v1748_v53 = vadd.f32 %v9696_v38, %v7244_v61  ;;  %v1901_v26 = vmax.f32 %v1745_v13, 0.0  ;;  %13884 = vst [vmem:[#allocation25_spill] sm:$0xff] %v9788_v48  ;;  %v9793_v61 = vpop.permute.xlu0 %3825  ;;  %7435 = vpow2.f32 %v2703_v33 }
 0x2a3   :  { %v1740_v11 = vadd.f32 %v9696_v38, %v1739_v47  ;;  %v1899_v46 = vmax.f32 %v1737_v30, 0.0  ;;  %v2605_v50 = vmax.f32 %v9782_v45, 0.0  ;;  %13885 = vst [vmem:[#allocation26_spill] sm:$0xff] %v9793_v61  ;;  %v2705_v33 = vmul.f32 1.442695, %v2696_v56 }
 0x2a4   :  { %v1902_v7 = vmax.f32 %v1748_v53, 0.0  ;;  %v2658_v36 = vsub.f32 0.0, %v2602_v40  ;;  %v2097_v53 = vadd.f32 %v9729_v32, %v9751_v10 }
 0x2a5   :  { %v9761_v54 = vpop.f32.mrb[72].mxu0  ;;  %v1900_v34 = vmax.f32 %v1740_v11, 0.0  ;;  %v2661_v40 = vsub.f32 0.0, %v2605_v50  ;;  %v9816_v11 = vpop.permute.xlu1 %3815  ;;  %7437 = vpow2.f32 %v2705_v33 }
 0x2a6   :  { %v9768_v39 = vpop.f32.mrb[73].mxu0  ;;  %v1970_v5 = vpack.c.bf16 %v1902_v7, %v1901_v26  ;;  %13886 = vst [vmem:[#allocation27_spill] sm:$0xff] %v9816_v11  ;;  %v2606_v26 = vmax.f32 %v9799_v8, 0.0  ;;  %v9827_v10 = vpop.permute.xlu0 %3829  ;;  %v2603_v61 = vmax.f32 %v2097_v53, 0.0 }
 0x2a7   :  { %v7247_v19 = vpop.f32.mrb[184].mxu1  ;;  %v9776_v17 = vpop.f32.mrb[74].mxu0  ;;  %v1969_v59 = vpack.c.bf16 %v1900_v34, %v1899_v46  ;;  %v2698_v46 = vmul.f32 %v9429_v24, %v2658_v36  ;;  %13887 = vst [vmem:[#allocation28_spill] sm:$0xff] %v9827_v10 }
 0x2a8   :  { %v1752_v62 = vpop.f32.mrb[185].mxu1  ;;  %v9778_v35 = vpop.f32.mrb[75].mxu0 }
 0x2a9   :  { %v7248_v31 = vpop.f32.mrb[186].mxu1  ;;  %7385 = vmatprep.mubr.bf16.mxu0 %v1969_v59  ;;  %v1761_v59 = vadd.f32 %v9696_v38, %v7247_v19  ;;  %v1753_v37 = vadd.f32 %v9696_v38, %v1752_v62  ;;  %v2709_v19 = vmul.f32 1.442695, %v2698_v46  ;;  %v2701_v62 = vmul.f32 %v9439_v16, %v2661_v40  ;;  %v9841_v60 = vpop.permute.xlu1 %3819 }
 0x2aa   :  { %v1755_v15 = vpop.f32.mrb[187].mxu1  ;;  %7386 = vmatmul.mubr.bf16.gmra.mrb[180].mxu0 %v1970_v5  ;;  %v7434_v29 = vpop.eup %7433  ;;  %v9821_v5 = vadd.f32 %v9729_v32, %v9753_v1  ;;  %v1764_v24 = vadd.f32 %v9696_v38, %v7248_v31  ;;  %v6644_v16 = vmul.f32 -1.442695, %v9736_v21  ;;  %13888 = vst [vmem:[#allocation29_spill] sm:$0xff] %v9841_v60 }
 0x2ab   :  { %v1756_v36 = vadd.f32 %v9696_v38, %v1755_v15  ;;  %v9830_v11 = vsub.f32 1.0, %v7434_v29  ;;  %v1905_v48 = vmax.f32 %v1761_v59, 0.0  ;;  %v1903_v43 = vmax.f32 %v1753_v37, 0.0  ;;  %v9844_v33 = vpop.permute.xlu0 %4049 }
 0x2ac   :  { %v1906_v1 = vmax.f32 %v1764_v24, 0.0  ;;  %v2662_v15 = vsub.f32 0.0, %v2606_v26  ;;  %v2604_v31 = vmax.f32 %v9821_v5, 0.0  ;;  %v7436_v10 = vpop.eup %7435  ;;  %v6642_v59 = vmul.f32 -1.442695, %v9740_v0  ;;  %13889 = vst [vmem:[#allocation30_spill] sm:$0xff] %v9844_v33 }
 0x2ad   :  { %v9786_v49 = vpop.f32.mrb[76].mxu0  ;;  %v1904_v18 = vmax.f32 %v1756_v36, 0.0  ;;  %2739 = vperm.xlu1 %7415, %v9830_v11   ;;  %7439 = vpow2.f32 %v2709_v19  ;;  %v2659_v37 = vsub.f32 0.0, %v2603_v61  ;;  %v2715_v24 = vmul.f32 1.442695, %v2701_v62 }
 0x2ae   :  { %v9791_v52 = vpop.f32.mrb[77].mxu0  ;;  %v1972_v40 = vpack.c.bf16 %v1906_v1, %v1905_v48  ;;  %v6645_v26 = vmul.f32 -1.442695, %v9766_v12  ;;  %v2702_v36 = vmul.f32 %v9465_v58, %v2662_v15  ;;  %v2660_v9 = vsub.f32 0.0, %v2604_v31 }
 0x2af   :  { %v9795_v47 = vpop.f32.mrb[188].mxu1  ;;  %v9801_v13 = vpop.f32.mrb[78].mxu0  ;;  %v1971_v29 = vpack.c.bf16 %v1904_v18, %v1903_v43  ;;  %7441 = vpow2.f32 %v6644_v16  ;;  %v6643_v43 = vmul.f32 -1.442695, %v9759_v2  ;;  %v2121_v18 = vadd.f32 %v9761_v54, %v9729_v32 }
 0x2b0   :  { %v9803_v30 = vpop.f32.mrb[189].mxu1  ;;  %v9805_v7 = vpop.f32.mrb[79].mxu0  ;;  %v9851_v48 = vsub.f32 1.0, %v7436_v10  ;;  %7443 = vpow2.f32 %v6642_v59  ;;  %v6648_v0 = vmul.f32 -1.442695, %v9782_v45  ;;  %v2699_v61 = vmul.f32 %v9420_v22, %v2659_v37 }
 0x2b1   :  { %v9807_v34 = vpop.f32.mrb[190].mxu1  ;;  %7389 = vmatprep.mubr.bf16.mxu0 %v1971_v29  ;;  %7445 = vpow2.f32 %v2715_v24  ;;  %v6646_v58 = vmul.f32 -1.442695, %v2097_v53  ;;  %v9862_v2 = vpop.permute.xlu1 %3823  ;;  %v2717_v54 = vmul.f32 1.442695, %v2702_v36  ;;  %v2700_v10 = vmul.f32 %v9446_v44, %v2660_v9 }
 0x2b2   :  { %v9812_v63 = vpop.f32.mrb[191].mxu1  ;;  %7390 = vmatmul.mubr.bf16.gmra.mrb[184].mxu0 %v1972_v40  ;;  %2729 = vperm.xlu0 %7416, %v9851_v48   ;;  %13890 = vst [vmem:[#allocation31_spill] sm:$0xff] %v9862_v2  ;;  %7447 = vpow2.f32 %v6645_v26  ;;  %v2817_v45 = vmax.f32 %v2121_v18, 0.0  ;;  %v7438_v1 = vpop.eup %7437  ;;  %v2711_v15 = vmul.f32 1.442695, %v2699_v61  ;;  %v9871_v53 = vadd.f32 %v9729_v32, %v9768_v39 }
 0x2b3   :  { %7449 = vpow2.f32 %v6643_v43  ;;  %v9867_v22 = vpop.permute.xlu0 %4053  ;;  %v9875_v31 = vadd.f32 %v9776_v17, %v9729_v32  ;;  %v1777_v44 = vadd.f32 %v9696_v38, %v9795_v47  ;;  %v2713_v16 = vmul.f32 1.442695, %v2700_v10 }
 0x2b4   :  { %13891 = vst [vmem:[#allocation32_spill] sm:$0xff] %v9867_v22  ;;  %7451 = vpow2.f32 %v6648_v0  ;;  %v2873_v40 = vsub.f32 0.0, %v2817_v45  ;;  %v1769_v29 = vadd.f32 %v9696_v38, %v9803_v30  ;;  %v1780_v59 = vadd.f32 %v9696_v38, %v9807_v34 }
 0x2b5   :  { %v9825_v50 = vpop.f32.mrb[80].mxu0  ;;  %7453 = vpow2.f32 %v6646_v58  ;;  %v9883_v39 = vsub.f32 1.0, %v7438_v1  ;;  %v9887_v17 = vpop.permute.xlu1 %3827  ;;  %v2815_v24 = vmax.f32 %v9871_v53, 0.0  ;;  %v2818_v47 = vmax.f32 %v9875_v31, 0.0 }
 0x2b6   :  { %v9832_v56 = vpop.f32.mrb[81].mxu0  ;;  %7455 = vpow2.f32 %v2717_v54  ;;  %13892 = vst [vmem:[#allocation33_spill] sm:$0xff] %v9887_v17  ;;  %v1909_v43 = vmax.f32 %v1777_v44, 0.0  ;;  %v1910_v0 = vmax.f32 %v1780_v59, 0.0  ;;  %v1772_v30 = vadd.f32 %v9696_v38, %v9812_v63 }
 0x2b7   :  { %v9834_v57 = vpop.f32.mrb[82].mxu0  ;;  %v7440_v9 = vpop.eup %7439  ;;  %7457 = vpow2.f32 %v2711_v15  ;;  %2734 = vperm.xlu1 %7415, %v9883_v39   ;;  %v6649_v10 = vmul.f32 -1.442695, %v9799_v8  ;;  %v9905_v45 = vadd.f32 %v9729_v32, %v9778_v35  ;;  %v2913_v44 = vmul.f32 %v9505_v27, %v2873_v40 }
 0x2b8   :  { %v9838_v46 = vpop.f32.mrb[83].mxu0  ;;  %v9896_v34 = vsub.f32 1.0, %v7440_v9  ;;  %v9900_v54 = vpop.permute.xlu0 %4057  ;;  %7459 = vpow2.f32 %v2713_v16  ;;  %v1907_v38 = vmax.f32 %v1769_v29, 0.0  ;;  %v1974_v63 = vpack.c.bf16 %v1910_v0, %v1909_v43 }
 0x2b9   :  { %v7442_v36 = vpop.eup %7441  ;;  %13893 = vst [vmem:[#allocation34_spill] sm:$0xff] %v9900_v54  ;;  %v1908_v9 = vmax.f32 %v1772_v30, 0.0  ;;  %v6647_v54 = vmul.f32 -1.442695, %v9821_v5  ;;  %v2871_v33 = vsub.f32 0.0, %v2815_v24  ;;  %v2874_v22 = vsub.f32 0.0, %v2818_v47  ;;  %v9912_v17 = vpop.permute.xlu1 %4047 }
 0x2ba   :  { %v7444_v58 = vpop.eup %7443  ;;  %2744 = vperm.xlu0 %7416, %v9896_v34   ;;  %v6652_v16 = vmul.f32 -1.442695, %v2121_v18  ;;  %13895 = vst [vmem:[#allocation36_spill] sm:$0xff] %v9912_v17  ;;  %v2633_v60 = vadd.f32 1.0, %v7442_v36  ;;  %7461 = vpow2.f32 %v6649_v10  ;;  %v2923_v29 = vmul.f32 1.442695, %v2913_v44 }
 0x2bb   :  { %v7446_v15 = vpop.eup %7445  ;;  %v1973_v2 = vpack.c.bf16 %v1908_v9, %v1907_v38  ;;  %v2631_v18 = vadd.f32 1.0, %v7444_v58  ;;  %7463 = vpow2.f32 %v6647_v54  ;;  %v2911_v47 = vmul.f32 %v9484_v28, %v2871_v33 }
 0x2bc   :  { %v7448_v59 = vpop.eup %7447  ;;  %v9915_v27 = vsub.f32 1.0, %v7446_v15  ;;  %v9919_v24 = vpop.permute.xlu0 %4061  ;;  %7465 = vpow2.f32 %v6652_v16  ;;  %v2914_v30 = vmul.f32 %v9479_v14, %v2874_v22  ;;  %v9930_v58 = vadd.f32 %v9786_v49, %v9729_v32 }
 0x2bd   :  { %v9853_v21 = vpop.f32.mrb[84].mxu0  ;;  %v7450_v8 = vpop.eup %7449  ;;  %7393 = vmatprep.mubr.bf16.mxu0 %v1973_v2  ;;  %13896 = vst [vmem:[#allocation37_spill] sm:$0xff] %v9919_v24  ;;  %v2634_v0 = vadd.f32 1.0, %v7448_v59  ;;  %7467 = vrcp.f32 %v2633_v60  ;;  %v9934_v28 = vadd.f32 %v9801_v13, %v9729_v32  ;;  %v2919_v14 = vmul.f32 1.442695, %v2911_v47 }
 0x2be   :  { %v9857_v12 = vpop.f32.mrb[85].mxu0  ;;  %v7452_v35 = vpop.eup %7451  ;;  %2759 = vperm.xlu1 %7415, %v9915_v27   ;;  %7394 = vmatmul.mubr.bf16.gmra.mrb[188].mxu0 %v1974_v63  ;;  %v2632_v54 = vadd.f32 1.0, %v7450_v8  ;;  %7469 = vpow2.f32 %v2923_v29  ;;  %v2925_v60 = vmul.f32 1.442695, %v2914_v30  ;;  %v9944_v49 = vadd.f32 %v9729_v32, %v9791_v52 }
 0x2bf   :  { %v9860_v19 = vpop.f32.mrb[86].mxu0  ;;  %v7454_v40 = vpop.eup %7453  ;;  %7471 = vrcp.f32 %v2631_v18  ;;  %v2637_v63 = vadd.f32 1.0, %v7452_v35  ;;  %v2821_v9 = vmax.f32 %v9930_v58, 0.0  ;;  %v2822_v16 = vmax.f32 %v9934_v28, 0.0 }
 0x2c0   :  { %v9865_v62 = vpop.f32.mrb[87].mxu0  ;;  %v7456_v5 = vpop.eup %7455  ;;  %7473 = vrcp.f32 %v2634_v0  ;;  %v2635_v8 = vadd.f32 1.0, %v7454_v40  ;;  %v6650_v29 = vmul.f32 -1.442695, %v9871_v53  ;;  %v2819_v18 = vmax.f32 %v9944_v49, 0.0 }
 0x2c1   :  { %v7458_v2 = vpop.eup %7457  ;;  %v9938_v38 = vpop.permute.xlu1 %4051  ;;  %v9940_v22 = vsub.f32 1.0, %v7456_v5  ;;  %7475 = vrcp.f32 %v2632_v54  ;;  %v6653_v5 = vmul.f32 -1.442695, %v9875_v31  ;;  %v2877_v30 = vsub.f32 0.0, %v2821_v9 }
 0x2c2   :  { %v7460_v44 = vpop.eup %7459  ;;  %13897 = vst [vmem:[#allocation38_spill] sm:$0xff] %v9938_v38  ;;  %v9951_v59 = vsub.f32 1.0, %v7458_v2  ;;  %7477 = vpow2.f32 %v2919_v14  ;;  %v6651_v54 = vmul.f32 -1.442695, %v9905_v45  ;;  %v2878_v31 = vsub.f32 0.0, %v2822_v16 }
 0x2c3   :  { %2764 = vperm.xlu0 %7416, %v9940_v22   ;;  %v9956_v52 = vsub.f32 1.0, %v7460_v44  ;;  %7479 = vpow2.f32 %v2925_v60  ;;  %v9972_v44 = vadd.f32 %v9729_v32, %v9805_v7  ;;  %v2917_v7 = vmul.f32 %v9541_v23, %v2877_v30 }
 0x2c4   :  { %2749 = vperm.xlu1 %7415, %v9951_v59   ;;  %7481 = vrcp.f32 %v2637_v63  ;;  %v2793_v23 = vsub.f32 1.0, %v9830_v11 }
 0x2c5   :  { %v9885_v37 = vpop.f32.mrb[88].mxu0  ;;  %v9964_v0 = vpop.permute.xlu1 %4055  ;;  %7483 = vrcp.f32 %v2635_v8  ;;  %v2875_v8 = vsub.f32 0.0, %v2819_v18 }
 0x2c6   :  { %v9891_v26 = vpop.f32.mrb[89].mxu0  ;;  %13899 = vst [vmem:[#allocation40_spill] sm:$0xff] %v9964_v0  ;;  %7485 = vpow2.f32 %v6650_v29  ;;  %v9991_v29 = vadd.f32 %v9825_v50, %v9729_v32 }
 0x2c7   :  { %v9898_v61 = vpop.f32.mrb[90].mxu0  ;;  %2754 = vperm.xlu0 %7416, %v9956_v52   ;;  %7487 = vpow2.f32 %v6653_v5  ;;  %v2915_v30 = vmul.f32 %v9522_v25, %v2875_v8  ;;  %v10020_v25 = vadd.f32 %v9834_v57, %v9729_v32 }
 0x2c8   :  { %v9907_v1 = vpop.f32.mrb[91].mxu0 }
 0x2c9   :  { %13894 = vst [vmem:[#allocation35_spill] sm:$0xff] %v9907_v1  ;;  %v2816_v1 = vmax.f32 %v9905_v45, 0.0  ;;  %v9995_v5 = vpop.permute.xlu1 %4059 }
 0x2ca   :  { %13906 = vst [vmem:[#allocation47_spill] sm:$0xff] %v9995_v5 }
 0x2cb   :  { %v2872_v15 = vsub.f32 0.0, %v2816_v1  ;;  %v9946_v1 = vpop.permute.xlu0 %4281 }
 0x2cc   :  { %13898 = vst [vmem:[#allocation39_spill] sm:$0xff] %v9946_v1 }
 0x2cd   :  { %v9917_v43 = vpop.f32.mrb[92].mxu0  ;;  %v2912_v13 = vmul.f32 %v9458_v51, %v2872_v15  ;;  %v7462_v51 = vpop.eup %7461 }
 0x2ce   :  { %v9923_v36 = vpop.f32.mrb[93].mxu0  ;;  %v7464_v40 = vpop.eup %7463 }
 0x2cf   :  { %v9926_v10 = vpop.f32.mrb[94].mxu0  ;;  %v2921_v53 = vmul.f32 1.442695, %v2912_v13  ;;  %v7466_v15 = vpop.eup %7465  ;;  %v2638_v13 = vadd.f32 1.0, %v7462_v51  ;;  %v2636_v1 = vadd.f32 1.0, %v7464_v40 }
 0x2d0   :  { %v9936_v33 = vpop.f32.mrb[95].mxu0  ;;  %v9976_v60 = vpop.eup %7467  ;;  %v2849_v45 = vadd.f32 1.0, %v7466_v15 }
 0x2d1   :  { %13901 = vst [vmem:[#allocation42_spill] sm:$0xff] %v9976_v60  ;;  %v9978_v63 = vpop.permute.xlu0 %4285  ;;  %v9980_v9 = vpop.eup %7469  ;;  %7489 = vpow2.f32 %v2921_v53  ;;  %v2918_v60 = vmul.f32 %v9515_v55, %v2878_v31  ;;  %v6656_v55 = vmul.f32 -1.442695, %v9930_v58  ;;  %v2931_v31 = vmul.f32 1.442695, %v2917_v7 }
 0x2d2   :  { %13902 = vst [vmem:[#allocation43_spill] sm:$0xff] %v9978_v63  ;;  %v9982_v24 = vpop.eup %7471  ;;  %7491 = vpow2.f32 %v6651_v54  ;;  %v2820_v63 = vmax.f32 %v9972_v44, 0.0  ;;  %v3049_v58 = vmax.f32 %v9991_v29, 0.0  ;;  %v13913_v7 = vsub.f32 1.0, %v9980_v9  ;;  %v10035_v0 = vpop.permute.xlu1 %4279 }
 0x2d3   :  { %13903 = vst [vmem:[#allocation44_spill] sm:$0xff] %v9982_v24  ;;  %v9985_v16 = vpop.eup %7473  ;;  %7493 = vrcp.f32 %v2638_v13  ;;  %v10011_v13 = vadd.f32 1e-10, %v2793_v23  ;;  %v2794_v24 = vsub.f32 1.0, %v9896_v34  ;;  %13915 = vst [vmem:[#allocation55_spill] sm:$0xff] %v10035_v0 }
 0x2d4   :  { %13904 = vst [vmem:[#allocation45_spill] sm:$0xff] %v9985_v16  ;;  %v10001_v53 = vpop.eup %7475  ;;  %7495 = vrcp.f32 %v2636_v1  ;;  %v2876_v1 = vsub.f32 0.0, %v2820_v63  ;;  %v3105_v38 = vsub.f32 0.0, %v3049_v58  ;;  %v6654_v58 = vmul.f32 -1.442695, %v9944_v49 }
 0x2d5   :  { %v9958_v35 = vpop.f32.mrb[96].mxu0  ;;  %13908 = vst [vmem:[#allocation49_spill] sm:$0xff] %v10001_v53  ;;  %v10007_v15 = vpop.eup %7477  ;;  %7497 = vrcp.f32 %v2849_v45  ;;  %v2933_v53 = vmul.f32 1.442695, %v2918_v60  ;;  %v10026_v45 = vadd.f32 %v9729_v32, %v9832_v56  ;;  %v2945_v23 = vmul.f32 %v13913_v7, %v10011_v13 }
 0x2d6   :  { %v9962_v47 = vpop.f32.mrb[97].mxu0  ;;  %v10009_v54 = vpop.permute.xlu0 %4289  ;;  %v2791_v60 = vsub.f32 1.0, %v9851_v48  ;;  %7499 = vpow2.f32 %v6656_v55  ;;  %v2916_v17 = vmul.f32 %v9496_v4, %v2876_v1  ;;  %v3050_v55 = vmax.f32 %v10020_v25, 0.0 }
 0x2d7   :  { %v9967_v2 = vpop.f32.mrb[98].mxu0  ;;  %13910 = vst [vmem:[#allocation51_spill] sm:$0xff] %v10009_v54  ;;  %v10015_v16 = vpop.eup %7479  ;;  %v2927_v54 = vmul.f32 1.442695, %v2915_v30  ;;  %7501 = vpow2.f32 %v2931_v31  ;;  %v10040_v5 = vadd.f32 %v2945_v23, %v9830_v11  ;;  %2963 = vperm.xlu1 %7415, %v2945_v23   ;;  %v10053_v11 = vadd.f32 %v9729_v32, %v9838_v46 }
 0x2d8   :  { %v9974_v14 = vpop.f32.mrb[99].mxu0  ;;  %v10022_v8 = vpop.eup %7481  ;;  %7503 = vpow2.f32 %v2933_v53  ;;  %v10055_v31 = vadd.f32 1e-10, %v2794_v24  ;;  %v10057_v53 = vadd.f32 1e-10, %v2791_v60  ;;  %v2792_v24 = vsub.f32 1.0, %v9883_v39 }
 0x2d9   :  { %13900 = vst [vmem:[#allocation41_spill] sm:$0xff] %v9974_v14  ;;  %13912 = vst [vmem:[#allocation53_spill] sm:$0xff] %v10022_v8  ;;  %v10033_v63 = vpop.eup %7483  ;;  %v2935_v8 = vsub.f32 1.0, %v10007_v15  ;;  %v3047_v15 = vmax.f32 %v10026_v45, 0.0  ;;  %7505 = vpow2.f32 %v2927_v54  ;;  %v2929_v54 = vmul.f32 1.442695, %v2916_v17 }
 0x2da   :  { %13914 = vst [vmem:[#allocation54_spill] sm:$0xff] %v10033_v63  ;;  %v7486_v57 = vpop.eup %7485  ;;  %v10048_v0 = vpop.permute.xlu0 %4293  ;;  %7507 = vpow2.f32 %v6654_v58 }
 0x2db   :  { %v7488_v7 = vpop.eup %7487  ;;  %13917 = vst [vmem:[#allocation57_spill] sm:$0xff] %v10048_v0  ;;  %v2847_v1 = vadd.f32 1.0, %v7486_v57  ;;  %v2943_v46 = vmul.f32 %v2935_v8, %v10057_v53  ;;  %v3145_v57 = vmul.f32 %v9581_v42, %v3105_v38  ;;  %v10090_v42 = vadd.f32 %v9853_v21, %v9729_v32 }
 0x2dc   :  { %v10046_v63 = vpop.eup %7489  ;;  %v2850_v0 = vadd.f32 1.0, %v7488_v7  ;;  %v13924_v38 = vsub.f32 1.0, %v9980_v9 }
 0x2dd   :  { %v9993_v51 = vpop.f32.mrb[100].mxu0  ;;  %v7492_v4 = vpop.eup %7491  ;;  %2953 = vperm.xlu1 %7415, %v2943_v46   ;;  %v10086_v49 = vadd.f32 %v2943_v46, %v9851_v48  ;;  %7509 = vrcp.f32 %v2847_v1  ;;  %v3155_v48 = vmul.f32 1.442695, %v3145_v57  ;;  %v13927_v46 = vsub.f32 1.0, %v10046_v63 }
 0x2de   :  { %13905 = vst [vmem:[#allocation46_spill] sm:$0xff] %v9993_v51  ;;  %v9999_v40 = vpop.f32.mrb[101].mxu0  ;;  %v10062_v56 = vpop.eup %7493  ;;  %v3048_v51 = vmax.f32 %v10053_v11, 0.0  ;;  %v2848_v17 = vadd.f32 1.0, %v7492_v4  ;;  %7511 = vpow2.f32 %v2929_v54 }
 0x2df   :  { %13907 = vst [vmem:[#allocation48_spill] sm:$0xff] %v9999_v40  ;;  %v10005_v50 = vpop.f32.mrb[102].mxu0  ;;  %13919 = vst [vmem:[#allocation59_spill] sm:$0xff] %v10062_v56  ;;  %v10071_v40 = vpop.eup %7495  ;;  %7513 = vrcp.f32 %v2850_v0 }
 0x2e0   :  { %13909 = vst [vmem:[#allocation50_spill] sm:$0xff] %v10005_v50  ;;  %v10013_v18 = vpop.f32.mrb[103].mxu0  ;;  %13921 = vst [vmem:[#allocation60_spill] sm:$0xff] %v10071_v40  ;;  %v10077_v7 = vpop.eup %7497  ;;  %v10097_v40 = vadd.f32 1e-10, %v2792_v24  ;;  %v3104_v1 = vsub.f32 0.0, %v3048_v51  ;;  %7515 = vrcp.f32 %v2848_v17 }
 0x2e1   :  { %13911 = vst [vmem:[#allocation52_spill] sm:$0xff] %v10013_v18  ;;  %13922 = vst [vmem:[#allocation61_spill] sm:$0xff] %v10077_v7  ;;  %v10079_v50 = vpop.permute.xlu1 %4283  ;;  %v3015_v7 = vsub.f32 1.0, %v2935_v8  ;;  %v3053_v8 = vmax.f32 %v10090_v42, 0.0 }
 0x2e2   :  { %13923 = vst [vmem:[#allocation62_spill] sm:$0xff] %v10079_v50 }
 0x2e3   :  { %v10124_v54 = vadd.f32 1e-10, %v3015_v7 }
 0x2e5   :  { %v10044_v30 = vpop.f32.mrb[104].mxu0 }
 0x2e6   :  { %13916 = vst [vmem:[#allocation56_spill] sm:$0xff] %v10044_v30  ;;  %v10060_v23 = vpop.f32.mrb[105].mxu0  ;;  %v13920_v30 = vsub.f32 1.0, %v10015_v16 }
 0x2e7   :  { %13918 = vst [vmem:[#allocation58_spill] sm:$0xff] %v10060_v23  ;;  %v10069_v60 = vpop.f32.mrb[106].mxu0  ;;  %v3106_v23 = vsub.f32 0.0, %v3050_v55  ;;  %v3017_v55 = vsub.f32 1.0, %v13924_v38 }
 0x2e8   :  { %v2946_v18 = vmul.f32 %v13920_v30, %v10055_v31  ;;  %v10075_v56 = vpop.f32.mrb[107].mxu0  ;;  %v3103_v30 = vsub.f32 0.0, %v3047_v15  ;;  %v10094_v15 = vpop.permute.xlu0 %4513 }
 0x2e9   :  { %13925 = vst [vmem:[#allocation63_spill] sm:$0xff] %v10094_v15  ;;  %v3146_v4 = vmul.f32 %v9555_v20, %v3106_v23  ;;  %v10113_v20 = vpop.permute.xlu1 %4287  ;;  %v10115_v23 = vadd.f32 1e-10, %v3017_v55  ;;  %v3109_v15 = vsub.f32 0.0, %v3053_v8 }
 0x2ea   :  { %v10083_v14 = vadd.f32 %v2946_v18, %v9896_v34  ;;  %2968 = vperm.xlu0 %7416, %v2946_v18   ;;  %v6657_v34 = vmul.f32 -1.442695, %v9934_v28  ;;  %v7500_v18 = vpop.eup %7499  ;;  %v3143_v9 = vmul.f32 %v9560_v6, %v3103_v30  ;;  %v2944_v28 = vmul.f32 %v13927_v46, %v10097_v40  ;;  %13929 = vst [vmem:[#allocation66_spill] sm:$0xff] %v10113_v20 }
 0x2eb   :  { %v10102_v21 = vpop.eup %7501  ;;  %v3157_v30 = vmul.f32 1.442695, %v3146_v4  ;;  %v2798_v4 = vsub.f32 1.0, %v9940_v22  ;;  %v2853_v57 = vadd.f32 1.0, %v7500_v18  ;;  %v3149_v50 = vmul.f32 %v9613_v41, %v3109_v15 }
 0x2ec   :  { %v10110_v38 = vpop.eup %7503  ;;  %7517 = vpow2.f32 %v6657_v34  ;;  %v10118_v0 = vadd.f32 %v2944_v28, %v9883_v39  ;;  %v10129_v46 = vpop.permute.xlu0 %4517  ;;  %v3151_v55 = vmul.f32 1.442695, %v3143_v9  ;;  %v3144_v34 = vmul.f32 %v9534_v3, %v3104_v1 }
 0x2ed   :  { %v10100_v58 = vpop.f32.mrb[108].mxu0  ;;  %v10122_v51 = vpop.eup %7505  ;;  %7519 = vpow2.f32 %v3155_v48  ;;  %13932 = vst [vmem:[#allocation69_spill] sm:$0xff] %v10129_v46  ;;  %v10134_v39 = vadd.f32 %v9729_v32, %v9857_v12  ;;  %v10140_v48 = vadd.f32 %v9860_v19, %v9729_v32  ;;  %v6655_v3 = vmul.f32 -1.442695, %v9972_v44 }
 0x2ee   :  { %13926 = vst [vmem:[#allocation64_spill] sm:$0xff] %v10100_v58  ;;  %v10108_v24 = vpop.f32.mrb[109].mxu0  ;;  %2958 = vperm.xlu0 %7416, %v2944_v28   ;;  %v2797_v28 = vsub.f32 1.0, %v9915_v27  ;;  %v7508_v12 = vpop.eup %7507  ;;  %7521 = vpow2.f32 %v3157_v30  ;;  %v10149_v46 = vadd.f32 %v9729_v32, %v9865_v62  ;;  %v10151_v8 = vadd.f32 1e-10, %v2798_v4 }
 0x2ef   :  { %13928 = vst [vmem:[#allocation65_spill] sm:$0xff] %v10108_v24  ;;  %v10120_v6 = vpop.f32.mrb[110].mxu0  ;;  %v2795_v19 = vsub.f32 1.0, %v9951_v59  ;;  %v10156_v20 = vpop.eup %7509  ;;  %7523 = vpow2.f32 %v3151_v55  ;;  %v3153_v44 = vmul.f32 1.442695, %v3144_v34  ;;  %v13936_v30 = vsub.f32 1.0, %v10102_v21 }
 0x2f0   :  { %13930 = vst [vmem:[#allocation67_spill] sm:$0xff] %v10120_v6  ;;  %v10127_v17 = vpop.f32.mrb[111].mxu0  ;;  %v10145_v1 = vadd.f32 1e-10, %v2797_v28  ;;  %13934 = vst [vmem:[#allocation71_spill] sm:$0xff] %v10156_v20  ;;  %v10158_v18 = vpop.permute.xlu1 %4291  ;;  %v3051_v28 = vmax.f32 %v10134_v39, 0.0  ;;  %7525 = vpow2.f32 %v6655_v3 }
 0x2f1   :  { %13931 = vst [vmem:[#allocation68_spill] sm:$0xff] %v10127_v17  ;;  %13935 = vst [vmem:[#allocation72_spill] sm:$0xff] %v10158_v18  ;;  %v10166_v4 = vpop.eup %7511  ;;  %v13938_v20 = vsub.f32 1.0, %v10110_v38  ;;  %v10173_v55 = vadd.f32 1e-10, %v2795_v19  ;;  %7527 = vrcp.f32 %v2853_v57  ;;  %v3052_v19 = vmax.f32 %v10149_v46, 0.0 }
 0x2f2   :  { %v2949_v9 = vmul.f32 %v13936_v30, %v10145_v1  ;;  %v10177_v17 = vpop.eup %7513  ;;  %v13941_v30 = vsub.f32 1.0, %v10015_v16  ;;  %v6660_v41 = vmul.f32 -1.442695, %v9991_v29  ;;  %v13945_v16 = vsub.f32 1.0, %v10122_v51 }
 0x2f3   :  { %v2950_v18 = vmul.f32 %v13938_v20, %v10151_v8  ;;  %13940 = vst [vmem:[#allocation75_spill] sm:$0xff] %v10177_v17  ;;  %v10189_v20 = vpop.eup %7515  ;;  %7529 = vpow2.f32 %v3153_v44  ;;  %v3163_v57 = vmul.f32 1.442695, %v3149_v50  ;;  %v2851_v58 = vadd.f32 1.0, %v7508_v12 }
 0x2f4   :  { %v3018_v6 = vsub.f32 1.0, %v13941_v30  ;;  %v10185_v15 = vadd.f32 %v2949_v9, %v9915_v27  ;;  %2983 = vperm.xlu1 %7415, %v2949_v9   ;;  %13944 = vst [vmem:[#allocation78_spill] sm:$0xff] %v10189_v20  ;;  %v2947_v3 = vmul.f32 %v13945_v16, %v10173_v55  ;;  %v6658_v9 = vmul.f32 -1.442695, %v10026_v45 }
 0x2f5   :  { %v10154_v7 = vpop.f32.mrb[112].mxu0  ;;  %v10193_v17 = vadd.f32 %v2950_v18, %v9940_v22  ;;  %2988 = vperm.xlu0 %7416, %v2950_v18   ;;  %v3107_v30 = vsub.f32 0.0, %v3051_v28  ;;  %v2796_v22 = vsub.f32 1.0, %v9956_v52  ;;  %v10206_v18 = vpop.permute.xlu1 %4511  ;;  %v13947_v16 = vsub.f32 1.0, %v10046_v63 }
 0x2f6   :  { %13933 = vst [vmem:[#allocation70_spill] sm:$0xff] %v10154_v7  ;;  %v10164_v62 = vpop.f32.mrb[113].mxu0  ;;  %v3054_v7 = vmax.f32 %v10140_v48, 0.0  ;;  %v7518_v29 = vpop.eup %7517  ;;  %13946 = vst [vmem:[#allocation79_spill] sm:$0xff] %v10206_v18  ;;  %7531 = vpow2.f32 %v6660_v41  ;;  %v10212_v45 = vadd.f32 %v9885_v37, %v9729_v32  ;;  %v13948_v50 = vsub.f32 1.0, %v10102_v21  ;;  %v13950_v41 = vld [vmem:[#allocation7_spill] sm:$0xff] }
 0x2f7   :  { %13937 = vst [vmem:[#allocation73_spill] sm:$0xff] %v10164_v62  ;;  %v10175_v34 = vpop.f32.mrb[114].mxu0  ;;  %v10181_v62 = vpop.permute.xlu0 %4521  ;;  %v3108_v44 = vsub.f32 0.0, %v3052_v19  ;;  %v10220_v28 = vmul.f32 %v10115_v23, %v10011_v13  ;;  %v2854_v63 = vadd.f32 1.0, %v7518_v29  ;;  %7533 = vpow2.f32 %v6658_v9 }
 0x2f8   :  { %13939 = vst [vmem:[#allocation74_spill] sm:$0xff] %v10175_v34  ;;  %13942 = vst [vmem:[#allocation76_spill] sm:$0xff] %v10181_v62  ;;  %v10187_v24 = vpop.f32.mrb[115].mxu0  ;;  %v10200_v62 = vpop.eup %7519  ;;  %v3110_v20 = vsub.f32 0.0, %v3054_v7  ;;  %v3016_v34 = vsub.f32 1.0, %v13947_v16  ;;  %2973 = vperm.xlu1 %7415, %v2947_v3   ;;  %v3021_v7 = vsub.f32 1.0, %v13948_v50  ;;  %7535 = vpow2.f32 %v3163_v57 }
 0x2f9   :  { %13943 = vst [vmem:[#allocation77_spill] sm:$0xff] %v10187_v24  ;;  %v10203_v24 = vadd.f32 %v2947_v3, %v9951_v59  ;;  %v10216_v59 = vadd.f32 1e-10, %v2796_v22  ;;  %v6661_v37 = vmul.f32 -1.442695, %v10020_v25  ;;  %v3147_v3 = vmul.f32 %v13950_v41, %v3107_v30  ;;  %v10230_v21 = vpop.eup %7521  ;;  %v13951_v22 = vld [vmem:[#allocation6_spill] sm:$0xff] }
 0x2fa   :  { %v3150_v13 = vmul.f32 %v13951_v22, %v3110_v20  ;;  %v13952_v23 = vsub.f32 1.0, %v10166_v4  ;;  %v10239_v9 = vpop.eup %7523  ;;  %v3026_v25 = vadd.f32 1e-10, %v3018_v6  ;;  %7537 = vrcp.f32 %v2851_v58  ;;  %v13955_v20 = vld [vmem:[#allocation5_spill] sm:$0xff]  ;;  %v10253_v6 = vpop.permute.xlu1 %4515 }
 0x2fb   :  { %v10224_v12 = vpop.permute.xlu0 %4525  ;;  %v3281_v30 = vmax.f32 %v10212_v45, 0.0  ;;  %v13954_v41 = vsub.f32 1.0, %v10122_v51  ;;  %v6659_v57 = vmul.f32 -1.442695, %v10053_v11  ;;  %v3148_v22 = vmul.f32 %v13955_v20, %v3108_v44  ;;  %13956 = vst [vmem:[#allocation6_spill] sm:$0xff] %v10253_v6  ;;  %v13966_v6 = vld [vmem:[#allocation12_spill] sm:$0xff] }
 0x2fc   :  { %13949 = vst [vmem:[#allocation80_spill] sm:$0xff] %v10224_v12  ;;  %v2948_v29 = vmul.f32 %v13952_v23, %v10216_v59  ;;  %v10241_v12 = vadd.f32 1e-10, %v3016_v34  ;;  %v10255_v34 = vadd.f32 1e-10, %v3021_v7  ;;  %7539 = vpow2.f32 %v6661_v37 }
 0x2fd   :  { %v10222_v27 = vpop.f32.mrb[116].mxu0  ;;  %v3019_v19 = vsub.f32 1.0, %v13954_v41  ;;  %v3159_v51 = vmul.f32 1.442695, %v3147_v3  ;;  %7541 = vrcp.f32 %v2854_v63  ;;  %v3165_v11 = vmul.f32 1.442695, %v3150_v13 }
 0x2fe   :  { %v10228_v16 = vpop.f32.mrb[117].mxu0  ;;  %v10249_v18 = vadd.f32 %v2948_v29, %v9956_v52  ;;  %2978 = vperm.xlu0 %7416, %v2948_v29   ;;  %v10262_v52 = vadd.f32 %v9898_v61, %v9729_v32  ;;  %v13958_v44 = vsub.f32 1.0, %v10200_v62  ;;  %v3337_v58 = vsub.f32 0.0, %v3281_v30  ;;  %v10287_v30 = vld [vmem:[%s13817_s7] ss:$0 sm:$0xff] }
 0x2ff   :  { %v10237_v50 = vpop.f32.mrb[118].mxu0  ;;  %v10270_v37 = vpop.permute.xlu0 %4745  ;;  %v10274_v3 = vadd.f32 %v9729_v32, %v9891_v26  ;;  %v10277_v63 = vmul.f32 %v3026_v25, %v10055_v31  ;;  %7543 = vpow2.f32 %v6659_v57  ;;  %v3161_v13 = vmul.f32 1.442695, %v3148_v22  ;;  %v13961_v32 = vld [vmem:[#allocation35_spill] sm:$0xff] }
 0x300   :  { %13953 = vst [vmem:[#allocation7_spill] sm:$0xff] %v10237_v50  ;;  %v10251_v23 = vpop.f32.mrb[119].mxu0  ;;  %v7526_v50 = vpop.eup %7525  ;;  %v3177_v29 = vmul.f32 %v13958_v44, %v10220_v28  ;;  %13959 = vst [vmem:[#allocation81_spill] sm:$0xff] %v10270_v37  ;;  %7545 = vpow2.f32 %v3159_v51  ;;  %v10291_v26 = vadd.f32 %v10287_v30, %v13961_v32  ;;  %v13962_v31 = vsub.f32 1.0, %v10230_v21 }
 0x301   :  { %v10258_v41 = vpop.eup %7527  ;;  %v2852_v61 = vadd.f32 1.0, %v7526_v50  ;;  %v6664_v22 = vmul.f32 -1.442695, %v10090_v42  ;;  %7547 = vpow2.f32 %v3165_v11  ;;  %v3282_v51 = vmax.f32 %v10262_v52, 0.0  ;;  %v10307_v37 = vpop.permute.xlu1 %4519 }
 0x302   :  { %13957 = vst [vmem:[#allocation5_spill] sm:$0xff] %v10258_v41  ;;  %v10267_v20 = vpop.eup %7529  ;;  %v10280_v41 = vadd.f32 %v3177_v29, %v10040_v5  ;;  %3195 = vperm.xlu1 %7415, %v3177_v29   ;;  %v3178_v50 = vmul.f32 %v13962_v31, %v10277_v63  ;;  %v10298_v5 = vmul.f32 %v10124_v54, %v10057_v53  ;;  %13965 = vst [vmem:[#allocation84_spill] sm:$0xff] %v10307_v37 }
 0x303   :  { %v7532_v7 = vpop.eup %7531  ;;  %v3377_v31 = vmul.f32 %v13966_v6, %v3337_v58  ;;  %v13967_v54 = vsub.f32 1.0, %v10239_v9  ;;  %v13969_v37 = vsub.f32 1.0, %v10110_v38  ;;  %7549 = vpow2.f32 %v3161_v13 }
 0x304   :  { %v7534_v32 = vpop.eup %7533  ;;  %v10312_v53 = vadd.f32 %v3178_v50, %v10083_v14  ;;  %3200 = vperm.xlu0 %7416, %v3178_v50   ;;  %v3081_v6 = vadd.f32 1.0, %v7532_v7  ;;  %7551 = vrcp.f32 %v2852_v61  ;;  %v10327_v14 = vpop.permute.xlu0 %4749  ;;  %v3280_v50 = vmax.f32 %v10291_v26, 0.0 }
 0x305   :  { %v10282_v44 = vpop.f32.mrb[120].mxu0  ;;  %v3175_v42 = vmul.f32 %v13967_v54, %v10298_v5  ;;  %v10319_v57 = vpop.eup %7535  ;;  %13971 = vst [vmem:[#allocation86_spill] sm:$0xff] %v10327_v14  ;;  %7553 = vpow2.f32 %v6664_v22  ;;  %v3338_v38 = vsub.f32 0.0, %v3282_v51  ;;  %v10339_v7 = vadd.f32 %v10287_v30, %v9917_v43 }
 0x306   :  { %13960 = vst [vmem:[#allocation82_spill] sm:$0xff] %v10282_v44  ;;  %v10300_v25 = vpop.f32.mrb[121].mxu0  ;;  %v3279_v44 = vmax.f32 %v10274_v3, 0.0  ;;  %v10325_v58 = vpop.eup %7537  ;;  %v3387_v13 = vmul.f32 1.442695, %v3377_v31  ;;  %7555 = vrcp.f32 %v3081_v6  ;;  %v3336_v61 = vsub.f32 0.0, %v3280_v50 }
 0x307   :  { %13963 = vst [vmem:[#allocation35_spill] sm:$0xff] %v10300_v25  ;;  %v10305_v29 = vpop.f32.mrb[122].mxu0  ;;  %v10321_v25 = vadd.f32 1e-10, %v3019_v19  ;;  %13970 = vst [vmem:[#allocation85_spill] sm:$0xff] %v10325_v58  ;;  %3185 = vperm.xlu1 %7415, %v3175_v42   ;;  %v10331_v54 = vadd.f32 %v3175_v42, %v10086_v49  ;;  %v10335_v19 = vmul.f32 %v10241_v12, %v10097_v40  ;;  %v13972_v49 = vsub.f32 1.0, %v10267_v20 }
 0x308   :  { %13964 = vst [vmem:[#allocation83_spill] sm:$0xff] %v10305_v29  ;;  %v10317_v11 = vpop.f32.mrb[123].mxu0  ;;  %v3022_v29 = vsub.f32 1.0, %v13969_v37  ;;  %v7540_v37 = vpop.eup %7539  ;;  %v3335_v58 = vsub.f32 0.0, %v3279_v44  ;;  %v13974_v40 = vsub.f32 1.0, %v10166_v4  ;;  %v13976_v44 = vsub.f32 1.0, %v10200_v62 }
 0x309   :  { %13968 = vst [vmem:[#allocation12_spill] sm:$0xff] %v10317_v11  ;;  %v3079_v11 = vadd.f32 1.0, %v7534_v32  ;;  %v3176_v42 = vmul.f32 %v13972_v49, %v10335_v19  ;;  %v10345_v14 = vpop.eup %7541  ;;  %v6662_v22 = vmul.f32 -1.442695, %v10134_v39  ;;  %v6665_v43 = vmul.f32 -1.442695, %v10140_v48  ;;  %v10353_v32 = vpop.permute.xlu1 %4523 }
 0x30a   :  { %13973 = vst [vmem:[#allocation87_spill] sm:$0xff] %v10345_v14  ;;  %v3020_v12 = vsub.f32 1.0, %v13974_v40  ;;  %13975 = vst [vmem:[#allocation88_spill] sm:$0xff] %v10353_v32  ;;  %v3249_v31 = vsub.f32 1.0, %v13976_v44  ;;  %v10362_v4 = vmul.f32 %v10255_v34, %v10145_v1  ;;  %v7544_v39 = vpop.eup %7543  ;;  %v3082_v48 = vadd.f32 1.0, %v7540_v37  ;;  %v13978_v40 = vld [vmem:[#allocation9_spill] sm:$0xff]  ;;  %v10370_v44 = vpop.permute.xlu0 %4753 }
 0x30b   :  { %v10358_v49 = vadd.f32 %v3176_v42, %v10118_v0  ;;  %3190 = vperm.xlu0 %7416, %v3176_v42   ;;  %7557 = vrcp.f32 %v3079_v11  ;;  %v3378_v14 = vmul.f32 %v13978_v40, %v3338_v38  ;;  %v3285_v32 = vmax.f32 %v10339_v7, 0.0  ;;  %v10368_v62 = vpop.eup %7545  ;;  %13979 = vst [vmem:[#allocation9_spill] sm:$0xff] %v10370_v44  ;;  %v13980_v0 = vld [vmem:[#allocation10_spill] sm:$0xff] }
 0x30c   :  { %v3030_v50 = vadd.f32 1e-10, %v3022_v29  ;;  %7559 = vpow2.f32 %v3387_v13  ;;  %v3375_v42 = vmul.f32 %v13980_v0, %v3335_v58  ;;  %v13981_v1 = vsub.f32 1.0, %v10319_v57  ;;  %v10378_v11 = vpop.eup %7547  ;;  %v13983_v58 = vld [vmem:[#allocation8_spill] sm:$0xff] }
 0x30d   :  { %v10351_v51 = vpop.f32.mrb[124].mxu0  ;;  %v3028_v37 = vadd.f32 1e-10, %v3020_v12  ;;  %7561 = vpow2.f32 %v6662_v22  ;;  %v6663_v38 = vmul.f32 -1.442695, %v10149_v46  ;;  %v10383_v29 = vadd.f32 %v10287_v30, %v9923_v36  ;;  %v10393_v44 = vpop.eup %7549 }
 0x30e   :  { %v10364_v6 = vpop.f32.mrb[125].mxu0  ;;  %v3181_v34 = vmul.f32 %v13981_v1, %v10362_v4  ;;  %v10387_v13 = vadd.f32 1e-10, %v3249_v31  ;;  %7563 = vpow2.f32 %v6665_v43  ;;  %v3376_v0 = vmul.f32 %v13983_v58, %v3336_v61  ;;  %v10399_v22 = vpop.eup %7551 }
 0x30f   :  { %13977 = vst [vmem:[#allocation89_spill] sm:$0xff] %v10364_v6  ;;  %v10376_v6 = vpop.f32.mrb[126].mxu0  ;;  %7565 = vrcp.f32 %v3082_v48  ;;  %v3389_v12 = vmul.f32 1.442695, %v3378_v14  ;;  %v3341_v46 = vsub.f32 0.0, %v3285_v32  ;;  %v10397_v36 = vadd.f32 %v10287_v30, %v9926_v10  ;;  %13984 = vst [vmem:[#allocation8_spill] sm:$0xff] %v10399_v22  ;;  %v10401_v31 = vpop.permute.xlu1 %4743 }
 0x310   :  { %v10385_v40 = vpop.f32.mrb[127].mxu0  ;;  %v10391_v1 = vadd.f32 %v3181_v34, %v10185_v15  ;;  %3215 = vperm.xlu1 %7415, %v3181_v34   ;;  %13985 = vst [vmem:[#allocation90_spill] sm:$0xff] %v10401_v31  ;;  %v13986_v43 = vsub.f32 1.0, %v10239_v9  ;;  %v3080_v58 = vadd.f32 1.0, %v7544_v39  ;;  %v13820_v15 = vsub.f32 1.0, %v10378_v11  ;;  %v10410_v22 = vpop.permute.xlu0 %4757 }
 0x311   :  { %13982 = vst [vmem:[#allocation10_spill] sm:$0xff] %v10385_v40  ;;  %v3383_v34 = vmul.f32 1.442695, %v3375_v42  ;;  %v7554_v40 = vpop.eup %7553  ;;  %7567 = vpow2.f32 %v6663_v38  ;;  %v6668_v14 = vmul.f32 -1.442695, %v10212_v45  ;;  %v3283_v10 = vmax.f32 %v10383_v29, 0.0 }
 0x312   :  { %v3247_v61 = vsub.f32 1.0, %v13986_v43  ;;  %13987 = vst [vmem:[#allocation91_spill] sm:$0xff] %v10410_v22  ;;  %v3385_v31 = vmul.f32 1.442695, %v3376_v0  ;;  %v10414_v9 = vadd.f32 %v10287_v30, %v9936_v33  ;;  %v10417_v39 = vmul.f32 %v3030_v50, %v10151_v8  ;;  %v10419_v42 = vpop.eup %7555  ;;  %v13989_v38 = vld [vmem:[#allocation17_spill] sm:$0xff] }
 0x313   :  { %13988 = vst [vmem:[#allocation92_spill] sm:$0xff] %v10419_v42  ;;  %7569 = vpow2.f32 %v3389_v12  ;;  %v3381_v43 = vmul.f32 %v13989_v38, %v3341_v46  ;;  %v3286_v45 = vmax.f32 %v10397_v36, 0.0  ;;  %v10425_v32 = vmul.f32 %v10321_v25, %v10173_v55  ;;  %v10443_v25 = vpop.permute.xlu1 %4747 }
 0x314   :  { %v13990_v0 = vsub.f32 1.0, %v10230_v21  ;;  %v6666_v33 = vmul.f32 -1.442695, %v10274_v3  ;;  %7571 = vpow2.f32 %v3383_v34  ;;  %v3182_v8 = vmul.f32 %v13820_v15, %v10417_v39  ;;  %13993 = vst [vmem:[#allocation93_spill] sm:$0xff] %v10443_v25  ;;  %v14001_v25 = vld [vmem:[#allocation13_spill] sm:$0xff] }
 0x315   :  { %v10433_v50 = vpop.eup %7557  ;;  %7573 = vpow2.f32 %v6668_v14  ;;  %v3339_v12 = vsub.f32 0.0, %v3283_v10  ;;  %v13992_v46 = vsub.f32 1.0, %v10368_v62  ;;  %v10439_v55 = vmul.f32 %v3028_v37, %v10216_v59  ;;  %v10449_v14 = vpop.f32.mrb[128].mxu0 }
 0x316   :  { %v3250_v48 = vsub.f32 1.0, %v13990_v0  ;;  %13991 = vst [vmem:[#allocation17_spill] sm:$0xff] %v10433_v50  ;;  %v10441_v21 = vpop.eup %7559  ;;  %v3085_v3 = vadd.f32 1.0, %v7554_v40  ;;  %7575 = vpow2.f32 %v3385_v31  ;;  %v3284_v34 = vmax.f32 %v10414_v9, 0.0  ;;  %3220 = vperm.xlu0 %7416, %v3182_v8   ;;  %13994 = vst [vmem:[#allocation94_spill] sm:$0xff] %v10449_v14  ;;  %v10457_v31 = vpop.f32.mrb[129].mxu0 }
 0x317   :  { %v3179_v38 = vmul.f32 %v13992_v46, %v10425_v32  ;;  %v10447_v0 = vadd.f32 %v3182_v8, %v10193_v17  ;;  %v7562_v10 = vpop.eup %7561  ;;  %v3395_v15 = vmul.f32 1.442695, %v3381_v43  ;;  %v3342_v46 = vsub.f32 0.0, %v3286_v45  ;;  %13996 = vst [vmem:[#allocation95_spill] sm:$0xff] %v10457_v31  ;;  %v10460_v8 = vpop.permute.xlu0 %4975 }
 0x318   :  { %v13995_v37 = vsub.f32 1.0, %v10393_v44  ;;  %v7564_v50 = vpop.eup %7563  ;;  %v3255_v42 = vadd.f32 1e-10, %v3247_v61  ;;  %7577 = vpow2.f32 %v6666_v33  ;;  %v6669_v17 = vmul.f32 -1.442695, %v10262_v52  ;;  %13997 = vst [vmem:[#allocation96_spill] sm:$0xff] %v10460_v8 }
 0x319   :  { %v10452_v59 = vadd.f32 %v3179_v38, %v10203_v24  ;;  %3205 = vperm.xlu1 %7415, %v3179_v38   ;;  %v10464_v43 = vadd.f32 %v10287_v30, %v9958_v35  ;;  %v10466_v24 = vpop.f32.mrb[130].mxu0  ;;  %v10468_v45 = vpop.eup %7565  ;;  %v14000_v38 = vsub.f32 1.0, %v10267_v20  ;;  %v13821_v22 = vsub.f32 1.0, %v10441_v21  ;;  %v14003_v20 = vld [vmem:[#allocation14_spill] sm:$0xff] }
 0x31a   :  { %v3180_v40 = vmul.f32 %v13995_v37, %v10439_v55  ;;  %13998 = vst [vmem:[#allocation97_spill] sm:$0xff] %v10466_v24  ;;  %13999 = vst [vmem:[#allocation98_spill] sm:$0xff] %v10468_v45  ;;  %v3379_v61 = vmul.f32 %v14001_v25, %v3339_v12  ;;  %7579 = vrcp.f32 %v3080_v58  ;;  %v14002_v52 = vsub.f32 1.0, %v10319_v57  ;;  %v10479_v24 = vpop.f32.mrb[131].mxu0  ;;  %v10486_v25 = vpop.permute.xlu1 %4751 }
 0x31b   :  { %v3248_v37 = vsub.f32 1.0, %v14000_v38  ;;  %v3083_v35 = vadd.f32 1.0, %v7562_v10  ;;  %v3340_v31 = vsub.f32 0.0, %v3284_v34  ;;  %v7568_v45 = vpop.eup %7567  ;;  %v3086_v14 = vadd.f32 1.0, %v7564_v50  ;;  %14004 = vst [vmem:[#allocation13_spill] sm:$0xff] %v10486_v25 }
 0x31c   :  { %v10475_v33 = vadd.f32 %v3180_v40, %v10249_v18  ;;  %v3253_v8 = vsub.f32 1.0, %v14002_v52  ;;  %3210 = vperm.xlu0 %7416, %v3180_v40   ;;  %7581 = vpow2.f32 %v3395_v15  ;;  %v3382_v38 = vmul.f32 %v14003_v20, %v3342_v46 }
 0x31d   :  { %v10484_v12 = vmul.f32 %v10387_v13, %v10220_v28  ;;  %v3258_v18 = vadd.f32 1e-10, %v3250_v48  ;;  %7583 = vpow2.f32 %v6669_v17  ;;  %v6667_v57 = vmul.f32 -1.442695, %v10291_v26  ;;  %v10490_v34 = vpop.eup %7569  ;;  %v10499_v13 = vpop.permute.xlu0 %4979  ;;  %v14006_v48 = vld [vmem:[#allocation11_spill] sm:$0xff] }
 0x31e   :  { %v3513_v58 = vmax.f32 %v10464_v43, 0.0  ;;  %v3256_v10 = vadd.f32 1e-10, %v3248_v37  ;;  %7585 = vrcp.f32 %v3085_v3  ;;  %v3391_v50 = vmul.f32 1.442695, %v3379_v61  ;;  %v10495_v46 = vpop.eup %7571  ;;  %14005 = vst [vmem:[#allocation14_spill] sm:$0xff] %v10499_v13 }
 0x31f   :  { %v3409_v15 = vmul.f32 %v13821_v22, %v10484_v12  ;;  %v10497_v28 = vadd.f32 1e-10, %v3253_v8  ;;  %7587 = vrcp.f32 %v3083_v35  ;;  %v3380_v26 = vmul.f32 %v14006_v48, %v3340_v31  ;;  %v7574_v17 = vpop.eup %7573 }
 0x320   :  { %v10504_v40 = vadd.f32 %v10287_v30, %v9967_v2  ;;  %7589 = vrcp.f32 %v3086_v14  ;;  %v3397_v3 = vmul.f32 1.442695, %v3382_v38  ;;  %v10508_v37 = vadd.f32 %v10287_v30, %v9962_v47  ;;  %v10513_v8 = vpop.eup %7575 }
 0x321   :  { %v10511_v61 = vadd.f32 %v3409_v15, %v10280_v41  ;;  %3427 = vperm.xlu1 %7415, %v3409_v15   ;;  %v13822_v52 = vsub.f32 1.0, %v10490_v34  ;;  %7591 = vpow2.f32 %v6667_v57  ;;  %v6672_v31 = vmul.f32 -1.442695, %v10339_v7  ;;  %v10522_v41 = vpop.permute.xlu1 %4755 }
 0x322   :  { %v3569_v2 = vsub.f32 0.0, %v3513_v58  ;;  %v14007_v35 = vsub.f32 1.0, %v10368_v62  ;;  %v3084_v20 = vadd.f32 1.0, %v7568_v45  ;;  %v13823_v47 = vsub.f32 1.0, %v10495_v46  ;;  %v7578_v38 = vpop.eup %7577  ;;  %14008 = vst [vmem:[#allocation11_spill] sm:$0xff] %v10522_v41  ;;  %v14010_v58 = vld [vmem:[#allocation41_spill] sm:$0xff] }
 0x323   :  { %7593 = vpow2.f32 %v3391_v50  ;;  %v3393_v15 = vmul.f32 1.442695, %v3380_v26  ;;  %v3514_v48 = vmax.f32 %v10504_v40, 0.0  ;;  %v10526_v22 = vmul.f32 %v3258_v18, %v10277_v63  ;;  %v10541_v63 = vpop.permute.xlu0 %5209  ;;  %v14013_v18 = vld [vmem:[#allocation21_spill] sm:$0xff] }
 0x324   :  { %v10519_v14 = vsub.f32 1.0, %v14007_v35  ;;  %v10529_v7 = vmul.f32 %v3255_v42, %v10298_v5  ;;  %v14009_v62 = vsub.f32 1.0, %v10378_v11  ;;  %7595 = vpow2.f32 %v3397_v3  ;;  %v10538_v35 = vpop.eup %7579  ;;  %14012 = vst [vmem:[#allocation99_spill] sm:$0xff] %v10541_v63 }
 0x325   :  { %v3511_v45 = vmax.f32 %v10508_v37, 0.0  ;;  %v10536_v50 = vadd.f32 %v10287_v30, %v14010_v58  ;;  %14011 = vst [vmem:[#allocation41_spill] sm:$0xff] %v10538_v35  ;;  %7597 = vpow2.f32 %v6672_v31  ;;  %v3609_v5 = vmul.f32 %v14013_v18, %v3569_v2  ;;  %v10558_v18 = vpop.f32.mrb[132].mxu0 }
 0x326   :  { %v3254_v57 = vsub.f32 1.0, %v14009_v62  ;;  %v3410_v11 = vmul.f32 %v13822_v52, %v10526_v22  ;;  %v10547_v42 = vpop.eup %7581  ;;  %7599 = vrcp.f32 %v3084_v20  ;;  %v3313_v3 = vadd.f32 1.0, %v7574_v17 }
 0x327   :  { %v3311_v62 = vadd.f32 1.0, %v7578_v38  ;;  %v3407_v58 = vmul.f32 %v13823_v47, %v10529_v7  ;;  %v7584_v35 = vpop.eup %7583  ;;  %7601 = vpow2.f32 %v3393_v15  ;;  %v3570_v31 = vsub.f32 0.0, %v3514_v48 }
 0x328   :  { %v10553_v26 = vadd.f32 %v3410_v11, %v10312_v53  ;;  %3432 = vperm.xlu0 %7416, %v3410_v11   ;;  %v10556_v2 = vmul.f32 %v3256_v10, %v10335_v19  ;;  %v10560_v52 = vpop.eup %7585  ;;  %v6670_v17 = vmul.f32 -1.442695, %v10383_v29  ;;  %v3567_v20 = vsub.f32 0.0, %v3511_v45  ;;  %v10569_v53 = vpop.permute.xlu1 %4977  ;;  %v14017_v11 = vld [vmem:[#allocation46_spill] sm:$0xff] }
 0x329   :  { %14014 = vst [vmem:[#allocation21_spill] sm:$0xff] %v10560_v52  ;;  %v3512_v38 = vmax.f32 %v10536_v50, 0.0  ;;  %3417 = vperm.xlu1 %7415, %v3407_v58   ;;  %v10565_v15 = vadd.f32 %v3407_v58, %v10331_v54  ;;  %v10567_v48 = vpop.eup %7587  ;;  %14016 = vst [vmem:[#allocation101_spill] sm:$0xff] %v10569_v53  ;;  %v3619_v10 = vmul.f32 1.442695, %v3609_v5  ;;  %v10574_v47 = vadd.f32 %v10287_v30, %v14017_v11  ;;  %v10587_v5 = vpop.f32.mrb[133].mxu0 }
 0x32a   :  { %14015 = vst [vmem:[#allocation100_spill] sm:$0xff] %v10567_v48  ;;  %v14018_v29 = vsub.f32 1.0, %v10513_v8  ;;  %v10579_v63 = vpop.eup %7589  ;;  %v14020_v54 = vsub.f32 1.0, %v10393_v44  ;;  %7603 = vrcp.f32 %v3313_v3  ;;  %v3314_v48 = vadd.f32 1.0, %v7584_v35  ;;  %14021 = vst [vmem:[#allocation102_spill] sm:$0xff] %v10587_v5  ;;  %v10590_v53 = vpop.permute.xlu0 %5211 }
 0x32b   :  { %14019 = vst [vmem:[#allocation46_spill] sm:$0xff] %v10579_v63  ;;  %v10585_v52 = vmul.f32 %v10497_v28, %v10362_v4  ;;  %v7592_v19 = vpop.eup %7591  ;;  %7605 = vrcp.f32 %v3311_v62  ;;  %v6673_v11 = vmul.f32 -1.442695, %v10397_v36  ;;  %14022 = vst [vmem:[#allocation103_spill] sm:$0xff] %v10590_v53  ;;  %v10596_v44 = vpop.f32.mrb[134].mxu0  ;;  %v14024_v4 = vld [vmem:[#allocation19_spill] sm:$0xff] }
 0x32c   :  { %v3408_v45 = vmul.f32 %v14018_v29, %v10556_v2  ;;  %v3252_v58 = vsub.f32 1.0, %v14020_v54  ;;  %v14023_v29 = vld [vmem:[#allocation16_spill] sm:$0xff]  ;;  %7607 = vpow2.f32 %v6670_v17  ;;  %v3607_v28 = vmul.f32 %v14024_v4, %v3567_v20  ;;  %v10601_v54 = vpop.f32.mrb[135].mxu0 }
 0x32d   :  { %v3610_v13 = vmul.f32 %v14023_v29, %v3570_v31  ;;  %v10598_v35 = vpop.eup %7593  ;;  %v3568_v3 = vsub.f32 0.0, %v3512_v38  ;;  %14025 = vst [vmem:[#allocation16_spill] sm:$0xff] %v10601_v54  ;;  %7609 = vpow2.f32 %v3619_v10  ;;  %v3517_v36 = vmax.f32 %v10574_v47, 0.0  ;;  %v10613_v10 = vpop.permute.xlu1 %5207 }
 0x32e   :  { %v10594_v63 = vadd.f32 %v3408_v45, %v10358_v49  ;;  %3422 = vperm.xlu0 %7416, %v3408_v45   ;;  %v14026_v62 = vsub.f32 1.0, %v10547_v42  ;;  %v10607_v49 = vpop.eup %7595  ;;  %v3259_v45 = vadd.f32 1e-10, %v10519_v14  ;;  %v14027_v29 = vsub.f32 1.0, %v10441_v21  ;;  %14028 = vst [vmem:[#allocation19_spill] sm:$0xff] %v10613_v10  ;;  %v14030_v14 = vld [vmem:[#allocation15_spill] sm:$0xff] }
 0x32f   :  { %7611 = vrcp.f32 %v3314_v48  ;;  %v6671_v17 = vmul.f32 -1.442695, %v10414_v9  ;;  %v7598_v20 = vpop.eup %7597  ;;  %v3262_v38 = vadd.f32 1e-10, %v3254_v57  ;;  %v3260_v4 = vadd.f32 1e-10, %v3252_v58  ;;  %v10626_v58 = vpop.permute.xlu0 %5441 }
 0x330   :  { %v3413_v31 = vmul.f32 %v14026_v62, %v10585_v52  ;;  %v3481_v53 = vsub.f32 1.0, %v14027_v29  ;;  %7613 = vpow2.f32 %v6673_v11  ;;  %v3621_v25 = vmul.f32 1.442695, %v3610_v13  ;;  %v10615_v41 = vpop.eup %7599  ;;  %v14031_v21 = vld [vmem:[#allocation50_spill] sm:$0xff]  ;;  %14032 = vst [vmem:[#allocation15_spill] sm:$0xff] %v10626_v58  ;;  %v14033_v13 = vld [vmem:[#allocation48_spill] sm:$0xff] }
 0x331   :  { %14029 = vst [vmem:[#allocation104_spill] sm:$0xff] %v10615_v41  ;;  %v3615_v54 = vmul.f32 1.442695, %v3607_v28  ;;  %v3608_v5 = vmul.f32 %v14030_v14, %v3568_v3  ;;  %v10621_v48 = vadd.f32 %v10287_v30, %v14031_v21  ;;  %v10623_v9 = vpop.eup %7601  ;;  %v3573_v11 = vsub.f32 0.0, %v3517_v36  ;;  %v14034_v21 = vld [vmem:[#allocation52_spill] sm:$0xff] }
 0x332   :  { %3447 = vperm.xlu1 %7415, %v3413_v31   ;;  %v10630_v29 = vadd.f32 %v10287_v30, %v14033_v13  ;;  %v10633_v62 = vadd.f32 %v3413_v31, %v10391_v1  ;;  %v3489_v28 = vadd.f32 1e-10, %v3481_v53  ;;  %v3312_v3 = vadd.f32 1.0, %v7592_v19 }
 0x333   :  { %v3317_v14 = vadd.f32 1.0, %v7598_v20  ;;  %7615 = vpow2.f32 %v6671_v17  ;;  %v10637_v41 = vadd.f32 %v10287_v30, %v14034_v21  ;;  %v10640_v57 = vmul.f32 %v3262_v38, %v10417_v39  ;;  %v14038_v17 = vld [vmem:[#allocation25_spill] sm:$0xff] }
 0x334   :  { %7617 = vpow2.f32 %v3621_v25  ;;  %v10643_v36 = vmul.f32 %v3259_v45, %v10425_v32  ;;  %v10645_v13 = vpop.eup %7603  ;;  %v3617_v53 = vmul.f32 1.442695, %v3608_v5  ;;  %v3518_v19 = vmax.f32 %v10621_v48, 0.0  ;;  %v10651_v25 = vpop.permute.xlu1 %4981 }
 0x335   :  { %14035 = vst [vmem:[#allocation50_spill] sm:$0xff] %v10645_v13  ;;  %7619 = vpow2.f32 %v3615_v54  ;;  %v10649_v31 = vpop.eup %7605  ;;  %14037 = vst [vmem:[#allocation52_spill] sm:$0xff] %v10651_v25  ;;  %v3613_v20 = vmul.f32 %v14038_v17, %v3573_v11  ;;  %v3515_v39 = vmax.f32 %v10630_v29, 0.0  ;;  %v14039_v32 = vsub.f32 1.0, %v10607_v49  ;;  %v10670_v13 = vpop.permute.xlu0 %5213 }
 0x336   :  { %14036 = vst [vmem:[#allocation48_spill] sm:$0xff] %v10649_v31  ;;  %v14040_v38 = vsub.f32 1.0, %v10598_v35  ;;  %v7608_v54 = vpop.eup %7607  ;;  %v14041_v5 = vsub.f32 1.0, %v10495_v46  ;;  %7621 = vrcp.f32 %v3312_v3  ;;  %v6676_v58 = vmul.f32 -1.442695, %v10464_v43  ;;  %14042 = vst [vmem:[#allocation25_spill] sm:$0xff] %v10670_v13 }
 0x337   :  { %v3414_v45 = vmul.f32 %v14039_v32, %v10640_v57  ;;  %v10665_v31 = vmul.f32 %v3260_v4, %v10439_v55  ;;  %v10667_v11 = vpop.eup %7609  ;;  %v6674_v17 = vmul.f32 -1.442695, %v10508_v37  ;;  %v3516_v32 = vmax.f32 %v10637_v41, 0.0  ;;  %v10679_v43 = vpop.f32.mrb[136].mxu0 }
 0x338   :  { %v3411_v21 = vmul.f32 %v14040_v38, %v10643_v36  ;;  %v3479_v1 = vsub.f32 1.0, %v14041_v5  ;;  %7623 = vrcp.f32 %v3317_v14  ;;  %v6677_v4 = vmul.f32 -1.442695, %v10504_v40  ;;  %v10700_v25 = vpop.permute.xlu1 %5439 }
 0x339   :  { %v10674_v38 = vadd.f32 %v3414_v45, %v10447_v0  ;;  %3452 = vperm.xlu0 %7416, %v3414_v45   ;;  %v10681_v55 = vpop.eup %7611  ;;  %v3574_v37 = vsub.f32 0.0, %v3518_v19  ;;  %v14044_v3 = vsub.f32 1.0, %v10623_v9  ;;  %v14045_v0 = vsub.f32 1.0, %v10490_v34  ;;  %14047 = vst [vmem:[#allocation107_spill] sm:$0xff] %v10700_v25 }
 0x33a   :  { %v10677_v46 = vadd.f32 %v3411_v21, %v10452_v59  ;;  %3437 = vperm.xlu1 %7415, %v3411_v21   ;;  %14043 = vst [vmem:[#allocation105_spill] sm:$0xff] %v10681_v55  ;;  %v7614_v13 = vpop.eup %7613  ;;  %7625 = vpow2.f32 %v3617_v53  ;;  %v3627_v59 = vmul.f32 1.442695, %v3613_v20  ;;  %v3571_v10 = vsub.f32 0.0, %v3515_v39  ;;  %v10689_v21 = vpop.f32.mrb[137].mxu0  ;;  %v14048_v53 = vld [vmem:[#allocation56_spill] sm:$0xff] }
 0x33b   :  { %v3412_v5 = vmul.f32 %v14044_v3, %v10665_v31  ;;  %v3482_v45 = vsub.f32 1.0, %v14045_v0  ;;  %14046 = vst [vmem:[#allocation106_spill] sm:$0xff] %v10689_v21  ;;  %7627 = vpow2.f32 %v6676_v58  ;;  %v10696_v40 = vmul.f32 %v3489_v28, %v10484_v12  ;;  %v10698_v19 = vpop.f32.mrb[138].mxu0  ;;  %v14051_v28 = vld [vmem:[#allocation20_spill] sm:$0xff] }
 0x33c   :  { %v3315_v3 = vadd.f32 1.0, %v7608_v54  ;;  %7629 = vpow2.f32 %v6674_v17  ;;  %v3572_v34 = vsub.f32 0.0, %v3516_v32  ;;  %v10704_v20 = vadd.f32 %v10287_v30, %v14048_v53  ;;  %v10706_v58 = vpop.f32.mrb[139].mxu0  ;;  %v14052_v32 = vld [vmem:[#allocation23_spill] sm:$0xff]  ;;  %v10714_v53 = vpop.permute.xlu0 %5671 }
 0x33d   :  { %v10693_v14 = vadd.f32 %v3412_v5, %v10475_v33  ;;  %3442 = vperm.xlu0 %7416, %v3412_v5   ;;  %14049 = vst [vmem:[#allocation56_spill] sm:$0xff] %v10706_v58  ;;  %v7616_v39 = vpop.eup %7615  ;;  %v3487_v33 = vadd.f32 1e-10, %v3479_v1  ;;  %v14050_v0 = vsub.f32 1.0, %v10513_v8  ;;  %7631 = vpow2.f32 %v6677_v4  ;;  %14053 = vst [vmem:[#allocation20_spill] sm:$0xff] %v10714_v53 }
 0x33e   :  { %v3614_v55 = vmul.f32 %v14051_v28, %v3574_v37  ;;  %v10711_v54 = vpop.eup %7617  ;;  %v3490_v25 = vadd.f32 1e-10, %v3482_v45  ;;  %v3318_v17 = vadd.f32 1.0, %v7614_v13  ;;  %7633 = vpow2.f32 %v3627_v59 }
 0x33f   :  { %v3480_v12 = vsub.f32 1.0, %v14050_v0  ;;  %v3611_v21 = vmul.f32 %v14052_v32, %v3571_v10  ;;  %v10716_v5 = vpop.eup %7619  ;;  %v14054_v58 = vsub.f32 1.0, %v10547_v42  ;;  %v6675_v8 = vmul.f32 -1.442695, %v10536_v50  ;;  %v14056_v10 = vld [vmem:[#allocation18_spill] sm:$0xff] }
 0x340   :  { %v10723_v4 = vadd.f32 %v10287_v30, %v10069_v60  ;;  %v14055_v37 = vsub.f32 1.0, %v10667_v11  ;;  %7635 = vrcp.f32 %v3315_v3  ;;  %v3316_v45 = vadd.f32 1.0, %v7616_v39  ;;  %v10730_v28 = vpop.eup %7621  ;;  %v14058_v50 = vld [vmem:[#allocation58_spill] sm:$0xff]  ;;  %v10740_v3 = vpop.permute.xlu1 %4983 }
 0x341   :  { %v3485_v1 = vsub.f32 1.0, %v14054_v58  ;;  %v3612_v59 = vmul.f32 %v14056_v10, %v3572_v34  ;;  %v3745_v0 = vmax.f32 %v10704_v20, 0.0  ;;  %14057 = vst [vmem:[#allocation23_spill] sm:$0xff] %v10730_v28  ;;  %v3629_v58 = vmul.f32 1.442695, %v3614_v55  ;;  %14059 = vst [vmem:[#allocation18_spill] sm:$0xff] %v10740_v3 }
 0x342   :  { %v3641_v13 = vmul.f32 %v14055_v37, %v10696_v40  ;;  %v10735_v32 = vadd.f32 %v10287_v30, %v14058_v50  ;;  %v3488_v37 = vadd.f32 1e-10, %v3480_v12  ;;  %7637 = vrcp.f32 %v3318_v17  ;;  %v10743_v10 = vpop.eup %7623  ;;  %v10751_v12 = vpop.permute.xlu0 %4985 }
 0x343   :  { %v3623_v39 = vmul.f32 1.442695, %v3611_v21  ;;  %14060 = vst [vmem:[#allocation58_spill] sm:$0xff] %v10743_v10  ;;  %v3493_v53 = vadd.f32 1e-10, %v3485_v1  ;;  %7639 = vpow2.f32 %v6675_v8  ;;  %v3746_v55 = vmax.f32 %v10723_v4, 0.0 }
 0x344   :  { %v10738_v60 = vadd.f32 %v3641_v13, %v10511_v61  ;;  %3659 = vperm.xlu1 %7415, %v3641_v13   ;;  %v10747_v50 = vmul.f32 %v3490_v25, %v10526_v22  ;;  %v10749_v42 = vpop.eup %7625  ;;  %7641 = vrcp.f32 %v3316_v45  ;;  %v3625_v61 = vmul.f32 1.442695, %v3612_v59  ;;  %14061 = vst [vmem:[#allocation108_spill] sm:$0xff] %v10751_v12  ;;  %v14067_v12 = vld [vmem:[#allocation29_spill] sm:$0xff] }
 0x345   :  { %v3801_v17 = vsub.f32 0.0, %v3745_v0  ;;  %v10754_v13 = vmul.f32 %v3487_v33, %v10529_v7  ;;  %v7628_v21 = vpop.eup %7627  ;;  %v14062_v34 = vsub.f32 1.0, %v10598_v35  ;;  %7643 = vpow2.f32 %v3629_v58 }
 0x346   :  { %v3743_v8 = vmax.f32 %v10735_v32, 0.0  ;;  %v14063_v22 = vsub.f32 1.0, %v10711_v54  ;;  %v7630_v10 = vpop.eup %7629  ;;  %v6680_v45 = vmul.f32 -1.442695, %v10574_v47  ;;  %7645 = vpow2.f32 %v3623_v39  ;;  %v10778_v39 = vpop.permute.xlu1 %5443 }
 0x347   :  { %v3483_v1 = vsub.f32 1.0, %v14062_v34  ;;  %v10765_v59 = vadd.f32 %v10287_v30, %v10075_v56  ;;  %v14064_v7 = vsub.f32 1.0, %v10716_v5  ;;  %v7632_v33 = vpop.eup %7631  ;;  %v14065_v0 = vsub.f32 1.0, %v10607_v49  ;;  %14066 = vst [vmem:[#allocation109_spill] sm:$0xff] %v10778_v39 }
 0x348   :  { %v3642_v25 = vmul.f32 %v14063_v22, %v10747_v50  ;;  %v3802_v28 = vsub.f32 0.0, %v3746_v55  ;;  %v10776_v47 = vpop.eup %7633  ;;  %v6678_v56 = vmul.f32 -1.442695, %v10630_v29  ;;  %7647 = vpow2.f32 %v3625_v61 }
 0x349   :  { %v3639_v35 = vmul.f32 %v14064_v7, %v10754_v13  ;;  %v3486_v58 = vsub.f32 1.0, %v14065_v0  ;;  %v3841_v7 = vmul.f32 %v14067_v12, %v3801_v17  ;;  %v10785_v0 = vpop.f32.mrb[140].mxu0  ;;  %v10787_v55 = vadd.f32 1e-10, %v3483_v1  ;;  %v10797_v12 = vpop.permute.xlu0 %5445  ;;  %v14077_v1 = vld [vmem:[#allocation27_spill] sm:$0xff] }
 0x34a   :  { %v10774_v22 = vadd.f32 %v3642_v25, %v10553_v26  ;;  %3664 = vperm.xlu0 %7416, %v3642_v25   ;;  %14068 = vst [vmem:[#allocation29_spill] sm:$0xff] %v10785_v0  ;;  %v3545_v26 = vadd.f32 1.0, %v7628_v21  ;;  %v3799_v34 = vsub.f32 0.0, %v3743_v8  ;;  %v10790_v25 = vmul.f32 %v3488_v37, %v10556_v2  ;;  %v10792_v3 = vpop.f32.mrb[141].mxu0  ;;  %v10794_v39 = vpop.eup %7635  ;;  %14071 = vst [vmem:[#allocation112_spill] sm:$0xff] %v10797_v12  ;;  %v14073_v2 = vld [vmem:[#allocation24_spill] sm:$0xff] }
 0x34b   :  { %3649 = vperm.xlu1 %7415, %v3639_v35   ;;  %v10783_v49 = vadd.f32 %v3639_v35, %v10565_v15  ;;  %14069 = vst [vmem:[#allocation110_spill] sm:$0xff] %v10792_v3  ;;  %14070 = vst [vmem:[#allocation111_spill] sm:$0xff] %v10794_v39  ;;  %v3543_v29 = vadd.f32 1.0, %v7630_v10  ;;  %7649 = vpow2.f32 %v6680_v45  ;;  %v3744_v61 = vmax.f32 %v10765_v59, 0.0  ;;  %v10802_v17 = vpop.f32.mrb[142].mxu0  ;;  %v14076_v12 = vld [vmem:[#allocation64_spill] sm:$0xff] }
 0x34c   :  { %v10800_v15 = vmul.f32 %v3493_v53, %v10585_v52  ;;  %14072 = vst [vmem:[#allocation113_spill] sm:$0xff] %v10802_v17  ;;  %v3546_v21 = vadd.f32 1.0, %v7632_v33  ;;  %v3842_v37 = vmul.f32 %v14073_v2, %v3802_v28  ;;  %v14074_v8 = vsub.f32 1.0, %v10749_v42  ;;  %v10809_v10 = vpop.eup %7637  ;;  %v14096_v17 = vld [vmem:[#allocation33_spill] sm:$0xff] }
 0x34d   :  { %14075 = vst [vmem:[#allocation24_spill] sm:$0xff] %v10809_v10  ;;  %v3494_v45 = vadd.f32 1e-10, %v3486_v58  ;;  %7651 = vpow2.f32 %v6678_v56  ;;  %v3851_v39 = vmul.f32 1.442695, %v3841_v7  ;;  %v10813_v52 = vadd.f32 %v10287_v30, %v14076_v12  ;;  %v7640_v53 = vpop.eup %7639  ;;  %v10824_v7 = vpop.permute.xlu1 %5673 }
 0x34e   :  { %v3640_v35 = vmul.f32 %v14074_v8, %v10790_v25  ;;  %7653 = vrcp.f32 %v3545_v26  ;;  %v6681_v33 = vmul.f32 -1.442695, %v10621_v48  ;;  %v3839_v3 = vmul.f32 %v14077_v1, %v3799_v34  ;;  %v10820_v2 = vpop.eup %7641  ;;  %14080 = vst [vmem:[#allocation27_spill] sm:$0xff] %v10824_v7 }
 0x34f   :  { %14078 = vst [vmem:[#allocation64_spill] sm:$0xff] %v10820_v2  ;;  %v14079_v58 = vsub.f32 1.0, %v10623_v9  ;;  %7655 = vrcp.f32 %v3543_v29  ;;  %v6679_v12 = vmul.f32 -1.442695, %v10637_v41  ;;  %v3800_v8 = vsub.f32 0.0, %v3744_v61  ;;  %v10827_v26 = vpop.eup %7643  ;;  %v10836_v29 = vpop.permute.xlu0 %5903  ;;  %v14084_v61 = vld [vmem:[#allocation65_spill] sm:$0xff] }
 0x350   :  { %v10818_v28 = vadd.f32 %v3640_v35, %v10594_v63  ;;  %3654 = vperm.xlu0 %7416, %v3640_v35   ;;  %v14081_v48 = vsub.f32 1.0, %v10667_v11  ;;  %7657 = vrcp.f32 %v3546_v21  ;;  %v3853_v63 = vmul.f32 1.442695, %v3842_v37  ;;  %v10834_v2 = vpop.eup %7645  ;;  %14083 = vst [vmem:[#allocation114_spill] sm:$0xff] %v10836_v29  ;;  %v10843_v11 = vpop.f32.mrb[143].mxu0  ;;  %v14086_v37 = vld [vmem:[#allocation67_spill] sm:$0xff] }
 0x351   :  { %v3484_v56 = vsub.f32 1.0, %v14079_v58  ;;  %v14082_v1 = vsub.f32 1.0, %v10776_v47  ;;  %v3544_v9 = vadd.f32 1.0, %v7640_v53  ;;  %7659 = vpow2.f32 %v3851_v39  ;;  %14085 = vst [vmem:[#allocation65_spill] sm:$0xff] %v10843_v11 }
 0x352   :  { %v3713_v34 = vsub.f32 1.0, %v14081_v48  ;;  %v3749_v41 = vmax.f32 %v10813_v52, 0.0  ;;  %v10841_v58 = vadd.f32 %v10287_v30, %v14084_v61  ;;  %7661 = vpow2.f32 %v6681_v33  ;;  %v10852_v39 = vpop.eup %7647  ;;  %v14087_v61 = vld [vmem:[#allocation22_spill] sm:$0xff] }
 0x353   :  { %v3645_v35 = vmul.f32 %v14082_v1, %v10800_v15  ;;  %v3847_v21 = vmul.f32 1.442695, %v3839_v3  ;;  %v10847_v48 = vadd.f32 %v10287_v30, %v14086_v37  ;;  %v3492_v53 = vadd.f32 1e-10, %v3484_v56  ;;  %v10859_v37 = vpop.permute.xlu1 %5215 }
 0x354   :  { %v13824_v29 = vsub.f32 1.0, %v10827_v26  ;;  %7663 = vpow2.f32 %v6679_v12  ;;  %v3840_v7 = vmul.f32 %v14087_v61, %v3800_v8  ;;  %v10856_v10 = vadd.f32 1e-10, %v3713_v34  ;;  %14088 = vst [vmem:[#allocation67_spill] sm:$0xff] %v10859_v37 }
 0x355   :  { %v10850_v1 = vadd.f32 %v3645_v35, %v10633_v62  ;;  %3679 = vperm.xlu1 %7415, %v3645_v35   ;;  %7665 = vpow2.f32 %v3853_v63  ;;  %v7650_v33 = vpop.eup %7649  ;;  %v3805_v62 = vsub.f32 0.0, %v3749_v41  ;;  %v3747_v35 = vmax.f32 %v10841_v58, 0.0  ;;  %v10875_v41 = vpop.permute.xlu0 %4987 }
 0x356   :  { %7667 = vrcp.f32 %v3544_v9  ;;  %v10863_v11 = vmul.f32 %v3494_v45, %v10640_v57  ;;  %v3750_v12 = vmax.f32 %v10847_v48, 0.0  ;;  %v10869_v8 = vmul.f32 %v10787_v55, %v10643_v36  ;;  %v14089_v9 = vld [vmem:[#allocation68_spill] sm:$0xff]  ;;  %14090 = vst [vmem:[#allocation22_spill] sm:$0xff] %v10875_v41 }
 0x357   :  { %7669 = vpow2.f32 %v3847_v21  ;;  %v7652_v34 = vpop.eup %7651  ;;  %v3849_v63 = vmul.f32 1.442695, %v3840_v7  ;;  %v10873_v61 = vadd.f32 %v10287_v30, %v14089_v9  ;;  %v10881_v45 = vmul.f32 %v3492_v53, %v10665_v31 }
 0x358   :  { %v3646_v57 = vmul.f32 %v13824_v29, %v10863_v11  ;;  %v10883_v21 = vpop.eup %7653  ;;  %v14092_v36 = vsub.f32 1.0, %v10716_v5  ;;  %v14093_v7 = vsub.f32 1.0, %v10711_v54  ;;  %v3549_v3 = vadd.f32 1.0, %v7650_v33 }
 0x359   :  { %14091 = vst [vmem:[#allocation68_spill] sm:$0xff] %v10883_v21  ;;  %v14094_v9 = vsub.f32 1.0, %v10834_v2  ;;  %v10892_v41 = vpop.eup %7655  ;;  %v6684_v29 = vmul.f32 -1.442695, %v10704_v20  ;;  %v3845_v31 = vmul.f32 %v14096_v17, %v3805_v62  ;;  %v3803_v53 = vsub.f32 0.0, %v3747_v35 }
 0x35a   :  { %v3711_v55 = vsub.f32 1.0, %v14092_v36  ;;  %v3714_v56 = vsub.f32 1.0, %v14093_v7  ;;  %14095 = vst [vmem:[#allocation115_spill] sm:$0xff] %v10892_v41  ;;  %v10897_v21 = vadd.f32 %v3646_v57, %v10674_v38  ;;  %3684 = vperm.xlu0 %7416, %v3646_v57   ;;  %v10899_v5 = vpop.eup %7657  ;;  %v3547_v54 = vadd.f32 1.0, %v7652_v34  ;;  %v10911_v38 = vpop.permute.xlu1 %5675  ;;  %v14102_v57 = vld [vmem:[#allocation70_spill] sm:$0xff]  ;;  %v14104_v41 = vld [vmem:[#allocation31_spill] sm:$0xff] }
 0x35b   :  { %v3643_v37 = vmul.f32 %v14094_v9, %v10869_v8  ;;  %14097 = vst [vmem:[#allocation33_spill] sm:$0xff] %v10899_v5  ;;  %v3806_v36 = vsub.f32 0.0, %v3750_v12  ;;  %v14098_v7 = vsub.f32 1.0, %v10852_v39  ;;  %v10907_v20 = vpop.eup %7659  ;;  %v14099_v17 = vsub.f32 1.0, %v10749_v42  ;;  %14100 = vst [vmem:[#allocation116_spill] sm:$0xff] %v10911_v38  ;;  %v10915_v34 = vpop.f32.mrb[144].mxu0 }
 0x35c   :  { %v6682_v35 = vmul.f32 -1.442695, %v10735_v32  ;;  %7671 = vpow2.f32 %v3849_v63  ;;  %v3748_v12 = vmax.f32 %v10873_v61, 0.0  ;;  %14101 = vst [vmem:[#allocation117_spill] sm:$0xff] %v10915_v34  ;;  %v3719_v32 = vadd.f32 1e-10, %v3711_v55  ;;  %v10928_v34 = vpop.permute.xlu0 %5447 }
 0x35d   :  { %v10902_v33 = vadd.f32 %v3643_v37, %v10677_v46  ;;  %3669 = vperm.xlu1 %7415, %v3643_v37   ;;  %v3644_v9 = vmul.f32 %v14098_v7, %v10881_v45  ;;  %v3712_v62 = vsub.f32 1.0, %v14099_v17  ;;  %v7662_v46 = vpop.eup %7661  ;;  %7673 = vrcp.f32 %v3549_v3  ;;  %v10925_v17 = vpop.f32.mrb[145].mxu0  ;;  %14105 = vst [vmem:[#allocation31_spill] sm:$0xff] %v10928_v34 }
 0x35e   :  { %v6685_v37 = vmul.f32 -1.442695, %v10723_v4  ;;  %v10920_v7 = vadd.f32 %v10287_v30, %v14102_v57  ;;  %14103 = vst [vmem:[#allocation70_spill] sm:$0xff] %v10925_v17  ;;  %v7664_v38 = vpop.eup %7663  ;;  %7675 = vpow2.f32 %v6684_v29  ;;  %v3859_v63 = vmul.f32 1.442695, %v3845_v31  ;;  %v10930_v3 = vpop.f32.mrb[146].mxu0 }
 0x35f   :  { %v10923_v42 = vadd.f32 %v3644_v9, %v10693_v14  ;;  %v3843_v5 = vmul.f32 %v14104_v41, %v3803_v53  ;;  %3674 = vperm.xlu0 %7416, %v3644_v9   ;;  %v10932_v4 = vpop.eup %7665  ;;  %v3722_v30 = vadd.f32 1e-10, %v3714_v56  ;;  %7677 = vrcp.f32 %v3547_v54  ;;  %v14106_v57 = vld [vmem:[#allocation28_spill] sm:$0xff]  ;;  %v10947_v54 = vpop.f32.mrb[147].mxu0 }
 0x360   :  { %v13825_v14 = vsub.f32 1.0, %v10907_v20  ;;  %v3846_v0 = vmul.f32 %v14106_v57, %v3806_v36  ;;  %v10936_v17 = vpop.eup %7667  ;;  %v10938_v55 = vadd.f32 1e-10, %v3712_v62  ;;  %v3550_v29 = vadd.f32 1.0, %v7662_v46  ;;  %14108 = vst [vmem:[#allocation118_spill] sm:$0xff] %v10947_v54  ;;  %v10952_v46 = vpop.permute.xlu1 %5905  ;;  %v14133_v54 = vld [vmem:[#allocation32_spill] sm:$0xff] }
 0x361   :  { %14107 = vst [vmem:[#allocation28_spill] sm:$0xff] %v10936_v17  ;;  %7679 = vpow2.f32 %v6682_v35  ;;  %v3804_v41 = vsub.f32 0.0, %v3748_v12  ;;  %v10940_v31 = vpop.eup %7669  ;;  %v3548_v53 = vadd.f32 1.0, %v7664_v38  ;;  %v3977_v9 = vmax.f32 %v10920_v7, 0.0  ;;  %14110 = vst [vmem:[#allocation119_spill] sm:$0xff] %v10952_v46  ;;  %v10975_v46 = vpop.permute.xlu0 %5907 }
 0x362   :  { %7681 = vpow2.f32 %v6685_v37  ;;  %v10945_v56 = vmul.f32 %v10856_v10, %v10696_v40  ;;  %v14109_v36 = vsub.f32 1.0, %v10776_v47  ;;  %v3855_v35 = vmul.f32 1.442695, %v3843_v5  ;;  %v10957_v38 = vld [vmem:[%s13817_s7] ss:$0 sm:$0xff]  ;;  %v14111_v37 = vld [vmem:[#allocation74_spill] sm:$0xff] }
 0x363   :  { %7683 = vpow2.f32 %v3859_v63  ;;  %v3861_v12 = vmul.f32 1.442695, %v3846_v0  ;;  %v10961_v40 = vadd.f32 %v10957_v38, %v14111_v37  ;;  %v10967_v10 = vmul.f32 %v3722_v30, %v10747_v50  ;;  %v14112_v0 = vld [vmem:[#allocation26_spill] sm:$0xff]  ;;  %14114 = vst [vmem:[#allocation74_spill] sm:$0xff] %v10975_v46 }
 0x364   :  { %v3717_v57 = vsub.f32 1.0, %v14109_v36  ;;  %v3873_v47 = vmul.f32 %v13825_v14, %v10945_v56  ;;  %7685 = vrcp.f32 %v3550_v29  ;;  %v6683_v5 = vmul.f32 -1.442695, %v10765_v59  ;;  %v14113_v36 = vld [vmem:[#allocation73_spill] sm:$0xff] }
 0x365   :  { %v3844_v63 = vmul.f32 %v14112_v0, %v3804_v41  ;;  %v10973_v62 = vadd.f32 %v10957_v38, %v14113_v36  ;;  %7687 = vrcp.f32 %v3548_v53  ;;  %v4033_v17 = vsub.f32 0.0, %v3977_v9  ;;  %v14115_v29 = vld [vmem:[#allocation77_spill] sm:$0xff]  ;;  %v11001_v36 = vpop.permute.xlu1 %5217  ;;  %v11018_v46 = vpop.permute.xlu0 %5219 }
 0x366   :  { %v10979_v14 = vadd.f32 %v3873_v47, %v10738_v60  ;;  %3891 = vperm.xlu1 %7415, %v3873_v47   ;;  %v10981_v50 = vpop.eup %7671  ;;  %v10983_v30 = vadd.f32 1e-10, %v3717_v57  ;;  %v6688_v59 = vmul.f32 -1.442695, %v10813_v52  ;;  %7689 = vpow2.f32 %v3855_v35  ;;  %14119 = vst [vmem:[#allocation73_spill] sm:$0xff] %v11001_v36  ;;  %v11030_v36 = vpop.f32.mrb[148].mxu0 }
 0x367   :  { %v10988_v41 = vadd.f32 %v10957_v38, %v14115_v29  ;;  %v10990_v0 = vpop.eup %7673  ;;  %7691 = vpow2.f32 %v3861_v12  ;;  %v3978_v53 = vmax.f32 %v10961_v40, 0.0  ;;  %v14117_v60 = vsub.f32 1.0, %v10932_v4  ;;  %14125 = vst [vmem:[#allocation120_spill] sm:$0xff] %v11030_v36 }
 0x368   :  { %14116 = vst [vmem:[#allocation26_spill] sm:$0xff] %v10990_v0  ;;  %v10997_v47 = vmul.f32 %v3719_v32, %v10754_v13  ;;  %v7676_v57 = vpop.eup %7675  ;;  %v14118_v52 = vsub.f32 1.0, %v10834_v2  ;;  %7693 = vpow2.f32 %v6683_v5  ;;  %v3857_v29 = vmul.f32 1.442695, %v3844_v63  ;;  %v14121_v0 = vld [vmem:[#allocation38_spill] sm:$0xff] }
 0x369   :  { %v3874_v9 = vmul.f32 %v14117_v60, %v10967_v10  ;;  %v3975_v37 = vmax.f32 %v10973_v62, 0.0  ;;  %v11004_v12 = vpop.eup %7677  ;;  %v4073_v34 = vmul.f32 %v14121_v0, %v4033_v17  ;;  %v14122_v13 = vsub.f32 1.0, %v10940_v31  ;;  %14124 = vst [vmem:[#allocation38_spill] sm:$0xff] %v11018_v46 }
 0x36a   :  { %v3715_v35 = vsub.f32 1.0, %v14118_v52  ;;  %14120 = vst [vmem:[#allocation77_spill] sm:$0xff] %v11004_v12  ;;  %v14123_v5 = vsub.f32 1.0, %v10827_v26  ;;  %7695 = vpow2.f32 %v6688_v59  ;;  %v6686_v52 = vmul.f32 -1.442695, %v10841_v58 }
 0x36b   :  { %v11009_v60 = vadd.f32 %v3874_v9, %v10774_v22  ;;  %3896 = vperm.xlu0 %7416, %v3874_v9   ;;  %v3871_v2 = vmul.f32 %v14122_v13, %v10997_v47  ;;  %v7680_v32 = vpop.eup %7679  ;;  %v3976_v12 = vmax.f32 %v10988_v41, 0.0  ;;  %v6689_v22 = vmul.f32 -1.442695, %v10847_v48 }
 0x36c   :  { %v3718_v63 = vsub.f32 1.0, %v14123_v5  ;;  %v7682_v17 = vpop.eup %7681  ;;  %v4034_v0 = vsub.f32 0.0, %v3978_v53  ;;  %v11026_v13 = vmul.f32 %v10938_v55, %v10790_v25  ;;  %v3723_v59 = vadd.f32 1e-10, %v3715_v35 }
 0x36d   :  { %3881 = vperm.xlu1 %7415, %v3871_v2   ;;  %v11022_v9 = vadd.f32 %v3871_v2, %v10783_v49  ;;  %v11028_v26 = vpop.eup %7683  ;;  %v3777_v58 = vadd.f32 1.0, %v7676_v57  ;;  %7697 = vpow2.f32 %v3857_v29  ;;  %v4031_v5 = vsub.f32 0.0, %v3975_v37  ;;  %v11041_v2 = vpop.f32.mrb[149].mxu0 }
 0x36e   :  { %v14126_v46 = vsub.f32 1.0, %v10852_v39  ;;  %v4083_v53 = vmul.f32 1.442695, %v4073_v34  ;;  %v11036_v49 = vadd.f32 %v10957_v38, %v10222_v27  ;;  %v14127_v25 = vsub.f32 1.0, %v10981_v50  ;;  %14128 = vst [vmem:[#allocation121_spill] sm:$0xff] %v11041_v2  ;;  %v11043_v35 = vpop.eup %7685  ;;  %v11045_v29 = vpop.permute.xlu1 %5677 }
 0x36f   :  { %14129 = vst [vmem:[#allocation122_spill] sm:$0xff] %v11043_v35  ;;  %v3775_v57 = vadd.f32 1.0, %v7680_v32  ;;  %v3778_v37 = vadd.f32 1.0, %v7682_v17  ;;  %7699 = vpow2.f32 %v6686_v52  ;;  %14130 = vst [vmem:[#allocation123_spill] sm:$0xff] %v11045_v29  ;;  %v4032_v39 = vsub.f32 0.0, %v3976_v12  ;;  %v11049_v34 = vpop.eup %7687  ;;  %v14134_v17 = vld [vmem:[#allocation36_spill] sm:$0xff]  ;;  %v11061_v29 = vpop.permute.xlu0 %5679 }
 0x370   :  { %v3716_v48 = vsub.f32 1.0, %v14126_v46  ;;  %v3872_v55 = vmul.f32 %v14127_v25, %v11026_v13  ;;  %v11047_v46 = vpop.f32.mrb[150].mxu0  ;;  %14131 = vst [vmem:[#allocation124_spill] sm:$0xff] %v11049_v34  ;;  %v14132_v27 = vsub.f32 1.0, %v10907_v20  ;;  %7701 = vpow2.f32 %v6689_v22  ;;  %v11057_v32 = vpop.eup %7689  ;;  %14135 = vst [vmem:[#allocation32_spill] sm:$0xff] %v11061_v29 }
 0x371   :  { %v4074_v25 = vmul.f32 %v14133_v54, %v4034_v0  ;;  %v3726_v52 = vadd.f32 1e-10, %v3718_v63  ;;  %7703 = vrcp.f32 %v3777_v58  ;;  %v13826_v12 = vsub.f32 1.0, %v11028_v26  ;;  %v11063_v34 = vpop.eup %7691  ;;  %v14136_v0 = vld [vmem:[#allocation30_spill] sm:$0xff] }
 0x372   :  { %v3945_v36 = vsub.f32 1.0, %v14132_v27  ;;  %v11055_v2 = vadd.f32 %v3872_v55, %v10818_v28  ;;  %3886 = vperm.xlu0 %7416, %v3872_v55   ;;  %v4071_v35 = vmul.f32 %v14134_v17, %v4031_v5  ;;  %v6687_v20 = vmul.f32 -1.442695, %v10873_v61  ;;  %v7694_v22 = vpop.eup %7693 }
 0x373   :  { %7705 = vpow2.f32 %v4083_v53  ;;  %v3981_v54 = vmax.f32 %v11036_v49, 0.0  ;;  %v11069_v28 = vadd.f32 %v10957_v38, %v10228_v16  ;;  %v3724_v63 = vadd.f32 1e-10, %v3716_v48  ;;  %v14137_v53 = vld [vmem:[#allocation7_spill] sm:$0xff]  ;;  %v11094_v16 = vpop.permute.xlu0 %5221 }
 0x374   :  { %7707 = vrcp.f32 %v3775_v57  ;;  %v4072_v58 = vmul.f32 %v14136_v0, %v4032_v39  ;;  %v11074_v5 = vmul.f32 %v10983_v30, %v10800_v15  ;;  %v11076_v55 = vadd.f32 1e-10, %v3945_v36  ;;  %v7696_v17 = vpop.eup %7695  ;;  %v11084_v57 = vpop.permute.xlu1 %4989  ;;  %14140 = vst [vmem:[#allocation7_spill] sm:$0xff] %v11094_v16 }
 0x375   :  { %7709 = vrcp.f32 %v3778_v37  ;;  %v4085_v61 = vmul.f32 1.442695, %v4074_v25  ;;  %v11080_v27 = vadd.f32 %v10957_v38, %v14137_v53  ;;  %14138 = vst [vmem:[#allocation36_spill] sm:$0xff] %v11084_v57  ;;  %v4079_v39 = vmul.f32 1.442695, %v4071_v35  ;;  %v11089_v30 = vpop.f32.mrb[151].mxu0 }
 0x376   :  { %v3877_v15 = vmul.f32 %v13826_v12, %v11074_v5  ;;  %14139 = vst [vmem:[#allocation30_spill] sm:$0xff] %v11089_v30  ;;  %v3776_v36 = vadd.f32 1.0, %v7694_v22  ;;  %7711 = vpow2.f32 %v6687_v20  ;;  %v4037_v37 = vsub.f32 0.0, %v3981_v54 }
 0x377   :  { %v3979_v25 = vmax.f32 %v11069_v28, 0.0  ;;  %v11092_v0 = vpop.eup %7697  ;;  %v4081_v53 = vmul.f32 1.442695, %v4072_v58  ;;  %v11100_v35 = vmul.f32 %v3726_v52, %v10863_v11  ;;  %v11103_v12 = vmul.f32 %v3723_v59, %v10869_v8 }
 0x378   :  { %v11097_v48 = vadd.f32 %v3877_v15, %v10850_v1  ;;  %3911 = vperm.xlu1 %7415, %v3877_v15   ;;  %v3781_v22 = vadd.f32 1.0, %v7696_v17  ;;  %v6692_v20 = vmul.f32 -1.442695, %v10920_v7  ;;  %7713 = vpow2.f32 %v4085_v61  ;;  %v14143_v61 = vld [vmem:[#allocation47_spill] sm:$0xff]  ;;  %v11123_v57 = vpop.permute.xlu1 %5449  ;;  %v14152_v7 = vld [vmem:[#allocation40_spill] sm:$0xff] }
 0x379   :  { %v3982_v54 = vmax.f32 %v11080_v27, 0.0  ;;  %v7700_v29 = vpop.eup %7699  ;;  %7715 = vpow2.f32 %v4079_v39  ;;  %v11109_v58 = vadd.f32 %v10957_v38, %v10251_v23  ;;  %v14141_v1 = vsub.f32 1.0, %v11063_v34  ;;  %14146 = vst [vmem:[#allocation125_spill] sm:$0xff] %v11123_v57 }
 0x37a   :  { %v14142_v8 = vsub.f32 1.0, %v11057_v32  ;;  %v7702_v52 = vpop.eup %7701  ;;  %7717 = vrcp.f32 %v3776_v36  ;;  %v4077_v17 = vmul.f32 %v14143_v61, %v4037_v37  ;;  %v4035_v15 = vsub.f32 0.0, %v3979_v25 }
 0x37b   :  { %v3878_v11 = vmul.f32 %v14141_v1, %v11100_v35  ;;  %v11119_v39 = vpop.eup %7703  ;;  %v14145_v23 = vsub.f32 1.0, %v10940_v31  ;;  %7719 = vpow2.f32 %v4081_v53  ;;  %v3779_v37 = vadd.f32 1.0, %v7700_v29 }
 0x37c   :  { %v3875_v59 = vmul.f32 %v14142_v8, %v11103_v12  ;;  %14144 = vst [vmem:[#allocation47_spill] sm:$0xff] %v11119_v39  ;;  %7721 = vrcp.f32 %v3781_v22  ;;  %v4038_v25 = vsub.f32 0.0, %v3982_v54  ;;  %v11134_v61 = vmul.f32 %v3724_v63, %v10881_v45  ;;  %v14155_v39 = vld [vmem:[#allocation82_spill] sm:$0xff] }
 0x37d   :  { %v3943_v16 = vsub.f32 1.0, %v14145_v23  ;;  %v11126_v1 = vadd.f32 %v3878_v11, %v10897_v21  ;;  %3916 = vperm.xlu0 %7416, %v3878_v11   ;;  %v11131_v36 = vpop.eup %7705  ;;  %v14148_v53 = vsub.f32 1.0, %v10932_v4  ;;  %v3782_v21 = vadd.f32 1.0, %v7702_v52 }
 0x37e   :  { %v11129_v8 = vadd.f32 %v3875_v59, %v10902_v33  ;;  %3901 = vperm.xlu1 %7415, %v3875_v59   ;;  %v11136_v31 = vpop.eup %7707  ;;  %7723 = vpow2.f32 %v6692_v20  ;;  %v3980_v11 = vmax.f32 %v11109_v58, 0.0  ;;  %v11141_v33 = vpop.permute.xlu0 %5681  ;;  %v14151_v22 = vsub.f32 1.0, %v10981_v50 }
 0x37f   :  { %14147 = vst [vmem:[#allocation126_spill] sm:$0xff] %v11136_v31  ;;  %v3946_v23 = vsub.f32 1.0, %v14148_v53  ;;  %14149 = vst [vmem:[#allocation127_spill] sm:$0xff] %v11141_v33  ;;  %v11143_v59 = vpop.eup %7709  ;;  %v4091_v54 = vmul.f32 1.442695, %v4077_v17  ;;  %v4075_v45 = vmul.f32 %v14152_v7, %v4035_v15  ;;  %v14153_v63 = vsub.f32 1.0, %v11092_v0 }
 0x380   :  { %14150 = vst [vmem:[#allocation128_spill] sm:$0xff] %v11143_v59  ;;  %v3944_v29 = vsub.f32 1.0, %v14151_v22  ;;  %v14154_v4 = vsub.f32 1.0, %v11028_v26  ;;  %v6690_v53 = vmul.f32 -1.442695, %v10973_v62  ;;  %v11157_v59 = vadd.f32 %v10957_v38, %v14155_v39  ;;  %v7712_v50 = vpop.eup %7711  ;;  %v14156_v7 = vld [vmem:[#allocation37_spill] sm:$0xff] }
 0x381   :  { %v3876_v31 = vmul.f32 %v14153_v63, %v11134_v61  ;;  %7725 = vrcp.f32 %v3779_v37  ;;  %v6693_v17 = vmul.f32 -1.442695, %v10961_v40  ;;  %v4078_v15 = vmul.f32 %v14156_v7, %v4038_v25  ;;  %v11164_v26 = vpop.f32.mrb[152].mxu0  ;;  %v14166_v33 = vld [vmem:[#allocation35_spill] sm:$0xff] }
 0x382   :  { %v3949_v52 = vsub.f32 1.0, %v14154_v4  ;;  %14157 = vst [vmem:[#allocation40_spill] sm:$0xff] %v11164_v26  ;;  %v3951_v63 = vadd.f32 1e-10, %v3943_v16  ;;  %7727 = vrcp.f32 %v3782_v21  ;;  %v11166_v4 = vpop.permute.xlu1 %5909  ;;  %v4036_v62 = vsub.f32 0.0, %v3980_v11  ;;  %v11172_v37 = vpop.eup %7713  ;;  %v14159_v16 = vld [vmem:[#allocation83_spill] sm:$0xff] }
 0x383   :  { %v11162_v22 = vadd.f32 %v3876_v31, %v10923_v42  ;;  %3906 = vperm.xlu0 %7416, %v3876_v31   ;;  %14158 = vst [vmem:[#allocation82_spill] sm:$0xff] %v11166_v4  ;;  %v11170_v39 = vmul.f32 %v11076_v55, %v10945_v56  ;;  %v3954_v40 = vadd.f32 1e-10, %v3946_v23  ;;  %v3952_v20 = vadd.f32 1e-10, %v3944_v29  ;;  %v11174_v42 = vpop.eup %7715  ;;  %v11181_v11 = vpop.permute.xlu0 %6127  ;;  %v14165_v4 = vld [vmem:[#allocation34_spill] sm:$0xff] }
 0x384   :  { %7729 = vpow2.f32 %v4091_v54  ;;  %v4087_v25 = vmul.f32 1.442695, %v4075_v45  ;;  %v4209_v31 = vmax.f32 %v11157_v59, 0.0  ;;  %v11179_v21 = vadd.f32 %v10957_v38, %v14159_v16  ;;  %14160 = vst [vmem:[#allocation37_spill] sm:$0xff] %v11181_v11  ;;  %v11186_v7 = vpop.f32.mrb[153].mxu0  ;;  %v11188_v23 = vpop.eup %7717 }
 0x385   :  { %7731 = vpow2.f32 %v6690_v53  ;;  %v14161_v56 = vsub.f32 1.0, %v11131_v36  ;;  %14162 = vst [vmem:[#allocation83_spill] sm:$0xff] %v11186_v7  ;;  %14163 = vst [vmem:[#allocation129_spill] sm:$0xff] %v11188_v23  ;;  %v11190_v29 = vadd.f32 1e-10, %v3949_v52  ;;  %v11192_v45 = vpop.f32.mrb[154].mxu0  ;;  %v11194_v53 = vpop.eup %7719  ;;  %v4076_v11 = vmul.f32 %v14165_v4, %v4036_v62 }
 0x386   :  { %7733 = vpow2.f32 %v6693_v17  ;;  %v4093_v54 = vmul.f32 1.442695, %v4078_v15  ;;  %14164 = vst [vmem:[#allocation130_spill] sm:$0xff] %v11192_v45  ;;  %v11200_v57 = vadd.f32 %v10957_v38, %v14166_v33  ;;  %v11205_v52 = vpop.eup %7721  ;;  %v3780_v17 = vadd.f32 1.0, %v7712_v50  ;;  %v11209_v16 = vpop.permute.xlu1 %5451 }
 0x387   :  { %v4105_v55 = vmul.f32 %v14161_v56, %v11170_v39  ;;  %14167 = vst [vmem:[#allocation34_spill] sm:$0xff] %v11205_v52  ;;  %v6691_v23 = vmul.f32 -1.442695, %v10988_v41  ;;  %7735 = vpow2.f32 %v4087_v25  ;;  %14168 = vst [vmem:[#allocation35_spill] sm:$0xff] %v11209_v16  ;;  %v4265_v4 = vsub.f32 0.0, %v4209_v31  ;;  %v14170_v41 = vld [vmem:[#allocation12_spill] sm:$0xff] }
 0x388   :  { %v7724_v45 = vpop.eup %7723  ;;  %v4210_v62 = vmax.f32 %v11179_v21, 0.0  ;;  %v11213_v33 = vmul.f32 %v3954_v40, %v10967_v10  ;;  %v6696_v15 = vmul.f32 -1.442695, %v11036_v49  ;;  %7737 = vpow2.f32 %v4093_v54  ;;  %v11229_v40 = vpop.permute.xlu0 %5453 }
 0x389   :  { %v11203_v56 = vadd.f32 %v4105_v55, %v10979_v14  ;;  %4123 = vperm.xlu1 %7415, %v4105_v55   ;;  %v11216_v14 = vmul.f32 %v3951_v63, %v10997_v47  ;;  %v11218_v55 = vpop.f32.mrb[155].mxu0  ;;  %v11224_v25 = vadd.f32 %v10957_v38, %v14170_v41  ;;  %v14171_v31 = vsub.f32 1.0, %v11057_v32  ;;  %14172 = vst [vmem:[#allocation12_spill] sm:$0xff] %v11229_v40 }
 0x38a   :  { %14169 = vst [vmem:[#allocation131_spill] sm:$0xff] %v11218_v55  ;;  %v4089_v16 = vmul.f32 1.442695, %v4076_v11  ;;  %v4207_v10 = vmax.f32 %v11200_v57, 0.0  ;;  %v14173_v47 = vsub.f32 1.0, %v11172_v37  ;;  %7739 = vrcp.f32 %v3780_v17 }
 0x38b   :  { %v3947_v52 = vsub.f32 1.0, %v14171_v31  ;;  %v11234_v50 = vpop.eup %7725  ;;  %v4009_v49 = vadd.f32 1.0, %v7724_v45  ;;  %v14175_v54 = vsub.f32 1.0, %v11174_v42  ;;  %v11240_v32 = vmul.f32 %v3952_v20, %v11026_v13  ;;  %v14177_v31 = vld [vmem:[#allocation62_spill] sm:$0xff] }
 0x38c   :  { %v4106_v63 = vmul.f32 %v14173_v47, %v11213_v33  ;;  %14174 = vst [vmem:[#allocation132_spill] sm:$0xff] %v11234_v50  ;;  %v11242_v11 = vpop.eup %7727  ;;  %7741 = vpow2.f32 %v6691_v23  ;;  %v4305_v40 = vmul.f32 %v14177_v31, %v4265_v4  ;;  %v4266_v55 = vsub.f32 0.0, %v4210_v62 }
 0x38d   :  { %v4103_v41 = vmul.f32 %v14175_v54, %v11216_v14  ;;  %14176 = vst [vmem:[#allocation133_spill] sm:$0xff] %v11242_v11  ;;  %7743 = vpow2.f32 %v6696_v15  ;;  %v4208_v45 = vmax.f32 %v11224_v25, 0.0  ;;  %v14178_v13 = vsub.f32 1.0, %v11194_v53 }
 0x38e   :  { %v11246_v7 = vadd.f32 %v4106_v63, %v11009_v60  ;;  %4128 = vperm.xlu0 %7416, %v4106_v63   ;;  %v11248_v47 = vpop.eup %7729  ;;  %v14179_v4 = vsub.f32 1.0, %v11063_v34  ;;  %v6694_v60 = vmul.f32 -1.442695, %v11069_v28  ;;  %7745 = vpow2.f32 %v4089_v16  ;;  %v11260_v63 = vpop.permute.xlu1 %5911  ;;  %v14182_v16 = vld [vmem:[#allocation43_spill] sm:$0xff] }
 0x38f   :  { %4113 = vperm.xlu1 %7415, %v4103_v41   ;;  %v11252_v17 = vadd.f32 %v4103_v41, %v11022_v9  ;;  %v4104_v20 = vmul.f32 %v14178_v13, %v11240_v32  ;;  %v7732_v23 = vpop.eup %7731  ;;  %14180 = vst [vmem:[#allocation62_spill] sm:$0xff] %v11260_v63  ;;  %v4263_v15 = vsub.f32 0.0, %v4207_v10  ;;  %v14181_v31 = vsub.f32 1.0, %v11092_v0  ;;  %v11274_v10 = vpop.permute.xlu0 %5913 }
 0x390   :  { %v3950_v62 = vsub.f32 1.0, %v14179_v4  ;;  %v7734_v54 = vpop.eup %7733  ;;  %v6697_v9 = vmul.f32 -1.442695, %v11080_v27  ;;  %v11267_v41 = vadd.f32 %v10957_v38, %v10351_v51  ;;  %7747 = vrcp.f32 %v4009_v49  ;;  %14183 = vst [vmem:[#allocation43_spill] sm:$0xff] %v11274_v10  ;;  %v11284_v49 = vpop.f32.mrb[156].mxu0 }
 0x391   :  { %v3948_v50 = vsub.f32 1.0, %v14181_v31  ;;  %v11270_v13 = vadd.f32 %v4104_v20, %v11055_v2  ;;  %v4315_v28 = vmul.f32 1.442695, %v4305_v40  ;;  %v4306_v4 = vmul.f32 %v14182_v16, %v4266_v55  ;;  %v11276_v0 = vpop.eup %7735  ;;  %14185 = vst [vmem:[#allocation134_spill] sm:$0xff] %v11284_v49  ;;  %v14186_v55 = vld [vmem:[#allocation55_spill] sm:$0xff]  ;;  %v14285_v49 = vld [vmem:[#allocation86_spill] sm:$0xff] }
 0x392   :  { %4118 = vperm.xlu0 %7416, %v4104_v20   ;;  %v14184_v27 = vsub.f32 1.0, %v11131_v36  ;;  %v4007_v11 = vadd.f32 1.0, %v7732_v23  ;;  %v4264_v51 = vsub.f32 0.0, %v4208_v45  ;;  %v11282_v2 = vmul.f32 %v11190_v29, %v11074_v5  ;;  %v11287_v10 = vpop.eup %7737  ;;  %v11290_v23 = vpop.permute.xlu1 %6129 }
 0x393   :  { %v3955_v34 = vadd.f32 1e-10, %v3947_v52  ;;  %v3958_v40 = vadd.f32 1e-10, %v3950_v62  ;;  %7749 = vpow2.f32 %v6694_v60  ;;  %v4303_v16 = vmul.f32 %v14186_v55, %v4263_v15  ;;  %14187 = vst [vmem:[#allocation55_spill] sm:$0xff] %v11290_v23  ;;  %v11299_v62 = vpop.f32.mrb[157].mxu0 }
 0x394   :  { %v4177_v31 = vsub.f32 1.0, %v14184_v27  ;;  %v3956_v20 = vadd.f32 1e-10, %v3948_v50  ;;  %v4010_v63 = vadd.f32 1.0, %v7734_v54  ;;  %7751 = vpow2.f32 %v6697_v9  ;;  %14189 = vst [vmem:[#allocation135_spill] sm:$0xff] %v11299_v62  ;;  %v11301_v60 = vpop.eup %7739  ;;  %v14191_v54 = vld [vmem:[#allocation39_spill] sm:$0xff] }
 0x395   :  { %v4213_v36 = vmax.f32 %v11267_v41, 0.0  ;;  %7753 = vpow2.f32 %v4315_v28  ;;  %v4317_v45 = vmul.f32 1.442695, %v4306_v4  ;;  %v11294_v5 = vadd.f32 %v10957_v38, %v10376_v6  ;;  %14190 = vst [vmem:[#allocation136_spill] sm:$0xff] %v11301_v60  ;;  %v11305_v28 = vpop.f32.mrb[158].mxu0  ;;  %v14193_v55 = vld [vmem:[#allocation89_spill] sm:$0xff] }
 0x396   :  { %v14188_v29 = vsub.f32 1.0, %v11248_v47  ;;  %v4185_v50 = vadd.f32 1e-10, %v4177_v31  ;;  %7755 = vrcp.f32 %v4007_v11  ;;  %v4304_v9 = vmul.f32 %v14191_v54, %v4264_v51  ;;  %14192 = vst [vmem:[#allocation39_spill] sm:$0xff] %v11305_v28  ;;  %v7742_v4 = vpop.eup %7741  ;;  %v11315_v31 = vpop.permute.xlu0 %5685 }
 0x397   :  { %v4311_v27 = vmul.f32 1.442695, %v4303_v16  ;;  %v11310_v23 = vadd.f32 %v10957_v38, %v14193_v55  ;;  %14194 = vst [vmem:[#allocation89_spill] sm:$0xff] %v11315_v31  ;;  %v11317_v11 = vpop.f32.mrb[159].mxu0  ;;  %v7744_v15 = vpop.eup %7743  ;;  %7757 = vrcp.f32 %v4010_v63  ;;  %v6695_v51 = vmul.f32 -1.442695, %v11109_v58 }
 0x398   :  { %v4109_v52 = vmul.f32 %v14188_v29, %v11282_v2  ;;  %14195 = vst [vmem:[#allocation137_spill] sm:$0xff] %v11317_v11  ;;  %v6700_v54 = vmul.f32 -1.442695, %v11157_v59  ;;  %v4269_v6 = vsub.f32 0.0, %v4213_v36  ;;  %v11321_v16 = vpop.eup %7745  ;;  %7759 = vpow2.f32 %v4317_v45  ;;  %v14197_v58 = vld [vmem:[#allocation10_spill] sm:$0xff]  ;;  %v11338_v45 = vpop.permute.xlu1 %5683 }
 0x399   :  { %v4214_v55 = vmax.f32 %v11294_v5, 0.0  ;;  %v14196_v60 = vsub.f32 1.0, %v11174_v42  ;;  %v4008_v63 = vadd.f32 1.0, %v7742_v4  ;;  %v4313_v11 = vmul.f32 1.442695, %v4304_v9  ;;  %14199 = vst [vmem:[#allocation138_spill] sm:$0xff] %v11338_v45 }
 0x39a   :  { %v11313_v29 = vadd.f32 %v4109_v52, %v11097_v48  ;;  %4143 = vperm.xlu1 %7415, %v4109_v52   ;;  %v11325_v48 = vmul.f32 %v3958_v40, %v11100_v35  ;;  %v11328_v52 = vmul.f32 %v3955_v34, %v11103_v12  ;;  %v11334_v59 = vadd.f32 %v10957_v38, %v14197_v58  ;;  %v11336_v36 = vpop.eup %7747  ;;  %v14202_v4 = vld [vmem:[#allocation72_spill] sm:$0xff] }
 0x39b   :  { %v4175_v31 = vsub.f32 1.0, %v14196_v60  ;;  %14198 = vst [vmem:[#allocation10_spill] sm:$0xff] %v11336_v36  ;;  %7761 = vpow2.f32 %v4311_v27  ;;  %v4211_v35 = vmax.f32 %v11310_v23, 0.0  ;;  %v14200_v12 = vsub.f32 1.0, %v11287_v10 }
 0x39c   :  { %v14201_v42 = vsub.f32 1.0, %v11276_v0  ;;  %v4013_v60 = vadd.f32 1.0, %v7744_v15  ;;  %7763 = vpow2.f32 %v6695_v51  ;;  %v13827_v9 = vsub.f32 1.0, %v11321_v16 }
 0x39d   :  { %v4110_v34 = vmul.f32 %v14200_v12, %v11325_v48  ;;  %v4309_v58 = vmul.f32 %v14202_v4, %v4269_v6  ;;  %v7750_v36 = vpop.eup %7749  ;;  %7765 = vpow2.f32 %v6700_v54  ;;  %v4270_v27 = vsub.f32 0.0, %v4214_v55  ;;  %v11355_v12 = vpop.permute.xlu0 %6133 }
 0x39e   :  { %v4107_v40 = vmul.f32 %v14201_v42, %v11328_v52  ;;  %14203 = vst [vmem:[#allocation72_spill] sm:$0xff] %v11355_v12  ;;  %v7752_v42 = vpop.eup %7751  ;;  %v6698_v15 = vmul.f32 -1.442695, %v11200_v57  ;;  %7767 = vpow2.f32 %v4313_v11  ;;  %v4212_v51 = vmax.f32 %v11334_v59, 0.0 }
 0x39f   :  { %v11350_v45 = vadd.f32 %v4110_v34, %v11126_v1  ;;  %4148 = vperm.xlu0 %7416, %v4110_v34   ;;  %v11360_v6 = vmul.f32 %v3956_v20, %v11134_v61  ;;  %v11362_v54 = vpop.eup %7753  ;;  %v14204_v1 = vsub.f32 1.0, %v11172_v37  ;;  %7769 = vrcp.f32 %v4008_v63  ;;  %v14207_v63 = vld [vmem:[#allocation57_spill] sm:$0xff] }
 0x3a0   :  { %v11353_v28 = vadd.f32 %v4107_v40, %v11129_v8  ;;  %4133 = vperm.xlu1 %7415, %v4107_v40   ;;  %v6701_v8 = vmul.f32 -1.442695, %v11179_v21  ;;  %v4267_v34 = vsub.f32 0.0, %v4211_v35  ;;  %v11367_v40 = vpop.eup %7755  ;;  %v14206_v4 = vsub.f32 1.0, %v11194_v53  ;;  %v11378_v21 = vpop.permute.xlu1 %6131 }
 0x3a1   :  { %v4178_v55 = vsub.f32 1.0, %v14204_v1  ;;  %14205 = vst [vmem:[#allocation139_spill] sm:$0xff] %v11367_v40  ;;  %v4323_v11 = vmul.f32 1.442695, %v4309_v58  ;;  %v4108_v61 = vmul.f32 %v13827_v9, %v11360_v6  ;;  %v11375_v20 = vmul.f32 %v4185_v50, %v11170_v39  ;;  %14208 = vst [vmem:[#allocation57_spill] sm:$0xff] %v11378_v21  ;;  %v11380_v35 = vpop.eup %7757  ;;  %v14216_v40 = vld [vmem:[#allocation97_spill] sm:$0xff] }
 0x3a2   :  { %v4176_v57 = vsub.f32 1.0, %v14206_v4  ;;  %7771 = vrcp.f32 %v4013_v60  ;;  %v4011_v37 = vadd.f32 1.0, %v7750_v36  ;;  %v4014_v1 = vadd.f32 1.0, %v7752_v42  ;;  %14209 = vst [vmem:[#allocation140_spill] sm:$0xff] %v11380_v35  ;;  %v11386_v9 = vpop.eup %7759  ;;  %v14211_v36 = vld [vmem:[#allocation66_spill] sm:$0xff] }
 0x3a3   :  { %v4310_v12 = vmul.f32 %v14207_v63, %v4270_v27  ;;  %7773 = vpow2.f32 %v6698_v15  ;;  %v4268_v58 = vsub.f32 0.0, %v4212_v51  ;;  %v11384_v4 = vadd.f32 %v4108_v61, %v11162_v22  ;;  %4138 = vperm.xlu0 %7416, %v4108_v61   ;;  %v14212_v27 = vld [vmem:[#allocation94_spill] sm:$0xff]  ;;  %v11395_v63 = vpop.permute.xlu0 %6135  ;;  %v11397_v15 = vpop.f32.mrb[160].mxu0 }
 0x3a4   :  { %v14210_v39 = vsub.f32 1.0, %v11248_v47  ;;  %7775 = vpow2.f32 %v6701_v8  ;;  %v4307_v60 = vmul.f32 %v14211_v36, %v4267_v34  ;;  %v11393_v42 = vadd.f32 %v10957_v38, %v14212_v27  ;;  %14213 = vst [vmem:[#allocation66_spill] sm:$0xff] %v11395_v63  ;;  %14214 = vst [vmem:[#allocation94_spill] sm:$0xff] %v11397_v15  ;;  %v14215_v36 = vld [vmem:[#allocation51_spill] sm:$0xff] }
 0x3a5   :  { %v4186_v51 = vadd.f32 1e-10, %v4178_v55  ;;  %v6699_v22 = vmul.f32 -1.442695, %v11224_v25  ;;  %7777 = vpow2.f32 %v4323_v11  ;;  %v11400_v61 = vpop.eup %7761  ;;  %v4183_v53 = vadd.f32 1e-10, %v4175_v31 }
 0x3a6   :  { %v4181_v50 = vsub.f32 1.0, %v14210_v39  ;;  %v4184_v47 = vadd.f32 1e-10, %v4176_v57  ;;  %7779 = vrcp.f32 %v4011_v37  ;;  %v4325_v8 = vmul.f32 1.442695, %v4310_v12  ;;  %v7764_v39 = vpop.eup %7763  ;;  %v11413_v57 = vpop.permute.xlu1 %5915  ;;  %v14221_v34 = vld [vmem:[#allocation95_spill] sm:$0xff] }
 0x3a7   :  { %v4308_v27 = vmul.f32 %v14215_v36, %v4268_v58  ;;  %v11406_v35 = vadd.f32 %v10957_v38, %v14216_v40  ;;  %v14217_v55 = vsub.f32 1.0, %v11362_v54  ;;  %v7766_v11 = vpop.eup %7765  ;;  %7781 = vrcp.f32 %v4014_v1  ;;  %14218 = vst [vmem:[#allocation51_spill] sm:$0xff] %v11413_v57  ;;  %v11433_v58 = vpop.permute.xlu0 %6139 }
 0x3a8   :  { %v11411_v63 = vadd.f32 1e-10, %v4181_v50  ;;  %v4319_v31 = vmul.f32 1.442695, %v4307_v60  ;;  %v4441_v12 = vmax.f32 %v11393_v42, 0.0  ;;  %v11416_v37 = vpop.eup %7767  ;;  %7783 = vpow2.f32 %v6699_v22  ;;  %14222 = vst [vmem:[#allocation95_spill] sm:$0xff] %v11433_v58 }
 0x3a9   :  { %v4337_v25 = vmul.f32 %v14217_v55, %v11375_v20  ;;  %v11423_v36 = vmul.f32 %v4186_v51, %v11213_v33  ;;  %v11425_v50 = vpop.eup %7769  ;;  %v14220_v1 = vsub.f32 1.0, %v11276_v0  ;;  %v4012_v55 = vadd.f32 1.0, %v7764_v39  ;;  %v11435_v22 = vpop.f32.mrb[161].mxu0 }
 0x3aa   :  { %14219 = vst [vmem:[#allocation97_spill] sm:$0xff] %v11425_v50  ;;  %7785 = vpow2.f32 %v4325_v8  ;;  %v11431_v21 = vadd.f32 %v10957_v38, %v14221_v34  ;;  %14223 = vst [vmem:[#allocation141_spill] sm:$0xff] %v11435_v22  ;;  %v4442_v33 = vmax.f32 %v11406_v35, 0.0  ;;  %v14224_v51 = vsub.f32 1.0, %v11386_v9  ;;  %v11444_v8 = vpop.f32.mrb[162].mxu0 }
 0x3ab   :  { %v11420_v40 = vadd.f32 %v4337_v25, %v11203_v56  ;;  %4355 = vperm.xlu1 %7415, %v4337_v25   ;;  %v4179_v60 = vsub.f32 1.0, %v14220_v1  ;;  %v4321_v56 = vmul.f32 1.442695, %v4308_v27  ;;  %v11442_v0 = vmul.f32 %v4183_v53, %v11216_v14  ;;  %14225 = vst [vmem:[#allocation142_spill] sm:$0xff] %v11444_v8  ;;  %v11449_v58 = vpop.f32.mrb[163].mxu0  ;;  %v11484_v22 = vpop.permute.xlu0 %6353 }
 0x3ac   :  { %v4338_v25 = vmul.f32 %v14224_v51, %v11423_v36  ;;  %v11446_v39 = vpop.eup %7771  ;;  %v4241_v34 = vadd.f32 1.0, %v7766_v11  ;;  %7787 = vpow2.f32 %v4319_v31  ;;  %v4497_v50 = vsub.f32 0.0, %v4441_v12  ;;  %14227 = vst [vmem:[#allocation144_spill] sm:$0xff] %v11449_v58 }
 0x3ad   :  { %14226 = vst [vmem:[#allocation143_spill] sm:$0xff] %v11446_v39  ;;  %v7774_v27 = vpop.eup %7773  ;;  %v6704_v57 = vmul.f32 -1.442695, %v11267_v41  ;;  %v11454_v51 = vadd.f32 %v10957_v38, %v10479_v24  ;;  %v14228_v53 = vsub.f32 1.0, %v11400_v61  ;;  %v14229_v31 = vsub.f32 1.0, %v11287_v10  ;;  %v11465_v41 = vpop.permute.xlu1 %5917 }
 0x3ae   :  { %v11457_v14 = vadd.f32 %v4338_v25, %v11246_v7  ;;  %4360 = vperm.xlu0 %7416, %v4338_v25   ;;  %v7776_v1 = vpop.eup %7775  ;;  %7789 = vrcp.f32 %v4012_v55  ;;  %v4439_v39 = vmax.f32 %v11431_v21, 0.0  ;;  %14230 = vst [vmem:[#allocation145_spill] sm:$0xff] %v11465_v41  ;;  %v11468_v24 = vmul.f32 %v4184_v47, %v11240_v32 }
 0x3af   :  { %v4335_v11 = vmul.f32 %v14228_v53, %v11442_v0  ;;  %v4182_v12 = vsub.f32 1.0, %v14229_v31  ;;  %v11470_v58 = vpop.eup %7777  ;;  %v14231_v7 = vsub.f32 1.0, %v11321_v16  ;;  %7791 = vpow2.f32 %v4321_v56  ;;  %v14233_v31 = vld [vmem:[#allocation6_spill] sm:$0xff] }
 0x3b0   :  { %v4498_v8 = vsub.f32 0.0, %v4442_v33  ;;  %v11477_v10 = vpop.eup %7779  ;;  %7793 = vrcp.f32 %v4241_v34  ;;  %v6702_v55 = vmul.f32 -1.442695, %v11310_v23  ;;  %v4537_v41 = vmul.f32 %v14233_v31, %v4497_v50  ;;  %14235 = vst [vmem:[#allocation6_spill] sm:$0xff] %v11484_v22 }
 0x3b1   :  { %v4180_v25 = vsub.f32 1.0, %v14231_v7  ;;  %4345 = vperm.xlu1 %7415, %v4335_v11   ;;  %v11475_v53 = vadd.f32 %v4335_v11, %v11252_v17  ;;  %14232 = vst [vmem:[#allocation146_spill] sm:$0xff] %v11477_v10  ;;  %v14234_v32 = vsub.f32 1.0, %v11416_v37  ;;  %v4239_v16 = vadd.f32 1.0, %v7774_v27  ;;  %v11487_v17 = vpop.eup %7781  ;;  %v14238_v27 = vld [vmem:[#allocation69_spill] sm:$0xff]  ;;  %v14242_v10 = vld [vmem:[#allocation79_spill] sm:$0xff] }
 0x3b2   :  { %v4242_v56 = vadd.f32 1.0, %v7776_v1  ;;  %7795 = vpow2.f32 %v6704_v57  ;;  %v4440_v33 = vmax.f32 %v11454_v51, 0.0  ;;  %14236 = vst [vmem:[#allocation147_spill] sm:$0xff] %v11487_v17  ;;  %v14237_v11 = vsub.f32 1.0, %v11362_v54  ;;  %v7784_v31 = vpop.eup %7783 }
 0x3b3   :  { %v4336_v47 = vmul.f32 %v14234_v32, %v11468_v24  ;;  %v4495_v7 = vsub.f32 0.0, %v4439_v39  ;;  %v6705_v32 = vmul.f32 -1.442695, %v11294_v5  ;;  %v4538_v1 = vmul.f32 %v14238_v27, %v4498_v8 }
 0x3b4   :  { %v4409_v34 = vsub.f32 1.0, %v14237_v11  ;;  %v11499_v57 = vadd.f32 %v10957_v38, %v10558_v18  ;;  %v11503_v54 = vmul.f32 %v11411_v63, %v11282_v2  ;;  %v11505_v11 = vpop.eup %7785  ;;  %v4187_v5 = vadd.f32 1e-10, %v4179_v60  ;;  %v11515_v2 = vpop.f32.mrb[164].mxu0 }
 0x3b5   :  { %v11493_v50 = vadd.f32 %v4336_v47, %v11270_v13  ;;  %4350 = vperm.xlu0 %7416, %v4336_v47   ;;  %v8213_v13 = vld [vmem:[%s13811_s1] sm:$0xff]  ;;  %7797 = vpow2.f32 %v6702_v55  ;;  %v4547_v8 = vmul.f32 1.442695, %v4537_v41  ;;  %v11513_v47 = vpop.permute.xlu1 %6137  ;;  %v4190_v18 = vadd.f32 1e-10, %v4182_v12  ;;  %14241 = vst [vmem:[#allocation149_spill] sm:$0xff] %v11515_v2  ;;  %v11524_v41 = vpop.permute.xlu0 %2729 }
 0x3b6   :  { %v11511_v39 = vsel %vm6319_vm2, %v8213_v13, 0.0  ;;  %14240 = vst [vmem:[#allocation148_spill] sm:$0xff] %v11513_v47  ;;  %v4188_v27 = vadd.f32 1e-10, %v4180_v25  ;;  %7799 = vrcp.f32 %v4239_v16  ;;  %v4496_v23 = vsub.f32 0.0, %v4440_v33  ;;  %v11517_v63 = vpop.eup %7787 }
 0x3b7   :  { %14239 = vst [vmem:[#allocation69_spill] sm:$0xff] %v11511_v39  ;;  %7801 = vrcp.f32 %v4242_v56  ;;  %v6703_v22 = vmul.f32 -1.442695, %v11334_v59  ;;  %v4535_v17 = vmul.f32 %v14242_v10, %v4495_v7  ;;  %v14243_v60 = vsub.f32 1.0, %v11470_v58 }
 0x3b8   :  { %v11526_v13 = vadd.f32 1e-10, %v4409_v34  ;;  %7803 = vpow2.f32 %v6705_v32  ;;  %v4549_v12 = vmul.f32 1.442695, %v4538_v1  ;;  %v4445_v25 = vmax.f32 %v11499_v57, 0.0  ;;  %v11529_v16 = vpop.eup %7789  ;;  %v14246_v1 = vld [vmem:[#allocation63_spill] sm:$0xff] }
 0x3b9   :  { %v4341_v55 = vmul.f32 %v14243_v60, %v11503_v54  ;;  %14244 = vst [vmem:[#allocation79_spill] sm:$0xff] %v11529_v16  ;;  %v14245_v56 = vsub.f32 1.0, %v11400_v61  ;;  %7805 = vpow2.f32 %v4547_v8  ;;  %v11537_v7 = vpop.eup %7791  ;;  %v4240_v34 = vadd.f32 1.0, %v7784_v31  ;;  %v14248_v8 = vld [vmem:[#allocation102_spill] sm:$0xff]  ;;  %v14257_v16 = vld [vmem:[#allocation88_spill] sm:$0xff] }
 0x3ba   :  { %v4536_v60 = vmul.f32 %v14246_v1, %v4496_v23  ;;  %v11543_v39 = vadd.f32 %v10957_v38, %v10596_v44  ;;  %v11545_v61 = vpop.eup %7793  ;;  %7807 = vpow2.f32 %v6703_v22  ;;  %v11554_v31 = vmul.f32 %v4190_v18, %v11325_v48  ;;  %v11569_v18 = vpop.permute.xlu0 %2744 }
 0x3bb   :  { %v4407_v33 = vsub.f32 1.0, %v14245_v56  ;;  %v11535_v10 = vadd.f32 %v4341_v55, %v11313_v29  ;;  %4375 = vperm.xlu1 %7415, %v4341_v55   ;;  %14247 = vst [vmem:[#allocation63_spill] sm:$0xff] %v11545_v61  ;;  %v4543_v56 = vmul.f32 1.442695, %v4535_v17  ;;  %v11549_v29 = vadd.f32 %v10957_v38, %v14248_v8  ;;  %v11551_v55 = vpop.permute.xlu1 %6141 }
 0x3bc   :  { %14249 = vst [vmem:[#allocation102_spill] sm:$0xff] %v11551_v55  ;;  %v7796_v32 = vpop.eup %7795  ;;  %v6708_v23 = vmul.f32 -1.442695, %v11393_v42  ;;  %7809 = vpow2.f32 %v4549_v12  ;;  %v4501_v1 = vsub.f32 0.0, %v4445_v25  ;;  %v11558_v44 = vmul.f32 %v4187_v5, %v11328_v52  ;;  %v14252_v25 = vld [vmem:[#allocation16_spill] sm:$0xff] }
 0x3bd   :  { %v14250_v22 = vsub.f32 1.0, %v11386_v9  ;;  %v14251_v8 = vsub.f32 1.0, %v11505_v11  ;;  %v11567_v48 = vmul.f32 %v4188_v27, %v11360_v6  ;;  %v4545_v42 = vmul.f32 1.442695, %v4536_v60 }
 0x3be   :  { %v4446_v12 = vmax.f32 %v11543_v39, 0.0  ;;  %v11574_v52 = vadd.f32 %v10957_v38, %v14252_v25  ;;  %v14253_v9 = vsub.f32 1.0, %v11517_v63  ;;  %7811 = vpow2.f32 %v4543_v56 }
 0x3bf   :  { %v4410_v17 = vsub.f32 1.0, %v14250_v22  ;;  %v4342_v61 = vmul.f32 %v14251_v8, %v11554_v31  ;;  %v11579_v22 = vpop.f32.mrb[165].mxu0  ;;  %v7798_v59 = vpop.eup %7797  ;;  %v6706_v8 = vmul.f32 -1.442695, %v11431_v21  ;;  %v4443_v6 = vmax.f32 %v11549_v29, 0.0 }
 0x3c0   :  { %v4339_v5 = vmul.f32 %v14253_v9, %v11558_v44  ;;  %14254 = vst [vmem:[#allocation16_spill] sm:$0xff] %v11579_v22  ;;  %v11586_v60 = vpop.permute.xlu1 %2739  ;;  %v11588_v38 = vpop.f32.mrb[166].mxu0  ;;  %7813 = vpow2.f32 %v6708_v23  ;;  %v6709_v9 = vmul.f32 -1.442695, %v11406_v35  ;;  %v4541_v47 = vmul.f32 %v14257_v16, %v4501_v1 }
 0x3c1   :  { %v11584_v27 = vadd.f32 %v4342_v61, %v11350_v45  ;;  %4380 = vperm.xlu0 %7416, %v4342_v61   ;;  %14255 = vst [vmem:[#allocation150_spill] sm:$0xff] %v11588_v38  ;;  %v11590_v25 = vpop.eup %7799  ;;  %v11597_v56 = vpop.f32.mrb[167].mxu0  ;;  %7815 = vrcp.f32 %v4240_v34  ;;  %v14260_v61 = vsub.f32 1.0, %v11416_v37  ;;  %v4245_v38 = vadd.f32 1.0, %v7796_v32 }
 0x3c2   :  { %14256 = vst [vmem:[#allocation151_spill] sm:$0xff] %v11590_v25  ;;  %v11595_v21 = vadd.f32 %v4339_v5, %v11353_v28  ;;  %4365 = vperm.xlu1 %7415, %v4339_v5   ;;  %14258 = vst [vmem:[#allocation88_spill] sm:$0xff] %v11597_v56  ;;  %v11599_v45 = vpop.eup %7801  ;;  %v14261_v23 = vsub.f32 1.0, %v11537_v7  ;;  %v4243_v22 = vadd.f32 1.0, %v7798_v59  ;;  %7817 = vpow2.f32 %v4545_v42  ;;  %v11613_v32 = vpop.permute.xlu0 %2764 }
 0x3c3   :  { %14259 = vst [vmem:[#allocation152_spill] sm:$0xff] %v11599_v45  ;;  %v4408_v55 = vsub.f32 1.0, %v14260_v61  ;;  %v7804_v35 = vpop.eup %7803  ;;  %v4502_v16 = vsub.f32 0.0, %v4446_v12  ;;  %v4444_v28 = vmax.f32 %v11574_v52, 0.0  ;;  %7819 = vpow2.f32 %v6706_v8 }
 0x3c4   :  { %v4340_v25 = vmul.f32 %v14261_v23, %v11567_v48  ;;  %v11607_v1 = vpop.eup %7805  ;;  %v6707_v5 = vmul.f32 -1.442695, %v11454_v51  ;;  %v4499_v34 = vsub.f32 0.0, %v4443_v6  ;;  %v4415_v61 = vadd.f32 1e-10, %v4407_v33  ;;  %v11619_v51 = vpop.permute.xlu1 %2734 }
 0x3c5   :  { %v14262_v23 = vsub.f32 1.0, %v11470_v58  ;;  %7821 = vpow2.f32 %v6709_v9  ;;  %v4555_v42 = vmul.f32 1.442695, %v4541_v47  ;;  %v7808_v12 = vpop.eup %7807  ;;  %v4418_v45 = vadd.f32 1e-10, %v4410_v17  ;;  %v14264_v47 = vld [vmem:[#allocation84_spill] sm:$0xff] }
 0x3c6   :  { %v11611_v37 = vadd.f32 %v4340_v25, %v11384_v4  ;;  %4370 = vperm.xlu0 %7416, %v4340_v25   ;;  %v11617_v56 = vadd.f32 1e-10, %v4408_v55  ;;  %7823 = vrcp.f32 %v4245_v38  ;;  %v4246_v8 = vadd.f32 1.0, %v7804_v35  ;;  %v11621_v6 = vpop.eup %7809  ;;  %v14263_v25 = vld [vmem:[#allocation80_spill] sm:$0xff] }
 0x3c7   :  { %v4413_v59 = vsub.f32 1.0, %v14262_v23  ;;  %7825 = vrcp.f32 %v4243_v22  ;;  %v13828_v4 = vsub.f32 1.0, %v11607_v1  ;;  %v4542_v33 = vmul.f32 %v14263_v25, %v4502_v16  ;;  %v11630_v55 = vld [vmem:[%s13817_s7] ss:$0 sm:$0xff] }
 0x3c8   :  { %v4500_v2 = vsub.f32 0.0, %v4444_v28  ;;  %7827 = vpow2.f32 %v6707_v5  ;;  %v6712_v58 = vmul.f32 -1.442695, %v11499_v57  ;;  %v4539_v9 = vmul.f32 %v14264_v47, %v4499_v34  ;;  %v11643_v57 = vpop.eup %7811  ;;  %v11647_v34 = vpop.permute.xlu0 %2754  ;;  %v14270_v28 = vld [vmem:[#allocation106_spill] sm:$0xff] }
 0x3c9   :  { %v11634_v17 = vadd.f32 %v11630_v55, %v10679_v43  ;;  %v11636_v22 = vadd.f32 1e-10, %v4413_v59  ;;  %7829 = vpow2.f32 %v4555_v42  ;;  %v6710_v38 = vmul.f32 -1.442695, %v11549_v29  ;;  %14265 = vst [vmem:[#allocation80_spill] sm:$0xff] %v11647_v34  ;;  %v11649_v43 = vpop.f32.mrb[168].mxu0 }
 0x3ca   :  { %v11641_v35 = vmul.f32 %v11526_v13, %v11375_v20  ;;  %7831 = vrcp.f32 %v4246_v8  ;;  %v4244_v16 = vadd.f32 1.0, %v7808_v12  ;;  %v6713_v5 = vmul.f32 -1.442695, %v11543_v39  ;;  %14266 = vst [vmem:[#allocation84_spill] sm:$0xff] %v11649_v43  ;;  %v7814_v23 = vpop.eup %7813  ;;  %v14267_v42 = vld [vmem:[#allocation76_spill] sm:$0xff] }
 0x3cb   :  { %v4557_v59 = vmul.f32 1.442695, %v4542_v33  ;;  %v4540_v29 = vmul.f32 %v14267_v42, %v4500_v2  ;;  %v11654_v20 = vadd.f32 %v11630_v55, %v10698_v19  ;;  %v11659_v12 = vpop.eup %7815  ;;  %7833 = vpow2.f32 %v6712_v58  ;;  %v11665_v33 = vpop.permute.xlu1 %2759 }
 0x3cc   :  { %v4569_v13 = vmul.f32 %v13828_v4, %v11641_v35  ;;  %14268 = vst [vmem:[#allocation76_spill] sm:$0xff] %v11659_v12  ;;  %v4551_v39 = vmul.f32 1.442695, %v4539_v9  ;;  %v4673_v8 = vmax.f32 %v11634_v17, 0.0  ;;  %v11663_v25 = vmul.f32 %v4418_v45, %v11423_v36  ;;  %v11667_v2 = vpop.eup %7817 }
 0x3cd   :  { %v14269_v19 = vsub.f32 1.0, %v11517_v63  ;;  %7835 = vpow2.f32 %v6710_v38  ;;  %v7820_v58 = vpop.eup %7819  ;;  %v4473_v9 = vadd.f32 1.0, %v7814_v23  ;;  %v11677_v36 = vadd.f32 %v11630_v55, %v14270_v28  ;;  %v11682_v63 = vpop.permute.xlu0 %2968 }
 0x3ce   :  { %v11673_v4 = vadd.f32 %v4569_v13, %v11420_v40  ;;  %4587 = vperm.xlu1 %7415, %v4569_v13   ;;  %7837 = vpow2.f32 %v6713_v5  ;;  %v14271_v45 = vsub.f32 1.0, %v11621_v6  ;;  %v4553_v38 = vmul.f32 1.442695, %v4540_v29  ;;  %v11688_v23 = vpop.f32.mrb[169].mxu0 }
 0x3cf   :  { %v4411_v47 = vsub.f32 1.0, %v14269_v19  ;;  %v7822_v19 = vpop.eup %7821  ;;  %7839 = vpow2.f32 %v4557_v59  ;;  %v4674_v40 = vmax.f32 %v11654_v20, 0.0  ;;  %v11686_v13 = vmul.f32 %v4415_v61, %v11442_v0  ;;  %14272 = vst [vmem:[#allocation106_spill] sm:$0xff] %v11688_v23  ;;  %v11696_v43 = vpop.f32.mrb[170].mxu0  ;;  %v14279_v23 = vld [vmem:[#allocation56_spill] sm:$0xff] }
 0x3d0   :  { %v4570_v12 = vmul.f32 %v14271_v45, %v11663_v25  ;;  %v11690_v5 = vpop.eup %7823  ;;  %7841 = vpow2.f32 %v4551_v39  ;;  %v4729_v42 = vsub.f32 0.0, %v4673_v8  ;;  %14274 = vst [vmem:[#allocation154_spill] sm:$0xff] %v11696_v43  ;;  %v4471_v29 = vadd.f32 1.0, %v7820_v58  ;;  %v11732_v15 = vpop.f32.mrb[171].mxu0 }
 0x3d1   :  { %14273 = vst [vmem:[#allocation153_spill] sm:$0xff] %v11690_v5  ;;  %v11698_v59 = vpop.eup %7825  ;;  %7843 = vrcp.f32 %v4244_v16  ;;  %v14276_v0 = vsub.f32 1.0, %v11643_v57  ;;  %v11705_v5 = vmul.f32 %v11617_v56, %v11468_v24  ;;  %v14277_v8 = vsub.f32 1.0, %v11505_v11  ;;  %v11712_v16 = vpop.permute.xlu1 %2749 }
 0x3d2   :  { %v11694_v45 = vadd.f32 %v4570_v12, %v11457_v14  ;;  %4592 = vperm.xlu0 %7416, %v4570_v12   ;;  %14275 = vst [vmem:[#allocation155_spill] sm:$0xff] %v11698_v59  ;;  %v7828_v39 = vpop.eup %7827  ;;  %v14278_v12 = vsub.f32 1.0, %v11537_v7  ;;  %v4474_v43 = vadd.f32 1.0, %v7822_v19  ;;  %v4671_v59 = vmax.f32 %v11677_v36, 0.0  ;;  %v14281_v19 = vld [vmem:[#allocation93_spill] sm:$0xff] }
 0x3d3   :  { %v4567_v61 = vmul.f32 %v14276_v0, %v11686_v13  ;;  %v4414_v14 = vsub.f32 1.0, %v14277_v8  ;;  %v11714_v58 = vpop.eup %7829  ;;  %7845 = vpow2.f32 %v4553_v38  ;;  %v4730_v0 = vsub.f32 0.0, %v4674_v40  ;;  %v11730_v40 = vpop.permute.xlu0 %2958  ;;  %14283 = vst [vmem:[#allocation93_spill] sm:$0xff] %v11732_v15 }
 0x3d4   :  { %v4412_v28 = vsub.f32 1.0, %v14278_v12  ;;  %v11718_v24 = vadd.f32 %v11630_v55, %v14279_v23  ;;  %v11723_v56 = vpop.eup %7831  ;;  %7847 = vrcp.f32 %v4473_v9  ;;  %v6711_v7 = vmul.f32 -1.442695, %v11574_v52 }
 0x3d5   :  { %4577 = vperm.xlu1 %7415, %v4567_v61   ;;  %v11721_v11 = vadd.f32 %v4567_v61, %v11475_v53  ;;  %14280 = vst [vmem:[#allocation56_spill] sm:$0xff] %v11723_v56  ;;  %v4769_v8 = vmul.f32 %v14281_v19, %v4729_v42  ;;  %v14282_v12 = vsub.f32 1.0, %v11667_v2  ;;  %v4419_v23 = vadd.f32 1e-10, %v4411_v47  ;;  %v7834_v56 = vpop.eup %7833  ;;  %v11740_v19 = vpop.permute.xlu1 %2963 }
 0x3d6   :  { %v14284_v62 = vsub.f32 1.0, %v11607_v1  ;;  %7849 = vrcp.f32 %v4471_v29  ;;  %v4472_v61 = vadd.f32 1.0, %v7828_v39  ;;  %v4422_v9 = vadd.f32 1e-10, %v4414_v14 }
 0x3d7   :  { %v4568_v38 = vmul.f32 %v14282_v12, %v11705_v5  ;;  %7851 = vrcp.f32 %v4474_v43  ;;  %v7836_v12 = vpop.eup %7835  ;;  %v6716_v15 = vmul.f32 -1.442695, %v11634_v17  ;;  %v4727_v47 = vsub.f32 0.0, %v4671_v59 }
 0x3d8   :  { %v4641_v53 = vsub.f32 1.0, %v14284_v62  ;;  %v4770_v1 = vmul.f32 %v14285_v49, %v4730_v0  ;;  %v4672_v62 = vmax.f32 %v11718_v24, 0.0  ;;  %v7838_v29 = vpop.eup %7837  ;;  %v4420_v39 = vadd.f32 1e-10, %v4412_v28 }
 0x3d9   :  { %v11738_v42 = vadd.f32 %v4568_v38, %v11493_v50  ;;  %4582 = vperm.xlu0 %7416, %v4568_v38   ;;  %7853 = vpow2.f32 %v6711_v7  ;;  %v4779_v43 = vmul.f32 1.442695, %v4769_v8  ;;  %v11747_v14 = vmul.f32 %v11636_v22, %v11503_v54  ;;  %v11749_v50 = vpop.eup %7839  ;;  %v14287_v7 = vld [vmem:[#allocation29_spill] sm:$0xff] }
 0x3da   :  { %v11751_v38 = vadd.f32 1e-10, %v4641_v53  ;;  %v14286_v52 = vsub.f32 1.0, %v11643_v57  ;;  %7855 = vrcp.f32 %v4472_v61  ;;  %v4477_v59 = vadd.f32 1.0, %v7834_v56  ;;  %v11755_v49 = vpop.eup %7841  ;;  %v11765_v53 = vpop.permute.xlu0 %2988  ;;  %v14290_v57 = vld [vmem:[#allocation90_spill] sm:$0xff] }
 0x3db   :  { %v4475_v0 = vadd.f32 1.0, %v7836_v12  ;;  %v6714_v28 = vmul.f32 -1.442695, %v11677_v36  ;;  %v11760_v8 = vadd.f32 %v11630_v55, %v14287_v7  ;;  %v14288_v54 = vsub.f32 1.0, %v11714_v58  ;;  %v11767_v26 = vpop.eup %7843  ;;  %v14291_v36 = vld [vmem:[#allocation113_spill] sm:$0xff] }
 0x3dc   :  { %v4639_v17 = vsub.f32 1.0, %v14286_v52  ;;  %14289 = vst [vmem:[#allocation86_spill] sm:$0xff] %v11767_v26  ;;  %7857 = vpow2.f32 %v6716_v15  ;;  %v4767_v56 = vmul.f32 %v14290_v57, %v4727_v47  ;;  %v4781_v61 = vmul.f32 1.442695, %v4770_v1  ;;  %v14293_v57 = vld [vmem:[#allocation110_spill] sm:$0xff] }
 0x3dd   :  { %v4573_v22 = vmul.f32 %v14288_v54, %v11747_v14  ;;  %v4728_v52 = vsub.f32 0.0, %v4672_v62  ;;  %7859 = vpow2.f32 %v4779_v43  ;;  %v11773_v7 = vadd.f32 %v11630_v55, %v14291_v36  ;;  %v11778_v54 = vpop.permute.xlu1 %2953  ;;  %v11780_v34 = vpop.eup %7845 }
 0x3de   :  { %v11782_v15 = vadd.f32 1e-10, %v4639_v17  ;;  %7861 = vrcp.f32 %v4477_v59  ;;  %v4478_v1 = vadd.f32 1.0, %v7838_v29  ;;  %v11785_v62 = vpop.eup %7847  ;;  %v4677_v43 = vmax.f32 %v11760_v8, 0.0  ;;  %v14295_v59 = vld [vmem:[#allocation81_spill] sm:$0xff] }
 0x3df   :  { %v11776_v30 = vadd.f32 %v4573_v22, %v11535_v10  ;;  %4607 = vperm.xlu1 %7415, %v4573_v22   ;;  %14292 = vst [vmem:[#allocation29_spill] sm:$0xff] %v11785_v62  ;;  %7863 = vpow2.f32 %v6714_v28  ;;  %v11790_v10 = vadd.f32 %v11630_v55, %v14293_v57  ;;  %v11793_v22 = vmul.f32 %v4422_v9, %v11554_v31  ;;  %v11808_v62 = vpop.permute.xlu0 %2978 }
 0x3e0   :  { %v11795_v36 = vpop.eup %7849  ;;  %v4775_v17 = vmul.f32 1.442695, %v4767_v56  ;;  %7865 = vpow2.f32 %v4781_v61  ;;  %v4768_v12 = vmul.f32 %v14295_v59, %v4728_v52  ;;  %v11799_v29 = vmul.f32 %v4419_v23, %v11558_v44  ;;  %14298 = vst [vmem:[#allocation110_spill] sm:$0xff] %v11808_v62  ;;  %v11810_v56 = vpop.f32.mrb[172].mxu0 }
 0x3e1   :  { %14294 = vst [vmem:[#allocation90_spill] sm:$0xff] %v11795_v36  ;;  %v11801_v47 = vpop.eup %7851  ;;  %7867 = vrcp.f32 %v4475_v0  ;;  %v4678_v57 = vmax.f32 %v11773_v7, 0.0  ;;  %v14297_v31 = vsub.f32 1.0, %v11749_v50  ;;  %14299 = vst [vmem:[#allocation81_spill] sm:$0xff] %v11810_v56  ;;  %v14300_v61 = vsub.f32 1.0, %v11621_v6  ;;  %v11828_v6 = vpop.permute.xlu1 %2983 }
 0x3e2   :  { %14296 = vst [vmem:[#allocation113_spill] sm:$0xff] %v11801_v47  ;;  %7869 = vrcp.f32 %v4478_v1  ;;  %v14301_v44 = vsub.f32 1.0, %v11755_v49  ;;  %v11818_v0 = vmul.f32 %v4420_v39, %v11567_v48  ;;  %v4733_v28 = vsub.f32 0.0, %v4677_v43  ;;  %v11830_v1 = vpop.f32.mrb[173].mxu0 }
 0x3e3   :  { %v4574_v9 = vmul.f32 %v14297_v31, %v11793_v22  ;;  %v4642_v52 = vsub.f32 1.0, %v14300_v61  ;;  %v7854_v59 = vpop.eup %7853  ;;  %v4675_v36 = vmax.f32 %v11790_v10, 0.0  ;;  %v14302_v31 = vld [vmem:[#allocation65_spill] sm:$0xff]  ;;  %14304 = vst [vmem:[#allocation156_spill] sm:$0xff] %v11830_v1  ;;  %v14306_v48 = vsub.f32 1.0, %v11667_v2 }
 0x3e4   :  { %v4571_v23 = vmul.f32 %v14301_v44, %v11799_v29  ;;  %v11823_v47 = vadd.f32 %v11630_v55, %v14302_v31  ;;  %v11832_v61 = vpop.eup %7855  ;;  %7871 = vpow2.f32 %v4775_v17  ;;  %v4777_v43 = vmul.f32 1.442695, %v4768_v12  ;;  %v11839_v31 = vpop.f32.mrb[174].mxu0 }
 0x3e5   :  { %v11826_v26 = vadd.f32 %v4574_v9, %v11584_v27  ;;  %4612 = vperm.xlu0 %7416, %v4574_v9   ;;  %14305 = vst [vmem:[#allocation157_spill] sm:$0xff] %v11832_v61  ;;  %v4640_v39 = vsub.f32 1.0, %v14306_v48  ;;  %14308 = vst [vmem:[#allocation159_spill] sm:$0xff] %v11839_v31  ;;  %v14309_v27 = vsub.f32 1.0, %v11714_v58  ;;  %v6717_v56 = vmul.f32 -1.442695, %v11654_v20 }
 0x3e6   :  { %v11837_v44 = vadd.f32 %v4571_v23, %v11595_v21  ;;  %4597 = vperm.xlu1 %7415, %v4571_v23   ;;  %v14310_v61 = vsub.f32 1.0, %v11780_v34  ;;  %v7858_v2 = vpop.eup %7857  ;;  %v4476_v48 = vadd.f32 1.0, %v7854_v59  ;;  %v6715_v12 = vmul.f32 -1.442695, %v11718_v24  ;;  %v14311_v21 = vld [vmem:[#allocation42_spill] sm:$0xff]  ;;  %v14312_v23 = vld [vmem:[#allocation61_spill] sm:$0xff]  ;;  %v11859_v59 = vpop.permute.xlu0 %3200 }
 0x3e7   :  { %14303 = vst [vmem:[#allocation65_spill] sm:$0xff] %v11826_v26  ;;  %v4645_v9 = vsub.f32 1.0, %v14309_v27  ;;  %v4734_v26 = vsub.f32 0.0, %v4678_v57  ;;  %v2769_v17 = vmul.f32 %v14311_v21, %v11586_v60  ;;  %v2993_v31 = vmul.f32 %v14312_v23, %v11740_v19  ;;  %v14313_v58 = vld [vmem:[#allocation11_spill] sm:$0xff]  ;;  %14314 = vst [vmem:[#allocation42_spill] sm:$0xff] %v11859_v59  ;;  %v11861_v24 = vpop.f32.mrb[175].mxu0 }
 0x3e8   :  { %14307 = vst [vmem:[#allocation158_spill] sm:$0xff] %v11837_v44  ;;  %v4572_v1 = vmul.f32 %v14310_v61, %v11818_v0  ;;  %v11852_v44 = vpop.eup %7859  ;;  %v4773_v27 = vmul.f32 %v14313_v58, %v4733_v28  ;;  %v4731_v20 = vsub.f32 0.0, %v4675_v36  ;;  %v4676_v57 = vmax.f32 %v11823_v47, 0.0  ;;  %14315 = vst [vmem:[#allocation61_spill] sm:$0xff] %v11861_v24 }
 0x3e9   :  { %v11863_v61 = vpop.eup %7861  ;;  %v4650_v60 = vadd.f32 1e-10, %v4642_v52  ;;  %7873 = vpow2.f32 %v4777_v43  ;;  %v6720_v19 = vmul.f32 -1.442695, %v11760_v8  ;;  %v11866_v21 = vadd.f32 %v2993_v31, %v2769_v17 }
 0x3ea   :  { %v11857_v62 = vadd.f32 %v4572_v1, %v11611_v37  ;;  %4602 = vperm.xlu0 %7416, %v4572_v1   ;;  %14316 = vst [vmem:[#allocation11_spill] sm:$0xff] %v11863_v61  ;;  %v7864_v28 = vpop.eup %7863  ;;  %v11868_v36 = vadd.f32 1e-10, %v4640_v39  ;;  %v4705_v23 = vadd.f32 1.0, %v7858_v2  ;;  %7875 = vpow2.f32 %v6717_v56  ;;  %v14317_v37 = vld [vmem:[#allocation91_spill] sm:$0xff]  ;;  %v11871_v1 = vpop.permute.xlu1 %2973  ;;  %v14320_v56 = vld [vmem:[#allocation13_spill] sm:$0xff] }
 0x3eb   :  { %v4774_v58 = vmul.f32 %v14317_v37, %v4734_v26  ;;  %v11873_v59 = vpop.eup %7865  ;;  %v11875_v24 = vadd.f32 1e-10, %v4645_v9  ;;  %v14318_v52 = vsub.f32 1.0, %v11755_v49  ;;  %7877 = vpow2.f32 %v6715_v12  ;;  %v14323_v49 = vld [vmem:[#allocation44_spill] sm:$0xff] }
 0x3ec   :  { %v11882_v31 = vpop.eup %7867  ;;  %7879 = vrcp.f32 %v4476_v48  ;;  %v4787_v39 = vmul.f32 1.442695, %v4773_v27  ;;  %v4771_v2 = vmul.f32 %v14320_v56, %v4731_v20  ;;  %v4732_v26 = vsub.f32 0.0, %v4676_v57  ;;  %v11898_v57 = vpop.permute.xlu0 %3190  ;;  %v14329_v27 = vld [vmem:[#allocation9_spill] sm:$0xff] }
 0x3ed   :  { %v11879_v43 = vsub.f32 1.0, %v14318_v52  ;;  %14319 = vst [vmem:[#allocation91_spill] sm:$0xff] %v11882_v31  ;;  %v11885_v17 = vpop.eup %7869  ;;  %v14322_v37 = vsub.f32 1.0, %v11749_v50  ;;  %7881 = vpow2.f32 %v6720_v19  ;;  %v2767_v52 = vmul.f32 %v14323_v49, %v11524_v41  ;;  %v14324_v50 = vld [vmem:[#allocation45_spill] sm:$0xff] }
 0x3ee   :  { %14321 = vst [vmem:[#allocation13_spill] sm:$0xff] %v11885_v17  ;;  %v11895_v12 = vmul.f32 %v11751_v38, %v11641_v35  ;;  %7883 = vrcp.f32 %v4705_v23  ;;  %v4703_v48 = vadd.f32 1.0, %v7864_v28  ;;  %v4789_v20 = vmul.f32 1.442695, %v4774_v58  ;;  %v11900_v56 = vpop.eup %7871  ;;  %v14325_v19 = vld [vmem:[#allocation117_spill] sm:$0xff]  ;;  %v14327_v38 = vld [vmem:[#allocation75_spill] sm:$0xff] }
 0x3ef   :  { %v11889_v9 = vsub.f32 1.0, %v14322_v37  ;;  %v2770_v37 = vmul.f32 %v14324_v50, %v11569_v18  ;;  %v11906_v8 = vadd.f32 %v11630_v55, %v14325_v19  ;;  %v14326_v41 = vsub.f32 1.0, %v11852_v44  ;;  %v11918_v18 = vpop.permute.xlu1 %3195 }
 0x3f0   :  { %v2994_v28 = vmul.f32 %v14327_v38, %v11682_v63  ;;  %v14328_v23 = vsub.f32 1.0, %v11780_v34  ;;  %7885 = vpow2.f32 %v4787_v39  ;;  %v4783_v49 = vmul.f32 1.442695, %v4771_v2  ;;  %v14330_v2 = vld [vmem:[#allocation70_spill] sm:$0xff] }
 0x3f1   :  { %v4801_v35 = vmul.f32 %v14326_v41, %v11895_v12  ;;  %v4772_v31 = vmul.f32 %v14329_v27, %v4732_v26  ;;  %v11922_v50 = vadd.f32 %v11630_v55, %v10930_v3  ;;  %v11930_v34 = vmul.f32 %v4650_v60, %v11663_v25  ;;  %v14332_v25 = vld [vmem:[#allocation71_spill] sm:$0xff] }
 0x3f2   :  { %v11915_v58 = vsub.f32 1.0, %v14328_v23  ;;  %v11927_v41 = vadd.f32 %v2994_v28, %v2770_v37  ;;  %7887 = vrcp.f32 %v4703_v48  ;;  %v6718_v39 = vmul.f32 -1.442695, %v11790_v10  ;;  %v11946_v48 = vpop.f32.mrb[176].mxu0  ;;  %v11954_v23 = vpop.permute.xlu0 %3220 }
 0x3f3   :  { %v11925_v19 = vadd.f32 %v4801_v35, %v11673_v4  ;;  %4819 = vperm.xlu1 %7415, %v4801_v35   ;;  %v11936_v26 = vadd.f32 %v11630_v55, %v14330_v2  ;;  %v11938_v3 = vpop.eup %7873  ;;  %7889 = vpow2.f32 %v4789_v20  ;;  %v4905_v4 = vmax.f32 %v11906_v8, 0.0  ;;  %14333 = vst [vmem:[#allocation44_spill] sm:$0xff] %v11946_v48  ;;  %v14334_v20 = vld [vmem:[#allocation78_spill] sm:$0xff]  ;;  %v11975_v17 = vpop.permute.xlu1 %3185 }
 0x3f4   :  { %v14331_v27 = vsub.f32 1.0, %v11873_v59  ;;  %v2991_v60 = vmul.f32 %v14332_v25, %v11778_v54  ;;  %v7876_v35 = vpop.eup %7875  ;;  %7891 = vpow2.f32 %v4783_v49  ;;  %v4785_v10 = vmul.f32 1.442695, %v4772_v31 }
 0x3f5   :  { %v11950_v38 = vmul.f32 %v11782_v15, %v11686_v13  ;;  %v2992_v28 = vmul.f32 %v14334_v20, %v11730_v40  ;;  %v7878_v2 = vpop.eup %7877  ;;  %v4906_v54 = vmax.f32 %v11922_v50, 0.0  ;;  %v4903_v40 = vmax.f32 %v11936_v26, 0.0  ;;  %v14337_v15 = vld [vmem:[#allocation118_spill] sm:$0xff] }
 0x3f6   :  { %v4802_v37 = vmul.f32 %v14331_v27, %v11930_v34  ;;  %v14335_v27 = vld [vmem:[#allocation49_spill] sm:$0xff]  ;;  %v11962_v31 = vadd.f32 %v2991_v60, %v2767_v52  ;;  %v11964_v49 = vpop.eup %7879  ;;  %v11970_v20 = vadd.f32 %v11630_v55, %v14337_v15  ;;  %v6721_v60 = vmul.f32 -1.442695, %v11773_v7 }
 0x3f7   :  { %v2768_v63 = vmul.f32 %v14335_v27, %v11619_v51  ;;  %14336 = vst [vmem:[#allocation45_spill] sm:$0xff] %v11964_v49  ;;  %v14338_v51 = vsub.f32 1.0, %v11900_v56  ;;  %v7882_v52 = vpop.eup %7881  ;;  %v4961_v49 = vsub.f32 0.0, %v4905_v4  ;;  %v4704_v15 = vadd.f32 1.0, %v7878_v2 }
 0x3f8   :  { %v11960_v25 = vadd.f32 %v4802_v37, %v11694_v45  ;;  %4824 = vperm.xlu0 %7416, %v4802_v37   ;;  %v11977_v45 = vpop.f32.mrb[177].mxu0  ;;  %v4706_v37 = vadd.f32 1.0, %v7876_v35  ;;  %v11984_v48 = vpop.eup %7883  ;;  %7893 = vpow2.f32 %v4785_v10  ;;  %v6719_v7 = vmul.f32 -1.442695, %v11823_v47  ;;  %v14344_v10 = vld [vmem:[#allocation53_spill] sm:$0xff] }
 0x3f9   :  { %v4799_v27 = vmul.f32 %v14338_v51, %v11950_v38  ;;  %14339 = vst [vmem:[#allocation117_spill] sm:$0xff] %v11977_v45  ;;  %v11980_v13 = vadd.f32 %v2992_v28, %v2768_v63  ;;  %v11982_v61 = vpop.f32.mrb[178].mxu0  ;;  %14341 = vst [vmem:[#allocation9_spill] sm:$0xff] %v11984_v48  ;;  %v11991_v45 = vmul.f32 %v11868_v36, %v11705_v5  ;;  %7895 = vpow2.f32 %v6718_v39  ;;  %v14342_v63 = vld [vmem:[#allocation5_spill] sm:$0xff]  ;;  %v12006_v39 = vpop.permute.xlu0 %3210 }
 0x3fa   :  { %14340 = vst [vmem:[#allocation75_spill] sm:$0xff] %v11982_v61  ;;  %v4962_v4 = vsub.f32 0.0, %v4906_v54  ;;  %v2997_v35 = vmul.f32 %v14342_v63, %v11828_v6  ;;  %v11996_v28 = vpop.f32.mrb[179].mxu0  ;;  %v11998_v48 = vpop.eup %7885  ;;  %v2773_v2 = vmul.f32 %v14344_v10, %v11665_v33  ;;  %v14345_v5 = vsub.f32 1.0, %v11938_v3  ;;  %14346 = vst [vmem:[#allocation71_spill] sm:$0xff] %v12006_v39  ;;  %v14347_v54 = vld [vmem:[#allocation14_spill] sm:$0xff] }
 0x3fb   :  { %4809 = vperm.xlu1 %7415, %v4799_v27   ;;  %v11987_v51 = vadd.f32 %v4799_v27, %v11721_v11  ;;  %14343 = vst [vmem:[#allocation70_spill] sm:$0xff] %v11996_v28  ;;  %v4959_v11 = vsub.f32 0.0, %v4903_v40  ;;  %v4904_v27 = vmax.f32 %v11970_v20, 0.0  ;;  %v4651_v47 = vadd.f32 1e-10, %v11879_v43 }
 0x3fc   :  { %v4800_v36 = vmul.f32 %v14345_v5, %v11991_v45  ;;  %7897 = vrcp.f32 %v4706_v37  ;;  %v4709_v6 = vadd.f32 1.0, %v7882_v52  ;;  %v5001_v63 = vmul.f32 %v14347_v54, %v4961_v49  ;;  %v12010_v28 = vpop.eup %7887  ;;  %v12018_v5 = vpop.permute.xlu1 %3215  ;;  %v14349_v49 = vld [vmem:[#allocation52_spill] sm:$0xff] }
 0x3fd   :  { %14348 = vst [vmem:[#allocation78_spill] sm:$0xff] %v12010_v28  ;;  %7899 = vrcp.f32 %v4704_v15  ;;  %v6724_v33 = vmul.f32 -1.442695, %v11906_v8  ;;  %v12016_v10 = vadd.f32 %v2997_v35, %v2773_v2  ;;  %v12020_v61 = vpop.eup %7889  ;;  %v4654_v43 = vadd.f32 1e-10, %v11889_v9 }
 0x3fe   :  { %v12014_v40 = vadd.f32 %v4800_v36, %v11738_v42  ;;  %4814 = vperm.xlu0 %7416, %v4800_v36   ;;  %v13829_v52 = vsub.f32 1.0, %v11998_v48  ;;  %7901 = vpow2.f32 %v6721_v60  ;;  %v5002_v37 = vmul.f32 %v14349_v49, %v4962_v4  ;;  %v12025_v15 = vpop.eup %7891  ;;  %v14350_v42 = vld [vmem:[#allocation96_spill] sm:$0xff]  ;;  %v14355_v49 = vld [vmem:[#allocation101_spill] sm:$0xff] }
 0x3ff   :  { %v4652_v8 = vadd.f32 1e-10, %v11915_v58  ;;  %7903 = vpow2.f32 %v6719_v7  ;;  %v4999_v36 = vmul.f32 %v14350_v42, %v4959_v11  ;;  %v4960_v35 = vsub.f32 0.0, %v4904_v27  ;;  %v14352_v58 = vld [vmem:[#allocation59_spill] sm:$0xff]  ;;  %v12041_v11 = vpop.permute.xlu0 %3432 }
 0x400   :  { %v14351_v2 = vsub.f32 1.0, %v11852_v44  ;;  %7905 = vrcp.f32 %v4709_v6  ;;  %v5011_v28 = vmul.f32 1.442695, %v5001_v63  ;;  %v12035_v9 = vmul.f32 %v11875_v24, %v11747_v14  ;;  %14353 = vst [vmem:[#allocation49_spill] sm:$0xff] %v12041_v11  ;;  %v14354_v14 = vld [vmem:[#allocation87_spill] sm:$0xff]  ;;  %v12087_v44 = vpop.f32.mrb[180].mxu0 }
 0x401   :  { %v13830_v60 = vsub.f32 1.0, %v12020_v61  ;;  %7907 = vpow2.f32 %v6724_v33  ;;  %v6722_v4 = vmul.f32 -1.442695, %v11936_v26  ;;  %v2774_v7 = vmul.f32 %v14352_v58, %v11613_v32  ;;  %v14356_v58 = vld [vmem:[#allocation120_spill] sm:$0xff]  ;;  %14365 = vst [vmem:[#allocation53_spill] sm:$0xff] %v12087_v44 }
 0x402   :  { %v12031_v54 = vsub.f32 1.0, %v14351_v2  ;;  %v5013_v27 = vmul.f32 1.442695, %v5002_v37  ;;  %v4805_v6 = vmul.f32 %v13829_v52, %v12035_v9  ;;  %v2998_v24 = vmul.f32 %v14354_v14, %v11765_v53  ;;  %v12049_v63 = vpop.eup %7893  ;;  %v12059_v37 = vpop.permute.xlu1 %3205 }
 0x403   :  { %v5007_v33 = vmul.f32 1.442695, %v4999_v36  ;;  %v5000_v26 = vmul.f32 %v14355_v49, %v4960_v35  ;;  %v12054_v32 = vadd.f32 %v11630_v55, %v11047_v46  ;;  %v12057_v42 = vmul.f32 %v4654_v43, %v11793_v22  ;;  %v7896_v2 = vpop.eup %7895  ;;  %v14357_v46 = vld [vmem:[#allocation54_spill] sm:$0xff]  ;;  %v14358_v43 = vld [vmem:[#allocation85_spill] sm:$0xff] }
 0x404   :  { %7909 = vpow2.f32 %v5011_v28  ;;  %v12063_v52 = vadd.f32 %v11630_v55, %v14356_v58  ;;  %v12066_v53 = vadd.f32 %v4805_v6, %v11776_v30  ;;  %4839 = vperm.xlu1 %7415, %v4805_v6   ;;  %v12068_v36 = vadd.f32 %v2998_v24, %v2774_v7  ;;  %v14361_v7 = vld [vmem:[#allocation80_spill] sm:$0xff]  ;;  %v14363_v58 = vld [vmem:[#allocation110_spill] sm:$0xff] }
 0x405   :  { %v2771_v35 = vmul.f32 %v14357_v46, %v11712_v16  ;;  %v4806_v22 = vmul.f32 %v13830_v60, %v12057_v42  ;;  %v2995_v28 = vmul.f32 %v14358_v43, %v11871_v1  ;;  %v12078_v14 = vmul.f32 %v4651_v47, %v11799_v29  ;;  %v14362_v6 = vld [vmem:[#allocation60_spill] sm:$0xff]  ;;  %v14367_v29 = vld [vmem:[#allocation65_spill] sm:$0xff] }
 0x406   :  { %v12080_v49 = vpop.eup %7897  ;;  %7911 = vpow2.f32 %v5013_v27  ;;  %v2772_v24 = vmul.f32 %v14362_v6, %v14361_v7  ;;  %v14364_v16 = vld [vmem:[#allocation8_spill] sm:$0xff]  ;;  %v5009_v11 = vmul.f32 1.442695, %v5000_v26  ;;  %v4910_v1 = vmax.f32 %v12054_v32, 0.0  ;;  %v12097_v27 = vpop.permute.xlu0 %3422  ;;  %v14369_v6 = vld [vmem:[#allocation121_spill] sm:$0xff] }
 0x407   :  { %14359 = vst [vmem:[#allocation118_spill] sm:$0xff] %v12078_v14  ;;  %14360 = vst [vmem:[#allocation5_spill] sm:$0xff] %v12080_v49  ;;  %v2996_v46 = vmul.f32 %v14364_v16, %v14363_v58  ;;  %v12089_v60 = vpop.eup %7899  ;;  %v12093_v47 = vadd.f32 %v4806_v22, %v14367_v29  ;;  %4844 = vperm.xlu0 %7416, %v4806_v22   ;;  %v12095_v43 = vadd.f32 %v2995_v28, %v2771_v35  ;;  %v12109_v29 = vpop.f32.mrb[181].mxu0  ;;  %v14373_v49 = vld [vmem:[#allocation30_spill] sm:$0xff] }
 0x408   :  { %14366 = vst [vmem:[#allocation14_spill] sm:$0xff] %v12089_v60  ;;  %14368 = vst [vmem:[#allocation52_spill] sm:$0xff] %v12097_v27  ;;  %v7902_v30 = vpop.eup %7901  ;;  %v4909_v7 = vmax.f32 %v12063_v52, 0.0  ;;  %v12102_v58 = vadd.f32 %v11630_v55, %v14369_v6  ;;  %v14370_v26 = vsub.f32 1.0, %v12025_v15  ;;  %v14372_v35 = vsub.f32 1.0, %v11900_v56  ;;  %v12120_v27 = vpop.permute.xlu1 %3427  ;;  %v14378_v56 = vld [vmem:[#allocation158_spill] sm:$0xff] }
 0x409   :  { %v12107_v60 = vadd.f32 %v2996_v46, %v2772_v24  ;;  %14371 = vst [vmem:[#allocation96_spill] sm:$0xff] %v12109_v29  ;;  %v7904_v22 = vpop.eup %7903  ;;  %7913 = vpow2.f32 %v6722_v4  ;;  %v12115_v44 = vadd.f32 %v11630_v55, %v14373_v49  ;;  %v12118_v6 = vmul.f32 %v4652_v8, %v11818_v0  ;;  %14374 = vst [vmem:[#allocation59_spill] sm:$0xff] %v12120_v27  ;;  %v12122_v39 = vpop.f32.mrb[182].mxu0 }
 0x40a   :  { %v4803_v16 = vmul.f32 %v14370_v26, %v12078_v14  ;;  %v4871_v28 = vsub.f32 1.0, %v14372_v35  ;;  %14375 = vst [vmem:[#allocation87_spill] sm:$0xff] %v12122_v39  ;;  %v12124_v24 = vpop.eup %7905  ;;  %v14377_v46 = vsub.f32 1.0, %v11873_v59  ;;  %v4707_v29 = vadd.f32 1.0, %v7896_v2 }
 0x40b   :  { %14376 = vst [vmem:[#allocation101_spill] sm:$0xff] %v12124_v24  ;;  %7915 = vpow2.f32 %v5007_v33  ;;  %v7908_v49 = vpop.eup %7907  ;;  %v14380_v35 = vsub.f32 1.0, %v11938_v3  ;;  %v4710_v8 = vadd.f32 1.0, %v7902_v30  ;;  %v4966_v14 = vsub.f32 0.0, %v4910_v1  ;;  %v12144_v30 = vpop.permute.xlu0 %3452 }
 0x40c   :  { %v4874_v26 = vsub.f32 1.0, %v14377_v46  ;;  %v12129_v4 = vadd.f32 %v4803_v16, %v14378_v56  ;;  %4829 = vperm.xlu1 %7415, %v4803_v16   ;;  %v14381_v39 = vsub.f32 1.0, %v12049_v63  ;;  %v4708_v24 = vadd.f32 1.0, %v7904_v22  ;;  %14383 = vst [vmem:[#allocation54_spill] sm:$0xff] %v12144_v30 }
 0x40d   :  { %v4872_v0 = vsub.f32 1.0, %v14380_v35  ;;  %7917 = vpow2.f32 %v5009_v11  ;;  %v4965_v59 = vsub.f32 0.0, %v4909_v7  ;;  %v4907_v2 = vmax.f32 %v12102_v58, 0.0  ;;  %v14385_v35 = vld [vmem:[#allocation92_spill] sm:$0xff] }
 0x40e   :  { %14379 = vst [vmem:[#allocation120_spill] sm:$0xff] %v12129_v4  ;;  %v4804_v27 = vmul.f32 %v14381_v39, %v12118_v6  ;;  %v14382_v33 = vsub.f32 1.0, %v11998_v48  ;;  %v6725_v16 = vmul.f32 -1.442695, %v11922_v50  ;;  %v4908_v56 = vmax.f32 %v12115_v44, 0.0  ;;  %v12146_v1 = vpop.eup %7909  ;;  %v14384_v50 = vld [vmem:[#allocation36_spill] sm:$0xff] }
 0x40f   :  { %v4881_v39 = vadd.f32 1e-10, %v12031_v54  ;;  %v12149_v11 = vadd.f32 1e-10, %v4871_v28  ;;  %7919 = vrcp.f32 %v4707_v29  ;;  %v6723_v48 = vmul.f32 -1.442695, %v11970_v20 }
 0x410   :  { %v4877_v46 = vsub.f32 1.0, %v14382_v33  ;;  %v12142_v3 = vadd.f32 %v4804_v27, %v11857_v62  ;;  %4834 = vperm.xlu0 %7416, %v4804_v27   ;;  %v4882_v7 = vadd.f32 1e-10, %v4874_v26  ;;  %7921 = vrcp.f32 %v4710_v8  ;;  %v12155_v33 = vpop.permute.xlu1 %3417  ;;  %v12157_v27 = vpop.eup %7911  ;;  %v14387_v54 = vld [vmem:[#allocation22_spill] sm:$0xff] }
 0x411   :  { %v5006_v22 = vmul.f32 %v14384_v50, %v4966_v14  ;;  %v3225_v62 = vmul.f32 %v14385_v35, %v11918_v18  ;;  %14386 = vst [vmem:[#allocation85_spill] sm:$0xff] %v12155_v33  ;;  %v12159_v30 = vadd.f32 1e-10, %v4872_v0  ;;  %7923 = vrcp.f32 %v4708_v24  ;;  %v12162_v29 = vpop.f32.mrb[183].mxu0  ;;  %v12183_v35 = vpop.permute.xlu0 %3442 }
 0x412   :  { %v5005_v28 = vmul.f32 %v14387_v54, %v4965_v59  ;;  %v4963_v4 = vsub.f32 0.0, %v4907_v2  ;;  %14388 = vst [vmem:[#allocation80_spill] sm:$0xff] %v12162_v29  ;;  %v12164_v20 = vadd.f32 1e-10, %v4877_v46  ;;  %7925 = vpow2.f32 %v6725_v16  ;;  %v14392_v54 = vld [vmem:[#allocation18_spill] sm:$0xff]  ;;  %v14395_v29 = vld [vmem:[#allocation108_spill] sm:$0xff] }
 0x413   :  { %v4964_v26 = vsub.f32 0.0, %v4908_v56  ;;  %v12167_v14 = vadd.f32 %v3225_v62, %v11866_v21  ;;  %v14389_v18 = vsub.f32 1.0, %v12025_v15  ;;  %v14390_v0 = vsub.f32 1.0, %v12020_v61  ;;  %v7914_v59 = vpop.eup %7913 }
 0x414   :  { %7927 = vpow2.f32 %v6723_v48  ;;  %v6728_v24 = vmul.f32 -1.442695, %v12063_v52  ;;  %v14391_v2 = vsub.f32 1.0, %v12049_v63  ;;  %v4937_v16 = vadd.f32 1.0, %v7908_v49  ;;  %v14393_v48 = vld [vmem:[#allocation42_spill] sm:$0xff]  ;;  %v14396_v63 = vld [vmem:[#allocation40_spill] sm:$0xff] }
 0x415   :  { %v12171_v8 = vsub.f32 1.0, %v14389_v18  ;;  %v12175_v50 = vsub.f32 1.0, %v14390_v0  ;;  %v5025_v21 = vsub.f32 1.0, %v12146_v1  ;;  %v5021_v56 = vmul.f32 1.442695, %v5006_v22  ;;  %v7916_v15 = vpop.eup %7915  ;;  %v14394_v0 = vld [vmem:[#allocation98_spill] sm:$0xff]  ;;  %v12200_v22 = vpop.permute.xlu1 %3447 }
 0x416   :  { %v12180_v46 = vsub.f32 1.0, %v14391_v2  ;;  %v13832_v62 = vsub.f32 1.0, %v12157_v27  ;;  %v5019_v61 = vmul.f32 1.442695, %v5005_v28  ;;  %v5003_v18 = vmul.f32 %v14392_v54, %v4963_v4  ;;  %v14397_v54 = vld [vmem:[#allocation83_spill] sm:$0xff] }
 0x417   :  { %v3226_v52 = vmul.f32 %v14394_v0, %v14393_v48  ;;  %v5004_v33 = vmul.f32 %v14395_v29, %v4964_v26  ;;  %v12192_v2 = vadd.f32 %v11630_v55, %v14396_v63  ;;  %v12195_v49 = vmul.f32 %v4881_v39, %v11895_v12  ;;  %v12202_v28 = vpop.eup %7917  ;;  %v12220_v63 = vpop.f32.mrb[184].mxu0 }
 0x418   :  { %v12198_v1 = vmul.f32 %v4882_v7, %v11930_v34  ;;  %v4935_v4 = vadd.f32 1.0, %v7914_v59  ;;  %7929 = vpow2.f32 %v6728_v24  ;;  %v12206_v48 = vadd.f32 %v11630_v55, %v14397_v54  ;;  %v14399_v59 = vld [vmem:[#allocation17_spill] sm:$0xff]  ;;  %14400 = vst [vmem:[#allocation110_spill] sm:$0xff] %v12220_v63 }
 0x419   :  { %v12209_v29 = vadd.f32 %v3226_v52, %v11927_v41  ;;  %v5023_v26 = vsub.f32 1.0, %v7916_v15  ;;  %v6726_v12 = vmul.f32 -1.442695, %v12102_v58  ;;  %7931 = vpow2.f32 %v5021_v56  ;;  %v12213_v39 = vpop.eup %7919  ;;  %v12242_v58 = vpop.f32.mrb[185].mxu0 }
 0x41a   :  { %v5033_v34 = vmul.f32 %v5025_v21, %v12195_v49  ;;  %14398 = vst [vmem:[#allocation60_spill] sm:$0xff] %v12213_v39  ;;  %7933 = vpow2.f32 %v5019_v61  ;;  %v5015_v7 = vmul.f32 1.442695, %v5003_v18  ;;  %v5034_v24 = vmul.f32 %v13832_v62, %v12198_v1  ;;  %v12222_v41 = vpop.eup %7921  ;;  %v12229_v61 = vpop.permute.xlu0 %3664  ;;  %14404 = vst [vmem:[#allocation121_spill] sm:$0xff] %v12242_v58  ;;  %v14405_v39 = vld [vmem:[#allocation130_spill] sm:$0xff] }
 0x41b   :  { %v3223_v0 = vmul.f32 %v14399_v59, %v11975_v17  ;;  %14401 = vst [vmem:[#allocation8_spill] sm:$0xff] %v12222_v41  ;;  %v5017_v56 = vmul.f32 1.442695, %v5004_v33  ;;  %v5137_v15 = vmax.f32 %v12192_v2, 0.0  ;;  %v12231_v18 = vpop.eup %7923  ;;  %v5135_v54 = vmax.f32 %v12206_v48, 0.0  ;;  %v14403_v33 = vld [vmem:[#allocation41_spill] sm:$0xff] }
 0x41c   :  { %v12227_v52 = vadd.f32 %v5033_v34, %v11925_v19  ;;  %5051 = vperm.xlu0 %7416, %v5033_v34   ;;  %14402 = vst [vmem:[#allocation65_spill] sm:$0xff] %v12231_v18  ;;  %v12235_v17 = vadd.f32 %v5034_v24, %v11960_v25  ;;  %5056 = vperm.xlu1 %7415, %v5034_v24   ;;  %v7926_v19 = vpop.eup %7925  ;;  %7935 = vrcp.f32 %v4937_v16  ;;  %v5105_v34 = vsub.f32 1.0, %v5025_v21  ;;  %v12252_v24 = vpop.permute.xlu1 %3437 }
 0x41d   :  { %v12238_v59 = vadd.f32 %v3223_v0, %v11962_v31  ;;  %v3224_v62 = vmul.f32 %v14403_v33, %v11898_v57  ;;  %v12246_v18 = vadd.f32 %v11630_v55, %v14405_v39  ;;  %v12250_v25 = vmul.f32 %v12149_v11, %v11950_v38  ;;  %v12262_v21 = vpop.f32.mrb[186].mxu0  ;;  %v14407_v11 = vld [vmem:[#allocation21_spill] sm:$0xff] }
 0x41e   :  { %v7928_v31 = vpop.eup %7927  ;;  %7937 = vpow2.f32 %v6726_v12  ;;  %v6729_v0 = vmul.f32 -1.442695, %v12054_v32  ;;  %v12260_v16 = vmul.f32 %v12159_v30, %v11991_v45  ;;  %14406 = vst [vmem:[#allocation30_spill] sm:$0xff] %v12262_v21  ;;  %v5193_v39 = vsub.f32 0.0, %v5137_v15 }
 0x41f   :  { %v12256_v57 = vadd.f32 %v3224_v62, %v11980_v13  ;;  %7939 = vpow2.f32 %v5015_v7  ;;  %v5031_v38 = vmul.f32 %v5023_v26, %v12250_v25  ;;  %v3229_v33 = vmul.f32 %v14407_v11, %v12018_v5  ;;  %v12274_v7 = vpop.permute.xlu0 %3654 }
 0x420   :  { %v4938_v41 = vadd.f32 1.0, %v7926_v19  ;;  %7941 = vpow2.f32 %v5017_v56  ;;  %v5191_v12 = vsub.f32 0.0, %v5135_v54  ;;  %v14408_v13 = vsub.f32 1.0, %v12202_v28  ;;  %14409 = vst [vmem:[#allocation158_spill] sm:$0xff] %v12274_v7  ;;  %v12290_v11 = vpop.permute.xlu1 %3659 }
 0x421   :  { %v5103_v62 = vsub.f32 1.0, %v5023_v26  ;;  %v4936_v58 = vadd.f32 1.0, %v7928_v31  ;;  %v5138_v45 = vmax.f32 %v12246_v18, 0.0  ;;  %5041 = vperm.xlu0 %7416, %v5031_v38   ;;  %v12272_v30 = vadd.f32 %v5031_v38, %v11987_v51  ;;  %v14410_v51 = vld [vmem:[#allocation103_spill] sm:$0xff] }
 0x422   :  { %v5032_v32 = vmul.f32 %v14408_v13, %v12260_v16  ;;  %v7930_v15 = vpop.eup %7929  ;;  %v12277_v5 = vadd.f32 1e-10, %v12171_v8  ;;  %7943 = vrcp.f32 %v4935_v4  ;;  %v6727_v56 = vmul.f32 -1.442695, %v12115_v44  ;;  %v14411_v4 = vld [vmem:[#allocation19_spill] sm:$0xff] }
 0x423   :  { %v12283_v26 = vpop.eup %7931  ;;  %v4886_v19 = vadd.f32 1e-10, %v12175_v50  ;;  %7945 = vpow2.f32 %v6729_v0  ;;  %v5233_v31 = vmul.f32 %v14410_v51, %v5193_v39  ;;  %v12288_v38 = vadd.f32 %v3229_v33, %v12016_v10 }
 0x424   :  { %v12281_v54 = vadd.f32 %v5032_v32, %v12014_v40  ;;  %5046 = vperm.xlu1 %7415, %v5032_v32   ;;  %v12292_v8 = vpop.eup %7933  ;;  %v12295_v44 = vadd.f32 1e-10, %v12180_v46  ;;  %v12297_v40 = vadd.f32 1e-10, %v5105_v34  ;;  %7947 = vrcp.f32 %v4938_v41  ;;  %v12300_v32 = vpop.f32.mrb[187].mxu0  ;;  %v14419_v46 = vld [vmem:[#allocation131_spill] sm:$0xff] }
 0x425   :  { %v5231_v13 = vmul.f32 %v14411_v4, %v5191_v12  ;;  %14412 = vst [vmem:[#allocation36_spill] sm:$0xff] %v12300_v32  ;;  %v12302_v50 = vadd.f32 1e-10, %v5103_v62  ;;  %7949 = vrcp.f32 %v4936_v58  ;;  %v6732_v10 = vmul.f32 -1.442695, %v12192_v2  ;;  %v14415_v4 = vld [vmem:[#allocation134_spill] sm:$0xff]  ;;  %v12338_v32 = vpop.permute.xlu1 %3649 }
 0x426   :  { %v5194_v0 = vsub.f32 0.0, %v5138_v45  ;;  %v14413_v39 = vsub.f32 1.0, %v12157_v27  ;;  %v4941_v51 = vadd.f32 1.0, %v7930_v15  ;;  %7951 = vpow2.f32 %v6727_v56  ;;  %v12310_v34 = vpop.eup %7935  ;;  %v14416_v2 = vld [vmem:[#allocation46_spill] sm:$0xff]  ;;  %v12319_v45 = vpop.permute.xlu0 %3684  ;;  %14422 = vst [vmem:[#allocation42_spill] sm:$0xff] %v12338_v32 }
 0x427   :  { %14414 = vst [vmem:[#allocation92_spill] sm:$0xff] %v12310_v34  ;;  %v5029_v41 = vsub.f32 1.0, %v12292_v8  ;;  %v5243_v12 = vmul.f32 1.442695, %v5233_v31  ;;  %v12315_v62 = vadd.f32 %v11630_v55, %v14415_v4  ;;  %v3230_v58 = vmul.f32 %v14416_v2, %v11954_v23  ;;  %14417 = vst [vmem:[#allocation22_spill] sm:$0xff] %v12319_v45  ;;  %v12321_v27 = vpop.f32.mrb[188].mxu0 }
 0x428   :  { %v12307_v33 = vsub.f32 1.0, %v14413_v39  ;;  %14418 = vst [vmem:[#allocation18_spill] sm:$0xff] %v12321_v27  ;;  %v7938_v15 = vpop.eup %7937  ;;  %v5239_v39 = vmul.f32 1.442695, %v5231_v13  ;;  %v2436_v56 = vadd.f32 %v11630_v55, %v14419_v46  ;;  %v12326_v34 = vmul.f32 %v4886_v19, %v12057_v42  ;;  %v14421_v27 = vld [vmem:[#allocation25_spill] sm:$0xff]  ;;  %v14423_v42 = vld [vmem:[#allocation135_spill] sm:$0xff] }
 0x429   :  { %v12330_v31 = vmul.f32 %v12164_v20, %v12035_v9  ;;  %v7940_v8 = vpop.eup %7939  ;;  %v14420_v4 = vsub.f32 1.0, %v12202_v28  ;;  %7953 = vpow2.f32 %v6732_v10  ;;  %v6730_v2 = vmul.f32 -1.442695, %v12206_v48  ;;  %v12364_v21 = vpop.f32.mrb[189].mxu0  ;;  %v14440_v32 = vld [vmem:[#allocation38_spill] sm:$0xff] }
 0x42a   :  { %v5234_v13 = vmul.f32 %v14421_v27, %v5194_v0  ;;  %v12340_v46 = vpop.eup %7941  ;;  %7955 = vrcp.f32 %v4941_v51  ;;  %v12344_v19 = vadd.f32 %v11630_v55, %v14423_v42  ;;  %v12347_v9 = vadd.f32 %v3230_v58, %v12068_v36  ;;  %v14426_v36 = vld [vmem:[#allocation100_spill] sm:$0xff]  ;;  %14428 = vst [vmem:[#allocation40_spill] sm:$0xff] %v12364_v21 }
 0x42b   :  { %v12334_v23 = vsub.f32 1.0, %v14420_v4  ;;  %v14424_v20 = vsub.f32 1.0, %v12283_v26  ;;  %v4939_v10 = vadd.f32 1.0, %v7938_v15  ;;  %7957 = vpow2.f32 %v5243_v12 }
 0x42c   :  { %v5141_v48 = vmax.f32 %v12315_v62, 0.0  ;;  %v5037_v0 = vmul.f32 %v5029_v41, %v12330_v31  ;;  %v12354_v27 = vpop.eup %7943  ;;  %7959 = vpow2.f32 %v5239_v39  ;;  %v5136_v51 = vmax.f32 %v2436_v56, 0.0 }
 0x42d   :  { %v5038_v28 = vmul.f32 %v14424_v20, %v12326_v34  ;;  %14425 = vst [vmem:[#allocation98_spill] sm:$0xff] %v12354_v27  ;;  %v3227_v58 = vmul.f32 %v14426_v36, %v12059_v37  ;;  %v7946_v4 = vpop.eup %7945  ;;  %v5027_v42 = vsub.f32 1.0, %v7940_v8  ;;  %7961 = vpow2.f32 %v6730_v2  ;;  %v12362_v20 = vpop.permute.xlu0 %3674  ;;  %v14430_v8 = vld [vmem:[#allocation71_spill] sm:$0xff]  ;;  %v14431_v36 = vld [vmem:[#allocation104_spill] sm:$0xff] }
 0x42e   :  { %v5245_v12 = vmul.f32 1.442695, %v5234_v13  ;;  %5071 = vperm.xlu1 %7415, %v5037_v0   ;;  %14427 = vst [vmem:[#allocation108_spill] sm:$0xff] %v12362_v20  ;;  %v12366_v39 = vpop.eup %7947  ;;  %v3228_v15 = vmul.f32 %v14431_v36, %v14430_v8  ;;  %v12377_v2 = vpop.f32.mrb[190].mxu0  ;;  %7963 = vrcp.f32 %v4939_v10  ;;  %v6733_v27 = vmul.f32 -1.442695, %v12246_v18 }
 0x42f   :  { %v12357_v55 = vadd.f32 %v5038_v28, %v12093_v47  ;;  %5076 = vperm.xlu0 %7416, %v5038_v28   ;;  %14429 = vst [vmem:[#allocation83_spill] sm:$0xff] %v12366_v39  ;;  %v5139_v47 = vmax.f32 %v12344_v19, 0.0  ;;  %v12370_v28 = vadd.f32 %v5037_v0, %v12066_v53  ;;  %v12373_v37 = vadd.f32 %v3227_v58, %v12095_v43  ;;  %v12379_v13 = vpop.eup %7949  ;;  %v12386_v53 = vpop.permute.xlu1 %3679  ;;  %v12391_v58 = vld [vmem:[%s13817_s7] ss:$0 sm:$0xff]  ;;  %v14435_v8 = vld [vmem:[#allocation39_spill] sm:$0xff]  ;;  %v14436_v10 = vld [vmem:[#allocation118_spill] sm:$0xff] }
 0x430   :  { %14432 = vst [vmem:[#allocation17_spill] sm:$0xff] %v12377_v2  ;;  %14433 = vst [vmem:[#allocation41_spill] sm:$0xff] %v12379_v13  ;;  %v5197_v21 = vsub.f32 0.0, %v5141_v48  ;;  %v12384_v39 = vmul.f32 %v12295_v44, %v12118_v6  ;;  %v7952_v0 = vpop.eup %7951  ;;  %v5192_v43 = vsub.f32 0.0, %v5136_v51  ;;  %v12395_v36 = vadd.f32 %v12391_v58, %v14435_v8  ;;  %v14438_v13 = vld [vmem:[#allocation59_spill] sm:$0xff]  ;;  %v14439_v2 = vld [vmem:[#allocation50_spill] sm:$0xff] }
 0x431   :  { %14434 = vst [vmem:[#allocation130_spill] sm:$0xff] %v12386_v53  ;;  %v12398_v18 = vadd.f32 %v3228_v15, %v12107_v60  ;;  %v12402_v6 = vmul.f32 %v12277_v5, %v14436_v10  ;;  %v4942_v44 = vadd.f32 1.0, %v7946_v4  ;;  %7965 = vpow2.f32 %v5245_v12  ;;  %v12414_v12 = vpop.permute.xlu0 %3896  ;;  %v12416_v10 = vpop.f32.mrb[191].mxu0 }
 0x432   :  { %v14437_v48 = vsub.f32 1.0, %v12340_v46  ;;  %v3457_v63 = vmul.f32 %v14439_v2, %v14438_v13  ;;  %v5109_v20 = vsub.f32 1.0, %v5029_v41  ;;  %v6731_v45 = vmul.f32 -1.442695, %v2436_v56  ;;  %14441 = vst [vmem:[#allocation21_spill] sm:$0xff] %v12414_v12  ;;  %14442 = vst [vmem:[#allocation103_spill] sm:$0xff] %v12416_v10 }
 0x433   :  { %v5195_v8 = vsub.f32 0.0, %v5139_v47  ;;  %v5035_v53 = vmul.f32 %v5027_v42, %v12402_v6  ;;  %v7954_v60 = vpop.eup %7953  ;;  %v5107_v15 = vsub.f32 1.0, %v5027_v42  ;;  %v4940_v7 = vadd.f32 1.0, %v7952_v0  ;;  %v14444_v41 = vld [vmem:[#allocation99_spill] sm:$0xff]  ;;  %v14445_v2 = vld [vmem:[#allocation120_spill] sm:$0xff] }
 0x434   :  { %v5036_v51 = vmul.f32 %v14437_v48, %v12384_v39  ;;  %v5237_v5 = vmul.f32 %v14440_v32, %v5197_v21  ;;  %v12418_v48 = vpop.eup %7955  ;;  %7967 = vpow2.f32 %v6733_v27  ;;  %v5232_v56 = vmul.f32 %v14444_v41, %v5192_v43  ;;  %v12436_v27 = vpop.permute.xlu1 %3669  ;;  %v14448_v41 = vld [vmem:[#allocation137_spill] sm:$0xff] }
 0x435   :  { %14443 = vst [vmem:[#allocation19_spill] sm:$0xff] %v12418_v48  ;;  %v5142_v47 = vmax.f32 %v12395_v36, 0.0  ;;  %v12423_v42 = vadd.f32 %v5035_v53, %v14445_v2  ;;  %5061 = vperm.xlu1 %7415, %v5035_v53   ;;  %v12425_v21 = vpop.eup %7957  ;;  %v12431_v32 = vadd.f32 1e-10, %v12334_v23  ;;  %7969 = vrcp.f32 %v4942_v44  ;;  %14446 = vst [vmem:[#allocation134_spill] sm:$0xff] %v12436_v27 }
 0x436   :  { %v12412_v4 = vadd.f32 %v5036_v51, %v12142_v3  ;;  %5066 = vperm.xlu0 %7416, %v5036_v51   ;;  %v12428_v3 = vadd.f32 1e-10, %v12307_v33  ;;  %v12434_v13 = vadd.f32 %v3457_v63, %v12167_v14  ;;  %v12438_v0 = vpop.eup %7959  ;;  %v5169_v43 = vadd.f32 1.0, %v7954_v60  ;;  %v14447_v51 = vld [vmem:[#allocation67_spill] sm:$0xff] }
 0x437   :  { %7971 = vpow2.f32 %v6731_v45  ;;  %v5235_v53 = vmul.f32 %v14447_v51, %v5195_v8  ;;  %v12443_v2 = vadd.f32 %v12391_v58, %v14448_v41  ;;  %v7962_v33 = vpop.eup %7961  ;;  %v12445_v48 = vadd.f32 1e-10, %v5109_v20  ;;  %v14451_v20 = vld [vmem:[#allocation94_spill] sm:$0xff] }
 0x438   :  { %v12447_v23 = vadd.f32 1e-10, %v5107_v15  ;;  %7973 = vrcp.f32 %v4940_v7  ;;  %v5251_v14 = vmul.f32 1.442695, %v5237_v5  ;;  %v14449_v63 = vsub.f32 1.0, %v12283_v26  ;;  %v12454_v8 = vpop.eup %7963  ;;  %v14452_v7 = vld [vmem:[#allocation49_spill] sm:$0xff]  ;;  %v12464_v26 = vpop.permute.xlu0 %3886 }
 0x439   :  { %v5241_v10 = vmul.f32 1.442695, %v5232_v56  ;;  %v6736_v45 = vmul.f32 -1.442695, %v12315_v62  ;;  %v5198_v60 = vsub.f32 0.0, %v5142_v47  ;;  %14450 = vst [vmem:[#allocation46_spill] sm:$0xff] %v12454_v8  ;;  %v12460_v15 = vadd.f32 %v12391_v58, %v14451_v20 }
 0x43a   :  { %v12451_v44 = vsub.f32 1.0, %v14449_v63  ;;  %v5257_v51 = vsub.f32 1.0, %v12425_v21  ;;  %v5255_v41 = vsub.f32 1.0, %v12438_v0  ;;  %v14453_v5 = vld [vmem:[#allocation105_spill] sm:$0xff]  ;;  %14454 = vst [vmem:[#allocation131_spill] sm:$0xff] %v12464_v26  ;;  %7975 = vrcp.f32 %v5169_v43 }
 0x43b   :  { %v3458_v12 = vmul.f32 %v14453_v5, %v14452_v7  ;;  %v5167_v56 = vadd.f32 1.0, %v7962_v33  ;;  %v5247_v63 = vmul.f32 1.442695, %v5235_v53  ;;  %v5140_v62 = vmax.f32 %v12443_v2, 0.0  ;;  %v7966_v47 = vpop.eup %7965  ;;  %v12478_v7 = vpop.permute.xlu1 %3891  ;;  %v14457_v33 = vld [vmem:[#allocation7_spill] sm:$0xff] }
 0x43c   :  { %7977 = vpow2.f32 %v5251_v14  ;;  %v12472_v0 = vmul.f32 %v12297_v40, %v12195_v49  ;;  %v12476_v20 = vmul.f32 %v12302_v50, %v12250_v25  ;;  %14455 = vst [vmem:[#allocation25_spill] sm:$0xff] %v12478_v7  ;;  %v14456_v43 = vsub.f32 1.0, %v12340_v46  ;;  %v14458_v14 = vld [vmem:[#allocation141_spill] sm:$0xff]  ;;  %v12501_v26 = vpop.permute.xlu0 %3916  ;;  %v14466_v7 = vld [vmem:[#allocation142_spill] sm:$0xff] }
 0x43d   :  { %v12468_v21 = vadd.f32 %v3458_v12, %v12209_v29  ;;  %7979 = vpow2.f32 %v5241_v10  ;;  %v5238_v5 = vmul.f32 %v14457_v33, %v5198_v60  ;;  %v12485_v29 = vadd.f32 %v12391_v58, %v14458_v14  ;;  %v14460_v10 = vld [vmem:[#allocation48_spill] sm:$0xff]  ;;  %14462 = vst [vmem:[#allocation100_spill] sm:$0xff] %v12501_v26 }
 0x43e   :  { %v5108_v53 = vsub.f32 1.0, %v14456_v43  ;;  %7981 = vpow2.f32 %v6736_v45  ;;  %v5369_v49 = vmax.f32 %v12460_v15, 0.0  ;;  %v5265_v40 = vmul.f32 %v5257_v51, %v12472_v0  ;;  %v7968_v50 = vpop.eup %7967  ;;  %v14459_v43 = vld [vmem:[#allocation85_spill] sm:$0xff] }
 0x43f   :  { %v5263_v25 = vmul.f32 %v5255_v41, %v12476_v20  ;;  %7983 = vrcp.f32 %v5167_v56  ;;  %v5258_v12 = vsub.f32 1.0, %v7966_v47  ;;  %v6734_v46 = vmul.f32 -1.442695, %v12344_v19  ;;  %v12493_v60 = vpop.eup %7969 }
 0x440   :  { %v3455_v8 = vmul.f32 %v14460_v10, %v14459_v43  ;;  %14461 = vst [vmem:[#allocation135_spill] sm:$0xff] %v12493_v60  ;;  %7985 = vpow2.f32 %v5247_v63  ;;  %v5196_v33 = vsub.f32 0.0, %v5140_v62  ;;  %v12496_v45 = vadd.f32 %v5265_v40, %v12227_v52  ;;  %5283 = vperm.xlu0 %7416, %v5265_v40   ;;  %v14463_v10 = vld [vmem:[#allocation52_spill] sm:$0xff]  ;;  %v14464_v63 = vld [vmem:[#allocation23_spill] sm:$0xff] }
 0x441   :  { %5273 = vperm.xlu1 %7415, %v5263_v25   ;;  %v12499_v14 = vadd.f32 %v5263_v25, %v12272_v30  ;;  %v7972_v56 = vpop.eup %7971  ;;  %v5253_v47 = vmul.f32 1.442695, %v5238_v5  ;;  %v5367_v19 = vmax.f32 %v12485_v29, 0.0  ;;  %v3456_v62 = vmul.f32 %v14464_v63, %v14463_v10  ;;  %v12519_v5 = vpop.permute.xlu1 %3881  ;;  %v14468_v63 = vld [vmem:[#allocation73_spill] sm:$0xff] }
 0x442   :  { %v12505_v43 = vadd.f32 %v3455_v8, %v12238_v59  ;;  %v12509_v60 = vpop.eup %7973  ;;  %v5170_v52 = vadd.f32 1.0, %v7968_v50  ;;  %v5425_v40 = vsub.f32 0.0, %v5369_v49  ;;  %v12513_v30 = vadd.f32 %v12391_v58, %v14466_v7  ;;  %v14467_v8 = vld [vmem:[#allocation58_spill] sm:$0xff] }
 0x443   :  { %14465 = vst [vmem:[#allocation71_spill] sm:$0xff] %v12509_v60  ;;  %v12517_v25 = vmul.f32 %v12428_v3, %v12198_v1  ;;  %v5337_v26 = vsub.f32 1.0, %v5257_v51  ;;  %7987 = vpow2.f32 %v6734_v46  ;;  %v12522_v59 = vadd.f32 %v3456_v62, %v12256_v57  ;;  %v14470_v62 = vld [vmem:[#allocation109_spill] sm:$0xff] }
 0x444   :  { %v3461_v10 = vmul.f32 %v14467_v8, %v12200_v22  ;;  %v5335_v50 = vsub.f32 1.0, %v5255_v41  ;;  %v5168_v49 = vadd.f32 1.0, %v7972_v56  ;;  %v5236_v60 = vmul.f32 %v14468_v63, %v5196_v33  ;;  %v12528_v27 = vpop.eup %7975  ;;  %v12541_v56 = vpop.permute.xlu0 %3906 }
 0x445   :  { %v5266_v7 = vmul.f32 %v5258_v12, %v12517_v25  ;;  %14469 = vst [vmem:[#allocation104_spill] sm:$0xff] %v12528_v27  ;;  %v6737_v1 = vmul.f32 -1.442695, %v12395_v36  ;;  %7989 = vpow2.f32 %v5253_v47  ;;  %v5423_v3 = vsub.f32 0.0, %v5367_v19  ;;  %14471 = vst [vmem:[#allocation39_spill] sm:$0xff] %v12541_v56  ;;  %v12555_v63 = vpop.permute.xlu1 %3911  ;;  %v14477_v27 = vld [vmem:[#allocation149_spill] sm:$0xff] }
 0x446   :  { %v12532_v51 = vadd.f32 %v3461_v10, %v12288_v38  ;;  %v12534_v57 = vpop.eup %7977  ;;  %v5338_v46 = vsub.f32 1.0, %v5258_v12  ;;  %v5465_v22 = vmul.f32 %v14470_v62, %v5425_v40  ;;  %v5370_v41 = vmax.f32 %v12513_v30, 0.0  ;;  %v14472_v10 = vld [vmem:[#allocation144_spill] sm:$0xff]  ;;  %14474 = vst [vmem:[#allocation59_spill] sm:$0xff] %v12555_v63 }
 0x447   :  { %v12539_v33 = vadd.f32 %v5266_v7, %v12235_v17  ;;  %5288 = vperm.xlu0 %7416, %v5266_v7   ;;  %v7980_v8 = vpop.eup %7979  ;;  %v12544_v36 = vadd.f32 1e-10, %v12451_v44  ;;  %v12546_v47 = vadd.f32 1e-10, %v5108_v53  ;;  %7991 = vrcp.f32 %v5170_v52  ;;  %v14476_v52 = vld [vmem:[#allocation107_spill] sm:$0xff] }
 0x448   :  { %v6735_v38 = vmul.f32 -1.442695, %v12443_v2  ;;  %v7982_v12 = vpop.eup %7981  ;;  %v12549_v19 = vadd.f32 1e-10, %v5337_v26  ;;  %7993 = vrcp.f32 %v5168_v49  ;;  %v5249_v40 = vmul.f32 1.442695, %v5236_v60  ;;  %v12582_v53 = vpop.permute.xlu0 %4128 }
 0x449   :  { %v12553_v17 = vadd.f32 %v12391_v58, %v14472_v10  ;;  %v12557_v7 = vpop.eup %7983  ;;  %v12559_v44 = vadd.f32 1e-10, %v5335_v50  ;;  %7995 = vpow2.f32 %v6737_v1  ;;  %v5463_v2 = vmul.f32 %v14476_v52, %v5423_v3  ;;  %v14479_v3 = vld [vmem:[#allocation16_spill] sm:$0xff]  ;;  %14483 = vst [vmem:[#allocation120_spill] sm:$0xff] %v12582_v53  ;;  %v14487_v53 = vld [vmem:[#allocation150_spill] sm:$0xff] }
 0x44a   :  { %14475 = vst [vmem:[#allocation50_spill] sm:$0xff] %v12557_v7  ;;  %v12563_v62 = vpop.eup %7985  ;;  %v12565_v26 = vadd.f32 1e-10, %v5338_v46  ;;  %v5475_v60 = vmul.f32 1.442695, %v5465_v22  ;;  %v5426_v49 = vsub.f32 0.0, %v5370_v41  ;;  %v12569_v10 = vadd.f32 %v12391_v58, %v14477_v27  ;;  %v12596_v7 = vpop.permute.xlu1 %3901 }
 0x44b   :  { %14473 = vst [vmem:[#allocation118_spill] sm:$0xff] %v12553_v17  ;;  %v5256_v56 = vsub.f32 1.0, %v7980_v8  ;;  %v5173_v63 = vadd.f32 1.0, %v7982_v12  ;;  %7997 = vpow2.f32 %v6735_v38  ;;  %v12573_v50 = vmul.f32 %v12445_v48, %v12330_v31  ;;  %v14481_v22 = vld [vmem:[#allocation54_spill] sm:$0xff]  ;;  %v14482_v41 = vld [vmem:[#allocation24_spill] sm:$0xff]  ;;  %v14485_v48 = vld [vmem:[#allocation111_spill] sm:$0xff] }
 0x44c   :  { %14478 = vst [vmem:[#allocation38_spill] sm:$0xff] %v12569_v10  ;;  %7999 = vpow2.f32 %v5249_v40  ;;  %v5368_v1 = vmax.f32 %v12553_v17, 0.0  ;;  %v12578_v46 = vadd.f32 %v12391_v58, %v14479_v3  ;;  %v3462_v52 = vmul.f32 %v14482_v41, %v14481_v22  ;;  %v14486_v17 = vld [vmem:[#allocation112_spill] sm:$0xff] }
 0x44d   :  { %v7988_v27 = vpop.eup %7987  ;;  %v5471_v8 = vmul.f32 1.442695, %v5463_v2  ;;  %v14484_v38 = vsub.f32 1.0, %v12534_v57  ;;  %v12589_v31 = vmul.f32 %v12431_v32, %v12260_v16  ;;  %v3459_v40 = vmul.f32 %v14485_v48, %v12252_v24 }
 0x44e   :  { %14480 = vst [vmem:[#allocation99_spill] sm:$0xff] %v12578_v46  ;;  %v5259_v3 = vsub.f32 1.0, %v12563_v62  ;;  %8001 = vpow2.f32 %v5475_v60  ;;  %v5466_v22 = vmul.f32 %v14486_v17, %v5426_v49  ;;  %v5373_v41 = vmax.f32 %v12569_v10, 0.0 }
 0x44f   :  { %v5269_v12 = vmul.f32 %v14484_v38, %v12573_v50  ;;  %v12598_v2 = vpop.eup %7989  ;;  %v12602_v38 = vadd.f32 %v12391_v58, %v14487_v53  ;;  %v12608_v24 = vadd.f32 %v3462_v52, %v12347_v9  ;;  %v5264_v32 = vmul.f32 %v5256_v56, %v12589_v31 }
 0x450   :  { %v5336_v17 = vsub.f32 1.0, %v5256_v56  ;;  %v5424_v62 = vsub.f32 0.0, %v5368_v1  ;;  %v5371_v60 = vmax.f32 %v12578_v46, 0.0  ;;  %v12613_v49 = vadd.f32 %v3459_v40, %v12373_v37  ;;  %v14491_v1 = vld [vmem:[#allocation64_spill] sm:$0xff] }
 0x451   :  { %14488 = vst [vmem:[#allocation67_spill] sm:$0xff] %v12602_v38  ;;  %v12605_v16 = vadd.f32 %v5269_v12, %v12370_v28  ;;  %5303 = vperm.xlu1 %7415, %v5269_v12   ;;  %v12615_v48 = vpop.eup %7991  ;;  %v5171_v53 = vadd.f32 1.0, %v7988_v27  ;;  %8003 = vpow2.f32 %v5471_v8  ;;  %v12618_v28 = vadd.f32 %v5264_v32, %v12281_v54  ;;  %5278 = vperm.xlu0 %7416, %v5264_v32   ;;  %v12630_v27 = vpop.permute.xlu0 %4118 }
 0x452   :  { %14489 = vst [vmem:[#allocation137_spill] sm:$0xff] %v12615_v48  ;;  %v12622_v9 = vmul.f32 %v12447_v23, %v12402_v6  ;;  %v12624_v52 = vpop.eup %7993  ;;  %8005 = vrcp.f32 %v5173_v63  ;;  %v5262_v56 = vsub.f32 1.0, %v12598_v2  ;;  %v6740_v37 = vmul.f32 -1.442695, %v12460_v15  ;;  %14492 = vst [vmem:[#allocation49_spill] sm:$0xff] %v12630_v27  ;;  %v14493_v23 = vld [vmem:[#allocation15_spill] sm:$0xff] }
 0x453   :  { %14490 = vst [vmem:[#allocation94_spill] sm:$0xff] %v12624_v52  ;;  %v3460_v12 = vmul.f32 %v14491_v1, %v12183_v35  ;;  %v7996_v8 = vpop.eup %7995  ;;  %v5477_v54 = vmul.f32 1.442695, %v5466_v22  ;;  %v5429_v40 = vsub.f32 0.0, %v5373_v41  ;;  %v5374_v32 = vmax.f32 %v12602_v38, 0.0  ;;  %v14494_v63 = vld [vmem:[#allocation88_spill] sm:$0xff]  ;;  %v12642_v35 = vpop.permute.xlu1 %4123 }
 0x454   :  { %v5267_v6 = vmul.f32 %v5259_v3, %v12622_v9  ;;  %v5464_v46 = vmul.f32 %v14493_v23, %v5424_v62  ;;  %v5427_v10 = vsub.f32 0.0, %v5371_v60  ;;  %v12637_v2 = vadd.f32 %v12391_v58, %v14494_v63 }
 0x455   :  { %v12640_v15 = vadd.f32 %v3460_v12, %v12398_v18  ;;  %v12644_v1 = vpop.eup %7997  ;;  %v12646_v22 = vadd.f32 1e-10, %v5336_v17  ;;  %v6738_v41 = vmul.f32 -1.442695, %v12485_v29  ;;  %v12654_v62 = vmul.f32 %v12544_v36, %v12326_v34  ;;  %v14498_v17 = vld [vmem:[#allocation68_spill] sm:$0xff]  ;;  %v14499_v29 = vld [vmem:[#allocation35_spill] sm:$0xff] }
 0x456   :  { %14495 = vst [vmem:[#allocation105_spill] sm:$0xff] %v12637_v2  ;;  %14496 = vst [vmem:[#allocation7_spill] sm:$0xff] %v12644_v1  ;;  %v12650_v38 = vadd.f32 %v5267_v6, %v12423_v42  ;;  %5293 = vperm.xlu1 %7415, %v5267_v6   ;;  %v12656_v60 = vpop.eup %7999  ;;  %v14497_v18 = vsub.f32 1.0, %v12534_v57  ;;  %8007 = vrcp.f32 %v5171_v53  ;;  %v5174_v23 = vadd.f32 1.0, %v7996_v8  ;;  %v14500_v36 = vld [vmem:[#allocation31_spill] sm:$0xff]  ;;  %v14502_v8 = vld [vmem:[#allocation84_spill] sm:$0xff] }
 0x457   :  { %v3689_v63 = vmul.f32 %v14498_v17, %v12290_v11  ;;  %8009 = vpow2.f32 %v5477_v54  ;;  %v5469_v1 = vmul.f32 %v14499_v29, %v5429_v40  ;;  %v5430_v42 = vsub.f32 0.0, %v5374_v32  ;;  %v14504_v17 = vld [vmem:[#allocation12_spill] sm:$0xff] }
 0x458   :  { %v5341_v12 = vsub.f32 1.0, %v14497_v18  ;;  %v5270_v6 = vmul.f32 %v5262_v56, %v12654_v62  ;;  %v12664_v52 = vpop.eup %8001  ;;  %8011 = vpow2.f32 %v6740_v37  ;;  %v5473_v34 = vmul.f32 1.442695, %v5464_v46  ;;  %v12668_v18 = vpop.permute.xlu0 %4148 }
 0x459   :  { %v5467_v48 = vmul.f32 %v14500_v36, %v5427_v10  ;;  %v5372_v57 = vmax.f32 %v12637_v2, 0.0  ;;  %14501 = vst [vmem:[#allocation141_spill] sm:$0xff] %v12668_v18  ;;  %v5339_v53 = vsub.f32 1.0, %v5259_v3  ;;  %8013 = vpow2.f32 %v6738_v41  ;;  %v12683_v37 = vpop.permute.xlu1 %4113  ;;  %v14516_v2 = vld [vmem:[#allocation115_spill] sm:$0xff] }
 0x45a   :  { %v12672_v11 = vadd.f32 %v12391_v58, %v14502_v8  ;;  %v12675_v54 = vadd.f32 %v5270_v6, %v12357_v55  ;;  %5308 = vperm.xlu0 %7416, %v5270_v6   ;;  %v12677_v40 = vadd.f32 1e-10, %v5341_v12  ;;  %8015 = vrcp.f32 %v5174_v23  ;;  %v14505_v55 = vld [vmem:[#allocation106_spill] sm:$0xff] }
 0x45b   :  { %v5260_v46 = vsub.f32 1.0, %v12656_v60  ;;  %v12681_v10 = vadd.f32 %v3689_v63, %v12434_v13  ;;  %v12685_v3 = vpop.eup %8003  ;;  %v5489_v32 = vsub.f32 1.0, %v12664_v52  ;;  %v5483_v41 = vmul.f32 1.442695, %v5469_v1  ;;  %v14508_v52 = vld [vmem:[#allocation154_spill] sm:$0xff] }
 0x45c   :  { %14503 = vst [vmem:[#allocation85_spill] sm:$0xff] %v12672_v11  ;;  %v5470_v29 = vmul.f32 %v14504_v17, %v5430_v42  ;;  %v12691_v6 = vadd.f32 %v12391_v58, %v14505_v55  ;;  %v12693_v12 = vpop.eup %8005  ;;  %v12696_v60 = vmul.f32 -1.442695, %v12513_v30  ;;  %8017 = vpow2.f32 %v5473_v34  ;;  %v14510_v34 = vld [vmem:[#allocation33_spill] sm:$0xff] }
 0x45d   :  { %14507 = vst [vmem:[#allocation52_spill] sm:$0xff] %v12693_v12  ;;  %v5479_v13 = vmul.f32 1.442695, %v5467_v48  ;;  %v5428_v23 = vsub.f32 0.0, %v5372_v57  ;;  %v12698_v63 = vadd.f32 1e-10, %v5339_v53  ;;  %v12703_v1 = vadd.f32 %v12391_v58, %v14508_v52  ;;  %v12712_v57 = vpop.permute.xlu0 %4138 }
 0x45e   :  { %14506 = vst [vmem:[#allocation48_spill] sm:$0xff] %v12691_v6  ;;  %v5601_v36 = vmax.f32 %v12672_v11, 0.0  ;;  %v12707_v42 = vmul.f32 %v12549_v19, %v12472_v0  ;;  %v5342_v8 = vsub.f32 1.0, %v5262_v56  ;;  %v5340_v17 = vsub.f32 1.0, %v5260_v46  ;;  %14511 = vst [vmem:[#allocation142_spill] sm:$0xff] %v12712_v57  ;;  %v14513_v0 = vld [vmem:[#allocation125_spill] sm:$0xff] }
 0x45f   :  { %14509 = vst [vmem:[#allocation23_spill] sm:$0xff] %v12703_v1  ;;  %v5487_v30 = vsub.f32 1.0, %v12685_v3  ;;  %v3690_v48 = vmul.f32 %v14510_v34, %v12229_v61  ;;  %8019 = vpow2.f32 %v5483_v41  ;;  %v5485_v53 = vmul.f32 1.442695, %v5470_v29  ;;  %v12726_v61 = vpop.permute.xlu1 %4143 }
 0x460   :  { %v5599_v55 = vmax.f32 %v12691_v6, 0.0  ;;  %v5497_v52 = vmul.f32 %v5489_v32, %v12707_v42  ;;  %v12716_v11 = vpop.eup %8007  ;;  %8021 = vpow2.f32 %v5479_v13  ;;  %v5468_v19 = vmul.f32 %v14513_v0, %v5428_v23  ;;  %14514 = vst [vmem:[#allocation73_spill] sm:$0xff] %v12726_v61  ;;  %v14515_v13 = vld [vmem:[#allocation42_spill] sm:$0xff]  ;;  %v14546_v61 = vld [vmem:[#allocation75_spill] sm:$0xff] }
 0x461   :  { %14512 = vst [vmem:[#allocation58_spill] sm:$0xff] %v12716_v11  ;;  %v12720_v56 = vadd.f32 %v3690_v48, %v12468_v21  ;;  %v12724_v3 = vmul.f32 %v12546_v47, %v12384_v39  ;;  %v8010_v41 = vpop.eup %8009  ;;  %v5657_v29 = vsub.f32 0.0, %v5601_v36  ;;  %v5602_v34 = vmax.f32 %v12703_v1, 0.0  ;;  %v14517_v21 = vld [vmem:[#allocation93_spill] sm:$0xff]  ;;  %v14522_v1 = vld [vmem:[#allocation158_spill] sm:$0xff] }
 0x462   :  { %v12730_v6 = vadd.f32 %v5497_v52, %v12496_v45  ;;  %5515 = vperm.xlu1 %7415, %v5497_v52   ;;  %v3687_v23 = vmul.f32 %v14516_v2, %v14515_v13  ;;  %v12734_v0 = vpop.eup %8011  ;;  %v12738_v48 = vadd.f32 %v12391_v58, %v14517_v21  ;;  %v14519_v39 = vld [vmem:[#allocation81_spill] sm:$0xff]  ;;  %v12747_v45 = vmul.f32 %v12559_v44, %v12476_v20  ;;  %v14523_v21 = vld [vmem:[#allocation28_spill] sm:$0xff]  ;;  %v12762_v44 = vpop.permute.xlu0 %4360 }
 0x463   :  { %v12742_v47 = vadd.f32 %v12391_v58, %v14519_v39  ;;  %v5268_v36 = vmul.f32 %v5260_v46, %v12724_v3  ;;  %v12749_v52 = vpop.eup %8013  ;;  %8023 = vpow2.f32 %v5485_v53  ;;  %v5655_v2 = vsub.f32 0.0, %v5599_v55  ;;  %14525 = vst [vmem:[#allocation16_spill] sm:$0xff] %v12762_v44  ;;  %v14526_v55 = vld [vmem:[#allocation116_spill] sm:$0xff]  ;;  %v14533_v44 = vld [vmem:[#allocation159_spill] sm:$0xff] }
 0x464   :  { %14518 = vst [vmem:[#allocation109_spill] sm:$0xff] %v12738_v48  ;;  %14521 = vst [vmem:[#allocation107_spill] sm:$0xff] %v12749_v52  ;;  %v12752_v13 = vadd.f32 %v3687_v23, %v12505_v43  ;;  %v3688_v11 = vmul.f32 %v14523_v21, %v14522_v1  ;;  %v12756_v12 = vpop.eup %8015  ;;  %v5490_v39 = vsub.f32 1.0, %v8010_v41  ;;  %v5481_v57 = vmul.f32 1.442695, %v5468_v19 }
 0x465   :  { %14520 = vst [vmem:[#allocation144_spill] sm:$0xff] %v12742_v47  ;;  %14524 = vst [vmem:[#allocation149_spill] sm:$0xff] %v12756_v12  ;;  %v12759_v46 = vadd.f32 %v5268_v36, %v12412_v4  ;;  %5298 = vperm.xlu0 %7416, %v5268_v36   ;;  %v5495_v20 = vmul.f32 %v5487_v30, %v12747_v45  ;;  %v12764_v53 = vadd.f32 1e-10, %v5342_v8  ;;  %v5658_v23 = vsub.f32 0.0, %v5602_v34  ;;  %v12781_v36 = vpop.permute.xlu1 %4133  ;;  %v14528_v34 = vld [vmem:[#allocation20_spill] sm:$0xff] }
 0x466   :  { %v5697_v43 = vmul.f32 %v14526_v55, %v5657_v29  ;;  %v12768_v52 = vadd.f32 %v3688_v11, %v12522_v59  ;;  %v12770_v1 = vpop.eup %8017  ;;  %v5600_v19 = vmax.f32 %v12738_v48, 0.0  ;;  %v5605_v4 = vmax.f32 %v12742_v47, 0.0  ;;  %14527 = vst [vmem:[#allocation54_spill] sm:$0xff] %v12781_v36  ;;  %v14529_v11 = vld [vmem:[#allocation156_spill] sm:$0xff]  ;;  %v14531_v55 = vld [vmem:[#allocation130_spill] sm:$0xff]  ;;  %v12809_v36 = vpop.permute.xlu0 %4350 }
 0x467   :  { %5505 = vperm.xlu1 %7415, %v5495_v20   ;;  %v12775_v41 = vadd.f32 %v5495_v20, %v12499_v14  ;;  %v12779_v8 = vmul.f32 %v12565_v26, %v12517_v25  ;;  %v5569_v29 = vsub.f32 1.0, %v5489_v32  ;;  %v5695_v59 = vmul.f32 %v14528_v34, %v5655_v2  ;;  %v14532_v48 = vld [vmem:[#allocation26_spill] sm:$0xff]  ;;  %14536 = vst [vmem:[#allocation112_spill] sm:$0xff] %v12809_v36 }
 0x468   :  { %v12786_v21 = vadd.f32 %v12391_v58, %v14529_v11  ;;  %v3693_v47 = vmul.f32 %v14532_v48, %v14531_v55  ;;  %v12790_v12 = vadd.f32 1e-10, %v5340_v17  ;;  %v5567_v14 = vsub.f32 1.0, %v5487_v30  ;;  %v14535_v17 = vld [vmem:[#allocation123_spill] sm:$0xff] }
 0x469   :  { %8025 = vpow2.f32 %v5481_v57  ;;  %v5498_v20 = vmul.f32 %v5490_v39, %v12779_v8  ;;  %v12793_v25 = vpop.eup %8019  ;;  %v5488_v26 = vsub.f32 1.0, %v12770_v1  ;;  %v5707_v32 = vmul.f32 1.442695, %v5697_v43 }
 0x46a   :  { %14530 = vst [vmem:[#allocation24_spill] sm:$0xff] %v12786_v21  ;;  %v12798_v2 = vadd.f32 %v12391_v58, %v14533_v44  ;;  %v12801_v34 = vadd.f32 %v3693_v47, %v12532_v51  ;;  %v12803_v11 = vpop.eup %8021  ;;  %v5698_v48 = vmul.f32 %v14535_v17, %v5658_v23  ;;  %v5656_v30 = vsub.f32 0.0, %v5600_v19  ;;  %v14537_v19 = vld [vmem:[#allocation61_spill] sm:$0xff]  ;;  %v14542_v17 = vld [vmem:[#allocation27_spill] sm:$0xff] }
 0x46b   :  { %v5661_v57 = vsub.f32 0.0, %v5605_v4  ;;  %v12807_v55 = vadd.f32 %v5498_v20, %v12539_v33  ;;  %5520 = vperm.xlu0 %7416, %v5498_v20   ;;  %v12811_v43 = vadd.f32 1e-10, %v5569_v29  ;;  %8027 = vpow2.f32 %v12696_v60  ;;  %v12824_v4 = vpop.permute.xlu1 %4355 }
 0x46c   :  { %14534 = vst [vmem:[#allocation111_spill] sm:$0xff] %v12798_v2  ;;  %v5703_v44 = vmul.f32 1.442695, %v5695_v59  ;;  %v5603_v51 = vmax.f32 %v12786_v21, 0.0  ;;  %v12815_v47 = vadd.f32 1e-10, %v5567_v14  ;;  %v12822_v33 = vadd.f32 %v12391_v58, %v14537_v19 }
 0x46d   :  { %v12817_v1 = vsub.f32 1.0, %v5490_v39  ;;  %v5493_v23 = vsub.f32 1.0, %v12793_v25  ;;  %14539 = vst [vmem:[#allocation64_spill] sm:$0xff] %v12824_v4  ;;  %v12826_v20 = vpop.eup %8023  ;;  %v12828_v29 = vsub.f32 1.0, %v5488_v26  ;;  %8029 = vpow2.f32 %v5707_v32  ;;  %v14540_v59 = vld [vmem:[#allocation44_spill] sm:$0xff]  ;;  %v14543_v21 = vld [vmem:[#allocation138_spill] sm:$0xff] }
 0x46e   :  { %14538 = vst [vmem:[#allocation150_spill] sm:$0xff] %v12822_v33  ;;  %v5606_v60 = vmax.f32 %v12798_v2, 0.0  ;;  %v12833_v14 = vadd.f32 %v12391_v58, %v14540_v59  ;;  %v5709_v39 = vmul.f32 1.442695, %v5698_v48  ;;  %v5696_v25 = vmul.f32 %v14542_v17, %v5656_v30  ;;  %v14544_v32 = vld [vmem:[#allocation117_spill] sm:$0xff] }
 0x46f   :  { %v5701_v36 = vmul.f32 %v14543_v21, %v5661_v57  ;;  %v12839_v19 = vmul.f32 %v12677_v40, %v12573_v50  ;;  %v5491_v4 = vsub.f32 1.0, %v12803_v11  ;;  %8031 = vpow2.f32 %v5703_v44  ;;  %v12853_v50 = vpop.permute.xlu0 %4380  ;;  %v14549_v57 = vld [vmem:[#allocation22_spill] sm:$0xff] }
 0x470   :  { %14541 = vst [vmem:[#allocation15_spill] sm:$0xff] %v12833_v14  ;;  %v5659_v18 = vsub.f32 0.0, %v5603_v51  ;;  %v12844_v2 = vadd.f32 %v12391_v58, %v14544_v32  ;;  %v5604_v48 = vmax.f32 %v12822_v33, 0.0  ;;  %v12850_v30 = vadd.f32 %v12391_v58, %v14546_v61  ;;  %14548 = vst [vmem:[#allocation35_spill] sm:$0xff] %v12853_v50  ;;  %v14550_v44 = vld [vmem:[#allocation122_spill] sm:$0xff]  ;;  %v12867_v50 = vpop.permute.xlu1 %4345 }
 0x471   :  { %v5501_v21 = vmul.f32 %v5493_v23, %v12839_v19  ;;  %v5662_v40 = vsub.f32 0.0, %v5606_v60  ;;  %v5833_v11 = vmax.f32 %v12833_v14, 0.0  ;;  %v3694_v51 = vmul.f32 %v14550_v44, %v14549_v57  ;;  %14551 = vst [vmem:[#allocation31_spill] sm:$0xff] %v12867_v50  ;;  %v14552_v60 = vld [vmem:[#allocation32_spill] sm:$0xff] }
 0x472   :  { %14545 = vst [vmem:[#allocation88_spill] sm:$0xff] %v12844_v2  ;;  %14547 = vst [vmem:[#allocation68_spill] sm:$0xff] %v12850_v30  ;;  %v12860_v17 = vmul.f32 %v12646_v22, %v12589_v31  ;;  %8033 = vpow2.f32 %v5709_v39  ;;  %v5705_v59 = vmul.f32 1.442695, %v5696_v25  ;;  %v5715_v61 = vmul.f32 1.442695, %v5701_v36 }
 0x473   :  { %v12862_v32 = vpop.eup %8025  ;;  %v12865_v33 = vadd.f32 %v5501_v21, %v12605_v16  ;;  %5535 = vperm.xlu1 %7415, %v5501_v21   ;;  %v5699_v14 = vmul.f32 %v14552_v60, %v5659_v18  ;;  %v5831_v27 = vmax.f32 %v12844_v2, 0.0  ;;  %v12872_v57 = vadd.f32 %v3694_v51, %v12608_v24  ;;  %v14553_v25 = vld [vmem:[#allocation134_spill] sm:$0xff]  ;;  %v14554_v36 = vld [vmem:[#allocation77_spill] sm:$0xff] }
 0x474   :  { %v5496_v31 = vmul.f32 %v5488_v26, %v12860_v17  ;;  %v5660_v22 = vsub.f32 0.0, %v5604_v48  ;;  %v5834_v39 = vmax.f32 %v12850_v30, 0.0  ;;  %v3691_v44 = vmul.f32 %v14554_v36, %v14553_v25  ;;  %v14556_v60 = vld [vmem:[#allocation89_spill] sm:$0xff]  ;;  %v14557_v26 = vld [vmem:[#allocation70_spill] sm:$0xff]  ;;  %v14561_v36 = vld [vmem:[#allocation124_spill] sm:$0xff] }
 0x475   :  { %v12880_v16 = vmul.f32 %v12698_v63, %v12622_v9  ;;  %v12882_v21 = vpop.eup %8027  ;;  %v5492_v18 = vsub.f32 1.0, %v12862_v32  ;;  %v5702_v2 = vmul.f32 %v14556_v60, %v5662_v40  ;;  %v5889_v24 = vsub.f32 0.0, %v5833_v11  ;;  %v12897_v63 = vpop.permute.xlu0 %4370 }
 0x476   :  { %14555 = vst [vmem:[#allocation84_spill] sm:$0xff] %v12882_v21  ;;  %v12887_v51 = vadd.f32 %v5496_v31, %v12618_v28  ;;  %5510 = vperm.xlu0 %7416, %v5496_v31   ;;  %8035 = vpow2.f32 %v5705_v59  ;;  %v12891_v48 = vadd.f32 %v12391_v58, %v14557_v26  ;;  %v12894_v25 = vadd.f32 %v3691_v44, %v12613_v49  ;;  %v14560_v28 = vld [vmem:[#allocation108_spill] sm:$0xff]  ;;  %v14562_v59 = vld [vmem:[#allocation127_spill] sm:$0xff]  ;;  %v12911_v44 = vpop.permute.xlu1 %4375 }
 0x477   :  { %v5499_v9 = vmul.f32 %v5491_v4, %v12880_v16  ;;  %14559 = vst [vmem:[#allocation106_spill] sm:$0xff] %v12897_v63  ;;  %v12899_v32 = vpop.eup %8029  ;;  %8037 = vpow2.f32 %v5715_v61  ;;  %v5711_v40 = vmul.f32 1.442695, %v5699_v14  ;;  %v5887_v11 = vsub.f32 0.0, %v5831_v27  ;;  %14563 = vst [vmem:[#allocation154_spill] sm:$0xff] %v12911_v44  ;;  %v14564_v61 = vld [vmem:[#allocation74_spill] sm:$0xff] }
 0x478   :  { %14558 = vst [vmem:[#allocation12_spill] sm:$0xff] %v12891_v48  ;;  %v3692_v31 = vmul.f32 %v14561_v36, %v14560_v28  ;;  %v5700_v60 = vmul.f32 %v14562_v59, %v5660_v22  ;;  %v5890_v30 = vsub.f32 0.0, %v5834_v39  ;;  %v12909_v49 = vmul.f32 %v12790_v12, %v12724_v3  ;;  %v14565_v12 = vld [vmem:[#allocation25_spill] sm:$0xff]  ;;  %v14566_v3 = vld [vmem:[#allocation47_spill] sm:$0xff] }
 0x479   :  { %v12905_v26 = vadd.f32 %v5499_v9, %v12650_v38  ;;  %5525 = vperm.xlu1 %7415, %v5499_v9   ;;  %v12913_v21 = vpop.eup %8031  ;;  %v5573_v14 = vsub.f32 1.0, %v5493_v23  ;;  %v5717_v27 = vmul.f32 1.442695, %v5702_v2  ;;  %v5929_v63 = vmul.f32 %v14564_v61, %v5889_v24  ;;  %v14567_v2 = vld [vmem:[#allocation114_spill] sm:$0xff] }
 0x47a   :  { %v12917_v28 = vadd.f32 %v3692_v31, %v12640_v15  ;;  %v12920_v22 = vadd.f32 1e-10, %v12817_v1  ;;  %v5832_v38 = vmax.f32 %v12891_v48, 0.0  ;;  %v5500_v39 = vmul.f32 %v5492_v18, %v12909_v49  ;;  %v14569_v61 = vld [vmem:[#allocation82_spill] sm:$0xff] }
 0x47b   :  { %v3921_v9 = vmul.f32 %v14566_v3, %v14565_v12  ;;  %v12927_v36 = vadd.f32 1e-10, %v12828_v29  ;;  %v5571_v23 = vsub.f32 1.0, %v5491_v4  ;;  %8039 = vpow2.f32 %v5711_v40  ;;  %v12938_v12 = vpop.permute.xlu0 %4592  ;;  %v14571_v3 = vld [vmem:[#allocation53_spill] sm:$0xff] }
 0x47c   :  { %v5927_v24 = vmul.f32 %v14567_v2, %v5887_v11  ;;  %v12930_v59 = vpop.eup %8033  ;;  %v14568_v15 = vsub.f32 1.0, %v12826_v20  ;;  %v5713_v31 = vmul.f32 1.442695, %v5700_v60  ;;  %v5930_v48 = vmul.f32 %v14569_v61, %v5890_v30  ;;  %5530 = vperm.xlu0 %7416, %v5500_v39   ;;  %14570 = vst [vmem:[#allocation33_spill] sm:$0xff] %v12938_v12  ;;  %v14573_v60 = vld [vmem:[#allocation96_spill] sm:$0xff] }
 0x47d   :  { %v12936_v44 = vadd.f32 %v5500_v39, %v12759_v46  ;;  %v12940_v29 = vadd.f32 1e-10, %v5573_v14  ;;  %8041 = vpow2.f32 %v5717_v27  ;;  %v5939_v4 = vmul.f32 1.442695, %v5929_v63  ;;  %v12957_v14 = vpop.permute.xlu1 %4365 }
 0x47e   :  { %v5574_v1 = vsub.f32 1.0, %v14568_v15  ;;  %v12943_v40 = vadd.f32 %v3921_v9, %v12681_v10  ;;  %v5888_v11 = vsub.f32 0.0, %v5832_v38  ;;  %v12947_v2 = vadd.f32 %v12391_v58, %v14571_v3  ;;  %14575 = vst [vmem:[#allocation115_spill] sm:$0xff] %v12957_v14 }
 0x47f   :  { %v12951_v30 = vadd.f32 %v12391_v58, %v14573_v60  ;;  %v12955_v46 = vmul.f32 %v12764_v53, %v12654_v62  ;;  %v12960_v63 = vadd.f32 1.0, %v12734_v0  ;;  %v12962_v10 = vadd.f32 1e-10, %v5571_v23  ;;  %v14577_v53 = vld [vmem:[#allocation87_spill] sm:$0xff]  ;;  %v12984_v12 = vpop.permute.xlu0 %4582 }
 0x480   :  { %14572 = vst [vmem:[#allocation125_spill] sm:$0xff] %v12947_v2  ;;  %v5572_v27 = vsub.f32 1.0, %v5492_v18  ;;  %v5935_v38 = vmul.f32 1.442695, %v5927_v24  ;;  %v12964_v39 = vpop.eup %8035  ;;  %v12966_v9 = vadd.f32 1e-10, %v5574_v1  ;;  %8043 = vpow2.f32 %v5713_v31 }
 0x481   :  { %14574 = vst [vmem:[#allocation42_spill] sm:$0xff] %v12951_v30  ;;  %14576 = vst [vmem:[#allocation93_spill] sm:$0xff] %v12960_v63  ;;  %v5721_v15 = vsub.f32 1.0, %v12899_v32  ;;  %v5941_v61 = vmul.f32 1.442695, %v5930_v48  ;;  %v12969_v3 = vpop.eup %8037  ;;  %v5719_v62 = vsub.f32 1.0, %v12913_v21  ;;  %8045 = vpow2.f32 %v5939_v4 }
 0x482   :  { %v12974_v0 = vadd.f32 %v12391_v58, %v14577_v53  ;;  %v14579_v18 = vsub.f32 1.0, %v12826_v20  ;;  %v14580_v24 = vld [vmem:[#allocation119_spill] sm:$0xff]  ;;  %v5837_v60 = vmax.f32 %v12947_v2, 0.0  ;;  %v5835_v32 = vmax.f32 %v12951_v30, 0.0  ;;  %v14581_v48 = vld [vmem:[#allocation21_spill] sm:$0xff]  ;;  %v14582_v31 = vld [vmem:[#allocation128_spill] sm:$0xff] }
 0x483   :  { %v5928_v1 = vmul.f32 %v14580_v24, %v5888_v11  ;;  %v3922_v63 = vmul.f32 %v14582_v31, %v14581_v48  ;;  %14583 = vst [vmem:[#allocation158_spill] sm:$0xff] %v12984_v12  ;;  %v12986_v21 = vadd.f32 1e-10, %v5572_v27  ;;  %8047 = vpow2.f32 %v5935_v38  ;;  %v12998_v24 = vpop.permute.xlu1 %4587 }
 0x484   :  { %14578 = vst [vmem:[#allocation81_spill] sm:$0xff] %v12974_v0  ;;  %v5502_v23 = vmul.f32 %v14579_v18, %v12955_v46  ;;  %v12993_v20 = vmul.f32 %v12815_v47, %v12747_v45  ;;  %v5722_v11 = vsub.f32 1.0, %v12930_v59  ;;  %8049 = vpow2.f32 %v5941_v61  ;;  %14584 = vst [vmem:[#allocation28_spill] sm:$0xff] %v12998_v24  ;;  %v14585_v45 = vld [vmem:[#allocation126_spill] sm:$0xff]  ;;  %v14586_v61 = vld [vmem:[#allocation80_spill] sm:$0xff] }
 0x485   :  { %v13000_v27 = vpop.eup %8039  ;;  %v5838_v38 = vmax.f32 %v12974_v0, 0.0  ;;  %v3919_v47 = vmul.f32 %v14585_v45, %v12519_v5  ;;  %v5801_v59 = vsub.f32 1.0, %v5721_v15  ;;  %v5937_v48 = vmul.f32 1.442695, %v5928_v1  ;;  %v14589_v45 = vld [vmem:[#allocation129_spill] sm:$0xff] }
 0x486   :  { %v12989_v4 = vadd.f32 %v5502_v23, %v12675_v54  ;;  %5540 = vperm.xlu1 %7415, %v5502_v23   ;;  %v13004_v54 = vadd.f32 %v3922_v63, %v12720_v56  ;;  %v5727_v23 = vmul.f32 %v5719_v62, %v12993_v20  ;;  %v5893_v31 = vsub.f32 0.0, %v5837_v60 }
 0x487   :  { %v5891_v53 = vsub.f32 0.0, %v5835_v32  ;;  %v13009_v18 = vpop.eup %8041  ;;  %v13013_v30 = vadd.f32 %v12391_v58, %v14586_v61  ;;  %v13019_v56 = vadd.f32 %v3919_v47, %v12752_v13  ;;  %v13023_v5 = vmul.f32 %v12811_v43, %v12707_v42  ;;  %v14588_v32 = vld [vmem:[#allocation131_spill] sm:$0xff]  ;;  %v13028_v61 = vpop.permute.xlu0 %4612  ;;  %v14599_v43 = vld [vmem:[#allocation34_spill] sm:$0xff] }
 0x488   :  { %5737 = vperm.xlu0 %7416, %v5727_v23   ;;  %v13016_v0 = vadd.f32 %v5727_v23, %v12775_v41  ;;  %v5799_v63 = vsub.f32 1.0, %v5719_v62  ;;  %v5802_v1 = vsub.f32 1.0, %v5722_v11  ;;  %v3920_v2 = vmul.f32 %v14589_v45, %v14588_v32  ;;  %14590 = vst [vmem:[#allocation20_spill] sm:$0xff] %v13028_v61  ;;  %v14593_v62 = vld [vmem:[#allocation51_spill] sm:$0xff]  ;;  %v13042_v45 = vpop.permute.xlu1 %4577 }
 0x489   :  { %14587 = vst [vmem:[#allocation116_spill] sm:$0xff] %v13013_v30  ;;  %v14591_v12 = vsub.f32 1.0, %v12964_v39  ;;  %v14592_v23 = vsub.f32 1.0, %v12969_v3  ;;  %v5894_v47 = vsub.f32 0.0, %v5838_v38  ;;  %v5729_v24 = vmul.f32 %v5721_v15, %v13023_v5  ;;  %14594 = vst [vmem:[#allocation156_spill] sm:$0xff] %v13042_v45  ;;  %v14601_v45 = vld [vmem:[#allocation110_spill] sm:$0xff] }
 0x48a   :  { %v13035_v42 = vpop.eup %8043  ;;  %8051 = vpow2.f32 %v5937_v48  ;;  %v5933_v60 = vmul.f32 %v14593_v62, %v5893_v31  ;;  %v13040_v32 = vadd.f32 %v3920_v2, %v12768_v52  ;;  %v5836_v38 = vmax.f32 %v13013_v30, 0.0  ;;  %v14598_v62 = vld [vmem:[#allocation59_spill] sm:$0xff] }
 0x48b   :  { %v5800_v41 = vsub.f32 1.0, %v14591_v12  ;;  %v5805_v13 = vsub.f32 1.0, %v14592_v23  ;;  %v13044_v61 = vpop.eup %8045  ;;  %v14595_v12 = vld [vmem:[#allocation62_spill] sm:$0xff]  ;;  %v13049_v15 = vadd.f32 %v5729_v24, %v12730_v6  ;;  %5747 = vperm.xlu1 %7415, %v5729_v24   ;;  %v13053_v48 = vmul.f32 %v12920_v22, %v12779_v8  ;;  %v14600_v6 = vld [vmem:[#allocation145_spill] sm:$0xff] }
 0x48c   :  { %v5931_v14 = vmul.f32 %v14595_v12, %v5891_v53  ;;  %v13055_v31 = vadd.f32 1e-10, %v5801_v59  ;;  %v13057_v52 = vadd.f32 1e-10, %v5799_v63  ;;  %v14597_v2 = vsub.f32 1.0, %v13000_v27 }
 0x48d   :  { %14596 = vst [vmem:[#allocation130_spill] sm:$0xff] %v13049_v15  ;;  %v3925_v53 = vmul.f32 %v14599_v43, %v14598_v62  ;;  %v13063_v12 = vpop.eup %8047  ;;  %v13065_v30 = vadd.f32 1e-10, %v5802_v1  ;;  %v5934_v24 = vmul.f32 %v14600_v6, %v5894_v47  ;;  %v13070_v8 = vadd.f32 %v12391_v58, %v14601_v45  ;;  %v13082_v1 = vpop.permute.xlu0 %4602 }
 0x48e   :  { %v5803_v23 = vsub.f32 1.0, %v14597_v2  ;;  %v5730_v22 = vmul.f32 %v5722_v11, %v13053_v48  ;;  %v13073_v59 = vpop.eup %8049  ;;  %v13075_v63 = vadd.f32 1e-10, %v5800_v41  ;;  %v14603_v2 = vsub.f32 1.0, %v13009_v18  ;;  %14604 = vst [vmem:[#allocation159_spill] sm:$0xff] %v13082_v1  ;;  %v14611_v41 = vld [vmem:[#allocation43_spill] sm:$0xff] }
 0x48f   :  { %14602 = vst [vmem:[#allocation26_spill] sm:$0xff] %v13070_v8  ;;  %v5947_v43 = vmul.f32 1.442695, %v5933_v60  ;;  %v13080_v62 = vadd.f32 %v3925_v53, %v12801_v34  ;;  %v13084_v47 = vadd.f32 1e-10, %v5805_v13  ;;  %v5892_v45 = vsub.f32 0.0, %v5836_v38  ;;  %v13097_v53 = vpop.permute.xlu1 %4607 }
 0x490   :  { %v5806_v50 = vsub.f32 1.0, %v14603_v2  ;;  %v5943_v6 = vmul.f32 1.442695, %v5931_v14  ;;  %v13087_v15 = vadd.f32 %v5730_v22, %v12807_v55  ;;  %5752 = vperm.xlu0 %7416, %v5730_v22   ;;  %v13089_v11 = vadd.f32 1e-10, %v5803_v23  ;;  %v14605_v60 = vld [vmem:[#allocation121_spill] sm:$0xff] }
 0x491   :  { %v13095_v34 = vadd.f32 %v12391_v58, %v14605_v60  ;;  %14607 = vst [vmem:[#allocation61_spill] sm:$0xff] %v13097_v53  ;;  %v5949_v13 = vmul.f32 1.442695, %v5934_v24  ;;  %v6057_v14 = vmax.f32 %v13070_v8, 0.0  ;;  %v14608_v38 = vld [vmem:[#allocation30_spill] sm:$0xff]  ;;  %v13106_v23 = vmul.f32 %v12927_v36, %v12860_v17 }
 0x492   :  { %v13102_v55 = vadd.f32 %v12391_v58, %v14608_v38  ;;  %v13108_v22 = vadd.f32 1e-10, %v5806_v50  ;;  %8053 = vpow2.f32 %v5947_v43  ;;  %v5932_v24 = vmul.f32 %v14611_v41, %v5892_v45  ;;  %v14613_v38 = vld [vmem:[#allocation36_spill] sm:$0xff]  ;;  %v14618_v45 = vld [vmem:[#allocation133_spill] sm:$0xff] }
 0x493   :  { %14606 = vst [vmem:[#allocation123_spill] sm:$0xff] %v13095_v34  ;;  %8055 = vpow2.f32 %v5943_v6  ;;  %v14612_v8 = vsub.f32 1.0, %v12964_v39  ;;  %v13118_v53 = vadd.f32 %v12391_v58, %v14613_v38  ;;  %v14615_v50 = vsub.f32 1.0, %v13035_v42  ;;  %v14617_v6 = vld [vmem:[#allocation100_spill] sm:$0xff] }
 0x494   :  { %14609 = vst [vmem:[#allocation44_spill] sm:$0xff] %v13102_v55  ;;  %14610 = vst [vmem:[#allocation27_spill] sm:$0xff] %v13108_v22  ;;  %v13120_v17 = vpop.eup %8051  ;;  %v14616_v2 = vsub.f32 1.0, %v13044_v61  ;;  %v6055_v43 = vmax.f32 %v13095_v34, 0.0  ;;  %v3926_v41 = vmul.f32 %v14618_v45, %v14617_v6  ;;  %v13129_v22 = vpop.permute.xlu0 %4824  ;;  %8057 = vpow2.f32 %v5949_v13 }
 0x495   :  { %v5728_v1 = vmul.f32 %v14612_v8, %v13106_v23  ;;  %14614 = vst [vmem:[#allocation138_spill] sm:$0xff] %v13118_v53  ;;  %v5804_v36 = vsub.f32 1.0, %v14615_v50  ;;  %14619 = vst [vmem:[#allocation117_spill] sm:$0xff] %v13129_v22  ;;  %v6113_v39 = vsub.f32 0.0, %v6057_v14  ;;  %v6058_v58 = vmax.f32 %v13102_v55, 0.0  ;;  %v13145_v13 = vpop.permute.xlu1 %4597  ;;  %v14624_v55 = vld [vmem:[#allocation132_spill] sm:$0xff] }
 0x496   :  { %v6033_v60 = vsub.f32 1.0, %v14616_v2  ;;  %v14621_v38 = vsub.f32 1.0, %v13063_v12  ;;  %v6056_v2 = vmax.f32 %v13118_v53, 0.0  ;;  %v13139_v34 = vadd.f32 %v3926_v41, %v12872_v57  ;;  %14622 = vst [vmem:[#allocation22_spill] sm:$0xff] %v13145_v13  ;;  %v14626_v41 = vld [vmem:[#allocation57_spill] sm:$0xff] }
 0x497   :  { %v13133_v8 = vadd.f32 %v5728_v1, %v12887_v51  ;;  %5742 = vperm.xlu1 %7415, %v5728_v1   ;;  %v13143_v6 = vmul.f32 %v12940_v29, %v12839_v19  ;;  %v14623_v14 = vsub.f32 1.0, %v13073_v59  ;;  %v13858_v51 = vsub.f32 1.0, %v13120_v17 }
 0x498   :  { %v6031_v50 = vsub.f32 1.0, %v14621_v38  ;;  %v5945_v1 = vmul.f32 1.442695, %v5932_v24  ;;  %v3923_v38 = vmul.f32 %v14624_v55, %v12596_v7  ;;  %v13152_v22 = vadd.f32 1e-10, %v5804_v36  ;;  %v14627_v36 = vld [vmem:[#allocation39_spill] sm:$0xff] }
 0x499   :  { %14620 = vst [vmem:[#allocation75_spill] sm:$0xff] %v13133_v8  ;;  %v6034_v45 = vsub.f32 1.0, %v14623_v14  ;;  %v13154_v53 = vadd.f32 1e-10, %v6033_v60  ;;  %v6111_v57 = vsub.f32 0.0, %v6055_v43  ;;  %v14625_v19 = vsub.f32 1.0, %v12969_v3 }
 0x49a   :  { %v6153_v13 = vmul.f32 %v14626_v41, %v6113_v39  ;;  %v6114_v8 = vsub.f32 0.0, %v6058_v58  ;;  %v13161_v14 = vadd.f32 %v3923_v38, %v12894_v25  ;;  %v13165_v24 = vmul.f32 %v12962_v10, %v12880_v16  ;;  %v14628_v3 = vld [vmem:[#allocation136_spill] sm:$0xff]  ;;  %v14632_v38 = vld [vmem:[#allocation18_spill] sm:$0xff] }
 0x49b   :  { %v5733_v29 = vmul.f32 %v14625_v19, %v13143_v6  ;;  %v13167_v7 = vadd.f32 1e-10, %v6031_v50  ;;  %v6112_v55 = vsub.f32 0.0, %v6056_v2  ;;  %v3924_v43 = vmul.f32 %v14628_v3, %v14627_v36  ;;  %v13174_v19 = vpop.permute.xlu0 %4814 }
 0x49c   :  { %14629 = vst [vmem:[#allocation122_spill] sm:$0xff] %v13174_v19  ;;  %v13176_v39 = vadd.f32 1e-10, %v6034_v45  ;;  %v6032_v25 = vsub.f32 1.0, %v13858_v51  ;;  %8059 = vpow2.f32 %v5945_v1  ;;  %v14630_v16 = vsub.f32 1.0, %v13000_v27  ;;  %v13183_v58 = vpop.eup %8053  ;;  %v13199_v27 = vpop.permute.xlu1 %4819  ;;  %v14640_v19 = vld [vmem:[#allocation10_spill] sm:$0xff] }
 0x49d   :  { %v13170_v60 = vadd.f32 %v5733_v29, %v12865_v33  ;;  %5767 = vperm.xlu0 %7416, %v5733_v29   ;;  %v14631_v33 = vld [vmem:[#allocation37_spill] sm:$0xff]  ;;  %v13187_v2 = vadd.f32 %v3924_v43, %v12917_v28  ;;  %v8216_v45 = vld [vmem:[%s13817_s7] ss:$0 sm:$0xff]  ;;  %v13197_v1 = vmul.f32 %v12986_v21, %v12909_v49  ;;  %14634 = vst [vmem:[#allocation134_spill] sm:$0xff] %v13199_v27  ;;  %v13201_v41 = vpop.eup %8055  ;;  %v6163_v36 = vmul.f32 1.442695, %v6153_v13 }
 0x49e   :  { %v5731_v10 = vmul.f32 %v14630_v16, %v13165_v24  ;;  %v6151_v50 = vmul.f32 %v14631_v33, %v6111_v57  ;;  %v13193_v29 = vadd.f32 %v8216_v45, %v14632_v38  ;;  %v14635_v57 = vld [vmem:[#allocation72_spill] sm:$0xff]  ;;  %v14638_v33 = vld [vmem:[#allocation55_spill] sm:$0xff]  ;;  %v14639_v49 = vsub.f32 1.0, %v13035_v42  ;;  %v13217_v27 = vpop.eup %8057 }
 0x49f   :  { %v6154_v3 = vmul.f32 %v14635_v57, %v6114_v8  ;;  %v14636_v43 = vld [vmem:[#allocation40_spill] sm:$0xff]  ;;  %v6152_v38 = vmul.f32 %v14638_v33, %v6112_v55  ;;  %v4153_v13 = vmul.f32 %v14640_v19, %v12642_v35  ;;  %v13219_v8 = vadd.f32 1e-10, %v6032_v25  ;;  %v14642_v57 = vld [vmem:[#allocation17_spill] sm:$0xff]  ;;  %v13230_v35 = vpop.permute.xlu0 %4844  ;;  %v14644_v55 = vld [vmem:[#allocation95_spill] sm:$0xff] }
 0x4a0   :  { %14633 = vst [vmem:[#allocation32_spill] sm:$0xff] %v13193_v29  ;;  %v13205_v28 = vadd.f32 %v5731_v10, %v12905_v26  ;;  %5757 = vperm.xlu1 %7415, %v5731_v10   ;;  %v13208_v16 = vadd.f32 %v8216_v45, %v14636_v43  ;;  %v6061_v51 = vmax.f32 %v13193_v29, 0.0  ;;  %v5732_v21 = vmul.f32 %v14639_v49, %v13197_v1 }
 0x4a1   :  { %14641 = vst [vmem:[#allocation89_spill] sm:$0xff] %v13219_v8  ;;  %v13224_v43 = vadd.f32 %v8216_v45, %v14642_v57  ;;  %v6159_v33 = vmul.f32 1.442695, %v6151_v50  ;;  %v6165_v19 = vmul.f32 1.442695, %v6154_v3  ;;  %v13233_v49 = vadd.f32 %v4153_v13, %v12943_v40  ;;  %v14649_v57 = vld [vmem:[#allocation140_spill] sm:$0xff] }
 0x4a2   :  { %14637 = vst [vmem:[#allocation77_spill] sm:$0xff] %v13208_v16  ;;  %v6059_v10 = vmax.f32 %v13208_v16, 0.0  ;;  %v6117_v29 = vsub.f32 0.0, %v6061_v51  ;;  %v13228_v42 = vadd.f32 %v5732_v21, %v12936_v44  ;;  %5762 = vperm.xlu0 %7416, %v5732_v21   ;;  %8061 = vpow2.f32 %v6163_v36  ;;  %v13238_v51 = vpop.permute.xlu1 %4809  ;;  %v14645_v44 = vld [vmem:[#allocation66_spill] sm:$0xff] }
 0x4a3   :  { %14643 = vst [vmem:[#allocation70_spill] sm:$0xff] %v13224_v43  ;;  %v6062_v26 = vmax.f32 %v13224_v43, 0.0  ;;  %v6161_v16 = vmul.f32 1.442695, %v6152_v38  ;;  %v13243_v3 = vmul.f32 %v12966_v9, %v12955_v46  ;;  %8063 = vpow2.f32 %v6159_v33  ;;  %v14648_v43 = vld [vmem:[#allocation120_spill] sm:$0xff] }
 0x4a4   :  { %v6115_v25 = vsub.f32 0.0, %v6059_v10  ;;  %v6157_v50 = vmul.f32 %v14644_v55, %v6117_v29  ;;  %v14646_v10 = vld [vmem:[#allocation103_spill] sm:$0xff]  ;;  %v4154_v36 = vmul.f32 %v14649_v57, %v14648_v43  ;;  %v13252_v29 = vmul.f32 %v13057_v52, %v12993_v20  ;;  %v14650_v55 = vld [vmem:[#allocation102_spill] sm:$0xff]  ;;  %v13265_v52 = vpop.permute.xlu0 %4834 }
 0x4a5   :  { %v6118_v21 = vsub.f32 0.0, %v6062_v26  ;;  %v13246_v40 = vadd.f32 %v8216_v45, %v14646_v10  ;;  %8065 = vpow2.f32 %v6165_v19  ;;  %v14651_v46 = vsub.f32 1.0, %v13009_v18 }
 0x4a6   :  { %v6155_v8 = vmul.f32 %v14645_v44, %v6115_v25  ;;  %v6171_v13 = vmul.f32 1.442695, %v6157_v50  ;;  %v13254_v38 = vpop.eup %8059  ;;  %v14652_v45 = vsub.f32 1.0, %v13183_v58  ;;  %v14653_v50 = vsub.f32 1.0, %v13201_v41 }
 0x4a7   :  { %14647 = vst [vmem:[#allocation108_spill] sm:$0xff] %v13246_v40  ;;  %v6158_v25 = vmul.f32 %v14650_v55, %v6118_v21  ;;  %v5734_v9 = vmul.f32 %v14651_v46, %v13243_v3  ;;  %8067 = vpow2.f32 %v6161_v16  ;;  %v6060_v20 = vmax.f32 %v13246_v40, 0.0  ;;  %v13278_v55 = vpop.permute.xlu1 %4839  ;;  %v14658_v46 = vld [vmem:[#allocation97_spill] sm:$0xff]  ;;  %v14682_v40 = vld [vmem:[#allocation151_spill] sm:$0xff] }
 0x4a8   :  { %v6167_v26 = vmul.f32 1.442695, %v6155_v8  ;;  %v6037_v33 = vsub.f32 1.0, %v14652_v45  ;;  %v6035_v43 = vsub.f32 1.0, %v14653_v50  ;;  %8069 = vpow2.f32 %v6171_v13 }
 0x4a9   :  { %v6173_v19 = vmul.f32 1.442695, %v6158_v25  ;;  %v13268_v8 = vadd.f32 %v5734_v9, %v12989_v4  ;;  %5772 = vperm.xlu1 %7415, %v5734_v9   ;;  %v13271_v18 = vadd.f32 %v4154_v36, %v13004_v54  ;;  %v14654_v57 = vsub.f32 1.0, %v13217_v27  ;;  %v14656_v4 = vld [vmem:[#allocation139_spill] sm:$0xff]  ;;  %v14657_v36 = vld [vmem:[#allocation49_spill] sm:$0xff] }
 0x4aa   :  { %8071 = vpow2.f32 %v6167_v26  ;;  %v6116_v21 = vsub.f32 0.0, %v6060_v20  ;;  %v14655_v16 = vsub.f32 1.0, %v13063_v12  ;;  %v13862_v13 = vsub.f32 1.0, %v13254_v38  ;;  %v14659_v26 = vld [vmem:[#allocation148_spill] sm:$0xff]  ;;  %v14660_v20 = vld [vmem:[#allocation73_spill] sm:$0xff] }
 0x4ab   :  { %v6038_v44 = vsub.f32 1.0, %v14654_v57  ;;  %v4151_v25 = vmul.f32 %v14656_v4, %v12683_v37  ;;  %v13285_v54 = vmul.f32 %v13055_v31, %v13023_v5  ;;  %v4152_v9 = vmul.f32 %v14658_v46, %v14657_v36  ;;  %v14661_v57 = vld [vmem:[#allocation143_spill] sm:$0xff] }
 0x4ac   :  { %v5959_v10 = vmul.f32 %v14655_v16, %v13252_v29  ;;  %v6156_v45 = vmul.f32 %v14659_v26, %v6116_v21  ;;  %v13295_v50 = vmul.f32 %v13065_v30, %v13053_v48  ;;  %v4157_v37 = vmul.f32 %v14661_v57, %v14660_v20  ;;  %v14666_v46 = vld [vmem:[#allocation147_spill] sm:$0xff]  ;;  %v13343_v20 = vpop.permute.xlu1 %4829 }
 0x4ad   :  { %8073 = vpow2.f32 %v6173_v19  ;;  %v13300_v5 = vadd.f32 %v4151_v25, %v13019_v56  ;;  %v14662_v31 = vsub.f32 1.0, %v13044_v61  ;;  %v13306_v21 = vadd.f32 %v4152_v9, %v13040_v32  ;;  %v13320_v19 = vpop.permute.xlu0 %5051  ;;  %v14664_v25 = vld [vmem:[#allocation130_spill] sm:$0xff] }
 0x4ae   :  { %5969 = vperm.xlu0 %7416, %v5959_v10   ;;  %v13291_v12 = vadd.f32 %v5959_v10, %v13016_v0  ;;  %v13308_v0 = vpop.eup %8061  ;;  %v6169_v10 = vmul.f32 1.442695, %v6156_v45  ;;  %v14663_v30 = vsub.f32 1.0, %v13073_v59  ;;  %v13314_v4 = vadd.f32 %v4157_v37, %v13080_v62  ;;  %v14665_v59 = vld [vmem:[#allocation141_spill] sm:$0xff] }
 0x4af   :  { %v5961_v16 = vmul.f32 %v14662_v31, %v13285_v54  ;;  %v13318_v56 = vmul.f32 %v13075_v63, %v13106_v23  ;;  %v13322_v61 = vadd.f32 1e-10, %v6037_v33  ;;  %v6036_v32 = vsub.f32 1.0, %v13862_v13  ;;  %v8064_v62 = vpop.eup %8063  ;;  %v14669_v31 = vld [vmem:[#allocation146_spill] sm:$0xff] }
 0x4b0   :  { %v5962_v48 = vmul.f32 %v14663_v30, %v13295_v50  ;;  %v4158_v9 = vmul.f32 %v14666_v46, %v14665_v59  ;;  %v13331_v26 = vadd.f32 1e-10, %v6035_v43  ;;  %v14667_v23 = vsub.f32 1.0, %v13120_v17  ;;  %v8066_v57 = vpop.eup %8065  ;;  %v14668_v43 = vld [vmem:[#allocation54_spill] sm:$0xff] }
 0x4b1   :  { %v13327_v36 = vadd.f32 %v5961_v16, %v14664_v25  ;;  %5979 = vperm.xlu1 %7415, %v5961_v16   ;;  %v13341_v45 = vmul.f32 %v13084_v47, %v13143_v6  ;;  %8075 = vpow2.f32 %v6169_v10  ;;  %v5819_v16 = vmul.f32 %v13089_v11, %v13165_v24  ;;  %v8068_v30 = vpop.eup %8067  ;;  %v14672_v59 = vld [vmem:[#allocation142_spill] sm:$0xff]  ;;  %v14673_v10 = vld [vmem:[#allocation79_spill] sm:$0xff] }
 0x4b2   :  { %v13334_v63 = vadd.f32 %v5962_v48, %v13087_v15  ;;  %5984 = vperm.xlu0 %7416, %v5962_v48   ;;  %v5960_v33 = vmul.f32 %v14667_v23, %v13318_v56  ;;  %v13346_v37 = vadd.f32 %v4158_v9, %v13139_v34  ;;  %v4155_v15 = vmul.f32 %v14669_v31, %v14668_v43  ;;  %v14670_v48 = vld [vmem:[#allocation75_spill] sm:$0xff]  ;;  %v13360_v34 = vpop.eup %8069 }
 0x4b3   :  { %v13352_v17 = vadd.f32 1e-10, %v6038_v44  ;;  %v14671_v47 = vsub.f32 1.0, %v13183_v58  ;;  %v4156_v46 = vmul.f32 %v14673_v10, %v14672_v59  ;;  %v13362_v9 = vadd.f32 1e-10, %v6036_v32  ;;  %v14675_v44 = vld [vmem:[#allocation27_spill] sm:$0xff] }
 0x4b4   :  { %v6024_v25 = vadd.f32 %v5960_v33, %v14670_v48  ;;  %v4163_v23 = vadd.f32 %v4155_v15, %v13161_v14  ;;  %v14674_v11 = vsub.f32 1.0, %v13201_v41  ;;  %v13369_v43 = vmul.f32 %v14675_v44, %v13243_v3  ;;  %v8072_v31 = vpop.eup %8071  ;;  %v13378_v14 = vpop.permute.xlu0 %5041 }
 0x4b5   :  { %v5965_v6 = vmul.f32 %v14671_v47, %v13341_v45  ;;  %5974 = vperm.xlu1 %7415, %v5960_v33   ;;  %v6177_v58 = vsub.f32 1.0, %v13308_v0  ;;  %v6175_v48 = vsub.f32 1.0, %v8064_v62  ;;  %v4164_v32 = vadd.f32 %v4156_v46, %v13187_v2  ;;  %v13376_v33 = vpop.permute.xlu1 %5056  ;;  %v14677_v0 = vld [vmem:[#allocation64_spill] sm:$0xff]  ;;  %v14678_v62 = vld [vmem:[#allocation63_spill] sm:$0xff] }
 0x4b6   :  { %v5963_v24 = vmul.f32 %v14674_v11, %v5819_v16  ;;  %v6178_v41 = vsub.f32 1.0, %v8066_v57  ;;  %v14676_v3 = vsub.f32 1.0, %v13217_v27  ;;  %v4385_v10 = vmul.f32 %v14678_v62, %v14677_v0  ;;  %v14679_v2 = vld [vmem:[#allocation16_spill] sm:$0xff] }
 0x4b7   :  { %v13373_v47 = vadd.f32 %v5965_v6, %v13170_v60  ;;  %5999 = vperm.xlu0 %7416, %v5965_v6   ;;  %v6176_v60 = vsub.f32 1.0, %v8068_v30  ;;  %v5820_v6 = vmul.f32 %v13152_v22, %v13197_v1  ;;  %v14680_v46 = vld [vmem:[#allocation152_spill] sm:$0xff]  ;;  %v6047_v57 = vmul.f32 %v13167_v7, %v13252_v29  ;;  %v8074_v44 = vpop.eup %8073 }
 0x4b8   :  { %v6027_v15 = vadd.f32 %v5963_v24, %v13205_v28  ;;  %v13384_v59 = vmul.f32 %v14676_v3, %v13369_v43  ;;  %v4386_v11 = vmul.f32 %v14680_v46, %v14679_v2  ;;  %v6181_v28 = vsub.f32 1.0, %v13360_v34  ;;  %v14681_v3 = vld [vmem:[#allocation31_spill] sm:$0xff]  ;;  %v14684_v34 = vld [vmem:[#allocation112_spill] sm:$0xff] }
 0x4b9   :  { %v6179_v13 = vsub.f32 1.0, %v8072_v31  ;;  %5989 = vperm.xlu1 %7415, %v5963_v24   ;;  %v4393_v27 = vadd.f32 %v4385_v10, %v13233_v49  ;;  %v4383_v0 = vmul.f32 %v14682_v40, %v14681_v3  ;;  %v14683_v22 = vsub.f32 1.0, %v13254_v38  ;;  %v14685_v24 = vld [vmem:[#allocation76_spill] sm:$0xff]  ;;  %v14686_v40 = vld [vmem:[#allocation154_spill] sm:$0xff]  ;;  %v14687_v10 = vld [vmem:[#allocation153_spill] sm:$0xff] }
 0x4ba   :  { %v4394_v30 = vadd.f32 %v4386_v11, %v13271_v18  ;;  %v6183_v62 = vmul.f32 %v6175_v48, %v6047_v57  ;;  %v6049_v7 = vmul.f32 %v13154_v53, %v13285_v54  ;;  %v4384_v31 = vmul.f32 %v14685_v24, %v14684_v34  ;;  %v14688_v48 = vld [vmem:[#allocation89_spill] sm:$0xff]  ;;  %v13417_v54 = vpop.permute.xlu1 %5046  ;;  %v14694_v34 = vld [vmem:[#allocation86_spill] sm:$0xff] }
 0x4bb   :  { %6004 = vperm.xlu0 %7416, %v13384_v59   ;;  %v5964_v1 = vmul.f32 %v14683_v22, %v5820_v6  ;;  %v4391_v29 = vadd.f32 %v4383_v0, %v13300_v5  ;;  %v6050_v49 = vmul.f32 %v13176_v39, %v13295_v50  ;;  %v4389_v2 = vmul.f32 %v14687_v10, %v14686_v40  ;;  %v13419_v5 = vpop.permute.xlu0 %5076  ;;  %v8076_v11 = vpop.eup %8075 }
 0x4bc   :  { %v13413_v46 = vadd.f32 %v6183_v62, %v13291_v12  ;;  %v6185_v18 = vmul.f32 %v6177_v58, %v6049_v7  ;;  %v6048_v53 = vmul.f32 %v14688_v48, %v13318_v56  ;;  %v6182_v57 = vsub.f32 1.0, %v8074_v44  ;;  %v14689_v58 = vld [vmem:[#allocation35_spill] sm:$0xff]  ;;  %v14690_v56 = vld [vmem:[#allocation56_spill] sm:$0xff]  ;;  %v14698_v48 = vld [vmem:[#allocation113_spill] sm:$0xff] }
 0x4bd   :  { %v6028_v38 = vadd.f32 %v5964_v1, %v13228_v42  ;;  %5994 = vperm.xlu1 %7415, %v5964_v1   ;;  %v4392_v39 = vadd.f32 %v4384_v31, %v13306_v21  ;;  %v6186_v50 = vmul.f32 %v6178_v41, %v6050_v49  ;;  %v4397_v3 = vadd.f32 %v4389_v2, %v13314_v4  ;;  %v14691_v1 = vld [vmem:[#allocation115_spill] sm:$0xff]  ;;  %v14696_v49 = vld [vmem:[#allocation29_spill] sm:$0xff] }
 0x4be   :  { %v13424_v42 = vadd.f32 %v6185_v18, %v13327_v36  ;;  %v6184_v12 = vmul.f32 %v6176_v60, %v6048_v53  ;;  %v4390_v0 = vmul.f32 %v14690_v56, %v14689_v58  ;;  %v6051_v44 = vmul.f32 %v13331_v26, %v5819_v16  ;;  %v14692_v7 = vld [vmem:[#allocation155_spill] sm:$0xff]  ;;  %v14693_v60 = vld [vmem:[#allocation106_spill] sm:$0xff]  ;;  %v13451_v10 = vpop.permute.xlu1 %5071  ;;  %v14702_v56 = vld [vmem:[#allocation157_spill] sm:$0xff] }
 0x4bf   :  { %6193 = vperm.xlu0 %7416, %v6183_v62   ;;  %v13429_v22 = vadd.f32 %v6186_v50, %v13334_v63  ;;  %v4387_v21 = vmul.f32 %v14692_v7, %v14691_v1  ;;  %v6053_v4 = vmul.f32 %v13322_v61, %v13341_v45  ;;  %v6180_v41 = vsub.f32 1.0, %v8076_v11  ;;  %v13453_v2 = vpop.permute.xlu0 %5066  ;;  %v14701_v58 = vld [vmem:[#allocation158_spill] sm:$0xff]  ;;  %v14703_v7 = vld [vmem:[#allocation61_spill] sm:$0xff] }
 0x4c0   :  { %v13436_v62 = vadd.f32 %v6184_v12, %v6024_v25  ;;  %v4398_v36 = vadd.f32 %v4390_v0, %v13346_v37  ;;  %v4388_v24 = vmul.f32 %v14694_v34, %v14693_v60  ;;  %v6474_v63 = vsel %vm6473_vm3, %v13413_v46, 0.0  ;;  %v14695_v37 = vld [vmem:[#allocation28_spill] sm:$0xff]  ;;  %v14707_v34 = vld [vmem:[#allocation22_spill] sm:$0xff] }
 0x4c1   :  { %6203 = vperm.xlu1 %7415, %v6185_v18   ;;  %v6187_v31 = vmul.f32 %v6179_v13, %v6051_v44  ;;  %v4395_v26 = vadd.f32 %v4387_v21, %v4163_v23  ;;  %v13443_v16 = vmul.f32 %v6181_v28, %v6053_v4  ;;  %v6054_v25 = vmul.f32 %v13352_v17, %v13369_v43  ;;  %v14697_v28 = vld [vmem:[#allocation33_spill] sm:$0xff]  ;;  %v14699_v17 = vld [vmem:[#allocation156_spill] sm:$0xff]  ;;  %v14700_v43 = vld [vmem:[#allocation90_spill] sm:$0xff] }
 0x4c2   :  { %v6475_v61 = vsel %vm6473_vm3, %v13436_v62, 0.0  ;;  %v4396_v45 = vadd.f32 %v4388_v24, %v4164_v32  ;;  %v4617_v40 = vmul.f32 %v14696_v49, %v14695_v37  ;;  %v6052_v23 = vmul.f32 %v13362_v9, %v5820_v6  ;;  %v14705_v4 = vld [vmem:[#allocation20_spill] sm:$0xff]  ;;  %v14706_v9 = vld [vmem:[#allocation13_spill] sm:$0xff] }
 0x4c3   :  { %6208 = vperm.xlu0 %7416, %v6186_v50   ;;  %v13455_v18 = vadd.f32 %v6475_v61, %v6474_v63  ;;  %v13457_v13 = vadd.f32 %v6187_v31, %v6027_v15  ;;  %v4618_v53 = vmul.f32 %v14698_v48, %v14697_v28  ;;  %v13462_v32 = vmul.f32 %v6182_v57, %v6054_v25  ;;  %v14704_v15 = vld [vmem:[#allocation11_spill] sm:$0xff]  ;;  %v14710_v61 = vld [vmem:[#allocation45_spill] sm:$0xff] }
 0x4c4   :  { %v4625_v11 = vadd.f32 %v4617_v40, %v4393_v27  ;;  %v4615_v50 = vmul.f32 %v14700_v43, %v14699_v17  ;;  %v4616_v0 = vmul.f32 %v14702_v56, %v14701_v58  ;;  %v6188_v44 = vmul.f32 %v6180_v41, %v6052_v23  ;;  %v14708_v27 = vld [vmem:[#allocation91_spill] sm:$0xff]  ;;  %v14713_v28 = vld [vmem:[#allocation117_spill] sm:$0xff]  ;;  %v5284_v43 = vpop.permute.xlu0 %5283  ;;  %v14717_v58 = vld [vmem:[#allocation14_spill] sm:$0xff] }
 0x4c5   :  { %6198 = vperm.xlu1 %7415, %v6184_v12   ;;  %v4626_v1 = vadd.f32 %v4618_v53, %v4394_v30  ;;  %v4621_v21 = vmul.f32 %v14704_v15, %v14703_v7  ;;  %v4622_v6 = vmul.f32 %v14706_v9, %v14705_v4  ;;  %v4619_v24 = vmul.f32 %v14708_v27, %v14707_v34  ;;  %v14709_v63 = vld [vmem:[#allocation159_spill] sm:$0xff]  ;;  %v14714_v48 = vld [vmem:[#allocation5_spill] sm:$0xff] }
 0x4c6   :  { %v4623_v60 = vadd.f32 %v4615_v50, %v4391_v29  ;;  %v4624_v57 = vadd.f32 %v4616_v0, %v4392_v39  ;;  %v4620_v25 = vmul.f32 %v14710_v61, %v14709_v63  ;;  %v13478_v12 = vsel %vm6473_vm3, %v13424_v42, 0.0  ;;  %v6340_v29 = vld [vmem:[%s13811_s1 + $0x18] sm:$0xff]  ;;  %v14711_v39 = vld [vmem:[#allocation134_spill] sm:$0xff] }
 0x4c7   :  { %6213 = vperm.xlu0 %7416, %v6187_v31   ;;  %v13480_v30 = vadd.f32 %v6188_v44, %v6028_v38  ;;  %v4629_v41 = vadd.f32 %v4621_v21, %v4397_v3  ;;  %v4630_v37 = vadd.f32 %v4622_v6, %v4398_v36  ;;  %v4627_v49 = vadd.f32 %v4619_v24, %v4395_v26  ;;  %v14712_v31 = vld [vmem:[#allocation9_spill] sm:$0xff]  ;;  %v5062_v38 = vpop.permute.xlu1 %5061  ;;  %v14715_v26 = vld [vmem:[#allocation78_spill] sm:$0xff]  ;;  %v14720_v61 = vld [vmem:[#allocation8_spill] sm:$0xff] }
 0x4c8   :  { %v4628_v40 = vadd.f32 %v4620_v25, %v4396_v45  ;;  %v4849_v23 = vmul.f32 %v14712_v31, %v14711_v39  ;;  %v4850_v53 = vmul.f32 %v14714_v48, %v14713_v28  ;;  %v6338_v17 = vld [vmem:[%s13811_s1 + $0x8] sm:$0xff]  ;;  %v6503_v3 = vsel %vm6319_vm2, %v6340_v29, 0.0  ;;  %v6339_v0 = vld [vmem:[%s13811_s1 + $0x10] sm:$0xff]  ;;  %v14721_v31 = vld [vmem:[#allocation60_spill] sm:$0xff] }
 0x4c9   :  { %6223 = vperm.xlu1 %7415, %v13443_v16   ;;  %v6499_v36 = vsel %vm6319_vm2, %v6338_v17, 0.0  ;;  %v4847_v45 = vmul.f32 %v14715_v26, %v13238_v51  ;;  %v14716_v50 = vld [vmem:[#allocation122_spill] sm:$0xff]  ;;  %v14718_v21 = vld [vmem:[#allocation69_spill] sm:$0xff]  ;;  %v6501_v6 = vsel %vm6319_vm2, %v6339_v0, 0.0  ;;  %v4854_v25 = vmul.f32 %v14720_v61, %v13230_v35  ;;  %v14723_v35 = vld [vmem:[#allocation92_spill] sm:$0xff] }
 0x4ca   :  { %v4848_v56 = vmul.f32 %v14717_v58, %v14716_v50  ;;  %v4857_v7 = vadd.f32 %v4849_v23, %v4625_v11  ;;  %v4858_v15 = vadd.f32 %v4850_v53, %v4626_v1  ;;  %v6500_v4 = vadd.f32 %v6499_v36, %v14718_v21  ;;  %v6342_v9 = vld [vmem:[%s13811_s1 + $0x28] sm:$0xff]  ;;  %v13514_v11 = vld [vmem:[%s13811_s1 + $0x20] sm:$0xff] }
 0x4cb   :  { %6228 = vperm.xlu0 %7416, %v13462_v32   ;;  %v6507_v51 = vsel %vm6319_vm2, %v6342_v9, 0.0  ;;  %v4855_v34 = vadd.f32 %v4847_v45, %v4623_v60  ;;  %v14719_v24 = vld [vmem:[#allocation101_spill] sm:$0xff]  ;;  %v6505_v39 = vsel %vm6319_vm2, %v13514_v11, 0.0  ;;  %v4851_v23 = vmul.f32 %v14721_v31, %v13343_v20  ;;  %v13525_v60 = vld [vmem:[%s13811_s1 + $0x30] sm:$0xff]  ;;  %v5274_v58 = vpop.permute.xlu1 %5273 }
 0x4cc   :  { %v4856_v27 = vadd.f32 %v4848_v56, %v4624_v57  ;;  %v4853_v63 = vmul.f32 %v14719_v24, %v13278_v55  ;;  %v6502_v1 = vadd.f32 %v6501_v6, %v6500_v4  ;;  %v14722_v57 = vld [vmem:[#allocation65_spill] sm:$0xff]  ;;  %v6509_v48 = vsel %vm6319_vm2, %v13525_v60, 0.0  ;;  %v14724_v45 = vld [vmem:[#allocation83_spill] sm:$0xff] }
 0x4cd   :  { %6218 = vperm.xlu1 %7415, %v6188_v44   ;;  %v4852_v28 = vmul.f32 %v14722_v57, %v13265_v52  ;;  %v5081_v53 = vmul.f32 %v14723_v35, %v13320_v19  ;;  %v4862_v36 = vadd.f32 %v4854_v25, %v4630_v37  ;;  %v4859_v26 = vadd.f32 %v4851_v23, %v4627_v49  ;;  %v5289_v44 = vpop.permute.xlu0 %5288  ;;  %v14725_v52 = vld [vmem:[#allocation98_spill] sm:$0xff]  ;;  %v14726_v4 = vld [vmem:[#allocation41_spill] sm:$0xff]  ;;  %v14728_v49 = vld [vmem:[#allocation19_spill] sm:$0xff] }
 0x4ce   :  { %v4861_v55 = vadd.f32 %v4853_v63, %v4629_v41  ;;  %v6504_v20 = vadd.f32 %v6503_v3, %v6502_v1  ;;  %v5082_v50 = vmul.f32 %v14724_v45, %v13376_v33  ;;  %v5079_v21 = vmul.f32 %v14725_v52, %v13378_v14  ;;  %v14730_v1 = vld [vmem:[#allocation46_spill] sm:$0xff]  ;;  %v14731_v25 = vld [vmem:[#allocation104_spill] sm:$0xff]  ;;  %v14733_v31 = vld [vmem:[#allocation137_spill] sm:$0xff] }
 0x4cf   :  { %6359 = vrot.lane.b32.xlu0 %v6340_v29, %s8242_s29  ;;  %v4860_v41 = vadd.f32 %v4852_v28, %v4628_v40  ;;  %v5089_v56 = vadd.f32 %v5081_v53, %v4857_v7  ;;  %v5080_v6 = vmul.f32 %v14726_v4, %v13417_v54  ;;  %v14727_v29 = vld [vmem:[#allocation135_spill] sm:$0xff]  ;;  %v5085_v3 = vmul.f32 %v14728_v49, %v13451_v10  ;;  %v14735_v53 = vld [vmem:[#allocation94_spill] sm:$0xff] }
 0x4d0   :  { %v6506_v24 = vadd.f32 %v6505_v39, %v6504_v20  ;;  %v5090_v19 = vadd.f32 %v5082_v50, %v4858_v15  ;;  %v5086_v37 = vmul.f32 %v14727_v29, %v13419_v5  ;;  %v5087_v33 = vadd.f32 %v5079_v21, %v4855_v34  ;;  %v14729_v40 = vld [vmem:[#allocation71_spill] sm:$0xff]  ;;  %v5304_v5 = vpop.permute.xlu1 %5303  ;;  %v14739_v21 = vld [vmem:[#allocation93_spill] sm:$0xff] }
 0x4d1   :  { %6355 = vrot.lane.b32.xlu1 %v6338_v17, %s8242_s29  ;;  %v5088_v63 = vadd.f32 %v5080_v6, %v4856_v27  ;;  %v5084_v7 = vmul.f32 %v14729_v40, %v13453_v2  ;;  %v5083_v14 = vmul.f32 %v14730_v1, %v5062_v38  ;;  %v5093_v15 = vadd.f32 %v5085_v3, %v4861_v55  ;;  %v13553_v10 = vld [vmem:[%s13811_s1 + $0x38] sm:$0xff]  ;;  %v14732_v27 = vld [vmem:[#allocation50_spill] sm:$0xff]  ;;  %v5279_v57 = vpop.permute.xlu0 %5278  ;;  %s8244_s1 = smov 127  }
 0x4d2   :  { %v6508_v54 = vadd.f32 %v6507_v51, %v6506_v24  ;;  %v5094_v61 = vadd.f32 %v5086_v37, %v4862_v36  ;;  %v5313_v39 = vmul.f32 %v14731_v25, %v5284_v43  ;;  %v5311_v2 = vmul.f32 %v14732_v27, %v5274_v58  ;;  %v14734_v51 = vld [vmem:[#allocation52_spill] sm:$0xff]  ;;  %v14741_v6 = vld [vmem:[#allocation107_spill] sm:$0xff] }
 0x4d3   :  { %6363 = vrot.lane.b32.xlu0 %v6342_v9, %s8242_s29  ;;  %v13555_v17 = vadd.f32 %v5084_v7, %v4860_v41  ;;  %v5091_v34 = vadd.f32 %v5083_v14, %v4859_v26  ;;  %v5314_v38 = vmul.f32 %v14733_v31, %v5289_v44  ;;  %v5317_v55 = vmul.f32 %v14734_v51, %v5304_v5  ;;  %v14742_v29 = vld [vmem:[#allocation99_spill] sm:$0xff]  ;;  %v14744_v7 = vld [vmem:[#allocation84_spill] sm:$0xff] }
 0x4d4   :  { %v13559_v23 = vadd.f32 %v6509_v48, %v6508_v54  ;;  %v5321_v9 = vadd.f32 %v5313_v39, %v5089_v56  ;;  %v6030_v43 = vadd.f32 %v13384_v59, %v13268_v8  ;;  %v5319_v28 = vadd.f32 %v5311_v2, %v5087_v33  ;;  %v14736_v48 = vld [vmem:[#allocation38_spill] sm:$0xff]  ;;  %v14738_v56 = vld [vmem:[#allocation7_spill] sm:$0xff] }
 0x4d5   :  { %6357 = vrot.lane.b32.xlu1 %v6339_v0, %s8242_s29  ;;  %v13565_v35 = vadd.f32 %v5314_v38, %v5090_v19  ;;  %v5312_v36 = vmul.f32 %v14735_v53, %v5279_v57  ;;  %v13570_v20 = vadd.f32 %v13443_v16, %v13373_v47  ;;  %v6744_v26 = vmul.f32 -1.442695, %v14736_v48  ;;  %v14737_v16 = vld [vmem:[#allocation118_spill] sm:$0xff]  ;;  %v5294_v44 = vpop.permute.xlu1 %5293  ;;  %v14746_v31 = vld [vmem:[#allocation67_spill] sm:$0xff] }
 0x4d6   :  { %v13575_v45 = vadd.f32 %v5317_v55, %v5093_v15  ;;  %v13578_v8 = vadd.f32 %v13462_v32, %v6030_v43  ;;  %v6478_v59 = vadd.f32 %v13478_v12, %v13455_v18  ;;  %v6479_v0 = vsel %vm6473_vm3, %v13429_v22, 0.0  ;;  %v14740_v18 = vld [vmem:[#allocation58_spill] sm:$0xff]  ;;  %v14745_v15 = vld [vmem:[#allocation105_spill] sm:$0xff] }
 0x4d7   :  { %6367 = vrot.lane.b32.xlu0 %v13553_v10, %s8242_s29  ;;  %v13584_v50 = vadd.f32 %v5312_v36, %v5088_v63  ;;  %v6481_v47 = vsel %vm6473_vm3, %v13457_v13, 0.0  ;;  %v6739_v58 = vmul.f32 -1.442695, %v14737_v16  ;;  %v5172_v52 = vadd.f32 1.0, %v14738_v56 }
 0x4d8   :  { %v6480_v41 = vadd.f32 %v6479_v0, %v6478_v59  ;;  %8077 = vrcp.f32 %v14739_v21  ;;  %v5315_v32 = vmul.f32 %v14740_v18, %v5294_v44  ;;  %v6483_v12 = vsel %vm6473_vm3, %v13480_v30, 0.0  ;;  %v14747_v59 = vld [vmem:[#allocation48_spill] sm:$0xff] }
 0x4d9   :  { %6361 = vrot.lane.b32.xlu1 %v13514_v11, %s8242_s29  ;;  %8079 = vpow2.f32 %v6744_v26  ;;  %v5399_v24 = vadd.f32 1.0, %v14741_v6  ;;  %v6742_v37 = vmul.f32 -1.442695, %v14742_v29  ;;  %v5309_v49 = vpop.permute.xlu0 %5308  ;;  %v14743_v11 = vld [vmem:[#allocation149_spill] sm:$0xff]  ;;  %v6485_v63 = vsel %vm6473_vm3, %v13570_v20, 0.0 }
 0x4da   :  { %v6482_v4 = vadd.f32 %v6481_v47, %v6480_v41  ;;  %v13597_v19 = vadd.f32 %v5315_v32, %v5091_v34  ;;  %8081 = vpow2.f32 %v6739_v58  ;;  %v5318_v33 = vmul.f32 %v14743_v11, %v5309_v49 }
 0x4db   :  { %8083 = vrcp.f32 %v5172_v52  ;;  %v5402_v1 = vadd.f32 1.0, %v14744_v7  ;;  %v6487_v54 = vsel %vm6473_vm3, %v13578_v8, 0.0  ;;  %v6743_v25 = vmul.f32 -1.442695, %v14745_v15  ;;  %v14748_v52 = vld [vmem:[#allocation85_spill] sm:$0xff] }
 0x4dc   :  { %v6484_v3 = vadd.f32 %v6483_v12, %v6482_v4  ;;  %8085 = vrcp.f32 %v5399_v24  ;;  %v13606_v14 = vadd.f32 %v5318_v33, %v5094_v61  ;;  %v6745_v38 = vmul.f32 -1.442695, %v14746_v31 }
 0x4dd   :  { %6365 = vrot.lane.b32.xlu1 %v13525_v60, %s8242_s29  ;;  %8087 = vpow2.f32 %v6742_v37  ;;  %v6746_v0 = vmul.f32 -1.442695, %v14747_v59  ;;  %v6748_v21 = vmul.f32 -1.442695, %v14748_v52  ;;  %s8245_s29 = smov 3  }
 0x4de   :  { %v6486_v40 = vadd.f32 %v6485_v63, %v6484_v3  ;;  %8089 = vrcp.f32 %v5402_v1 }
 0x4df   :  { %8091 = vpow2.f32 %v6743_v25 }
 0x4e0   :  { %v13611_v39 = vadd.f32 %v6487_v54, %v6486_v40  ;;  %8093 = vpow2.f32 %v6745_v38 }
 0x4e1   :  { %v5516_v34 = vpop.permute.xlu1 %5515 }
 0x4e2   :  { %v8078_v60 = vpop.eup %8077 }
 0x4e3   :  { %v8080_v5 = vpop.eup %8079  ;;  %v5545_v27 = vmul.f32 %v8078_v60, %v5516_v34  ;;  %v14751_v60 = vld [vmem:[#allocation144_spill] sm:$0xff] }
 0x4e4   :  { %v8082_v2 = vpop.eup %8081  ;;  %v5405_v61 = vadd.f32 1.0, %v8080_v5  ;;  %v5299_v57 = vpop.permute.xlu0 %5298  ;;  %v6752_v5 = vmul.f32 -1.442695, %v14751_v60  ;;  %v14759_v60 = vld [vmem:[#allocation125_spill] sm:$0xff] }
 0x4e5   :  { %v8084_v51 = vpop.eup %8083  ;;  %v13614_v55 = vadd.f32 %v5545_v27, %v5321_v9  ;;  %v5400_v36 = vadd.f32 1.0, %v8082_v2 }
 0x4e6   :  { %v5316_v43 = vmul.f32 %v8084_v51, %v5299_v57  ;;  %v8086_v53 = vpop.eup %8085  ;;  %v5506_v48 = vpop.permute.xlu1 %5505  ;;  %8095 = vrcp.f32 %v5405_v61  ;;  %v14752_v51 = vld [vmem:[#allocation24_spill] sm:$0xff] }
 0x4e7   :  { %v8088_v26 = vpop.eup %8087  ;;  %v5543_v16 = vmul.f32 %v8086_v53, %v5506_v48  ;;  %8097 = vrcp.f32 %v5400_v36  ;;  %v6750_v61 = vmul.f32 -1.442695, %v14752_v51  ;;  %v14753_v53 = vld [vmem:[#allocation150_spill] sm:$0xff]  ;;  %v14761_v51 = vld [vmem:[#allocation81_spill] sm:$0xff] }
 0x4e8   :  { %v5324_v47 = vadd.f32 %v5316_v43, %v13555_v17  ;;  %v8090_v44 = vpop.eup %8089  ;;  %v5403_v41 = vadd.f32 1.0, %v8088_v26  ;;  %8099 = vpow2.f32 %v6746_v0  ;;  %v14749_v17 = vld [vmem:[#allocation23_spill] sm:$0xff]  ;;  %v6751_v36 = vmul.f32 -1.442695, %v14753_v53 }
 0x4e9   :  { %v13618_v58 = vadd.f32 %v5543_v16, %v5319_v28  ;;  %v8092_v56 = vpop.eup %8091  ;;  %v6749_v4 = vmul.f32 -1.442695, %v14749_v17 }
 0x4ea   :  { %v5521_v9 = vpop.permute.xlu0 %5520  ;;  %8101 = vrcp.f32 %v5403_v41  ;;  %v5404_v12 = vadd.f32 1.0, %v8092_v56  ;;  %v8094_v6 = vpop.eup %8093 }
 0x4eb   :  { %v5546_v18 = vmul.f32 %v8090_v44, %v5521_v9  ;;  %8103 = vpow2.f32 %v6748_v21  ;;  %v5406_v3 = vadd.f32 1.0, %v8094_v6 }
 0x4ec   :  { %8105 = vrcp.f32 %v5404_v12 }
 0x4ed   :  { %v13622_v32 = vadd.f32 %v5546_v18, %v13565_v35  ;;  %8107 = vpow2.f32 %v6749_v4  ;;  %v14750_v35 = vld [vmem:[#allocation109_spill] sm:$0xff]  ;;  %v14755_v4 = vld [vmem:[#allocation88_spill] sm:$0xff] }
 0x4ee   :  { %v6747_v63 = vmul.f32 -1.442695, %v14750_v35  ;;  %8109 = vrcp.f32 %v5406_v3  ;;  %v6754_v6 = vmul.f32 -1.442695, %v14755_v4  ;;  %v14757_v35 = vld [vmem:[#allocation68_spill] sm:$0xff] }
 0x4f0   :  { %v8096_v28 = vpop.eup %8095  ;;  %8111 = vpow2.f32 %v6747_v63 }
 0x4f1   :  { %v8098_v37 = vpop.eup %8097 }
 0x4f2   :  { %v5536_v24 = vpop.permute.xlu1 %5535  ;;  %v8100_v49 = vpop.eup %8099 }
 0x4f3   :  { %v5549_v29 = vmul.f32 %v8096_v28, %v5536_v24  ;;  %v5631_v1 = vadd.f32 1.0, %v8100_v49  ;;  %v14756_v24 = vld [vmem:[#allocation15_spill] sm:$0xff] }
 0x4f4   :  { %v8102_v7 = vpop.eup %8101 }
 0x4f5   :  { %v13626_v11 = vadd.f32 %v5549_v29, %v13575_v45  ;;  %v5511_v33 = vpop.permute.xlu0 %5510  ;;  %v8104_v25 = vpop.eup %8103  ;;  %8113 = vrcp.f32 %v5631_v1 }
 0x4f6   :  { %v5544_v40 = vmul.f32 %v8098_v37, %v5511_v33  ;;  %v8106_v45 = vpop.eup %8105  ;;  %v5633_v2 = vadd.f32 1.0, %v8104_v25  ;;  %8115 = vpow2.f32 %v6752_v5  ;;  %v6760_v5 = vmul.f32 -1.442695, %v14759_v60 }
 0x4f7   :  { %v8108_v38 = vpop.eup %8107 }
 0x4f8   :  { %v13630_v54 = vadd.f32 %v5544_v40, %v13584_v50  ;;  %v5526_v15 = vpop.permute.xlu1 %5525  ;;  %8117 = vrcp.f32 %v5633_v2  ;;  %v5634_v43 = vadd.f32 1.0, %v8108_v38  ;;  %v8110_v48 = vpop.eup %8109  ;;  %v14758_v40 = vld [vmem:[#allocation12_spill] sm:$0xff] }
 0x4f9   :  { %v5547_v34 = vmul.f32 %v8102_v7, %v5526_v15  ;;  %8119 = vpow2.f32 %v6750_v61  ;;  %v6755_v7 = vmul.f32 -1.442695, %v14758_v40  ;;  %v6761_v61 = vmul.f32 -1.442695, %v14761_v51  ;;  %v14767_v40 = vld [vmem:[#allocation77_spill] sm:$0xff] }
 0x4fa   :  { %8121 = vrcp.f32 %v5634_v43 }
 0x4fb   :  { %v13634_v27 = vadd.f32 %v5547_v34, %v13597_v19  ;;  %v5531_v31 = vpop.permute.xlu0 %5530  ;;  %v8112_v19 = vpop.eup %8111  ;;  %8123 = vpow2.f32 %v6751_v36 }
 0x4fc   :  { %v5548_v50 = vmul.f32 %v8106_v45, %v5531_v31  ;;  %v5632_v41 = vadd.f32 1.0, %v8112_v19 }
 0x4fe   :  { %v13637_v57 = vadd.f32 %v5548_v50, %v5324_v47  ;;  %v14754_v47 = vld [vmem:[#allocation111_spill] sm:$0xff]  ;;  %8125 = vrcp.f32 %v5632_v41 }
 0x4ff   :  { %v8114_v0 = vpop.eup %8113  ;;  %v6753_v56 = vmul.f32 -1.442695, %v14754_v47 }
 0x500   :  { %v8116_v44 = vpop.eup %8115 }
 0x501   :  { %v5637_v18 = vadd.f32 1.0, %v8116_v44  ;;  %8127 = vpow2.f32 %v6753_v56 }
 0x502   :  { %v8118_v21 = vpop.eup %8117 }
 0x503   :  { %v8120_v17 = vpop.eup %8119  ;;  %8129 = vrcp.f32 %v5637_v18  ;;  %v14764_v18 = vld [vmem:[#allocation26_spill] sm:$0xff] }
 0x504   :  { %v8122_v37 = vpop.eup %8121  ;;  %v5635_v49 = vadd.f32 1.0, %v8120_v17  ;;  %8131 = vpow2.f32 %v6754_v6  ;;  %v6764_v17 = vmul.f32 -1.442695, %v14764_v18  ;;  %v14765_v6 = vld [vmem:[#allocation44_spill] sm:$0xff] }
 0x505   :  { %v5541_v26 = vpop.permute.xlu1 %5540  ;;  %v8124_v33 = vpop.eup %8123 }
 0x506   :  { %v5550_v59 = vmul.f32 %v8110_v48, %v5541_v26  ;;  %v5636_v15 = vadd.f32 1.0, %v8124_v33  ;;  %v14762_v48 = vld [vmem:[#allocation116_spill] sm:$0xff] }
 0x507   :  { %v5738_v9 = vpop.permute.xlu0 %5737  ;;  %v6759_v26 = vmul.f32 -1.442695, %v14762_v48 }
 0x508   :  { %v13641_v16 = vadd.f32 %v5550_v59, %v13606_v14  ;;  %v5775_v52 = vmul.f32 %v8114_v0, %v5738_v9  ;;  %v6756_v14 = vmul.f32 -1.442695, %v14756_v24  ;;  %v8126_v45 = vpop.eup %8125  ;;  %v14763_v59 = vld [vmem:[#allocation123_spill] sm:$0xff] }
 0x509   :  { %v6762_v0 = vmul.f32 -1.442695, %v14763_v59 }
 0x50a   :  { %v13645_v12 = vadd.f32 %v5775_v52, %v13618_v58  ;;  %v5748_v28 = vpop.permute.xlu1 %5747  ;;  %v6757_v58 = vmul.f32 -1.442695, %v14757_v35  ;;  %8133 = vpow2.f32 %v6756_v14 }
 0x50b   :  { %v5777_v29 = vmul.f32 %v8118_v21, %v5748_v28  ;;  %8135 = vrcp.f32 %v5635_v49  ;;  %v8128_v31 = vpop.eup %8127  ;;  %v6765_v28 = vmul.f32 -1.442695, %v14765_v6 }
 0x50c   :  { %8137 = vpow2.f32 %v6757_v58  ;;  %v5638_v53 = vadd.f32 1.0, %v8128_v31  ;;  %v14766_v58 = vld [vmem:[#allocation138_spill] sm:$0xff] }
 0x50d   :  { %v13650_v3 = vadd.f32 %v5777_v29, %v13614_v55  ;;  %8139 = vpow2.f32 %v6755_v7  ;;  %v14760_v55 = vld [vmem:[#allocation42_spill] sm:$0xff]  ;;  %v8130_v50 = vpop.eup %8129  ;;  %v6766_v7 = vmul.f32 -1.442695, %v14767_v40 }
 0x50e   :  { %v6758_v34 = vmul.f32 -1.442695, %v14760_v55  ;;  %8141 = vrcp.f32 %v5636_v15 }
 0x50f   :  { %v5753_v63 = vpop.permute.xlu0 %5752  ;;  %8143 = vpow2.f32 %v6760_v5  ;;  %v14768_v5 = vld [vmem:[#allocation32_spill] sm:$0xff] }
 0x510   :  { %v5778_v1 = vmul.f32 %v8122_v37, %v5753_v63  ;;  %8145 = vpow2.f32 %v6758_v34  ;;  %v6763_v63 = vmul.f32 -1.442695, %v14766_v58  ;;  %v6768_v55 = vmul.f32 -1.442695, %v14768_v5 }
 0x511   :  { %8147 = vpow2.f32 %v6761_v61 }
 0x512   :  { %v13655_v25 = vadd.f32 %v5778_v1, %v13622_v32  ;;  %v8132_v32 = vpop.eup %8131  ;;  %8149 = vrcp.f32 %v5638_v53 }
 0x513   :  { %v5863_v9 = vadd.f32 1.0, %v8132_v32  ;;  %8151 = vpow2.f32 %v6759_v26  ;;  %v14770_v32 = vld [vmem:[#allocation108_spill] sm:$0xff] }
 0x514   :  { %v8134_v36 = vpop.eup %8133  ;;  %8153 = vpow2.f32 %v6762_v0  ;;  %v6767_v53 = vmul.f32 -1.442695, %v14770_v32 }
 0x515   :  { %v8136_v41 = vpop.eup %8135  ;;  %v5865_v56 = vadd.f32 1.0, %v8134_v36  ;;  %8155 = vrcp.f32 %v5863_v9 }
 0x516   :  { %v5743_v2 = vpop.permute.xlu1 %5742  ;;  %v8138_v47 = vpop.eup %8137 }
 0x517   :  { %v5776_v38 = vmul.f32 %v8126_v45, %v5743_v2  ;;  %v8140_v21 = vpop.eup %8139  ;;  %v5866_v14 = vadd.f32 1.0, %v8138_v47  ;;  %8157 = vrcp.f32 %v5865_v56  ;;  %v14769_v45 = vld [vmem:[#allocation70_spill] sm:$0xff] }
 0x518   :  { %v8142_v24 = vpop.eup %8141  ;;  %8159 = vpow2.f32 %v6764_v17  ;;  %v6769_v2 = vmul.f32 -1.442695, %v14769_v45 }
 0x519   :  { %v13661_v43 = vadd.f32 %v5776_v38, %v13630_v54  ;;  %v8144_v49 = vpop.eup %8143  ;;  %8161 = vpow2.f32 %v6765_v28 }
 0x51a   :  { %v8146_v35 = vpop.eup %8145  ;;  %8163 = vrcp.f32 %v5866_v14  ;;  %v5869_v15 = vadd.f32 1.0, %v8144_v49 }
 0x51b   :  { %v8148_v60 = vpop.eup %8147 }
 0x51c   :  { %v5768_v19 = vpop.permute.xlu0 %5767  ;;  %v8150_v34 = vpop.eup %8149  ;;  %v5870_v51 = vadd.f32 1.0, %v8148_v60 }
 0x51d   :  { %v5781_v44 = vmul.f32 %v8130_v50, %v5768_v19  ;;  %v8152_v38 = vpop.eup %8151 }
 0x51e   :  { %v8154_v50 = vpop.eup %8153  ;;  %v5868_v19 = vadd.f32 1.0, %v8152_v38 }
 0x51f   :  { %v13666_v52 = vadd.f32 %v5781_v44, %v13626_v11  ;;  %v5758_v54 = vpop.permute.xlu1 %5757  ;;  %v5864_v11 = vadd.f32 1.0, %v8140_v21  ;;  %v6087_v44 = vadd.f32 1.0, %v8154_v50 }
 0x520   :  { %v5779_v4 = vmul.f32 %v8136_v41, %v5758_v54 }
 0x521   :  { %v5763_v37 = vpop.permute.xlu0 %5762  ;;  %8165 = vrcp.f32 %v5864_v11 }
 0x522   :  { %v13671_v29 = vadd.f32 %v5779_v4, %v13634_v27  ;;  %v5780_v33 = vmul.f32 %v8142_v24, %v5763_v37  ;;  %v5867_v27 = vadd.f32 1.0, %v8146_v35  ;;  %8167 = vpow2.f32 %v6763_v63 }
 0x523   :  { %8169 = vpow2.f32 %v6766_v7 }
 0x524   :  { %v13676_v1 = vadd.f32 %v5780_v33, %v13637_v57  ;;  %8171 = vrcp.f32 %v5869_v15  ;;  %v8156_v57 = vpop.eup %8155 }
 0x525   :  { %8173 = vrcp.f32 %v5867_v27  ;;  %v8158_v26 = vpop.eup %8157 }
 0x526   :  { %8175 = vpow2.f32 %v6768_v55  ;;  %v8160_v0 = vpop.eup %8159 }
 0x527   :  { %8177 = vpow2.f32 %v6769_v2  ;;  %v8162_v41 = vpop.eup %8161  ;;  %v6089_v17 = vadd.f32 1.0, %v8160_v0 }
 0x528   :  { %v5773_v31 = vpop.permute.xlu1 %5772  ;;  %8179 = vrcp.f32 %v5870_v51  ;;  %v8164_v56 = vpop.eup %8163  ;;  %v6090_v6 = vadd.f32 1.0, %v8162_v41 }
 0x529   :  { %v5782_v61 = vmul.f32 %v8150_v34, %v5773_v31  ;;  %8181 = vpow2.f32 %v6767_v53 }
 0x52a   :  { %8183 = vrcp.f32 %v5868_v19 }
 0x52b   :  { %v5790_v36 = vadd.f32 %v5782_v61, %v13641_v16  ;;  %v8166_v18 = vpop.eup %8165  ;;  %8185 = vrcp.f32 %v6087_v44 }
 0x52c   :  { %v8168_v4 = vpop.eup %8167  ;;  %8187 = vrcp.f32 %v6089_v17 }
 0x52d   :  { %v5970_v48 = vpop.permute.xlu0 %5969  ;;  %v8170_v24 = vpop.eup %8169  ;;  %v6088_v35 = vadd.f32 1.0, %v8168_v4  ;;  %8189 = vrcp.f32 %v6090_v6 }
 0x52e   :  { %v6007_v59 = vmul.f32 %v8156_v57, %v5970_v48  ;;  %v8172_v49 = vpop.eup %8171  ;;  %v6091_v40 = vadd.f32 1.0, %v8170_v24 }
 0x52f   :  { %v8174_v33 = vpop.eup %8173  ;;  %8191 = vrcp.f32 %v6088_v35 }
 0x530   :  { %v6015_v9 = vadd.f32 %v6007_v59, %v13645_v12  ;;  %v5980_v47 = vpop.permute.xlu1 %5979  ;;  %v8176_v63 = vpop.eup %8175  ;;  %8193 = vrcp.f32 %v6091_v40 }
 0x531   :  { %v6009_v54 = vmul.f32 %v8158_v26, %v5980_v47  ;;  %v5985_v21 = vpop.permute.xlu0 %5984  ;;  %v8178_v15 = vpop.eup %8177  ;;  %v6093_v55 = vadd.f32 1.0, %v8176_v63 }
 0x532   :  { %v6010_v16 = vmul.f32 %v8164_v56, %v5985_v21  ;;  %v8180_v27 = vpop.eup %8179  ;;  %v6094_v2 = vadd.f32 1.0, %v8178_v15 }
 0x533   :  { %v6017_v28 = vadd.f32 %v6009_v54, %v13650_v3  ;;  %v8182_v45 = vpop.eup %8181  ;;  %8195 = vrcp.f32 %v6093_v55 }
 0x534   :  { %v6018_v14 = vadd.f32 %v6010_v16, %v13655_v25  ;;  %v5975_v37 = vpop.permute.xlu1 %5974  ;;  %v8184_v38 = vpop.eup %8183  ;;  %8197 = vrcp.f32 %v6094_v2 }
 0x535   :  { %v6008_v12 = vmul.f32 %v8166_v18, %v5975_v37  ;;  %v8186_v50 = vpop.eup %8185  ;;  %v14771_v37 = vld [vmem:[#allocation6_spill] sm:$0xff] }
 0x536   :  { %v6000_v11 = vpop.permute.xlu0 %5999  ;;  %v8188_v48 = vpop.eup %8187 }
 0x537   :  { %v6013_v58 = vmul.f32 %v8172_v49, %v6000_v11  ;;  %v6016_v7 = vadd.f32 %v6008_v12, %v13661_v43  ;;  %v8190_v59 = vpop.eup %8189 }
 0x538   :  { %v5990_v3 = vpop.permute.xlu1 %5989 }
 0x539   :  { %v6021_v60 = vadd.f32 %v6013_v58, %v13666_v52  ;;  %v6011_v5 = vmul.f32 %v8174_v33, %v5990_v3  ;;  %v6092_v52 = vadd.f32 1.0, %v8182_v45 }
 0x53a   :  { %v6005_v25 = vpop.permute.xlu0 %6004 }
 0x53b   :  { %v6014_v34 = vmul.f32 %v8180_v27, %v6005_v25  ;;  %v6019_v31 = vadd.f32 %v6011_v5, %v13671_v29  ;;  %8199 = vrcp.f32 %v6092_v52 }
 0x53c   :  { %v5995_v61 = vpop.permute.xlu1 %5994 }
 0x53d   :  { %v6022_v51 = vadd.f32 %v6014_v34, %v5790_v36  ;;  %v6012_v43 = vmul.f32 %v8184_v38, %v5995_v61  ;;  %v8192_v36 = vpop.eup %8191 }
 0x53e   :  { %v6194_v57 = vpop.permute.xlu0 %6193  ;;  %v8194_v54 = vpop.eup %8193 }
 0x53f   :  { %v6231_v32 = vmul.f32 %v8186_v50, %v6194_v57  ;;  %v6020_v53 = vadd.f32 %v6012_v43, %v13676_v1  ;;  %v8196_v16 = vpop.eup %8195  ;;  %v6511_v50 = vsel %vm6319_vm2, %v13553_v10, 0.0 }
 0x540   :  { %v6204_v19 = vpop.permute.xlu1 %6203  ;;  %v8198_v6 = vpop.eup %8197  ;;  %v6512_v52 = vadd.f32 %v6511_v50, %v13559_v23 }
 0x541   :  { %v6239_v26 = vadd.f32 %v6231_v32, %v6015_v9  ;;  %v6233_v0 = vmul.f32 %v8188_v48, %v6204_v19 }
 0x542   :  { %v6209_v44 = vpop.permute.xlu0 %6208 }
 0x543   :  { %v6234_v29 = vmul.f32 %v8190_v59, %v6209_v44  ;;  %v6241_v41 = vadd.f32 %v6233_v0, %v6017_v28  ;;  %v6377_v49 = vsub.f32 %v6239_v26, %v14771_v37 }
 0x544   :  { %v6199_v56 = vpop.permute.xlu1 %6198 }
 0x545   :  { %v6242_v47 = vadd.f32 %v6234_v29, %v6018_v14  ;;  %v6232_v21 = vmul.f32 %v8192_v36, %v6199_v56  ;;  %6267 = vrot.lane.b32.xlu1 %v6241_v41, %s8244_s1  ;;  %v8200_v11 = vpop.eup %8199  ;;  %v6385_v63 = vmul.f32 %v6377_v49, %v6377_v49 }
 0x546   :  { %v6214_v18 = vpop.permute.xlu0 %6213 }
 0x547   :  { %v6235_v17 = vmul.f32 %v8194_v54, %v6214_v18  ;;  %v6240_v1 = vadd.f32 %v6232_v21, %v6016_v7 }
 0x548   :  { %v6224_v9 = vpop.permute.xlu1 %6223 }
 0x549   :  { %v6243_v4 = vadd.f32 %v6235_v17, %v6019_v31  ;;  %v6237_v24 = vmul.f32 %v8196_v16, %v6224_v9  ;;  %6263 = vrot.lane.b32.xlu1 %v6239_v26, %s8244_s1  ;;  %6265 = vrot.lane.b32.xlu0 %v6240_v1, %s8244_s1 }
 0x54a   :  { %v6229_v28 = vpop.permute.xlu0 %6228 }
 0x54b   :  { %v6238_v14 = vmul.f32 %v8198_v6, %v6229_v28  ;;  %v6245_v12 = vadd.f32 %v6237_v24, %v6021_v60 }
 0x54c   :  { %v6219_v33 = vpop.permute.xlu1 %6218 }
 0x54d   :  { %v6246_v35 = vadd.f32 %v6238_v14, %v6022_v51  ;;  %v6236_v58 = vmul.f32 %v8200_v11, %v6219_v33  ;;  %6269 = vrot.lane.b32.xlu1 %v6242_v47, %s8244_s1 }
 0x54e   :  { %v6360_v15 = vpop.permute.xlu0 %6359 }
 0x54f   :  { %v6244_v40 = vadd.f32 %v6236_v58, %v6020_v53  ;;  %v6380_v5 = vsub.f32 %v6242_v47, %v6360_v15 }
 0x550   :  { %v6356_v7 = vpop.permute.xlu1 %6355 }
 0x551   :  { %6401 = vrot.lane.b32.xlu1 %v6385_v63, %s8244_s1  ;;  %v6388_v60 = vmul.f32 %v6380_v5, %v6380_v5  ;;  %v6378_v34 = vsub.f32 %v6240_v1, %v6356_v7 }
 0x552   :  { %v6364_v38 = vpop.permute.xlu0 %6363 }
 0x553   :  { %v6386_v2 = vmul.f32 %v6378_v34, %v6378_v34  ;;  %v6382_v43 = vsub.f32 %v6244_v40, %v6364_v38 }
 0x554   :  { %v6358_v3 = vpop.permute.xlu1 %6357 }
 0x555   :  { %v6379_v27 = vsub.f32 %v6241_v41, %v6358_v3  ;;  %6275 = vrot.lane.b32.xlu1 %v6245_v12, %s8244_s1  ;;  %v6390_v53 = vmul.f32 %v6382_v43, %v6382_v43 }
 0x556   :  { %v6368_v32 = vpop.permute.xlu0 %6367 }
 0x557   :  { %v6387_v25 = vmul.f32 %v6379_v27, %v6379_v27  ;;  %v6384_v48 = vsub.f32 %v6246_v35, %v6368_v32 }
 0x558   :  { %v6362_v55 = vpop.permute.xlu1 %6361 }
 0x559   :  { %6271 = vrot.lane.b32.xlu1 %v6243_v4, %s8244_s1  ;;  %6405 = vrot.lane.b32.xlu0 %v6387_v25, %s8244_s1  ;;  %v6381_v51 = vsub.f32 %v6243_v4, %v6362_v55  ;;  %v6392_v26 = vmul.f32 %v6384_v48, %v6384_v48 }
 0x55b   :  { %v6389_v57 = vmul.f32 %v6381_v51, %v6381_v51 }
 0x55c   :  { %v6366_v45 = vpop.permute.xlu1 %6365 }
 0x55d   :  { %6273 = vrot.lane.b32.xlu1 %v6244_v40, %s8244_s1  ;;  %6407 = vrot.lane.b32.xlu0 %v6388_v60, %s8244_s1  ;;  %v6383_v31 = vsub.f32 %v6245_v12, %v6366_v45 }
 0x55f   :  { %v6391_v61 = vmul.f32 %v6383_v31, %v6383_v31 }
 0x561   :  { %6277 = vrot.lane.b32.xlu1 %v6246_v35, %s8244_s1  ;;  %6403 = vrot.lane.b32.xlu0 %v6386_v2, %s8244_s1 }
 0x565   :  { %6413 = vrot.lane.b32.xlu0 %v6391_v61, %s8244_s1 }
 0x569   :  { %6409 = vrot.lane.b32.xlu0 %v6389_v57, %s8244_s1 }
 0x56d   :  { %6411 = vrot.lane.b32.xlu0 %v6390_v53, %s8244_s1 }
 0x571   :  { %6415 = vrot.lane.b32.xlu0 %v6392_v26, %s8244_s1 }
 0x5b7   :  { %v13709_v19 = vpop.permute.xlu1 %6267 }
 0x5b8   :  { %v6452_v47 = vsel %vm6319_vm2, %v13709_v19, 0.0 }
 0x5bb   :  { %v13711_v59 = vpop.permute.xlu1 %6263  ;;  %v13713_v10 = vpop.permute.xlu0 %6265 }
 0x5bc   :  { %v6450_v23 = vsel %vm6319_vm2, %v13713_v10, 0.0  ;;  %v6449_v44 = vsel %vm6319_vm2, %v13711_v59, 0.0 }
 0x5bd   :  { %v6451_v41 = vadd.f32 %v6450_v23, %v6449_v44 }
 0x5bf   :  { %v13715_v0 = vpop.permute.xlu1 %6269  ;;  %v6453_v56 = vadd.f32 %v6452_v47, %v6451_v41 }
 0x5c0   :  { %v6454_v54 = vsel %vm6319_vm2, %v13715_v0, 0.0 }
 0x5c1   :  { %v6455_v1 = vadd.f32 %v6454_v54, %v6453_v56 }
 0x5c3   :  { %v6402_v29 = vpop.permute.xlu1 %6401 }
 0x5c4   :  { %v6425_v12 = vsel %vm6319_vm2, %v6402_v29, 0.0 }
 0x5c7   :  { %v13721_v36 = vpop.permute.xlu1 %6275 }
 0x5c8   :  { %v6460_v28 = vsel %vm6319_vm2, %v13721_v36, 0.0 }
 0x5cb   :  { %v6406_v21 = vpop.permute.xlu0 %6405  ;;  %v13727_v18 = vpop.permute.xlu1 %6271 }
 0x5cc   :  { %v6456_v17 = vsel %vm6319_vm2, %v13727_v18, 0.0  ;;  %v6428_v40 = vsel %vm6319_vm2, %v6406_v21, 0.0 }
 0x5cd   :  { %v6457_v16 = vadd.f32 %v6456_v17, %v6455_v1 }
 0x5cf   :  { %v6408_v9 = vpop.permute.xlu0 %6407  ;;  %v6274_v4 = vpop.permute.xlu1 %6273 }
 0x5d0   :  { %v6458_v6 = vsel %vm6319_vm2, %v6274_v4, 0.0  ;;  %v6430_v3 = vsel %vm6319_vm2, %v6408_v9, 0.0 }
 0x5d1   :  { %v6459_v24 = vadd.f32 %v6458_v6, %v6457_v16 }
 0x5d3   :  { %v6404_v14 = vpop.permute.xlu0 %6403  ;;  %v6461_v37 = vadd.f32 %v6460_v28, %v6459_v24  ;;  %v6278_v49 = vpop.permute.xlu1 %6277 }
 0x5d4   :  { %v6426_v11 = vsel %vm6319_vm2, %v6404_v14, 0.0  ;;  %v6462_v33 = vsel %vm6319_vm2, %v6278_v49, 0.0 }
 0x5d5   :  { %v6427_v35 = vadd.f32 %v6426_v11, %v6425_v12  ;;  %v6463_v58 = vadd.f32 %v6462_v33, %v6461_v37 }
 0x5d7   :  { %v6414_v63 = vpop.permute.xlu0 %6413  ;;  %6464 = vadd.xlane.f32.xlu0 %v6463_v58  ;;  %v6429_v7 = vadd.f32 %v6428_v40, %v6427_v35  ;;  %v6522_v35 = vlaneseq }
 0x5d8   :  { %v6436_v45 = vsel %vm6319_vm2, %v6414_v63, 0.0 }
 0x5d9   :  { %v6431_v5 = vadd.f32 %v6430_v3, %v6429_v7  ;;  %v6523_v58 = vand.u32 127, %v6522_v35 }
 0x5db   :  { %v6410_v15 = vpop.permute.xlu0 %6409  ;;  %6489 = vadd.xlane.f32.xlu0 %v13611_v39  ;;  %vm6524_vm5 = vcmp.eq.s32.totalorder %v6523_v58, 0  ;;  %vm6527_vm6 = vcmp.eq.s32.totalorder %v6523_v58, 1  ;;  %vm6531_vm7 = vcmp.eq.s32.totalorder %v6523_v58, 2  ;;  %vm6535_vm8 = vcmp.eq.s32.totalorder %v6523_v58, 3 }
 0x5dc   :  { %v6432_v27 = vsel %vm6319_vm2, %v6410_v15, 0.0 }
 0x5dd   :  { %v6433_v25 = vadd.f32 %v6432_v27, %v6431_v5 }
 0x5df   :  { %v6412_v55 = vpop.permute.xlu0 %6411 }
 0x5e0   :  { %v6434_v60 = vsel %vm6319_vm2, %v6412_v55, 0.0 }
 0x5e1   :  { %v6435_v34 = vadd.f32 %v6434_v60, %v6433_v25 }
 0x5e3   :  { %v6416_v2 = vpop.permute.xlu0 %6415  ;;  %v6437_v31 = vadd.f32 %v6436_v45, %v6435_v34 }
 0x5e4   :  { %v6438_v38 = vsel %vm6319_vm2, %v6416_v2, 0.0 }
 0x5e5   :  { %v6439_v51 = vadd.f32 %v6438_v38, %v6437_v31 }
 0x5e7   :  { %6440 = vadd.xlane.f32.xlu1 %v6439_v51 }
 0x5eb   :  { %6513 = vadd.xlane.f32.xlu1 %v6512_v52 }
 0x5f1   :  { %6295 = vrot.lane.b32.xlu0 %v13413_v46, %s8245_s29 }
 0x5f5   :  { %6301 = vrot.lane.b32.xlu0 %v13429_v22, %s8245_s29 }
 0x5f9   :  { %6305 = vrot.lane.b32.xlu0 %v13480_v30, %s8245_s29 }
 0x5fc   :  { %6297 = vrot.lane.b32.xlu1 %v13436_v62, %s8245_s29 }
 0x5fd   :  { %6309 = vrot.lane.b32.xlu0 %v13578_v8, %s8245_s29 }
 0x600   :  { %6299 = vrot.lane.b32.xlu1 %v13424_v42, %s8245_s29 }
 0x604   :  { %6303 = vrot.lane.b32.xlu1 %v13457_v13, %s8245_s29 }
 0x608   :  { %6307 = vrot.lane.b32.xlu1 %v13570_v20, %s8245_s29 }
 0x664   :  { %v6465_v39 = vpop.xlane.xlu0 %6464 }
 0x665   :  { %v6466_v50 = vrot.slane %v6465_v39, 4 }
 0x667   :  { %v6467_v62 = vadd.f32 %v6466_v50, %v6465_v39 }
 0x668   :  { %v6490_v61 = vpop.xlane.xlu0 %6489 }
 0x669   :  { %v6491_v46 = vrot.slane %v6490_v61, 4  ;;  %v6468_v20 = vrot.slane %v6467_v62, 2 }
 0x66b   :  { %v6492_v30 = vadd.f32 %v6491_v46, %v6490_v61 }
 0x66c   :  { %v6296_v43 = vpop.permute.xlu0 %6295 }
 0x66d   :  { %v6320_v22 = vsel %vm6319_vm2, %v13711_v59, %v6296_v43  ;;  %v6493_v52 = vrot.slane %v6492_v30, 2 }
 0x66e   :  { %6329 = vst.msk [vmem:[%s13818_s8] sm:$0xff] %vm6328_vm4, %v6320_v22 }
 0x66f   :  { %v6494_v41 = vadd.f32 %v6493_v52, %v6492_v30 }
 0x670   :  { %v6302_v42 = vpop.permute.xlu0 %6301 }
 0x671   :  { %v6323_v13 = vsel %vm6319_vm2, %v13715_v0, %v6302_v42  ;;  %v6469_v0 = vadd.f32 %v6468_v20, %v6467_v62  ;;  %v6495_v9 = vrot.slane %v6494_v41, 1 }
 0x672   :  { %6332 = vst.msk [vmem:[%s13818_s8 + $0x18] sm:$0xff] %vm6328_vm4, %v6323_v13 }
 0x673   :  { %v6470_v21 = vrot.slane %v6469_v0, 1  ;;  %v6496_v37 = vadd.f32 %v6495_v9, %v6494_v41 }
 0x674   :  { %v6441_v8 = vpop.xlane.xlu1 %6440  ;;  %v6306_v57 = vpop.permute.xlu0 %6305 }
 0x675   :  { %v6442_v32 = vrot.slane %v6441_v8, 4  ;;  %v6325_v53 = vsel %vm6319_vm2, %v6274_v4, %v6306_v57  ;;  %v6471_v28 = vadd.f32 %v6470_v21, %v6469_v0 }
 0x676   :  { %6334 = vst.msk [vmem:[%s13818_s8 + $0x28] sm:$0xff] %vm6328_vm4, %v6325_v53 }
 0x677   :  { %v6443_v48 = vadd.f32 %v6442_v32, %v6441_v8 }
 0x678   :  { %v6514_v26 = vpop.xlane.xlu1 %6513  ;;  %v6310_v59 = vpop.permute.xlu0 %6309 }
 0x679   :  { %v6444_v23 = vrot.slane %v6443_v48, 2  ;;  %v6515_v44 = vrot.slane %v6514_v26, 4  ;;  %v6327_v29 = vsel %vm6319_vm2, %v6278_v49, %v6310_v59 }
 0x67a   :  { %6336 = vst.msk [vmem:[%s13818_s8 + $0x38] sm:$0xff] %vm6328_vm4, %v6327_v29 }
 0x67b   :  { %v6516_v47 = vadd.f32 %v6515_v44, %v6514_v26  ;;  %v6445_v56 = vadd.f32 %v6444_v23, %v6443_v48 }
 0x67c   :  { %v6298_v54 = vpop.permute.xlu1 %6297 }
 0x67d   :  { %v6517_v17 = vrot.slane %v6516_v47, 2  ;;  %v6321_v1 = vsel %vm6319_vm2, %v13713_v10, %v6298_v54  ;;  %v6446_v16 = vrot.slane %v6445_v56, 1 }
 0x67e   :  { %6330 = vst.msk [vmem:[%s13818_s8 + $0x8] sm:$0xff] %vm6328_vm4, %v6321_v1 }
 0x67f   :  { %v6447_v4 = vadd.f32 %v6446_v16, %v6445_v56  ;;  %v6518_v6 = vadd.f32 %v6517_v17, %v6516_v47 }
 0x680   :  { %v6300_v24 = vpop.permute.xlu1 %6299 }
 0x681   :  { %v6322_v14 = vsel %vm6319_vm2, %v13709_v19, %v6300_v24  ;;  %7401 = vpush %v6447_v4  ;;  %v6519_v49 = vrot.slane %v6518_v6, 1 }
 0x682   :  { %6331 = vst.msk [vmem:[%s13818_s8 + $0x10] sm:$0xff] %vm6328_vm4, %v6322_v14 }
 0x683   :  { %7403 = vpush %v6471_v28  ;;  %v6520_v10 = vadd.f32 %v6519_v49, %v6518_v6 }
 0x684   :  { %7405 = vpush %v6496_v37  ;;  %v6304_v12 = vpop.permute.xlu1 %6303 }
 0x685   :  { %v6324_v11 = vsel %vm6319_vm2, %v13727_v18, %v6304_v12  ;;  %7407 = vpush %v6520_v10 }
 0x686   :  { %6333 = vst.msk [vmem:[%s13818_s8 + $0x20] sm:$0xff] %vm6328_vm4, %v6324_v11 }
 0x688   :  { %v6308_v19 = vpop.permute.xlu1 %6307 }
 0x689   :  { %v6326_v33 = vsel %vm6319_vm2, %v13721_v36, %v6308_v19 }
 0x68a   :  { %6335 = vst.msk [vmem:[%s13818_s8 + $0x30] sm:$0xff] %vm6328_vm4, %v6326_v33  ;;  %s6549_s8 = sshll.u32 %s8246_s25, 4  ;;  %s6550_s8 = int_to_ptr.vmem [resolvable:$true] %s6549_s8 }
 0x68b   :  { %s8217_s26 = scalar_lea.vmem %s6550_s8, 16  ;;  %s8221_s27 = scalar_lea.vmem %s6550_s8, 32 }
 0x68c   :  { %p8218_p0 = scmp.ne.s32.totalorder %s6550_s8, %s8217_s26  ;;  %p8222_p1 = scmp.lt.s32.totalorder %s6550_s8, %s6550_s8 }
 0x68d   :  { %p8223_p2 = scmp.lt.s32.totalorder %s8221_s27, %s8217_s26 }
 0x68f   :  { %p8224_p3 = por %p8223_p2, %p8222_p1 }
 0x691   :  { %p8225_p4 = pnand %p8224_p3, %p8218_p0 }
 0x6b2   :  { %s7402_s21 = spop %7401 }
 0x6b3   :  { %v6525_v18 = vstv %s7402_s21 }
 0x6b4   :  { %s7404_s22 = spop %7403  ;;  %v6526_v63 = vsel %vm6524_vm5, %v6525_v18, 0.0 }
 0x6b5   :  { %v6528_v40 = vstv %s7404_s22  ;;  %s7406_s23 = spop %7405 }
 0x6b6   :  { %v6529_v7 = vsel %vm6527_vm6, %v6528_v40, 0.0  ;;  %v6532_v15 = vstv %s7406_s23  ;;  %s7408_s24 = spop %7407 }
 0x6b7   :  { %v6530_v36 = vadd.f32 %v6529_v7, %v6526_v63  ;;  %v6533_v3 = vsel %vm6531_vm7, %v6532_v15, 0.0  ;;  %v6536_v27 = vstv %s7408_s24 }
 0x6b8   :  { %v6537_v25 = vsel %vm6535_vm8, %v6536_v27, 0.0 }
 0x6b9   :  { %v6534_v5 = vadd.f32 %v6533_v3, %v6530_v36 }
 0x6bb   :  { %v6538_v55 = vadd.f32 %v6537_v25, %v6534_v5 }
 0x6bd   :  { %6540 = vst.msk [vmem:[#allocation2] sm:$0x1] %vm6539_vm9, %v6538_v55 }
 0x6be   :  { %8228 = shalt.err (!%p8225_p4)
}
 0x6bf   :  { %s8229_s28 = scalar_lea.hbm %s13819_s9, 16 }
 0x6c0   :  { %p8230_p5 = scmp.ne.s32.totalorder %s13819_s9, %s8229_s28  ;;  %p8233_p6 = scmp.lt.u32.totalorder %s8229_s28, %s13819_s9 }
 0x6c2   :  { %p8235_p7 = pnand %p8233_p6, %p8230_p5 }
 0x6c4   :  { %8238 = shalt.err (!%p8235_p7)
}
 0x6c5   :  { %6552 = dma.vmem_to_hbm [thread:$0]  %s6550_s8, 16, %s13819_s9, [#allocation3]  }
 0x6c6   :  { %8239 = dma.done.wait [#allocation3], 16  }
 0x6c7   :  { %8240 = vsyncadd [#allocation3], 4294967280 }
 0x6c8   :  { %6558 = vsyncpa [#allocation3], 1 }

</bundles_post_ra>
